<compile_context>
chip_gen: v7x
topology: tpu7x:2x2x1
jax: 0.10.0
libtpu: 0.0.40
codegen_flags: <defaults>
</compile_context>

<pallas_src>
from functools import partial

import jax
import jax.numpy as jnp
from jax.experimental import pallas as pl
from jax.experimental.pallas import tpu as pltpu


def conv_layer_kernel(atom_tile_ref, atom_full_ref, nbr_flat_ref, idx_ref,
                      w_self_ref, w_nb_ref, b_ref, bn2s_ref, bn2b_ref,
                      out_ref, *, atom_fea_len, max_nbr, gather_chunk):
    A = atom_fea_len
    M = max_nbr
    TN = atom_tile_ref.shape[0]
    R = TN * M
    Nfull = atom_full_ref.shape[0]

    atom_self = atom_tile_ref[...]                        # (TN, A)
    nbr_flat = nbr_flat_ref[...]                          # (R, Bp)
    idx_flat = idx_ref[...]                               # (R, 1) int32

    # ---- gather neighbor atom features: atom_in_fea[nbr_fea_idx] -----------
    # One-hot matmul against the VMEM-resident atom table, chunked over the
    # table so the live one-hot intermediate stays bounded.  The lane iota is
    # built once (2D, lane-dense); per chunk we only shift the (R, 1) index
    # column and compare, so the gather is essentially the one-hot MXU GEMM.
    # TODO(synk): for N beyond a few thousand atoms switch to a DMA row gather.
    n_chunks = Nfull // gather_chunk
    iota2d = jax.lax.broadcasted_iota(jnp.int32, (R, gather_chunk), 1)
    atom_nbr = None
    for c in range(n_chunks):                             # static unroll
        base = c * gather_chunk
        tbl = atom_full_ref[pl.ds(base, gather_chunk), :]            # (C, A)
        onehot = ((idx_flat - base) == iota2d).astype(jnp.float32)   # (R, C)
        part = jnp.dot(onehot, tbl, preferred_element_type=jnp.float32)
        atom_nbr = part if atom_nbr is None else atom_nbr + part     # (R, A)

    # ---- fc_full with bn1 + bias already folded into the weights -----------
    # gated = [self | nbr | bond] @ W_folded + b_folded  (split-weight form).
    # Bond features are zero-padded to a 128-lane multiple, so the concat is
    # vreg-aligned and K = A + Bp fills the MXU.
    g_self = jnp.dot(atom_self, w_self_ref[...],
                     preferred_element_type=jnp.float32) + b_ref[...]  # (TN, 2A)
    feat = jnp.concatenate([atom_nbr, nbr_flat], axis=-1)              # (R, A+Bp)
    g_pair = jnp.dot(feat, w_nb_ref[...],
                     preferred_element_type=jnp.float32)               # (R, 2A)

    # ---- gate / core kept 2D (lane/sublane dense) ---------------------------
    # Row-broadcast g_self to (R, 2A) once; do the sigmoid/softplus/multiply on
    # dense 2D views instead of an M=12 -> 16 sublane-padded 3D layout.
    g_self_rep = jnp.broadcast_to(
        g_self[:, None, :], (TN, M, 2 * A)).reshape(R, 2 * A)
    gated = g_pair + g_self_rep                           # (R, 2A)
    nbr_filter = jax.nn.sigmoid(gated[:, :A])             # (R, A)
    nbr_core = jax.nn.softplus(gated[:, A:])              # (R, A)
    prod = nbr_filter * nbr_core                          # (R, A)

    # Only the small (R, A) product goes 3D, for the neighbor-axis reduction.
    nbr_sumed = jnp.sum(prod.reshape(TN, M, A), axis=1)   # (TN, A)

    # ---- bn2 (folded eval-mode affine) + residual + softplus ----------------
    nbr_sumed = nbr_sumed * bn2s_ref[...] + bn2b_ref[...]
    out_ref[...] = jax.nn.softplus(atom_self + nbr_sumed)


def _round_up(x, m):
    return ((x + m - 1) // m) * m


def _estimate_vmem_bytes(N, A, Bp, M, tile_n, gather_chunk):
    """Working-set estimate so the scoped-VMEM limit tracks the real need."""
    f32 = 4
    R = tile_n * M
    per_tile_io = (tile_n * A            # atom tile
                   + R * Bp              # bond features
                   + R * 128             # neighbor indices (lane-padded)
                   + tile_n * A)         # output tile
    invariant = (N * A                                   # atom table
                 + A * 2 * A + (A + Bp) * 2 * A          # folded weights
                 + 6 * A)                                # bias + bn2 scale/shift
    live = (R * gather_chunk             # one-hot
            + R * A                      # gathered neighbor features
            + R * (A + Bp)               # concat GEMM operand
            + 3 * R * 2 * A              # g_pair / g_self broadcast / gated
            + 3 * R * A)                 # filter / core / product
    est = (2 * per_tile_io + 2 * invariant + live) * f32
    # At least the 32 MiB scoped default; stay well under v7x's 64 MiB VMEM.
    return int(min(48 * 1024 * 1024, max(32 * 1024 * 1024, 1.5 * est)))


def conv_layer_forward(atom_in_fea, nbr_fea, nbr_fea_idx, params, *,
                       tile_n=128, gather_chunk=256):
    N, A = atom_in_fea.shape
    _, M, B = nbr_fea.shape
    w, b, bn1s, bn1b, bn2s, bn2b = params

    # The one-hot gather keeps the whole atom table VMEM resident; fail loudly
    # for large graphs instead of spilling at compile/run time.
    # TODO(synk): DMA row-gather fallback for tables that do not fit in VMEM.
    if N * A * 4 > 20 * 1024 * 1024:
        raise ValueError("atom table too large for the VMEM-resident one-hot "
                         "gather path; a DMA row gather is required")

    # Tile selection: big tiles feed the MXU, but keep >= 4 grid steps when
    # possible so on v7x each of the 2 TensorCores still pipelines >= 2 steps.
    tile_n = min(tile_n, N)
    while (N // tile_n) < 4 and tile_n % 2 == 0 and tile_n // 2 >= 64 \
            and N % (tile_n // 2) == 0:
        tile_n //= 2
    assert N % tile_n == 0, "N must be divisible by tile_n"
    assert tile_n % 8 == 0, "tile_n must be a multiple of 8"

    # Fold eval-mode bn1 affine (and the fc bias) into the linear layer:
    #   bn1(x @ W + b) = x @ (W * s) + (b * s + t)      (one-time host fold)
    w_folded = (w * bn1s).astype(jnp.float32)            # (2A+B, 2A)
    b_folded = (b * bn1s + bn1b).astype(jnp.float32)     # (1, 2A)
    w_self = w_folded[:A, :]                             # (A, 2A)
    w_nbr = w_folded[A:2 * A, :]                         # (A, 2A)
    w_bond = w_folded[2 * A:, :]                         # (B, 2A)

    # Zero-pad the bond-feature dim to a lane-aligned width: the in-kernel
    # concat becomes vreg-aligned and K = A + Bp fills the MXU.  Zero rows in
    # the weight keep the math exact.
    Bp = _round_up(B, 128)
    nbr_flat = nbr_fea.reshape(N * M, B)
    if Bp != B:
        nbr_flat = jnp.pad(nbr_flat, ((0, 0), (0, Bp - B)))
        w_bond = jnp.pad(w_bond, ((0, Bp - B), (0, 0)))
    w_nb = jnp.concatenate([w_nbr, w_bond], axis=0)      # (A+Bp, 2A)

    # Neighbor indices pre-flattened to (N*M, 1): consumed directly against a
    # 2D lane iota in the kernel (no in-kernel 3D iota or index reshape).
    idx_flat = nbr_fea_idx.reshape(N * M, 1).astype(jnp.int32)

    # Chunk size for the in-kernel gather over the atom table (bounded so the
    # live one-hot stays small — matters most on v7x's 64 MiB VMEM).
    if N <= gather_chunk or N % gather_chunk != 0:
        gather_chunk = N

    vmem_limit = _estimate_vmem_bytes(N, A, Bp, M, tile_n, gather_chunk)

    kernel = partial(conv_layer_kernel, atom_fea_len=A, max_nbr=M,
                     gather_chunk=gather_chunk)
    out = pl.pallas_call(
        kernel,
        out_shape=jax.ShapeDtypeStruct((N, A), jnp.float32),
        grid=(N // tile_n,),
        in_specs=[
            pl.BlockSpec((tile_n, A), lambda i: (i, 0)),         # atom tile
            # Grid-invariant operands (constant index_map).
            # TODO(synk): single-buffer these (pipeline_mode=pl.Buffered(1))
            # once validated; negligible at demo N.
            pl.BlockSpec((N, A), lambda i: (0, 0)),              # full atom table
            pl.BlockSpec((tile_n * M, Bp), lambda i: (i, 0)),    # bond feats (flat, padded)
            pl.BlockSpec((tile_n * M, 1), lambda i: (i, 0)),     # neighbor idx (flat)
            pl.BlockSpec((A, 2 * A), lambda i: (0, 0)),          # W_self (bn1-folded)
            pl.BlockSpec((A + Bp, 2 * A), lambda i: (0, 0)),     # W_[nbr|bond] (padded)
            pl.BlockSpec((1, 2 * A), lambda i: (0, 0)),          # folded bias
            pl.BlockSpec((1, A), lambda i: (0, 0)),              # bn2 scale
            pl.BlockSpec((1, A), lambda i: (0, 0)),              # bn2 shift
        ],
        out_specs=pl.BlockSpec((tile_n, A), lambda i: (i, 0)),
        compiler_params=pltpu.CompilerParams(
            dimension_semantics=("parallel",),    # independent tiles -> 2 TCs on v7x
            vmem_limit_bytes=vmem_limit),
    )(atom_in_fea, atom_in_fea, nbr_flat, idx_flat,
      w_self, w_nb, b_folded, bn2s, bn2b)
    return out


def ref_forward(atom, nbr, idx, params):
    """Pure-JAX reference of the PyTorch forward (eval-mode BN, unfolded)."""
    w, b, bn1s, bn1b, bn2s, bn2b = params
    N, A = atom.shape
    M = idx.shape[1]
    atom_nbr = atom[idx]                                                  # (N,M,A)
    total = jnp.concatenate(
        [jnp.broadcast_to(atom[:, None, :], (N, M, A)), atom_nbr, nbr], axis=2)
    gated = jnp.einsum('nmf,fo->nmo', total, w,
                       precision=jax.lax.Precision.HIGHEST) + b[0]
    gated = gated * bn1s[0] + bn1b[0]
    filt = jax.nn.sigmoid(gated[..., :A])
    core = jax.nn.softplus(gated[..., A:])
    summed = jnp.sum(filt * core, axis=1)
    summed = summed * bn2s[0] + bn2b[0]
    return jax.nn.softplus(atom + summed)


if __name__ == "__main__":
    # Small but MXU-friendly shapes: N atoms, M neighbors each,
    # atom_fea_len A (=128 keeps output stores lane-dense), nbr_fea_len B.
    N, M, A, B = 256, 12, 128, 64
    eps = 1e-5

    key = jax.random.PRNGKey(0)
    ks = jax.random.split(key, 12)

    # nn.Linear(2A+B, 2A) init (PyTorch default uniform bound), stored (in, out).
    fan_in = 2 * A + B
    bound = 1.0 / jnp.sqrt(jnp.float32(fan_in))
    w = jax.random.uniform(ks[0], (2 * A + B, 2 * A), jnp.float32, -bound, bound)
    b = jax.random.uniform(ks[1], (1, 2 * A), jnp.float32, -bound, bound)

    # BatchNorm1d params (deterministic synthetic), folded into scale/shift.
    gamma1 = jax.random.uniform(ks[2], (2 * A,), jnp.float32, 0.5, 1.5)
    beta1 = 0.1 * jax.random.normal(ks[3], (2 * A,), jnp.float32)
    mean1 = 0.1 * jax.random.normal(ks[4], (2 * A,), jnp.float32)
    var1 = jax.random.uniform(ks[5], (2 * A,), jnp.float32, 0.5, 1.5)
    bn1s = (gamma1 / jnp.sqrt(var1 + eps)).reshape(1, 2 * A)
    bn1b = (beta1 - mean1 * gamma1 / jnp.sqrt(var1 + eps)).reshape(1, 2 * A)

    gamma2 = jax.random.uniform(ks[6], (A,), jnp.float32, 0.5, 1.5)
    beta2 = 0.1 * jax.random.normal(ks[7], (A,), jnp.float32)
    mean2 = 0.1 * jax.random.normal(ks[8], (A,), jnp.float32)
    var2 = jax.random.uniform(ks[9], (A,), jnp.float32, 0.5, 1.5)
    bn2s = (gamma2 / jnp.sqrt(var2 + eps)).reshape(1, A)
    bn2b = (beta2 - mean2 * gamma2 / jnp.sqrt(var2 + eps)).reshape(1, A)

    params = (w, b, bn1s, bn1b, bn2s, bn2b)

    # Inputs.
    atom_in_fea = jax.random.normal(ks[10], (N, A), jnp.float32)
    kf, ki = jax.random.split(ks[11])
    nbr_fea = jax.random.normal(kf, (N, M, B), jnp.float32)
    nbr_fea_idx = jax.random.randint(ki, (N, M), 0, N, dtype=jnp.int32)

    out = conv_layer_forward(atom_in_fea, nbr_fea, nbr_fea_idx, params)
    out = jax.block_until_ready(out)

    ref = ref_forward(atom_in_fea, nbr_fea, nbr_fea_idx, params)
    if not jnp.allclose(out, ref, rtol=1e-3, atol=1e-3):
        err = float(jnp.max(jnp.abs(out - ref)))
        raise AssertionError(
            f"Pallas kernel output does not match reference (max abs err {err})")

    print("KERNEL_OK")
</pallas_src>

<mosaic_0001>
module attributes {stable_mosaic.version = 11 : i64} {
  func.func @conv_layer_kernel(%arg0: i32, %arg1: memref<64x128xf32, #tpu.memory_space<vmem>>, %arg2: memref<256x128xf32, #tpu.memory_space<vmem>>, %arg3: memref<768x128xf32, #tpu.memory_space<vmem>>, %arg4: memref<768x1xi32, #tpu.memory_space<vmem>>, %arg5: memref<128x256xf32, #tpu.memory_space<vmem>>, %arg6: memref<256x256xf32, #tpu.memory_space<vmem>>, %arg7: memref<1x256xf32, #tpu.memory_space<vmem>>, %arg8: memref<1x128xf32, #tpu.memory_space<vmem>>, %arg9: memref<1x128xf32, #tpu.memory_space<vmem>>, %arg10: memref<64x128xf32, #tpu.memory_space<vmem>>) attributes {dimension_semantics = [#tpu.dimension_semantics<parallel>], iteration_bounds = array<i64: 4>, scalar_prefetch = 0 : i64, scratch_operands = 0 : i64, tpu.core_type = #tpu.core_type<tc>, window_params = [{transform_indices = @transform_0, window_bounds = array<i64: 64, 128>}, {pipeline_mode = #tpu.pipeline_mode<synchronous>, transform_indices = @transform_1, window_bounds = array<i64: 256, 128>}, {transform_indices = @transform_2, window_bounds = array<i64: 768, 128>}, {transform_indices = @transform_3, window_bounds = array<i64: 768, 1>}, {pipeline_mode = #tpu.pipeline_mode<synchronous>, transform_indices = @transform_4, window_bounds = array<i64: 128, 256>}, {pipeline_mode = #tpu.pipeline_mode<synchronous>, transform_indices = @transform_5, window_bounds = array<i64: 256, 256>}, {pipeline_mode = #tpu.pipeline_mode<synchronous>, transform_indices = @transform_6, window_bounds = array<i64: 1, 256>}, {pipeline_mode = #tpu.pipeline_mode<synchronous>, transform_indices = @transform_7, window_bounds = array<i64: 1, 128>}, {pipeline_mode = #tpu.pipeline_mode<synchronous>, transform_indices = @transform_8, window_bounds = array<i64: 1, 128>}, {transform_indices = @transform_9, window_bounds = array<i64: 64, 128>}]} {
    %c0 = arith.constant 0 : index
    %c0_0 = arith.constant 0 : index
    %0 = vector.load %arg1[%c0, %c0_0] : memref<64x128xf32, #tpu.memory_space<vmem>>, vector<64x128xf32>
    %c0_1 = arith.constant 0 : index
    %c0_2 = arith.constant 0 : index
    %1 = vector.load %arg3[%c0_1, %c0_2] : memref<768x128xf32, #tpu.memory_space<vmem>>, vector<768x128xf32>
    %c0_3 = arith.constant 0 : index
    %c0_4 = arith.constant 0 : index
    %2 = vector.load %arg4[%c0_3, %c0_4] : memref<768x1xi32, #tpu.memory_space<vmem>>, vector<768x1xi32>
    %3 = tpu.iota {dimensions = array<i32: 1>} : vector<768x256xi32>
    %c0_5 = arith.constant 0 : index
    %c0_6 = arith.constant 0 : index
    %4 = vector.load %arg2[%c0_5, %c0_6] : memref<256x128xf32, #tpu.memory_space<vmem>>, vector<256x128xf32>
    %c0_i32 = arith.constant 0 : i32
    %5 = vector.broadcast %c0_i32 : i32 to vector<768x1xi32>
    %6 = arith.subi %2, %5 : vector<768x1xi32>
    %7 = vector.broadcast %6 : vector<768x1xi32> to vector<768x256xi32>
    %8 = arith.cmpi eq, %7, %3 : vector<768x256xi32>
    %9 = arith.extui %8 : vector<768x256xi1> to vector<768x256xi32>
    %10 = arith.sitofp %9 : vector<768x256xi32> to vector<768x256xf32>
    %cst = arith.constant dense<0.000000e+00> : vector<768x128xf32>
    %11 = tpu.matmul %10, %4, %cst {dimension_numbers = #tpu.dot_dimension_numbers<[1], [0], [0], [1], [0, 0, 1, 1], [], []>} : vector<768x256xf32>, vector<256x128xf32>, vector<768x128xf32> -> vector<768x128xf32>
    %c0_7 = arith.constant 0 : index
    %c0_8 = arith.constant 0 : index
    %12 = vector.load %arg5[%c0_7, %c0_8] : memref<128x256xf32, #tpu.memory_space<vmem>>, vector<128x256xf32>
    %cst_9 = arith.constant dense<0.000000e+00> : vector<64x256xf32>
    %13 = tpu.matmul %0, %12, %cst_9 {dimension_numbers = #tpu.dot_dimension_numbers<[1], [0], [0], [1], [0, 0, 1, 1], [], []>} : vector<64x128xf32>, vector<128x256xf32>, vector<64x256xf32> -> vector<64x256xf32>
    %c0_10 = arith.constant 0 : index
    %c0_11 = arith.constant 0 : index
    %14 = vector.load %arg7[%c0_10, %c0_11] : memref<1x256xf32, #tpu.memory_space<vmem>>, vector<1x256xf32>
    %15 = vector.broadcast %14 : vector<1x256xf32> to vector<64x256xf32>
    %16 = arith.addf %13, %15 : vector<64x256xf32>
    %17 = tpu.concatenate %11, %1 in 1 : vector<768x128xf32>, vector<768x128xf32> -> vector<768x256xf32>
    %c0_12 = arith.constant 0 : index
    %c0_13 = arith.constant 0 : index
    %18 = vector.load %arg6[%c0_12, %c0_13] : memref<256x256xf32, #tpu.memory_space<vmem>>, vector<256x256xf32>
    %cst_14 = arith.constant dense<0.000000e+00> : vector<768x256xf32>
    %19 = tpu.matmul %17, %18, %cst_14 {dimension_numbers = #tpu.dot_dimension_numbers<[1], [0], [0], [1], [0, 0, 1, 1], [], []>} : vector<768x256xf32>, vector<256x256xf32>, vector<768x256xf32> -> vector<768x256xf32>
    %20 = vector.shape_cast %16 : vector<64x256xf32> to vector<64x1x256xf32>
    %21 = vector.shape_cast %20 : vector<64x1x256xf32> to vector<64x1x256xf32>
    %22 = vector.broadcast %21 : vector<64x1x256xf32> to vector<64x12x256xf32>
    %23 = vector.shape_cast %22 : vector<64x12x256xf32> to vector<768x256xf32>
    %24 = arith.addf %19, %23 : vector<768x256xf32>
    %25 = vector.extract_strided_slice %24 {offsets = [0, 0], sizes = [768, 128], strides = [1, 1]} : vector<768x256xf32> to vector<768x128xf32>
    %26 = arith.negf %25 : vector<768x128xf32>
    %27 = math.exp %26 : vector<768x128xf32>
    %cst_15 = arith.constant 1.000000e+00 : f32
    %28 = vector.broadcast %cst_15 : f32 to vector<768x128xf32>
    %29 = arith.addf %28, %27 : vector<768x128xf32>
    %30 = arith.divf %28, %29 : vector<768x128xf32>
    %31 = vector.extract_strided_slice %24 {offsets = [0, 128], sizes = [768, 128], strides = [1, 1]} : vector<768x256xf32> to vector<768x128xf32>
    %cst_16 = arith.constant 0.000000e+00 : f32
    %32 = vector.broadcast %cst_16 : f32 to vector<768x128xf32>
    %33 = arith.maximumf %31, %32 : vector<768x128xf32>
    %34 = vector.broadcast %cst_16 : f32 to vector<768x128xf32>
    %35 = arith.subf %31, %34 : vector<768x128xf32>
    %36 = arith.cmpf one, %35, %35 : vector<768x128xf32>
    %37 = vector.broadcast %cst_16 : f32 to vector<768x128xf32>
    %38 = arith.addf %31, %37 : vector<768x128xf32>
    %39 = math.absf %35 : vector<768x128xf32>
    %cst_17 = arith.constant 0.000000e+00 : f32
    %40 = vector.broadcast %cst_17 : f32 to vector<768x128xf32>
    %41 = arith.subf %40, %39 : vector<768x128xf32>
    %42 = math.exp %41 : vector<768x128xf32>
    %43 = math.log1p %42 : vector<768x128xf32>
    %44 = arith.addf %33, %43 : vector<768x128xf32>
    %45 = arith.select %36, %38, %44 : vector<768x128xi1>, vector<768x128xf32>
    %46 = arith.mulf %30, %45 : vector<768x128xf32>
    %47 = vector.shape_cast %46 : vector<768x128xf32> to vector<64x12x128xf32>
    %cst_18 = arith.constant dense<0.000000e+00> : vector<64x128xf32>
    %48 = vector.multi_reduction <add>, %47, %cst_18 [1] : vector<64x12x128xf32> to vector<64x128xf32>
    %c0_19 = arith.constant 0 : index
    %c0_20 = arith.constant 0 : index
    %49 = vector.load %arg8[%c0_19, %c0_20] : memref<1x128xf32, #tpu.memory_space<vmem>>, vector<1x128xf32>
    %50 = vector.broadcast %49 : vector<1x128xf32> to vector<64x128xf32>
    %51 = arith.mulf %48, %50 : vector<64x128xf32>
    %c0_21 = arith.constant 0 : index
    %c0_22 = arith.constant 0 : index
    %52 = vector.load %arg9[%c0_21, %c0_22] : memref<1x128xf32, #tpu.memory_space<vmem>>, vector<1x128xf32>
    %53 = vector.broadcast %52 : vector<1x128xf32> to vector<64x128xf32>
    %54 = arith.addf %51, %53 : vector<64x128xf32>
    %55 = arith.addf %0, %54 : vector<64x128xf32>
    %cst_23 = arith.constant 0.000000e+00 : f32
    %56 = vector.broadcast %cst_23 : f32 to vector<64x128xf32>
    %57 = arith.maximumf %55, %56 : vector<64x128xf32>
    %58 = vector.broadcast %cst_23 : f32 to vector<64x128xf32>
    %59 = arith.subf %55, %58 : vector<64x128xf32>
    %60 = arith.cmpf one, %59, %59 : vector<64x128xf32>
    %61 = vector.broadcast %cst_23 : f32 to vector<64x128xf32>
    %62 = arith.addf %55, %61 : vector<64x128xf32>
    %63 = math.absf %59 : vector<64x128xf32>
    %cst_24 = arith.constant 0.000000e+00 : f32
    %64 = vector.broadcast %cst_24 : f32 to vector<64x128xf32>
    %65 = arith.subf %64, %63 : vector<64x128xf32>
    %66 = math.exp %65 : vector<64x128xf32>
    %67 = math.log1p %66 : vector<64x128xf32>
    %68 = arith.addf %57, %67 : vector<64x128xf32>
    %69 = arith.select %60, %62, %68 : vector<64x128xi1>, vector<64x128xf32>
    %c0_25 = arith.constant 0 : index
    %c0_26 = arith.constant 0 : index
    %70 = vector.load %arg10[%c0_25, %c0_26] : memref<64x128xf32, #tpu.memory_space<vmem>>, vector<64x128xf32>
    tpu.vector_store %arg10[%c0_25, %c0_26], %69 {strides = array<i32>} : memref<64x128xf32, #tpu.memory_space<vmem>>, vector<64x128xf32>,
    return
  }
  func.func @transform_0(%arg0: i32) -> (i32, i32) {
    %c0_i32 = arith.constant 0 : i32
    %c0_i32_0 = arith.constant 0 : i32
    return %arg0, %c0_i32 : i32, i32
  }
  func.func @transform_1(%arg0: i32) -> (i32, i32) {
    %c0_i32 = arith.constant 0 : i32
    %c0_i32_0 = arith.constant 0 : i32
    %c0_i32_1 = arith.constant 0 : i32
    return %c0_i32, %c0_i32_0 : i32, i32
  }
  func.func @transform_2(%arg0: i32) -> (i32, i32) {
    %c0_i32 = arith.constant 0 : i32
    %c0_i32_0 = arith.constant 0 : i32
    return %arg0, %c0_i32 : i32, i32
  }
  func.func @transform_3(%arg0: i32) -> (i32, i32) {
    %c0_i32 = arith.constant 0 : i32
    %c0_i32_0 = arith.constant 0 : i32
    return %arg0, %c0_i32 : i32, i32
  }
  func.func @transform_4(%arg0: i32) -> (i32, i32) {
    %c0_i32 = arith.constant 0 : i32
    %c0_i32_0 = arith.constant 0 : i32
    %c0_i32_1 = arith.constant 0 : i32
    return %c0_i32, %c0_i32_0 : i32, i32
  }
  func.func @transform_5(%arg0: i32) -> (i32, i32) {
    %c0_i32 = arith.constant 0 : i32
    %c0_i32_0 = arith.constant 0 : i32
    %c0_i32_1 = arith.constant 0 : i32
    return %c0_i32, %c0_i32_0 : i32, i32
  }
  func.func @transform_6(%arg0: i32) -> (i32, i32) {
    %c0_i32 = arith.constant 0 : i32
    %c0_i32_0 = arith.constant 0 : i32
    %c0_i32_1 = arith.constant 0 : i32
    return %c0_i32, %c0_i32_0 : i32, i32
  }
  func.func @transform_7(%arg0: i32) -> (i32, i32) {
    %c0_i32 = arith.constant 0 : i32
    %c0_i32_0 = arith.constant 0 : i32
    %c0_i32_1 = arith.constant 0 : i32
    return %c0_i32, %c0_i32_0 : i32, i32
  }
  func.func @transform_8(%arg0: i32) -> (i32, i32) {
    %c0_i32 = arith.constant 0 : i32
    %c0_i32_0 = arith.constant 0 : i32
    %c0_i32_1 = arith.constant 0 : i32
    return %c0_i32, %c0_i32_0 : i32, i32
  }
  func.func @transform_9(%arg0: i32) -> (i32, i32) {
    %c0_i32 = arith.constant 0 : i32
    %c0_i32_0 = arith.constant 0 : i32
    return %arg0, %c0_i32 : i32, i32
  }
}

</mosaic_0001>

<bundles_post_ra>
// kernel: tpu_custom_call.1
= control target key start
LH: loop header
LB: loop body
LE: loop exit
PB: predicated region body
PF: predicated region fallthrough
CT: control target
= control target key end

     0   :  { %s15326_s0 = inlined_call_operand.hbm [shape: f32[256,128], index: 0, kind: input, shape index: {}]   ;;  %s15327_s1 = inlined_call_operand.hbm [shape: f32[256,128], index: 1, kind: input, shape index: {}]   ;;  %s15328_s2 = inlined_call_operand.vmem [shape: f32[3072,128], index: 2, kind: input, shape index: {}]   ;;  %s15329_s3 = inlined_call_operand.vmem [shape: s32[3072,1], index: 3, kind: input, shape index: {}]   ;;  %s15330_s4 = inlined_call_operand.hbm [shape: f32[128,256], index: 4, kind: input, shape index: {}]   ;;  %s15331_s5 = inlined_call_operand.hbm [shape: f32[256,256], index: 5, kind: input, shape index: {}]   ;;  %s15332_s6 = inlined_call_operand.vmem [shape: f32[1,256], index: 6, kind: input, shape index: {}]   ;;  %s15333_s7 = inlined_call_operand.vmem [shape: f32[1,128], index: 7, kind: input, shape index: {}]   ;;  %s15334_s8 = inlined_call_operand.vmem [shape: f32[1,128], index: 8, kind: input, shape index: {}]   ;;  %s15335_s9 = inlined_call_operand.hbm [shape: f32[256,128], index: 9, kind: output, shape index: {}]  }
   0x1   :  { %15425 = sst [smem:[#allocation94_spill]] %s15327_s1 }
   0x2   :  { %15426 = sst [smem:[#allocation95_spill]] %s15335_s9 }
   0x3   :  { %14 = vsyncpa [#allocation3], 0 }
   0x4   :  { %16 = vsyncpa [#allocation3 + $0x1], 0 }
   0x5   :  { %17 = vsyncpa [#allocation6], 0 }
   0x6   :  { %18 = vsyncpa [#allocation9], 0 }
   0x7   :  { %19 = vsyncpa [#allocation4], 0 }
   0x8   :  { %21 = vsyncpa [#allocation4 + $0x1], 0  ;;  %s10263_s30 = smov 0   ;;  %s10265_s10 = smov 0  }
   0x9   :  { %s10267_s11 = smov 0   ;;  %s10269_s12 = smov 0  }
   0xa LB: > { %15427 = sst [smem:[#allocation15_spill]] %s10183_s30  ;;  %s10284_s13 = sadd.s32 4294967295, %s10195_s12   ;;  %s10195_s12 = sphi %s10269_s12, %s15762_s12   ;;  %s10191_s11 = sphi %s10267_s11, %s15761_s11   ;;  %s10187_s10 = sphi %s10265_s10, %s15760_s10   ;;  %s10183_s30 = sphi %s10263_s30, %s15759_s30  }
   0xb   : > { %s8285_s14 = sadd.s32 4294967294, %s10195_s12   ;;  %p47_p0 = scmp.ne.s32.totalorder %s10187_s10, %s10183_s30 }
   0xc   : > { %p15336_p1 = scmp.eq.s32.totalorder %s10284_s13, 0  ;;  %p255_p3 = scmp.eq.s32.totalorder %s8285_s14, 3 }
   0xd   : > { %p8286_p5 = scmp.ge.s32.totalorder %s10195_s12, 1  ;;  %p262_p7 = scmp.lt.s32.totalorder %s10195_s12, 5 }
   0xe   : > { %p10293_p4 = por %p15336_p1, %p47_p0  ;;  %p10298_p6 = por %p255_p3, %p47_p0 }
   0xf   : > { %p10303_p8 = pnand %p8286_p5, %p262_p7  ;;  %s10197_s18 = smov [#allocation5]  }
  0x10   : > { %s15428_s15 = scalar_select %p10293_p4, 1, 0 }
  0x11   : > { %s15429_s16 = scalar_select %p10298_p6, 1, 0 }
  0x12   : > { %s15431_s17 = scalar_select %p10303_p8, 1, 0 }
  0x13   : > { %15430 = sst [smem:[#allocation16_spill]] %s15429_s16  ;;  %s274_s19 = sshll.u32 %s10197_s18, 4  ;;  %s275_s19 = int_to_ptr.vmem [resolvable:$true] %s274_s19 }
  0x14   : > { %p9111_p9 = pneg %p10303_p8  ;;  %s10198_s21 = smov [#allocation7]  }
  0x15   : > { %s287_s22 = sshll.u32 %s10198_s21, 4  ;;  %s15433_s1 = sld [smem:[#allocation94_spill]]  ;;  %s10315_s22 = int_to_ptr.vmem [resolvable:$true] %s287_s22 }
  0x16   : > { %p10311_p10 = pnand %p9111_p9, %p15336_p1 }
  0x18   : > { %p10325_p12 = pneg %p10311_p10 }
  0x1b   : > { %s10007_s25 = scalar_lea.hbm %s15433_s1, 4096 }
  0x1c   : > { %p10008_p11 = scmp.ne.s32.totalorder %s15433_s1, %s10007_s25  ;;  %p10014_p3 = scmp.lt.u32.totalorder %s10007_s25, %s15433_s1 }
  0x1e   : > { %p10010_p13 = pnand %p10325_p12, %p10008_p11 }
  0x20   : > { %p10011_p0 = pneg %p10010_p13 }
  0x22   : > { %p10016_p5 = pnand %p10014_p3, %p10011_p0 }
  0x24   : > { %10019 = shalt.err (!%p10016_p5)
}
  0x25   : > { %s10020_s18 = scalar_lea.vmem %s275_s19, 4096  ;;  %p10028_p2 = scmp.lt.s32.totalorder %s275_s19, %s275_s19 }
  0x26   : > { %p10021_p7 = scmp.ne.s32.totalorder %s275_s19, %s10020_s18  ;;  %p10029_p6 = scmp.lt.s32.totalorder %s10020_s18, %s10020_s18 }
  0x28   : > { %p10023_p9 = pnand %p10021_p7, %p10325_p12  ;;  %p10030_p4 = por %p10029_p6, %p10028_p2 }
  0x2a   : > { %p10024_p1 = pneg %p10023_p9 }
  0x2c   : > { %p10031_p8 = pnand %p10030_p4, %p10024_p1 }
  0x2e   : > { %10034 = shalt.err (!%p10031_p8)
}
  0x2f   : > { %s15341_s21 = smov 128   ;;  %s15342_s23 = smov 8  }
  0x30   : > { %9114 = dma.hbm_to_vmem [thread:$0]  (!%p10311_p10), %s15433_s1, 4096, %s275_s19, [#allocation6], %s15341_s21, %s15341_s21, %s15342_s23  }
  0x31   : > { %s10035_s29 = scalar_lea.hbm %s15330_s4, 4096 }
  0x32   : > { %p10036_p1 = scmp.ne.s32.totalorder %s15330_s4, %s10035_s29  ;;  %p10042_p6 = scmp.lt.u32.totalorder %s10035_s29, %s15330_s4 }
  0x34   : > { %p10038_p2 = pnand %p10036_p1, %p10325_p12 }
  0x36   : > { %p10039_p4 = pneg %p10038_p2 }
  0x38   : > { %p10044_p8 = pnand %p10042_p6, %p10039_p4 }
  0x3a   : > { %10047 = shalt.err (!%p10044_p8)
}
  0x3b   : > { %s10048_s19 = scalar_lea.vmem %s10315_s22, 4096  ;;  %p10056_p3 = scmp.lt.s32.totalorder %s10315_s22, %s10315_s22 }
  0x3c   : > { %p10049_p11 = scmp.ne.s32.totalorder %s10315_s22, %s10048_s19  ;;  %p10057_p5 = scmp.lt.s32.totalorder %s10048_s19, %s10048_s19 }
  0x3e   : > { %p10051_p13 = pnand %p10049_p11, %p10325_p12  ;;  %p10058_p7 = por %p10057_p5, %p10056_p3 }
  0x40   : > { %p10052_p0 = pneg %p10051_p13 }
  0x42   : > { %p10059_p9 = pnand %p10058_p7, %p10052_p0 }
  0x44   : > { %10062 = shalt.err (!%p10059_p9)
}
  0x45   : > { %s10201_s24 = smov 256   ;;  %s10202_s30 = smov 16  }
  0x46   : > { %9117 = dma.hbm_to_vmem [thread:$0]  (!%p10311_p10), %s15330_s4, 4096, %s10315_s22, [#allocation6], %s10201_s24, %s10201_s24, %s10202_s30  }
  0x47   : > { %s10203_s26 = smov [#allocation8]   ;;  %s10368_s29 = sadd.s32 1, %s10195_s12  }
  0x48   : > { %s300_s27 = sshll.u32 %s10203_s26, 4  ;;  %s10063_s19 = scalar_lea.hbm %s15331_s5, 8192  ;;  %s301_s27 = int_to_ptr.vmem [resolvable:$true] %s300_s27 }
  0x49   : > { %p10064_p1 = scmp.ne.s32.totalorder %s15331_s5, %s10063_s19  ;;  %p10070_p6 = scmp.lt.u32.totalorder %s10063_s19, %s15331_s5 }
  0x4b   : > { %p10066_p2 = pnand %p10064_p1, %p10325_p12 }
  0x4d   : > { %p10067_p4 = pneg %p10066_p2 }
  0x4f   : > { %p10072_p8 = pnand %p10070_p6, %p10067_p4 }
  0x51   : > { %10075 = shalt.err (!%p10072_p8)
}
  0x52   : > { %s10076_s22 = scalar_lea.vmem %s301_s27, 8192  ;;  %p10084_p3 = scmp.lt.s32.totalorder %s301_s27, %s301_s27 }
  0x53   : > { %p10077_p11 = scmp.ne.s32.totalorder %s301_s27, %s10076_s22  ;;  %p10085_p5 = scmp.lt.s32.totalorder %s10076_s22, %s10076_s22 }
  0x55   : > { %p10079_p13 = pnand %p10077_p11, %p10325_p12  ;;  %p10086_p7 = por %p10085_p5, %p10084_p3 }
  0x57   : > { %p10080_p0 = pneg %p10079_p13 }
  0x59   : > { %p10087_p9 = pnand %p10086_p7, %p10080_p0 }
  0x5b   : > { %10090 = shalt.err (!%p10087_p9)
}
  0x5c   : > { %9120 = dma.hbm_to_vmem [thread:$0]  (!%p10311_p10), %s15331_s5, 8192, %s301_s27, [#allocation9], %s10201_s24, %s10201_s24, %s10202_s30  }
  0x5d   : > { %s31_s1 = ssub.s32 %s10195_s12, %s10368_s29  ;;  %s34_s9 = sadd.s32 1, %s10191_s11 }
  0x5e   : > { %p32_p12 = scmp.eq.s32.totalorder %s31_s1, 0  ;;  %p41_p1 = scmp.ne.s32.totalorder %s10191_s11, %s10187_s10 }
  0x5f   : > { %p42_p2 = scmp.eq.s32.totalorder %s10195_s12, 0  ;;  %p9132_p4 = scmp.lt.s32.totalorder %s10195_s12, 4 }
  0x60   : > { %s10396_s20 = scalar_select %p32_p12, %s10191_s11, %s34_s9  }
  0x61   : > { %p43_p6 = por %p42_p2, %p41_p1  ;;  %p15435_p8 = scmp.eq.s32.totalorder %s10284_s13, 3 }
  0x62   : > { %s323_s16 = sand.u32 1, %s10191_s11   ;;  %s8917_s25 = sshll.u32 %s10195_s12, 10 }
  0x63   : > { %p10400_p11 = por %p15435_p8, %p41_p1  ;;  %s8291_s26 = sshll.u32 %s323_s16, 6 }
  0x64   : > { %s10409_s24 = scalar_lea.hbm %s15326_s0, %s8917_s25  ;;  %s327_s30 = scalar_lea.vmem [#allocation2], %s8291_s26 }
  0x65   : > { %s334_s27 = sshll.u32 %s327_s30, 4  ;;  %p10411_p10 = pnand %p9132_p4, %p43_p6  ;;  %s10415_s27 = int_to_ptr.vmem [resolvable:$true] %s334_s27 }
  0x66   : > { %s10417_s22 = scalar_lea.sflag [#allocation3], %s323_s16  ;;  %s10091_s21 = scalar_lea.hbm %s10409_s24, 1024 }
  0x67   : > { %p10092_p13 = scmp.ne.s32.totalorder %s10409_s24, %s10091_s21  ;;  %p10093_p0 = pneg %p10411_p10 }
  0x68   : > { %s10096_s9 = scalar_lea.hbm %s15326_s0, 4096  ;;  %p10097_p7 = scmp.lt.u32.totalorder %s10409_s24, %s15326_s0 }
  0x69   : > { %p10094_p3 = pnand %p10093_p0, %p10092_p13  ;;  %p10098_p9 = scmp.lt.u32.totalorder %s10096_s9, %s10091_s21 }
  0x6a   : > { %p10100_p1 = scmp.lt.u32.totalorder %s10091_s21, %s10409_s24 }
  0x6b   : > { %p10095_p5 = pneg %p10094_p3  ;;  %p10099_p12 = por %p10098_p9, %p10097_p7 }
  0x6d   : > { %p10101_p2 = por %p10100_p1, %p10099_p12 }
  0x6f   : > { %p10102_p4 = pnand %p10101_p2, %p10095_p5 }
  0x71   : > { %10105 = shalt.err (!%p10102_p4)
}
  0x72   : > { %s10106_s16 = scalar_lea.vmem %s10415_s27, 1024  ;;  %s10204_s14 = smov [#allocation2]  }
  0x73   : > { %p10107_p6 = scmp.ne.s32.totalorder %s10415_s27, %s10106_s16  ;;  %s10111_s18 = sshll.u32 %s10204_s14, 4  ;;  %s10112_s18 = int_to_ptr.vmem [resolvable:$false] %s10111_s18 }
  0x74   : > { %s10113_s30 = scalar_lea.vmem %s10112_s18, 2048  ;;  %p10114_p3 = scmp.lt.s32.totalorder %s10415_s27, %s10112_s18 }
  0x75   : > { %p10109_p8 = pnand %p10107_p6, %p10093_p0  ;;  %p10115_p7 = scmp.lt.s32.totalorder %s10113_s30, %s10106_s16 }
  0x77   : > { %p10110_p13 = pneg %p10109_p8  ;;  %p10116_p9 = por %p10115_p7, %p10114_p3 }
  0x79   : > { %p10117_p12 = pnand %p10116_p9, %p10110_p13 }
  0x7b   : > { %10120 = shalt.err (!%p10117_p12)
}
  0x7c   : > { %s15438_s21 = smov 8   ;;  %s15439_s23 = smov 128  }
  0x7d   : > { %9124 = dma.hbm_to_vmem [thread:$0]  (!%p10411_p10), %s10409_s24, 1024, %s10415_s27, %s10417_s22, %s15439_s23, %s15439_s23, %s15438_s21  }
  0x7e   : > { %p15440_p0 = scmp.ne.s32.totalorder %s15431_s17, 0 }
  0x80   : > { %364 = sbr.rel (%p15440_p0) target bundleno = 1718 (0x6b6), region = 56 }
  0x87   : > { %s10451_s1 = sand.u32 1, %s10187_s10   ;;  %p15441_p5 = scmp.ne.s32.totalorder %s15428_s15, 0 }
  0x88   : > { %s8295_s9 = sshll.u32 %s10451_s1, 6  ;;  %s367_s25 = scalar_lea.sflag [#allocation3], %s10451_s1 }
  0x89   : > { %s10457_s19 = scalar_lea.vmem [#allocation2], %s8295_s9 }
  0x8a   : > { %10166 = dma.done.wait (%p15441_p5), %s367_s25, 1024  }
  0x8b   : > { %10168 = vsyncadd (%p15441_p5), %s367_s25, 4294966272  ;;  %p15442_p10 = scmp.eq.s32.totalorder %s10284_s13, 0 }
  0x8d   : > { %10170 = dma.done.wait (%p15442_p10), [#allocation6], 8192   ;;  %p15443_p1 = pmov %p15442_p10 }
  0x8f   : > { %10172 = vsyncadd (%p15443_p1), [#allocation6], 4294959104  ;;  %p15444_p2 = pmov %p15443_p1 }
  0x90   : > { %p15445_p4 = pmov %p15443_p1 }
  0x91   : > { %10174 = dma.done.wait (%p15444_p2), [#allocation9], 8192  }
  0x92   : > { %10176 = vsyncadd (%p15445_p4), [#allocation9], 4294959104  ;;  %s428_s17 = smul.u32 96, %s10284_s13  ;;  %v10205_v0 = vmov 0   ;;  %v10206_v1 = vmov 0.0|0.0   ;;  %v644_v2 = vld [vmem:[#allocation5] sm:$0xff] }
  0x93   : > { %9184 = vset.pattern.permute.xlu1 %v10205_v0  ;;  %9183 = vset.pattern.permute.xlu0 %v10205_v0  ;;  %v645_v3 = vld [vmem:[#allocation5 + $0x8] sm:$0xff]  ;;  %v646_v13 = vld [vmem:[#allocation5 + $0x10] sm:$0xff]  ;;  %v647_v14 = vld [vmem:[#allocation5 + $0x18] sm:$0xff]  ;;  %s12773_s26 = scalar_lea.vmem [#allocation10], %s8295_s9  ;;  %s8918_s27 = sshll.u32 %s10284_s13, 10 }
  0x94   : > { %p429_p6 = scmp.lt.s32.totalorder %s428_s17, 383  ;;  %8919 = vmatprep.subr.bf16.mxu0 %v10206_v1  ;;  %v8920_v6 = vpack.c.bf16 %v645_v3, %v644_v2  ;;  %v8923_v15 = vpack.c.bf16 %v647_v14, %v646_v13  ;;  %v648_v16 = vld [vmem:[#allocation5 + $0x20] sm:$0xff]  ;;  %v649_v17 = vld [vmem:[#allocation5 + $0x28] sm:$0xff]  ;;  %v650_v21 = vld [vmem:[#allocation5 + $0x30] sm:$0xff]  ;;  %s15755_s16 = sld [smem:[#allocation95_spill]] }
  0x95   : > { %v8926_v20 = vpack.c.bf16 %v649_v17, %v648_v16  ;;  %v651_v22 = vld [vmem:[#allocation5 + $0x38] sm:$0xff]  ;;  %v652_v26 = vld [vmem:[#allocation5 + $0x40] sm:$0xff]  ;;  %v653_v27 = vld [vmem:[#allocation5 + $0x48] sm:$0xff]  ;;  %s8146_s18 = scalar_lea.sflag [#allocation4], %s10451_s1  ;;  %s10210_s30 = smov [#allocation10]  }
  0x96   : > { %s15764_s17 = smov (!%p429_p6, %s428_s17), 383  ;;  %8921 = vmatpush1.bf16.msra.mxu0 %v8920_v6  ;;  %v8929_v25 = vpack.c.bf16 %v651_v22, %v650_v21  ;;  %v8932_v30 = vpack.c.bf16 %v653_v27, %v652_v26  ;;  %v654_v31 = vld [vmem:[#allocation5 + $0x50] sm:$0xff]  ;;  %v655_v32 = vld [vmem:[#allocation5 + $0x58] sm:$0xff]  ;;  %v656_v36 = vld [vmem:[#allocation5 + $0x60] sm:$0xff]  ;;  %s10125_s21 = sshll.u32 %s10210_s30, 4  ;;  %s10126_s21 = int_to_ptr.vmem [resolvable:$false] %s10125_s21 }
  0x97   : > { %s8300_s15 = sshll.u32 %s15764_s17, 3  ;;  %8922 = vmatprep.subr.bf16.mxu0 %v10206_v1  ;;  %v8935_v35 = vpack.c.bf16 %v655_v32, %v654_v31  ;;  %v657_v37 = vld [vmem:[#allocation5 + $0x68] sm:$0xff]  ;;  %v658_v41 = vld [vmem:[#allocation5 + $0x70] sm:$0xff]  ;;  %v659_v42 = vld [vmem:[#allocation5 + $0x78] sm:$0xff]  ;;  %s10127_s23 = scalar_lea.vmem %s10126_s21, 2048 }
  0x98   : > { %s10481_s22 = scalar_lea.vmem %s15329_s3, %s8300_s15  ;;  %v8938_v40 = vpack.c.bf16 %v657_v37, %v656_v36  ;;  %v8941_v45 = vpack.c.bf16 %v659_v42, %v658_v41  ;;  %v660_v46 = vld [vmem:[#allocation5 + $0x80] sm:$0xff]  ;;  %v661_v47 = vld [vmem:[#allocation5 + $0x88] sm:$0xff]  ;;  %v662_v51 = vld [vmem:[#allocation5 + $0x90] sm:$0xff]  ;;  %s10819_s14 = scalar_lea.vmem %s15328_s2, %s8300_s15 }
  0x99   : > { %v547_v4 = vld [vmem:[%s10481_s22 + $0x10] sm:$0xff]  ;;  %v545_v5 = vld [vmem:[%s10481_s22] sm:$0xff]  ;;  %v548_v7 = vld [vmem:[%s10481_s22 + $0x18] sm:$0xff]  ;;  %v8944_v50 = vpack.c.bf16 %v661_v47, %v660_v46 }
  0x9a   : > { %683 = vperm.xlu1 %9184, %v547_v4   ;;  %677 = vperm.xlu0 %9183, %v545_v5   ;;  %v546_v8 = vld [vmem:[%s10481_s22 + $0x8] sm:$0xff]  ;;  %v549_v10 = vld [vmem:[%s10481_s22 + $0x20] sm:$0xff]  ;;  %v552_v11 = vld [vmem:[%s10481_s22 + $0x38] sm:$0xff] }
  0x9b   : > { %v550_v9 = vld [vmem:[%s10481_s22 + $0x28] sm:$0xff]  ;;  %v551_v12 = vld [vmem:[%s10481_s22 + $0x30] sm:$0xff]  ;;  %v553_v19 = vld [vmem:[%s10481_s22 + $0x40] sm:$0xff]  ;;  %8924 = vmatpush1.bf16.msra.mxu0 %v8923_v15 }
  0x9c   : > { %v554_v18 = vld [vmem:[%s10481_s22 + $0x48] sm:$0xff]  ;;  %8925 = vmatprep.subr.bf16.mxu0 %v10206_v1  ;;  %v556_v23 = vld [vmem:[%s10481_s22 + $0x58] sm:$0xff]  ;;  %v555_v24 = vld [vmem:[%s10481_s22 + $0x50] sm:$0xff] }
  0x9d   : > { %v558_v28 = vld [vmem:[%s10481_s22 + $0x68] sm:$0xff]  ;;  %v557_v29 = vld [vmem:[%s10481_s22 + $0x60] sm:$0xff]  ;;  %v560_v33 = vld [vmem:[%s10481_s22 + $0x78] sm:$0xff] }
  0x9e   : > { %686 = vperm.xlu1 %9184, %v548_v7   ;;  %680 = vperm.xlu0 %9183, %v546_v8   ;;  %v559_v34 = vld [vmem:[%s10481_s22 + $0x70] sm:$0xff]  ;;  %v562_v38 = vld [vmem:[%s10481_s22 + $0x88] sm:$0xff]  ;;  %v561_v39 = vld [vmem:[%s10481_s22 + $0x80] sm:$0xff] }
  0x9f   : > { %8927 = vmatpush1.bf16.msra.mxu0 %v8926_v20  ;;  %v564_v43 = vld [vmem:[%s10481_s22 + $0x98] sm:$0xff]  ;;  %v563_v44 = vld [vmem:[%s10481_s22 + $0x90] sm:$0xff]  ;;  %v566_v48 = vld [vmem:[%s10481_s22 + $0xa8] sm:$0xff] }
  0xa0   : > { %8928 = vmatprep.subr.bf16.mxu0 %v10206_v1  ;;  %v565_v49 = vld [vmem:[%s10481_s22 + $0xa0] sm:$0xff]  ;;  %v663_v52 = vld [vmem:[#allocation5 + $0x98] sm:$0xff]  ;;  %v567_v54 = vld [vmem:[%s10481_s22 + $0xb0] sm:$0xff] }
  0xa1   : > { %v568_v53 = vld [vmem:[%s10481_s22 + $0xb8] sm:$0xff]  ;;  %v8947_v55 = vpack.c.bf16 %v663_v52, %v662_v51  ;;  %v664_v56 = vld [vmem:[#allocation5 + $0xa0] sm:$0xff]  ;;  %v665_v57 = vld [vmem:[#allocation5 + $0xa8] sm:$0xff] }
  0xa2   : > { %692 = vperm.xlu1 %9184, %v550_v9   ;;  %689 = vperm.xlu0 %9183, %v549_v10   ;;  %v570_v58 = vld [vmem:[%s10481_s22 + $0xc8] sm:$0xff]  ;;  %v569_v59 = vld [vmem:[%s10481_s22 + $0xc0] sm:$0xff]  ;;  %v8950_v60 = vpack.c.bf16 %v665_v57, %v664_v56  ;;  %v666_v61 = vld [vmem:[#allocation5 + $0xb0] sm:$0xff]  ;;  %v10207_v57 = vmov 1.0  }
  0xa3   : > { %8930 = vmatpush1.bf16.msra.mxu0 %v8929_v25  ;;  %v667_v62 = vld [vmem:[#allocation5 + $0xb8] sm:$0xff]  ;;  %v571_v0 = vld [vmem:[%s10481_s22 + $0xd0] sm:$0xff]  ;;  %v668_v3 = vld [vmem:[#allocation5 + $0xc0] sm:$0xff] }
  0xa4   : > { %8931 = vmatprep.subr.bf16.mxu0 %v10206_v1  ;;  %v572_v63 = vld [vmem:[%s10481_s22 + $0xd8] sm:$0xff]  ;;  %v8953_v2 = vpack.c.bf16 %v667_v62, %v666_v61  ;;  %v669_v4 = vld [vmem:[#allocation5 + $0xc8] sm:$0xff]  ;;  %v573_v6 = vld [vmem:[%s10481_s22 + $0xe0] sm:$0xff] }
  0xa5   : > { %v574_v5 = vld [vmem:[%s10481_s22 + $0xe8] sm:$0xff]  ;;  %v8956_v7 = vpack.c.bf16 %v669_v4, %v668_v3  ;;  %v670_v8 = vld [vmem:[#allocation5 + $0xd0] sm:$0xff]  ;;  %v671_v9 = vld [vmem:[#allocation5 + $0xd8] sm:$0xff] }
  0xa6   : > { %698 = vperm.xlu1 %9184, %v552_v11   ;;  %695 = vperm.xlu0 %9183, %v551_v12   ;;  %v576_v10 = vld [vmem:[%s10481_s22 + $0xf8] sm:$0xff]  ;;  %v575_v11 = vld [vmem:[%s10481_s22 + $0xf0] sm:$0xff]  ;;  %v8959_v12 = vpack.c.bf16 %v671_v9, %v670_v8  ;;  %v672_v13 = vld [vmem:[#allocation5 + $0xe0] sm:$0xff] }
  0xa7   : > { %8933 = vmatpush1.bf16.msra.mxu0 %v8932_v30  ;;  %v673_v14 = vld [vmem:[#allocation5 + $0xe8] sm:$0xff]  ;;  %v577_v16 = vld [vmem:[%s10481_s22 + $0x100] sm:$0xff]  ;;  %v580_v20 = vld [vmem:[%s10481_s22 + $0x118] sm:$0xff] }
  0xa8   : > { %8934 = vmatprep.subr.bf16.mxu0 %v10206_v1  ;;  %v578_v15 = vld [vmem:[%s10481_s22 + $0x108] sm:$0xff]  ;;  %v8962_v17 = vpack.c.bf16 %v673_v14, %v672_v13  ;;  %v579_v21 = vld [vmem:[%s10481_s22 + $0x110] sm:$0xff]  ;;  %v584_v25 = vld [vmem:[%s10481_s22 + $0x138] sm:$0xff] }
  0xa9   : > { %v583_v26 = vld [vmem:[%s10481_s22 + $0x130] sm:$0xff]  ;;  %v586_v27 = vld [vmem:[%s10481_s22 + $0x148] sm:$0xff]  ;;  %v589_v31 = vld [vmem:[%s10481_s22 + $0x160] sm:$0xff] }
  0xaa   : > { %704 = vperm.xlu1 %9184, %v554_v18   ;;  %701 = vperm.xlu0 %9183, %v553_v19   ;;  %v674_v18 = vld [vmem:[#allocation5 + $0xf0] sm:$0xff]  ;;  %v675_v19 = vld [vmem:[#allocation5 + $0xf8] sm:$0xff]  ;;  %v590_v30 = vld [vmem:[%s10481_s22 + $0x168] sm:$0xff] }
  0xab   : > { %8936 = vmatpush1.bf16.msra.mxu0 %v8935_v35  ;;  %v8965_v22 = vpack.c.bf16 %v675_v19, %v674_v18  ;;  %v592_v32 = vld [vmem:[%s10481_s22 + $0x178] sm:$0xff]  ;;  %v593_v35 = vld [vmem:[%s10481_s22 + $0x180] sm:$0xff]  ;;  %v595_v37 = vld [vmem:[%s10481_s22 + $0x190] sm:$0xff] }
  0xac   : > { %8937 = vmatprep.subr.bf16.mxu0 %v10206_v1  ;;  %v596_v36 = vld [vmem:[%s10481_s22 + $0x198] sm:$0xff]  ;;  %v599_v41 = vld [vmem:[%s10481_s22 + $0x1b0] sm:$0xff]  ;;  %v602_v42 = vld [vmem:[%s10481_s22 + $0x1c8] sm:$0xff] }
  0xad   : > { %v606_v46 = vld [vmem:[%s10481_s22 + $0x1e8] sm:$0xff]  ;;  %v605_v47 = vld [vmem:[%s10481_s22 + $0x1e0] sm:$0xff]  ;;  %v612_v56 = vld [vmem:[%s10481_s22 + $0x218] sm:$0xff] }
  0xae   : > { %710 = vperm.xlu1 %9184, %v556_v23   ;;  %707 = vperm.xlu0 %9183, %v555_v24   ;;  %v582_v23 = vld [vmem:[%s10481_s22 + $0x128] sm:$0xff]  ;;  %v581_v24 = vld [vmem:[%s10481_s22 + $0x120] sm:$0xff]  ;;  %v615_v14 = vld [vmem:[%s10481_s22 + $0x230] sm:$0xff] }
  0xaf   : > { %8939 = vmatpush1.bf16.msra.mxu0 %v8938_v40  ;;  %v600_v40 = vld [vmem:[%s10481_s22 + $0x1b8] sm:$0xff]  ;;  %v614_v3 = vld [vmem:[%s10481_s22 + $0x228] sm:$0xff]  ;;  %v2089_v9 = vld [vmem:[#allocation7 + $0x20] sm:$0xff] }
  0xb0   : > { %8940 = vmatprep.subr.bf16.mxu0 %v10206_v1  ;;  %v2093_v18 = vld [vmem:[#allocation7 + $0x40] sm:$0xff]  ;;  %v2095_v19 = vld [vmem:[#allocation7 + $0x50] sm:$0xff] }
  0xb2   : > { %716 = vperm.xlu1 %9184, %v558_v28   ;;  %713 = vperm.xlu0 %9183, %v557_v29   ;;  %v588_v28 = vld [vmem:[%s10481_s22 + $0x158] sm:$0xff]  ;;  %v587_v29 = vld [vmem:[%s10481_s22 + $0x150] sm:$0xff] }
  0xb3   : > { %8942 = vmatpush1.bf16.msra.mxu0 %v8941_v45  ;;  %v603_v45 = vld [vmem:[%s10481_s22 + $0x1d0] sm:$0xff] }
  0xb4   : > { %8943 = vmatprep.subr.bf16.mxu0 %v10206_v1 }
  0xb6   : > { %722 = vperm.xlu1 %9184, %v560_v33   ;;  %719 = vperm.xlu0 %9183, %v559_v34   ;;  %v591_v33 = vld [vmem:[%s10481_s22 + $0x170] sm:$0xff]  ;;  %v594_v34 = vld [vmem:[%s10481_s22 + $0x188] sm:$0xff] }
  0xb7   : > { %8945 = vmatpush1.bf16.msra.mxu0 %v8944_v50  ;;  %v607_v50 = vld [vmem:[%s10481_s22 + $0x1f0] sm:$0xff] }
  0xb8   : > { %8946 = vmatprep.subr.bf16.mxu0 %v10206_v1 }
  0xba   : > { %728 = vperm.xlu1 %9184, %v562_v38   ;;  %725 = vperm.xlu0 %9183, %v561_v39   ;;  %v598_v38 = vld [vmem:[%s10481_s22 + $0x1a8] sm:$0xff]  ;;  %v597_v39 = vld [vmem:[%s10481_s22 + $0x1a0] sm:$0xff] }
  0xbb   : > { %8948 = vmatpush1.bf16.msra.mxu0 %v8947_v55 }
  0xbc   : > { %8949 = vmatprep.subr.bf16.mxu0 %v10206_v1 }
  0xbe   : > { %734 = vperm.xlu1 %9184, %v564_v43   ;;  %731 = vperm.xlu0 %9183, %v563_v44   ;;  %v601_v43 = vld [vmem:[%s10481_s22 + $0x1c0] sm:$0xff]  ;;  %v604_v44 = vld [vmem:[%s10481_s22 + $0x1d8] sm:$0xff] }
  0xbf   : > { %8951 = vmatpush1.bf16.msra.mxu0 %v8950_v60  ;;  %v2088_v60 = vld [vmem:[#allocation7 + $0x18] sm:$0xff] }
  0xc0   : > { %8952 = vmatprep.subr.bf16.mxu0 %v10206_v1 }
  0xc2   : > { %740 = vperm.xlu1 %9184, %v566_v48   ;;  %737 = vperm.xlu0 %9183, %v565_v49   ;;  %v641_v48 = vlaneseq  ;;  %v608_v49 = vld [vmem:[%s10481_s22 + $0x1f8] sm:$0xff] }
  0xc3   : > { %8954 = vmatpush1.bf16.msra.mxu0 %v8953_v2 }
  0xc4   : > { %8955 = vmatprep.subr.bf16.mxu0 %v10206_v1  ;;  %v10563_v51 = vand.u32 127, %v641_v48 }
  0xc6   : > { %746 = vperm.xlu1 %9184, %v568_v53   ;;  %743 = vperm.xlu0 %9183, %v567_v54   ;;  %v10566_v52 = vadd.s32 128, %v10563_v51  ;;  %v610_v53 = vld [vmem:[%s10481_s22 + $0x208] sm:$0xff]  ;;  %v609_v54 = vld [vmem:[%s10481_s22 + $0x200] sm:$0xff] }
  0xc7   : > { %8957 = vmatpush1.bf16.msra.mxu0 %v8956_v7  ;;  %v2092_v7 = vld [vmem:[#allocation7 + $0x38] sm:$0xff] }
  0xc8   : > { %8958 = vmatprep.subr.bf16.mxu0 %v10206_v1 }
  0xca   : > { %752 = vperm.xlu1 %9184, %v570_v58   ;;  %749 = vperm.xlu0 %9183, %v569_v59   ;;  %v611_v58 = vld [vmem:[%s10481_s22 + $0x210] sm:$0xff]  ;;  %v2086_v59 = vld [vmem:[#allocation7 + $0x8] sm:$0xff] }
  0xcb   : > { %8960 = vmatpush1.bf16.msra.mxu0 %v8959_v12  ;;  %v8967_v62 = vpack.c.bf16 %v2088_v60, %v2086_v59  ;;  %v626_v60 = vld [vmem:[%s10481_s22 + $0x288] sm:$0xff] }
  0xcc   : > { %8961 = vmatprep.subr.bf16.mxu0 %v10206_v1 }
  0xcd   : > { %8968 = vmatprep.subr.bf16.mxu1 %v8967_v62  ;;  %v625_v62 = vld [vmem:[%s10481_s22 + $0x280] sm:$0xff] }
  0xce   : > { %758 = vperm.xlu1 %9184, %v572_v63   ;;  %755 = vperm.xlu0 %9183, %v571_v0   ;;  %v2085_v63 = vld [vmem:[#allocation7] sm:$0xff]  ;;  %v2087_v0 = vld [vmem:[#allocation7 + $0x10] sm:$0xff] }
  0xcf   : > { %8963 = vmatpush1.bf16.msra.mxu0 %v8962_v17  ;;  %v8969_v4 = vpack.c.bf16 %v2087_v0, %v2085_v63  ;;  %v2114_v63 = vld [vmem:[#allocation7 + $0xe8] sm:$0xff]  ;;  %v2116_v0 = vld [vmem:[#allocation7 + $0xf8] sm:$0xff] }
  0xd0   : > { %8964 = vmatprep.subr.bf16.mxu0 %v10206_v1  ;;  %v585_v1 = vld [vmem:[%s10481_s22 + $0x140] sm:$0xff] }
  0xd1   : > { %8970 = vmatpush1.bf16.msra.mxu1 %v8969_v4  ;;  %v2115_v4 = vld [vmem:[#allocation7 + $0xf0] sm:$0xff] }
  0xd2   : > { %764 = vperm.xlu1 %9184, %v574_v5   ;;  %761 = vperm.xlu0 %9183, %v573_v6   ;;  %v613_v5 = vld [vmem:[%s10481_s22 + $0x220] sm:$0xff]  ;;  %v2090_v6 = vld [vmem:[#allocation7 + $0x28] sm:$0xff] }
  0xd3   : > { %8966 = vmatpush1.bf16.msra.mxu0 %v8965_v22  ;;  %v8971_v8 = vpack.c.bf16 %v2092_v7, %v2090_v6  ;;  %v8977_v22 = vpack.c.bf16 %v2095_v19, %v2093_v18  ;;  %v628_v7 = vld [vmem:[%s10481_s22 + $0x298] sm:$0xff] }
  0xd5   : > { %8972 = vmatprep.subr.bf16.mxu1 %v8971_v8  ;;  %v627_v8 = vld [vmem:[%s10481_s22 + $0x290] sm:$0xff] }
  0xd6   : > { %770 = vperm.xlu1 %9184, %v576_v10   ;;  %767 = vperm.xlu0 %9183, %v575_v11   ;;  %v2091_v10 = vld [vmem:[#allocation7 + $0x30] sm:$0xff]  ;;  %v616_v11 = vld [vmem:[%s10481_s22 + $0x238] sm:$0xff] }
  0xd7   : > { %v8973_v12 = vpack.c.bf16 %v2091_v10, %v2089_v9  ;;  %v441_v10 = vld [vmem:[%s10457_s19] sm:$0xff] }
  0xd9   : > { %8974 = vmatpush1.bf16.msra.mxu1 %v8973_v12  ;;  %v2245_v12 = vld [vmem:[#allocation8 + $0x18] sm:$0xff] }
  0xda   : > { %776 = vperm.xlu1 %9184, %v578_v15   ;;  %773 = vperm.xlu0 %9183, %v577_v16   ;;  %v2094_v15 = vld [vmem:[#allocation7 + $0x48] sm:$0xff]  ;;  %v2096_v16 = vld [vmem:[#allocation7 + $0x58] sm:$0xff] }
  0xdb   : > { %v8975_v17 = vpack.c.bf16 %v2096_v16, %v2094_v15  ;;  %v630_v15 = vld [vmem:[%s10481_s22 + $0x2a8] sm:$0xff]  ;;  %v629_v16 = vld [vmem:[%s10481_s22 + $0x2a0] sm:$0xff] }
  0xdd   : > { %8976 = vmatprep.subr.bf16.mxu1 %v8975_v17  ;;  %v10208_v17 = vmov 0.0  }
  0xde   : > { %782 = vperm.xlu1 %9184, %v580_v20   ;;  %779 = vperm.xlu0 %9183, %v579_v21   ;;  %v618_v21 = vld [vmem:[%s10481_s22 + $0x248] sm:$0xff] }
  0xdf   : > { %8978 = vmatpush1.bf16.msra.mxu1 %v8977_v22  ;;  %2193 = vmatprep.mubr.f32.mxu1 %v10208_v17  ;;  %v2249_v22 = vld [vmem:[#allocation8 + $0x38] sm:$0xff] }
  0xe2   : > { %788 = vperm.xlu1 %9184, %v582_v23   ;;  %785 = vperm.xlu0 %9183, %v581_v24   ;;  %v617_v23 = vld [vmem:[%s10481_s22 + $0x240] sm:$0xff]  ;;  %v2098_v24 = vld [vmem:[#allocation7 + $0x68] sm:$0xff] }
  0xe6   : > { %794 = vperm.xlu1 %9184, %v584_v25   ;;  %791 = vperm.xlu0 %9183, %v583_v26   ;;  %v2100_v25 = vld [vmem:[#allocation7 + $0x78] sm:$0xff] }
  0xe7   : > { %v8979_v26 = vpack.c.bf16 %v2100_v25, %v2098_v24  ;;  %v2248_v24 = vld [vmem:[#allocation8 + $0x30] sm:$0xff]  ;;  %v632_v25 = vld [vmem:[%s10481_s22 + $0x2b8] sm:$0xff] }
  0xe9   : > { %8980 = vmatprep.subr.bf16.mxu1 %v8979_v26  ;;  %v631_v26 = vld [vmem:[%s10481_s22 + $0x2b0] sm:$0xff] }
  0xea   : > { %800 = vperm.xlu1 %9184, %v586_v27   ;;  %797 = vperm.xlu0 %9183, %v585_v1   ;;  %v2097_v27 = vld [vmem:[#allocation7 + $0x60] sm:$0xff]  ;;  %v2099_v1 = vld [vmem:[#allocation7 + $0x70] sm:$0xff] }
  0xee   : > { %806 = vperm.xlu1 %9184, %v588_v28   ;;  %803 = vperm.xlu0 %9183, %v587_v29   ;;  %v620_v29 = vld [vmem:[%s10481_s22 + $0x258] sm:$0xff] }
  0xf2   : > { %812 = vperm.xlu1 %9184, %v590_v30   ;;  %809 = vperm.xlu0 %9183, %v589_v31   ;;  %v8981_v30 = vpack.c.bf16 %v2099_v1, %v2097_v27  ;;  %v619_v31 = vld [vmem:[%s10481_s22 + $0x250] sm:$0xff] }
  0xf4   : > { %8982 = vmatpush1.bf16.msra.mxu1 %v8981_v30  ;;  %v2253_v30 = vld [vmem:[#allocation8 + $0x58] sm:$0xff] }
  0xf6   : > { %818 = vperm.xlu1 %9184, %v592_v32   ;;  %815 = vperm.xlu0 %9183, %v591_v33   ;;  %v2102_v32 = vld [vmem:[#allocation7 + $0x88] sm:$0xff]  ;;  %v2104_v33 = vld [vmem:[#allocation7 + $0x98] sm:$0xff] }
  0xfa   : > { %824 = vperm.xlu1 %9184, %v594_v34   ;;  %821 = vperm.xlu0 %9183, %v593_v35   ;;  %v8983_v34 = vpack.c.bf16 %v2104_v33, %v2102_v32  ;;  %v2101_v35 = vld [vmem:[#allocation7 + $0x80] sm:$0xff]  ;;  %v2252_v32 = vld [vmem:[#allocation8 + $0x50] sm:$0xff]  ;;  %v634_v33 = vld [vmem:[%s10481_s22 + $0x2c8] sm:$0xff] }
  0xfc   : > { %8984 = vmatprep.subr.bf16.mxu1 %v8983_v34  ;;  %v633_v34 = vld [vmem:[%s10481_s22 + $0x2c0] sm:$0xff] }
  0xfe   : > { %830 = vperm.xlu1 %9184, %v596_v36   ;;  %827 = vperm.xlu0 %9183, %v595_v37   ;;  %v2103_v36 = vld [vmem:[#allocation7 + $0x90] sm:$0xff] }
 0x102   : > { %836 = vperm.xlu1 %9184, %v598_v38   ;;  %833 = vperm.xlu0 %9183, %v597_v39   ;;  %v622_v38 = vld [vmem:[%s10481_s22 + $0x268] sm:$0xff]  ;;  %v8985_v39 = vpack.c.bf16 %v2103_v36, %v2101_v35 }
 0x104   : > { %8986 = vmatpush1.bf16.msra.mxu1 %v8985_v39  ;;  %v2257_v39 = vld [vmem:[#allocation8 + $0x78] sm:$0xff] }
 0x106   : > { %842 = vperm.xlu1 %9184, %v600_v40   ;;  %839 = vperm.xlu0 %9183, %v599_v41   ;;  %v621_v40 = vld [vmem:[%s10481_s22 + $0x260] sm:$0xff]  ;;  %v2106_v41 = vld [vmem:[#allocation7 + $0xa8] sm:$0xff] }
 0x10a   : > { %848 = vperm.xlu1 %9184, %v602_v42   ;;  %845 = vperm.xlu0 %9183, %v601_v43   ;;  %v2108_v42 = vld [vmem:[#allocation7 + $0xb8] sm:$0xff] }
 0x10b   : > { %v8987_v43 = vpack.c.bf16 %v2108_v42, %v2106_v41  ;;  %v2256_v41 = vld [vmem:[#allocation8 + $0x70] sm:$0xff]  ;;  %v636_v42 = vld [vmem:[%s10481_s22 + $0x2d8] sm:$0xff] }
 0x10d   : > { %8988 = vmatprep.subr.bf16.mxu1 %v8987_v43  ;;  %v635_v43 = vld [vmem:[%s10481_s22 + $0x2d0] sm:$0xff] }
 0x10e   : > { %854 = vperm.xlu1 %9184, %v604_v44   ;;  %851 = vperm.xlu0 %9183, %v603_v45   ;;  %v2105_v44 = vld [vmem:[#allocation7 + $0xa0] sm:$0xff]  ;;  %v2107_v45 = vld [vmem:[#allocation7 + $0xb0] sm:$0xff] }
 0x112   : > { %860 = vperm.xlu1 %9184, %v606_v46   ;;  %857 = vperm.xlu0 %9183, %v605_v47   ;;  %v624_v47 = vld [vmem:[%s10481_s22 + $0x278] sm:$0xff] }
 0x116   : > { %866 = vperm.xlu1 %9184, %v608_v49   ;;  %863 = vperm.xlu0 %9183, %v607_v50   ;;  %v8989_v49 = vpack.c.bf16 %v2107_v45, %v2105_v44  ;;  %v623_v50 = vld [vmem:[%s10481_s22 + $0x270] sm:$0xff] }
 0x118   : > { %8990 = vmatpush1.bf16.msra.mxu1 %v8989_v49  ;;  %v2261_v49 = vld [vmem:[#allocation8 + $0x98] sm:$0xff] }
 0x119   : > { %v678_v55 = vpop.permute.xlu0 %677  ;;  %v684_v2 = vpop.permute.xlu1 %683 }
 0x11a   : > { %vm964_vm0 = vcmp.eq.s32.totalorder %v678_v55, %v10563_v51  ;;  %872 = vperm.xlu1 %9184, %v610_v53   ;;  %869 = vperm.xlu0 %9183, %v609_v54   ;;  %vm965_vm1 = vcmp.eq.s32.totalorder %v678_v55, %v10566_v52  ;;  %vm969_vm4 = vcmp.eq.s32.totalorder %v684_v2, %v10566_v52  ;;  %v2110_v53 = vld [vmem:[#allocation7 + $0xc8] sm:$0xff]  ;;  %v2112_v54 = vld [vmem:[#allocation7 + $0xd8] sm:$0xff] }
 0x11b   : > { %8494 = vmatprep.mubr.msk.f32.mxu0 %vm965_vm1, %v10207_v57  ;;  %vm968_vm5 = vcmp.eq.s32.totalorder %v684_v2, %v10563_v51  ;;  %v8991_v55 = vpack.c.bf16 %v2112_v54, %v2110_v53  ;;  %v8995_v2 = vpack.c.bf16 %v2116_v0, %v2114_v63  ;;  %v2260_v53 = vld [vmem:[#allocation8 + $0x90] sm:$0xff]  ;;  %v638_v54 = vld [vmem:[%s10481_s22 + $0x2e8] sm:$0xff]  ;;  %v640_v0 = vld [vmem:[%s10481_s22 + $0x2f8] sm:$0xff] }
 0x11c   : > { %8495 = vmatmul.mubr.msk.f32.vlgmr.msra.gmra.mrb[0].mxu0 %vm964_vm0, %v10207_v57  ;;  %v2264_v63 = vld [vmem:[#allocation8 + $0xb0] sm:$0xff] }
 0x11d   : > { %v681_v61 = vpop.permute.xlu0 %680  ;;  %v687_v13 = vpop.permute.xlu1 %686  ;;  %8992 = vmatprep.subr.bf16.mxu1 %v8991_v55  ;;  %v637_v55 = vld [vmem:[%s10481_s22 + $0x2e0] sm:$0xff] }
 0x11e   : > { %vm966_vm2 = vcmp.eq.s32.totalorder %v681_v61, %v10563_v51  ;;  %vm967_vm3 = vcmp.eq.s32.totalorder %v681_v61, %v10566_v52  ;;  %878 = vperm.xlu1 %9184, %v612_v56   ;;  %875 = vperm.xlu0 %9183, %v611_v58   ;;  %vm971_vm6 = vcmp.eq.s32.totalorder %v687_v13, %v10566_v52  ;;  %v2109_v56 = vld [vmem:[#allocation7 + $0xc0] sm:$0xff]  ;;  %v2111_v58 = vld [vmem:[#allocation7 + $0xd0] sm:$0xff] }
 0x11f   : > { %8496 = vmatprep.mubr.msk.f32.mxu0 %vm967_vm3, %v10207_v57  ;;  %vm970_vm7 = vcmp.eq.s32.totalorder %v687_v13, %v10563_v51  ;;  %v8993_v61 = vpack.c.bf16 %v2111_v58, %v2109_v56  ;;  %v2242_v13 = vld [vmem:[#allocation8] sm:$0xff] }
 0x120   : > { %8497 = vmatmul.mubr.msk.f32.gmra.mrb[2].mxu0 %vm966_vm2, %v10207_v57 }
 0x121   : > { %8498 = vmatprep.mubr.msk.f32.mxu0 %vm969_vm4, %v10207_v57  ;;  %v690_v20 = vpop.permute.xlu0 %689  ;;  %v693_v28 = vpop.permute.xlu1 %692  ;;  %8994 = vmatpush1.bf16.msra.mxu1 %v8993_v61  ;;  %v2265_v61 = vld [vmem:[#allocation8 + $0xb8] sm:$0xff] }
 0x122   : > { %884 = vperm.xlu1 %9184, %v614_v3   ;;  %881 = vperm.xlu0 %9183, %v613_v5   ;;  %vm973_vm8 = vcmp.eq.s32.totalorder %v690_v20, %v10566_v52  ;;  %vm972_vm9 = vcmp.eq.s32.totalorder %v690_v20, %v10563_v51  ;;  %vm975_vm10 = vcmp.eq.s32.totalorder %v693_v28, %v10566_v52  ;;  %v2113_v3 = vld [vmem:[#allocation7 + $0xe0] sm:$0xff] }
 0x123   : > { %vm974_vm11 = vcmp.eq.s32.totalorder %v693_v28, %v10563_v51  ;;  %v8997_v6 = vpack.c.bf16 %v2115_v4, %v2113_v3  ;;  %8996 = vmatprep.subr.bf16.mxu1 %v8995_v2  ;;  %v639_v2 = vld [vmem:[%s10481_s22 + $0x2f0] sm:$0xff] }
 0x124   : > { %8499 = vmatmul.mubr.msk.f32.gmra.mrb[4].mxu0 %vm968_vm5, %v10207_v57 }
 0x125   : > { %8500 = vmatprep.mubr.msk.f32.mxu0 %vm971_vm6, %v10207_v57  ;;  %v696_v37 = vpop.permute.xlu0 %695  ;;  %v699_v46 = vpop.permute.xlu1 %698  ;;  %8998 = vmatpush1.bf16.msra.mxu1 %v8997_v6  ;;  %v2267_v6 = vld [vmem:[#allocation8 + $0xc8] sm:$0xff] }
 0x126   : > { %890 = vperm.xlu1 %9184, %v616_v11   ;;  %887 = vperm.xlu0 %9183, %v615_v14   ;;  %vm977_vm12 = vcmp.eq.s32.totalorder %v696_v37, %v10566_v52  ;;  %vm976_vm13 = vcmp.eq.s32.totalorder %v696_v37, %v10563_v51  ;;  %vm979_vm14 = vcmp.eq.s32.totalorder %v699_v46, %v10566_v52  ;;  %v2243_v11 = vld [vmem:[#allocation8 + $0x8] sm:$0xff]  ;;  %v2244_v14 = vld [vmem:[#allocation8 + $0x10] sm:$0xff] }
 0x127   : > { %vm978_vm15 = vcmp.eq.s32.totalorder %v699_v46, %v10563_v51  ;;  %v8999_v18 = vpack.c.bf16 %v2245_v12, %v2243_v11  ;;  %v9001_v19 = vpack.c.bf16 %v2244_v14, %v2242_v13  ;;  %v2271_v13 = vld [vmem:[#allocation8 + $0xe8] sm:$0xff]  ;;  %v2273_v14 = vld [vmem:[#allocation8 + $0xf8] sm:$0xff] }
 0x128   : > { %8501 = vmatmul.mubr.msk.f32.gmra.mrb[6].mxu0 %vm970_vm7, %v10207_v57  ;;  %2194 = vmatmul.mubr.f32.vlgmr.msra.gmra.mrb[0].mxu1 %v441_v10  ;;  %v2268_v10 = vld [vmem:[#allocation8 + $0xd0] sm:$0xff] }
 0x129   : > { %8502 = vmatprep.mubr.msk.f32.mxu0 %vm973_vm8, %v10207_v57  ;;  %v702_v59 = vpop.permute.xlu0 %701  ;;  %v705_v5 = vpop.permute.xlu1 %704  ;;  %9063 = vmatprep.subr.bf16.mxu1 %v8999_v18 }
 0x12a   : > { %896 = vperm.xlu1 %9184, %v618_v21   ;;  %893 = vperm.xlu0 %9183, %v617_v23   ;;  %vm981_vm0 = vcmp.eq.s32.totalorder %v702_v59, %v10566_v52  ;;  %vm980_vm1 = vcmp.eq.s32.totalorder %v702_v59, %v10563_v51  ;;  %vm983_vm2 = vcmp.eq.s32.totalorder %v705_v5, %v10566_v52  ;;  %v2247_v21 = vld [vmem:[#allocation8 + $0x28] sm:$0xff]  ;;  %v2246_v23 = vld [vmem:[#allocation8 + $0x20] sm:$0xff] }
 0x12b   : > { %vm982_vm3 = vcmp.eq.s32.totalorder %v705_v5, %v10563_v51  ;;  %v9003_v27 = vpack.c.bf16 %v2249_v22, %v2247_v21  ;;  %9000 = vmatprep.subr.bf16.mxu0 %v8999_v18  ;;  %9079 = vmatpush1.bf16.msra.mxu1 %v9001_v19  ;;  %v10639_v1 = vpack.c.bf16 %v2248_v24, %v2246_v23  ;;  %v2272_v18 = vld [vmem:[#allocation8 + $0xf0] sm:$0xff]  ;;  %v2275_v21 = vld [vmem:[#allocation8 + $0x108] sm:$0xff]  ;;  %v2277_v22 = vld [vmem:[#allocation8 + $0x118] sm:$0xff] }
 0x12c   : > { %8503 = vmatmul.mubr.msk.f32.gmra.mrb[8].mxu0 %vm972_vm9, %v10207_v57  ;;  %2199 = vmatprep.mubr.f32.mxu1 %v10208_v17  ;;  %v10715_v23 = vpack.c.bf16 %v2277_v22, %v2275_v21  ;;  %v2274_v24 = vld [vmem:[#allocation8 + $0x100] sm:$0xff]  ;;  %v2305_v21 = vld [vmem:[#allocation8 + $0x1f8] sm:$0xff]  ;;  %v2304_v22 = vld [vmem:[#allocation8 + $0x1f0] sm:$0xff] }
 0x12d   : > { %8504 = vmatprep.mubr.msk.f32.mxu0 %vm975_vm10, %v10207_v57  ;;  %v708_v9 = vpop.permute.xlu0 %707  ;;  %v711_v20 = vpop.permute.xlu1 %710  ;;  %9064 = vmatprep.subr.bf16.mxu1 %v9003_v27 }
 0x12e   : > { %902 = vperm.xlu1 %9184, %v620_v29   ;;  %899 = vperm.xlu0 %9183, %v619_v31   ;;  %vm985_vm4 = vcmp.eq.s32.totalorder %v708_v9, %v10566_v52  ;;  %vm984_vm5 = vcmp.eq.s32.totalorder %v708_v9, %v10563_v51  ;;  %vm987_vm6 = vcmp.eq.s32.totalorder %v711_v20, %v10566_v52  ;;  %v2251_v29 = vld [vmem:[#allocation8 + $0x48] sm:$0xff]  ;;  %v2250_v31 = vld [vmem:[#allocation8 + $0x40] sm:$0xff] }
 0x12f   : > { %vm986_vm7 = vcmp.eq.s32.totalorder %v711_v20, %v10563_v51  ;;  %v10645_v35 = vpack.c.bf16 %v2253_v30, %v2251_v29  ;;  %9002 = vmatpush1.bf16.msra.mxu0 %v9001_v19  ;;  %9080 = vmatpush1.bf16.msra.mxu1 %v10639_v1  ;;  %v10650_v36 = vpack.c.bf16 %v2252_v32, %v2250_v31  ;;  %v2266_v9 = vld [vmem:[#allocation8 + $0xc0] sm:$0xff]  ;;  %v2281_v29 = vld [vmem:[#allocation8 + $0x138] sm:$0xff]  ;;  %v2280_v32 = vld [vmem:[#allocation8 + $0x130] sm:$0xff] }
 0x130   : > { %8505 = vmatmul.mubr.msk.f32.gmra.mrb[10].mxu0 %vm974_vm11, %v10207_v57  ;;  %9004 = vmatprep.subr.bf16.mxu0 %v9003_v27  ;;  %v10699_v11 = vpack.c.bf16 %v2268_v10, %v2266_v9  ;;  %v2278_v31 = vld [vmem:[#allocation8 + $0x120] sm:$0xff]  ;;  %v2299_v9 = vld [vmem:[#allocation8 + $0x1c8] sm:$0xff]  ;;  %v2301_v10 = vld [vmem:[#allocation8 + $0x1d8] sm:$0xff] }
 0x131   : > { %8506 = vmatprep.mubr.msk.f32.mxu0 %vm977_vm12, %v10207_v57  ;;  %v714_v28 = vpop.permute.xlu0 %713  ;;  %v717_v37 = vpop.permute.xlu1 %716  ;;  %9065 = vmatprep.subr.bf16.mxu1 %v10645_v35 }
 0x132   : > { %908 = vperm.xlu1 %9184, %v622_v38   ;;  %905 = vperm.xlu0 %9183, %v621_v40   ;;  %vm989_vm8 = vcmp.eq.s32.totalorder %v714_v28, %v10566_v52  ;;  %v2255_v38 = vld [vmem:[#allocation8 + $0x68] sm:$0xff]  ;;  %v2254_v40 = vld [vmem:[#allocation8 + $0x60] sm:$0xff]  ;;  %vm988_vm9 = vcmp.eq.s32.totalorder %v714_v28, %v10563_v51  ;;  %vm991_vm10 = vcmp.eq.s32.totalorder %v717_v37, %v10566_v52 }
 0x133   : > { %v10657_v44 = vpack.c.bf16 %v2257_v39, %v2255_v38  ;;  %9081 = vmatpush1.bf16.msra.mxu1 %v10650_v36  ;;  %v10663_v45 = vpack.c.bf16 %v2256_v41, %v2254_v40  ;;  %vm990_vm11 = vcmp.eq.s32.totalorder %v717_v37, %v10563_v51  ;;  %9006 = vmatpush1.bf16.msra.mxu0 %v10639_v1  ;;  %v2279_v28 = vld [vmem:[#allocation8 + $0x128] sm:$0xff]  ;;  %v2285_v37 = vld [vmem:[#allocation8 + $0x158] sm:$0xff]  ;;  %v2282_v39 = vld [vmem:[#allocation8 + $0x140] sm:$0xff] }
 0x134   : > { %8507 = vmatmul.mubr.msk.f32.gmra.mrb[12].mxu0 %vm976_vm13, %v10207_v57  ;;  %9008 = vmatprep.subr.bf16.mxu0 %v10645_v35  ;;  %v10728_v30 = vpack.c.bf16 %v2281_v29, %v2279_v28  ;;  %v2284_v40 = vld [vmem:[#allocation8 + $0x150] sm:$0xff]  ;;  %v444_v41 = vld [vmem:[%s10457_s19 + $0x18] sm:$0xff] }
 0x135   : > { %8508 = vmatprep.mubr.msk.f32.mxu0 %vm979_vm14, %v10207_v57  ;;  %v720_v46 = vpop.permute.xlu0 %719  ;;  %9066 = vmatprep.subr.bf16.mxu1 %v10657_v44  ;;  %v723_v59 = vpop.permute.xlu1 %722 }
 0x136   : > { %914 = vperm.xlu1 %9184, %v624_v47   ;;  %911 = vperm.xlu0 %9183, %v623_v50   ;;  %v2259_v47 = vld [vmem:[#allocation8 + $0x88] sm:$0xff]  ;;  %v2258_v50 = vld [vmem:[#allocation8 + $0x80] sm:$0xff]  ;;  %vm993_vm12 = vcmp.eq.s32.totalorder %v720_v46, %v10566_v52  ;;  %vm992_vm13 = vcmp.eq.s32.totalorder %v720_v46, %v10563_v51  ;;  %vm995_vm14 = vcmp.eq.s32.totalorder %v723_v59, %v10566_v52 }
 0x137   : > { %v10670_v56 = vpack.c.bf16 %v2261_v49, %v2259_v47  ;;  %9082 = vmatpush1.bf16.msra.mxu1 %v10663_v45  ;;  %v10675_v58 = vpack.c.bf16 %v2260_v53, %v2258_v50  ;;  %9010 = vmatpush1.bf16.msra.mxu0 %v10650_v36  ;;  %v2283_v36 = vld [vmem:[#allocation8 + $0x148] sm:$0xff]  ;;  %v2286_v47 = vld [vmem:[#allocation8 + $0x160] sm:$0xff]  ;;  %v2288_v49 = vld [vmem:[#allocation8 + $0x170] sm:$0xff] }
 0x138   : > { %8509 = vmatmul.mubr.msk.f32.gmra.mrb[14].mxu0 %vm978_vm15, %v10207_v57  ;;  %vm994_vm15 = vcmp.eq.s32.totalorder %v723_v59, %v10563_v51  ;;  %9012 = vmatprep.subr.bf16.mxu0 %v10657_v44  ;;  %v10741_v38 = vpack.c.bf16 %v2285_v37, %v2283_v36  ;;  %v2287_v44 = vld [vmem:[#allocation8 + $0x168] sm:$0xff]  ;;  %v445_v50 = vld [vmem:[%s10457_s19 + $0x20] sm:$0xff]  ;;  %v10763_v53 = vpack.c.bf16 %v2288_v49, %v2286_v47 }
 0x139   : > { %8510 = vmatprep.mubr.msk.f32.mxu0 %vm981_vm0, %v10207_v57  ;;  %9067 = vmatprep.subr.bf16.mxu1 %v10670_v56  ;;  %v726_v5 = vpop.permute.xlu0 %725  ;;  %v729_v12 = vpop.permute.xlu1 %728  ;;  %v2290_v59 = vld [vmem:[#allocation8 + $0x180] sm:$0xff] }
 0x13a   : > { %920 = vperm.xlu1 %9184, %v626_v60   ;;  %917 = vperm.xlu0 %9183, %v625_v62   ;;  %v2263_v60 = vld [vmem:[#allocation8 + $0xa8] sm:$0xff]  ;;  %v2262_v62 = vld [vmem:[#allocation8 + $0xa0] sm:$0xff]  ;;  %vm997_vm0 = vcmp.eq.s32.totalorder %v726_v5, %v10566_v52 }
 0x13b   : > { %v10682_v3 = vpack.c.bf16 %v2265_v61, %v2263_v60  ;;  %9083 = vmatpush1.bf16.msra.mxu1 %v10675_v58  ;;  %v10688_v4 = vpack.c.bf16 %v2264_v63, %v2262_v62  ;;  %9014 = vmatpush1.bf16.msra.mxu0 %v10663_v45  ;;  %v2289_v45 = vld [vmem:[#allocation8 + $0x178] sm:$0xff]  ;;  %v2292_v60 = vld [vmem:[#allocation8 + $0x190] sm:$0xff]  ;;  %v446_v61 = vld [vmem:[%s10457_s19 + $0x28] sm:$0xff] }
 0x13c   : > { %8511 = vmatmul.mubr.msk.f32.gmra.mrb[16].mxu0 %vm980_vm1, %v10207_v57  ;;  %vm996_vm1 = vcmp.eq.s32.totalorder %v726_v5, %v10563_v51  ;;  %9016 = vmatprep.subr.bf16.mxu0 %v10670_v56  ;;  %v10754_v46 = vpack.c.bf16 %v2289_v45, %v2287_v44  ;;  %v2293_v56 = vld [vmem:[#allocation8 + $0x198] sm:$0xff]  ;;  %v10776_v62 = vpack.c.bf16 %v2292_v60, %v2290_v59  ;;  %v2296_v5 = vld [vmem:[#allocation8 + $0x1b0] sm:$0xff] }
 0x13d   : > { %8512 = vmatprep.mubr.msk.f32.mxu0 %vm983_vm2, %v10207_v57  ;;  %9068 = vmatprep.subr.bf16.mxu1 %v10682_v3  ;;  %vm999_vm2 = vcmp.eq.s32.totalorder %v729_v12, %v10566_v52  ;;  %v732_v20 = vpop.permute.xlu0 %731  ;;  %v735_v1 = vpop.permute.xlu1 %734 }
 0x13e   : > { %926 = vperm.xlu1 %9184, %v628_v7   ;;  %923 = vperm.xlu0 %9183, %v627_v8   ;;  %v2269_v7 = vld [vmem:[#allocation8 + $0xd8] sm:$0xff] }
 0x13f   : > { %v10691_v8 = vpack.c.bf16 %v2269_v7, %v2267_v6  ;;  %9084 = vmatpush1.bf16.msra.mxu1 %v10688_v4  ;;  %9018 = vmatpush1.bf16.msra.mxu0 %v10675_v58  ;;  %v447_v6 = vld [vmem:[%s10457_s19 + $0x30] sm:$0xff] }
 0x140   : > { %8513 = vmatmul.mubr.msk.f32.gmra.mrb[18].mxu0 %vm982_vm3, %v10207_v57  ;;  %vm998_vm3 = vcmp.eq.s32.totalorder %v729_v12, %v10563_v51  ;;  %9020 = vmatprep.subr.bf16.mxu0 %v10682_v3  ;;  %v10793_v12 = vpack.c.bf16 %v2301_v10, %v2299_v9  ;;  %v455_v9 = vld [vmem:[%s10819_s14 + $0x30] sm:$0xff] }
 0x141   : > { %8514 = vmatprep.mubr.msk.f32.mxu0 %vm985_vm4, %v10207_v57  ;;  %9069 = vmatprep.subr.bf16.mxu1 %v10691_v8  ;;  %vm1001_vm4 = vcmp.eq.s32.totalorder %v732_v20, %v10566_v52  ;;  %v738_v35 = vpop.permute.xlu0 %737 }
 0x142   : > { %932 = vperm.xlu1 %9184, %v630_v15   ;;  %929 = vperm.xlu0 %9183, %v629_v16   ;;  %v10703_v15 = vpack.c.bf16 %v2273_v14, %v2271_v13  ;;  %v2270_v16 = vld [vmem:[#allocation8 + $0xe0] sm:$0xff]  ;;  %v2300_v13 = vld [vmem:[#allocation8 + $0x1d0] sm:$0xff]  ;;  %v448_v14 = vld [vmem:[%s10457_s19 + $0x38] sm:$0xff] }
 0x143   : > { %9085 = vmatpush1.bf16.msra.mxu1 %v10699_v11  ;;  %v10711_v19 = vpack.c.bf16 %v2272_v18, %v2270_v16  ;;  %9022 = vmatpush1.bf16.msra.mxu0 %v10688_v4  ;;  %v2294_v4 = vld [vmem:[#allocation8 + $0x1a0] sm:$0xff] }
 0x144   : > { %8515 = vmatmul.mubr.msk.f32.gmra.mrb[20].mxu0 %vm984_vm5, %v10207_v57  ;;  %9070 = vmatprep.subr.bf16.mxu1 %v10703_v15  ;;  %vm1000_vm5 = vcmp.eq.s32.totalorder %v732_v20, %v10563_v51  ;;  %v10789_v7 = vpack.c.bf16 %v2296_v5, %v2294_v4  ;;  %v2303_v20 = vld [vmem:[#allocation8 + $0x1e8] sm:$0xff] }
 0x145   : > { %8516 = vmatprep.mubr.msk.f32.mxu0 %vm987_vm6, %v10207_v57  ;;  %vm1003_vm6 = vcmp.eq.s32.totalorder %v735_v1, %v10566_v52  ;;  %9024 = vmatprep.subr.bf16.mxu0 %v10691_v8  ;;  %v454_v5 = vld [vmem:[%s10819_s14 + $0x28] sm:$0xff] }
 0x146   : > { %938 = vperm.xlu1 %9184, %v632_v25   ;;  %935 = vperm.xlu0 %9183, %v631_v26   ;;  %v2276_v25 = vld [vmem:[#allocation8 + $0x110] sm:$0xff]  ;;  %v442_v26 = vld [vmem:[%s10457_s19 + $0x8] sm:$0xff] }
 0x147   : > { %9086 = vmatpush1.bf16.msra.mxu1 %v10711_v19  ;;  %v10724_v27 = vpack.c.bf16 %v2276_v25, %v2274_v24  ;;  %9026 = vmatpush1.bf16.msra.mxu0 %v10699_v11  ;;  %v2298_v11 = vld [vmem:[#allocation8 + $0x1c0] sm:$0xff] }
 0x148   : > { %8517 = vmatmul.mubr.msk.f32.gmra.mrb[22].mxu0 %vm986_vm7, %v10207_v57  ;;  %9071 = vmatprep.subr.bf16.mxu1 %v10715_v23  ;;  %vm1002_vm7 = vcmp.eq.s32.totalorder %v735_v1, %v10563_v51  ;;  %v10802_v16 = vpack.c.bf16 %v2300_v13, %v2298_v11  ;;  %v456_v13 = vld [vmem:[%s10819_s14 + $0x38] sm:$0xff] }
 0x149   : > { %8518 = vmatprep.mubr.msk.f32.mxu0 %vm989_vm8, %v10207_v57  ;;  %2200 = vmatmul.mubr.f32.gmra.mrb[2].mxu1 %v442_v26  ;;  %vm1005_vm8 = vcmp.eq.s32.totalorder %v738_v35, %v10566_v52 }
 0x14a   : > { %944 = vperm.xlu1 %9184, %v634_v33   ;;  %941 = vperm.xlu0 %9183, %v633_v34   ;;  %v443_v33 = vld [vmem:[%s10457_s19 + $0x10] sm:$0xff]  ;;  %v10737_v34 = vpack.c.bf16 %v2280_v32, %v2278_v31 }
 0x14b   : > { %2205 = vmatprep.mubr.f32.mxu1 %v10208_v17  ;;  %9087 = vmatpush1.bf16.msra.mxu1 %v10724_v27 }
 0x14c   : > { %8519 = vmatmul.mubr.msk.f32.gmra.mrb[24].mxu0 %vm988_vm9, %v10207_v57  ;;  %9072 = vmatprep.subr.bf16.mxu1 %v10728_v30  ;;  %vm1004_vm9 = vcmp.eq.s32.totalorder %v738_v35, %v10563_v51 }
 0x14d   : > { %8520 = vmatprep.mubr.msk.f32.mxu0 %vm991_vm10, %v10207_v57  ;;  %2206 = vmatmul.mubr.f32.gmra.mrb[4].mxu1 %v443_v33 }
 0x14e   : > { %950 = vperm.xlu1 %9184, %v636_v42   ;;  %947 = vperm.xlu0 %9183, %v635_v43   ;;  %v10750_v42 = vpack.c.bf16 %v2284_v40, %v2282_v39  ;;  %v741_v43 = vpop.permute.xlu1 %740 }
 0x14f   : > { %2211 = vmatprep.mubr.f32.mxu1 %v10208_v17  ;;  %9088 = vmatpush1.bf16.msra.mxu1 %v10737_v34  ;;  %vm1007_vm10 = vcmp.eq.s32.totalorder %v741_v43, %v10566_v52 }
 0x150   : > { %8521 = vmatmul.mubr.msk.f32.gmra.mrb[26].mxu0 %vm990_vm11, %v10207_v57  ;;  %9073 = vmatprep.subr.bf16.mxu1 %v10741_v38  ;;  %vm1006_vm11 = vcmp.eq.s32.totalorder %v741_v43, %v10563_v51 }
 0x151   : > { %8522 = vmatprep.mubr.msk.f32.mxu0 %vm993_vm12, %v10207_v57  ;;  %2212 = vmatmul.mubr.f32.gmra.mrb[6].mxu1 %v444_v41 }
 0x152   : > { %956 = vperm.xlu1 %9184, %v638_v54   ;;  %953 = vperm.xlu0 %9183, %v637_v55   ;;  %v744_v54 = vpop.permute.xlu0 %743  ;;  %v2291_v55 = vld [vmem:[#allocation8 + $0x188] sm:$0xff]  ;;  %v747_v63 = vpop.permute.xlu1 %746 }
 0x153   : > { %2217 = vmatprep.mubr.f32.mxu1 %v10208_v17  ;;  %9089 = vmatpush1.bf16.msra.mxu1 %v10750_v42  ;;  %v10767_v58 = vpack.c.bf16 %v2293_v56, %v2291_v55  ;;  %vm1009_vm12 = vcmp.eq.s32.totalorder %v744_v54, %v10566_v52 }
 0x154   : > { %8523 = vmatmul.mubr.msk.f32.gmra.mrb[28].mxu0 %vm992_vm13, %v10207_v57  ;;  %9074 = vmatprep.subr.bf16.mxu1 %v10754_v46  ;;  %vm1008_vm13 = vcmp.eq.s32.totalorder %v744_v54, %v10563_v51 }
 0x155   : > { %8524 = vmatprep.mubr.msk.f32.mxu0 %vm995_vm14, %v10207_v57  ;;  %2218 = vmatmul.mubr.f32.gmra.mrb[8].mxu1 %v445_v50  ;;  %vm1011_vm14 = vcmp.eq.s32.totalorder %v747_v63, %v10566_v52 }
 0x156   : > { %962 = vperm.xlu1 %9184, %v640_v0   ;;  %959 = vperm.xlu0 %9183, %v639_v2   ;;  %v2295_v0 = vld [vmem:[#allocation8 + $0x1a8] sm:$0xff]  ;;  %v2297_v2 = vld [vmem:[#allocation8 + $0x1b8] sm:$0xff]  ;;  %v750_v8 = vpop.permute.xlu0 %749  ;;  %v753_v18 = vpop.permute.xlu1 %752 }
 0x157   : > { %2223 = vmatprep.mubr.f32.mxu1 %v10208_v17  ;;  %9090 = vmatpush1.bf16.msra.mxu1 %v10763_v53  ;;  %v10780_v3 = vpack.c.bf16 %v2297_v2, %v2295_v0 }
 0x158   : > { %8525 = vmatmul.mubr.msk.f32.gmra.mrb[30].mxu0 %vm994_vm15, %v10207_v57  ;;  %9075 = vmatprep.subr.bf16.mxu1 %v10767_v58  ;;  %vm1010_vm15 = vcmp.eq.s32.totalorder %v747_v63, %v10563_v51 }
 0x159   : > { %8526 = vmatprep.mubr.msk.f32.mxu0 %vm997_vm0, %v10207_v57  ;;  %2224 = vmatmul.mubr.f32.gmra.mrb[10].mxu1 %v446_v61  ;;  %vm1013_vm0 = vcmp.eq.s32.totalorder %v750_v8, %v10566_v52 }
 0x15a   : > { %2229 = vmatprep.mubr.f32.mxu1 %v10208_v17  ;;  %9028 = vmatprep.subr.bf16.mxu0 %v10703_v15  ;;  %v2302_v15 = vld [vmem:[#allocation8 + $0x1e0] sm:$0xff]  ;;  %v756_v25 = vpop.permute.xlu0 %755  ;;  %v759_v26 = vpop.permute.xlu1 %758 }
 0x15b   : > { %9091 = vmatpush1.bf16.msra.mxu1 %v10776_v62  ;;  %9030 = vmatpush1.bf16.msra.mxu0 %v10711_v19  ;;  %v9061_v24 = vpack.c.bf16 %v2304_v22, %v2302_v15  ;;  %v453_v19 = vld [vmem:[%s10819_s14 + $0x20] sm:$0xff]  ;;  %v2120_v22 = vshrl.u32 %v641_v48, 7 }
 0x15c   : > { %8527 = vmatmul.mubr.msk.f32.gmra.mrb[32].mxu0 %vm996_vm1, %v10207_v57  ;;  %9076 = vmatprep.subr.bf16.mxu1 %v10780_v3  ;;  %vm1012_vm1 = vcmp.eq.s32.totalorder %v750_v8, %v10563_v51 }
 0x15d   : > { %8528 = vmatprep.mubr.msk.f32.mxu0 %vm999_vm2, %v10207_v57  ;;  %2230 = vmatmul.mubr.f32.gmra.mrb[12].mxu1 %v447_v6  ;;  %vm1015_vm2 = vcmp.eq.s32.totalorder %v753_v18, %v10566_v52 }
 0x15e   : > { %2235 = vmatprep.mubr.f32.mxu1 %v10208_v17  ;;  %v10806_v17 = vpack.c.bf16 %v2305_v21, %v2303_v20  ;;  %9032 = vmatprep.subr.bf16.mxu0 %v10715_v23  ;;  %v762_v23 = vpop.permute.xlu0 %761  ;;  %v457_v20 = vld [vmem:[%s10819_s14 + $0x40] sm:$0xff] }
 0x15f   : > { %9092 = vmatpush1.bf16.msra.mxu1 %v10789_v7  ;;  %9034 = vmatpush1.bf16.msra.mxu0 %v10724_v27  ;;  %v765_v27 = vpop.permute.xlu1 %764 }
 0x160   : > { %8529 = vmatmul.mubr.msk.f32.gmra.mrb[34].mxu0 %vm998_vm3, %v10207_v57  ;;  %9077 = vmatprep.subr.bf16.mxu1 %v10793_v12  ;;  %vm1014_vm3 = vcmp.eq.s32.totalorder %v753_v18, %v10563_v51 }
 0x161   : > { %8530 = vmatprep.mubr.msk.f32.mxu0 %vm1001_vm4, %v10207_v57  ;;  %2236 = vmatmul.mubr.f32.gmra.mrb[14].mxu1 %v448_v14  ;;  %vm1017_vm4 = vcmp.eq.s32.totalorder %v756_v25, %v10566_v52 }
 0x162   : > { %3834 = vmatprep.mubr.f32.mxu1 %v453_v19  ;;  %9036 = vmatprep.subr.bf16.mxu0 %v10728_v30  ;;  %v768_v1 = vpop.permute.xlu0 %767  ;;  %v10997_v19 = vsub.s32 0, %v2120_v22 }
 0x163   : > { %9093 = vmatpush1.bf16.msra.mxu1 %v10802_v16  ;;  %9038 = vmatpush1.bf16.msra.mxu0 %v10737_v34  ;;  %v771_v28 = vpop.permute.xlu1 %770 }
 0x164   : > { %8531 = vmatmul.mubr.msk.f32.gmra.mrb[36].mxu0 %vm1000_vm5, %v10207_v57  ;;  %9078 = vmatprep.subr.bf16.mxu1 %v10806_v17  ;;  %vm1016_vm5 = vcmp.eq.s32.totalorder %v756_v25, %v10563_v51  ;;  %15446 = vst [vmem:[#allocation17_spill] sm:$0xff] %v10997_v19 }
 0x165   : > { %8532 = vmatprep.mubr.msk.f32.mxu0 %vm1003_vm6, %v10207_v57  ;;  %vm1019_vm6 = vcmp.eq.s32.totalorder %v759_v26, %v10566_v52  ;;  %9040 = vmatprep.subr.bf16.mxu0 %v10741_v38 }
 0x166   : > { %v774_v29 = vpop.permute.xlu0 %773 }
 0x167   : > { %9094 = vmatpush1.bf16.msra.mxu1 %v9061_v24  ;;  %9042 = vmatpush1.bf16.msra.mxu0 %v10750_v42  ;;  %v777_v30 = vpop.permute.xlu1 %776 }
 0x168   : > { %8533 = vmatmul.mubr.msk.f32.gmra.mrb[38].mxu0 %vm1002_vm7, %v10207_v57  ;;  %vm1018_vm7 = vcmp.eq.s32.totalorder %v759_v26, %v10563_v51  ;;  %9044 = vmatprep.subr.bf16.mxu0 %v10754_v46  ;;  %v10999_v26 = vsub.s32 1, %v2120_v22 }
 0x169   : > { %8534 = vmatprep.mubr.msk.f32.mxu0 %vm1005_vm8, %v10207_v57  ;;  %vm1021_vm8 = vcmp.eq.s32.totalorder %v762_v23, %v10566_v52 }
 0x16a   : > { %v780_v31 = vpop.permute.xlu0 %779  ;;  %15447 = vst [vmem:[#allocation18_spill] sm:$0xff] %v10999_v26 }
 0x16b   : > { %9046 = vmatpush1.bf16.msra.mxu0 %v10763_v53  ;;  %v783_v32 = vpop.permute.xlu1 %782 }
 0x16c   : > { %8535 = vmatmul.mubr.msk.f32.gmra.mrb[40].mxu0 %vm1004_vm9, %v10207_v57  ;;  %vm1020_vm9 = vcmp.eq.s32.totalorder %v762_v23, %v10563_v51  ;;  %9048 = vmatprep.subr.bf16.mxu0 %v10767_v58 }
 0x16d   : > { %8536 = vmatprep.mubr.msk.f32.mxu0 %vm1007_vm10, %v10207_v57  ;;  %vm1023_vm10 = vcmp.eq.s32.totalorder %v765_v27, %v10566_v52 }
 0x16e   : > { %v786_v33 = vpop.permute.xlu0 %785 }
 0x16f   : > { %9050 = vmatpush1.bf16.msra.mxu0 %v10776_v62  ;;  %v789_v34 = vpop.permute.xlu1 %788 }
 0x170   : > { %8537 = vmatmul.mubr.msk.f32.gmra.mrb[42].mxu0 %vm1006_vm11, %v10207_v57  ;;  %vm1022_vm11 = vcmp.eq.s32.totalorder %v765_v27, %v10563_v51  ;;  %9052 = vmatprep.subr.bf16.mxu0 %v10780_v3  ;;  %v2117_v27 = vld [vmem:[%s15332_s6] sm:$0x3] }
 0x171   : > { %8538 = vmatprep.mubr.msk.f32.mxu0 %vm1009_vm12, %v10207_v57  ;;  %vm1025_vm12 = vcmp.eq.s32.totalorder %v768_v1, %v10566_v52 }
 0x172   : > { %v792_v35 = vpop.permute.xlu0 %791 }
 0x173   : > { %9054 = vmatpush1.bf16.msra.mxu0 %v10789_v7  ;;  %v795_v36 = vpop.permute.xlu1 %794 }
 0x174   : > { %8539 = vmatmul.mubr.msk.f32.gmra.mrb[44].mxu0 %vm1008_vm13, %v10207_v57  ;;  %vm1024_vm13 = vcmp.eq.s32.totalorder %v768_v1, %v10563_v51  ;;  %9056 = vmatprep.subr.bf16.mxu0 %v10793_v12  ;;  %v11008_v1 = vrot.slane %v2117_v27, %v10997_v19 }
 0x175   : > { %8540 = vmatprep.mubr.msk.f32.mxu0 %vm1011_vm14, %v10207_v57  ;;  %vm1027_vm14 = vcmp.eq.s32.totalorder %v771_v28, %v10566_v52 }
 0x176   : > { %v798_v37 = vpop.permute.xlu0 %797 }
 0x177   : > { %9058 = vmatpush1.bf16.msra.mxu0 %v10802_v16  ;;  %v801_v38 = vpop.permute.xlu1 %800 }
 0x178   : > { %8541 = vmatmul.mubr.msk.f32.gmra.mrb[46].mxu0 %vm1010_vm15, %v10207_v57  ;;  %vm1026_vm15 = vcmp.eq.s32.totalorder %v771_v28, %v10563_v51  ;;  %9060 = vmatprep.subr.bf16.mxu0 %v10806_v17  ;;  %v11011_v28 = vrot.slane %v2117_v27, %v10999_v26 }
 0x179   : > { %8542 = vmatprep.mubr.msk.f32.mxu0 %vm1013_vm0, %v10207_v57  ;;  %vm1029_vm0 = vcmp.eq.s32.totalorder %v774_v29, %v10566_v52 }
 0x17a   : > { %v804_v39 = vpop.permute.xlu0 %803 }
 0x17b   : > { %9062 = vmatpush1.bf16.msra.mxu0 %v9061_v24  ;;  %v807_v40 = vpop.permute.xlu1 %806  ;;  %v458_v24 = vld [vmem:[%s10819_s14 + $0x48] sm:$0xff] }
 0x17c   : > { %8543 = vmatmul.mubr.msk.f32.gmra.mrb[48].mxu0 %vm1012_vm1, %v10207_v57  ;;  %vm1028_vm1 = vcmp.eq.s32.totalorder %v774_v29, %v10563_v51  ;;  %v10209_v29 = vmov 1966171168  }
 0x17d   : > { %8544 = vmatprep.mubr.msk.f32.mxu0 %vm1015_vm2, %v10207_v57  ;;  %vm1031_vm2 = vcmp.eq.s32.totalorder %v777_v30, %v10566_v52 }
 0x17e   : > { %v810_v41 = vpop.permute.xlu0 %809 }
 0x17f   : > { %v813_v42 = vpop.permute.xlu1 %812 }
 0x180   : > { %8545 = vmatmul.mubr.msk.f32.gmra.mrb[50].mxu0 %vm1014_vm3, %v10207_v57  ;;  %vm1030_vm3 = vcmp.eq.s32.totalorder %v777_v30, %v10563_v51  ;;  %v2325_v30 = vunpack.c.l.s4 %v10209_v29  ;;  %v464_v29 = vld [vmem:[%s10819_s14 + $0x78] sm:$0xff] }
 0x181   : > { %8546 = vmatprep.mubr.msk.f32.mxu0 %vm1017_vm4, %v10207_v57  ;;  %vm1033_vm4 = vcmp.eq.s32.totalorder %v780_v31, %v10566_v52 }
 0x182   : > { %v816_v43 = vpop.permute.xlu0 %815 }
 0x183   : > { %v819_v44 = vpop.permute.xlu1 %818 }
 0x184   : > { %8547 = vmatmul.mubr.msk.f32.gmra.mrb[52].mxu0 %vm1016_vm5, %v10207_v57  ;;  %vm1032_vm5 = vcmp.eq.s32.totalorder %v780_v31, %v10563_v51  ;;  %v459_v31 = vld [vmem:[%s10819_s14 + $0x50] sm:$0xff] }
 0x185   : > { %8548 = vmatprep.mubr.msk.f32.mxu0 %vm1019_vm6, %v10207_v57  ;;  %vm1035_vm6 = vcmp.eq.s32.totalorder %v783_v32, %v10566_v52 }
 0x186   : > { %v822_v45 = vpop.permute.xlu0 %821 }
 0x187   : > { %v825_v46 = vpop.permute.xlu1 %824 }
 0x188   : > { %8549 = vmatmul.mubr.msk.f32.gmra.mrb[54].mxu0 %vm1018_vm7, %v10207_v57  ;;  %vm1034_vm7 = vcmp.eq.s32.totalorder %v783_v32, %v10563_v51 }
 0x189   : > { %8550 = vmatprep.mubr.msk.f32.mxu0 %vm1021_vm8, %v10207_v57  ;;  %vm1037_vm8 = vcmp.eq.s32.totalorder %v786_v33, %v10566_v52 }
 0x18a   : > { %v828_v47 = vpop.permute.xlu0 %827 }
 0x18b   : > { %v831_v49 = vpop.permute.xlu1 %830 }
 0x18c   : > { %8551 = vmatmul.mubr.msk.f32.gmra.mrb[56].mxu0 %vm1020_vm9, %v10207_v57  ;;  %vm1036_vm9 = vcmp.eq.s32.totalorder %v786_v33, %v10563_v51 }
 0x18d   : > { %8552 = vmatprep.mubr.msk.f32.mxu0 %vm1023_vm10, %v10207_v57  ;;  %vm1039_vm10 = vcmp.eq.s32.totalorder %v789_v34, %v10566_v52 }
 0x18e   : > { %v834_v50 = vpop.permute.xlu0 %833 }
 0x18f   : > { %v837_v53 = vpop.permute.xlu1 %836 }
 0x190   : > { %8553 = vmatmul.mubr.msk.f32.gmra.mrb[58].mxu0 %vm1022_vm11, %v10207_v57  ;;  %vm1038_vm11 = vcmp.eq.s32.totalorder %v789_v34, %v10563_v51  ;;  %v2326_v34 = vunpack.c.0.s8 %v2325_v30 }
 0x191   : > { %8554 = vmatprep.mubr.msk.f32.mxu0 %vm1025_vm12, %v10207_v57  ;;  %vm1041_vm12 = vcmp.eq.s32.totalorder %v792_v35, %v10566_v52 }
 0x192   : > { %v840_v54 = vpop.permute.xlu0 %839 }
 0x193   : > { %v843_v58 = vpop.permute.xlu1 %842 }
 0x194   : > { %8555 = vmatmul.mubr.msk.f32.gmra.mrb[60].mxu0 %vm1024_vm13, %v10207_v57  ;;  %vm1040_vm13 = vcmp.eq.s32.totalorder %v792_v35, %v10563_v51 }
 0x195   : > { %8556 = vmatprep.mubr.msk.f32.mxu0 %vm1027_vm14, %v10207_v57  ;;  %vm1043_vm14 = vcmp.eq.s32.totalorder %v795_v36, %v10566_v52 }
 0x196   : > { %v846_v61 = vpop.permute.xlu0 %845 }
 0x197   : > { %v849_v0 = vpop.permute.xlu1 %848 }
 0x198   : > { %8557 = vmatmul.mubr.msk.f32.gmra.mrb[62].mxu0 %vm1026_vm15, %v10207_v57  ;;  %vm1042_vm15 = vcmp.eq.s32.totalorder %v795_v36, %v10563_v51 }
 0x199   : > { %8558 = vmatprep.mubr.msk.f32.mxu0 %vm1029_vm0, %v10207_v57  ;;  %vm1045_vm0 = vcmp.eq.s32.totalorder %v798_v37, %v10566_v52 }
 0x19a   : > { %v852_v4 = vpop.permute.xlu0 %851 }
 0x19b   : > { %v855_v8 = vpop.permute.xlu1 %854 }
 0x19c   : > { %8559 = vmatmul.mubr.msk.f32.gmra.mrb[64].mxu0 %vm1028_vm1, %v10207_v57  ;;  %vm1044_vm1 = vcmp.eq.s32.totalorder %v798_v37, %v10563_v51 }
 0x19d   : > { %8560 = vmatprep.mubr.msk.f32.mxu0 %vm1031_vm2, %v10207_v57  ;;  %vm1047_vm2 = vcmp.eq.s32.totalorder %v801_v38, %v10566_v52 }
 0x19e   : > { %v858_v11 = vpop.permute.xlu0 %857 }
 0x19f   : > { %v861_v18 = vpop.permute.xlu1 %860 }
 0x1a0   : > { %8561 = vmatmul.mubr.msk.f32.gmra.mrb[66].mxu0 %vm1030_vm3, %v10207_v57  ;;  %vm1046_vm3 = vcmp.eq.s32.totalorder %v801_v38, %v10563_v51 }
 0x1a1   : > { %8562 = vmatprep.mubr.msk.f32.mxu0 %vm1033_vm4, %v10207_v57  ;;  %vm1049_vm4 = vcmp.eq.s32.totalorder %v804_v39, %v10566_v52 }
 0x1a2   : > { %v864_v15 = vpop.permute.xlu0 %863 }
 0x1a3   : > { %v867_v48 = vpop.permute.xlu1 %866 }
 0x1a4   : > { %8563 = vmatmul.mubr.msk.f32.gmra.mrb[68].mxu0 %vm1032_vm5, %v10207_v57  ;;  %vm1048_vm5 = vcmp.eq.s32.totalorder %v804_v39, %v10563_v51 }
 0x1a5   : > { %8564 = vmatprep.mubr.msk.f32.mxu0 %vm1035_vm6, %v10207_v57  ;;  %vm1051_vm6 = vcmp.eq.s32.totalorder %v807_v40, %v10566_v52 }
 0x1a6   : > { %v870_v38 = vpop.permute.xlu0 %869 }
 0x1a8   : > { %8565 = vmatmul.mubr.msk.f32.gmra.mrb[70].mxu0 %vm1034_vm7, %v10207_v57  ;;  %vm1050_vm7 = vcmp.eq.s32.totalorder %v807_v40, %v10563_v51  ;;  %v11020_v40 = vsub.s32 %v2326_v34, %v2120_v22 }
 0x1a9   : > { %8566 = vmatprep.mubr.msk.f32.mxu0 %vm1037_vm8, %v10207_v57  ;;  %vm1053_vm8 = vcmp.eq.s32.totalorder %v810_v41, %v10566_v52 }
 0x1ac   : > { %8567 = vmatmul.mubr.msk.f32.gmra.mrb[72].mxu0 %vm1036_vm9, %v10207_v57  ;;  %vm1052_vm9 = vcmp.eq.s32.totalorder %v810_v41, %v10563_v51  ;;  %v460_v41 = vld [vmem:[%s10819_s14 + $0x58] sm:$0xff] }
 0x1ad   : > { %8568 = vmatprep.mubr.msk.f32.mxu0 %vm1039_vm10, %v10207_v57  ;;  %vm1055_vm10 = vcmp.eq.s32.totalorder %v813_v42, %v10566_v52 }
 0x1b0   : > { %8569 = vmatmul.mubr.msk.f32.gmra.mrb[74].mxu0 %vm1038_vm11, %v10207_v57  ;;  %vm1054_vm11 = vcmp.eq.s32.totalorder %v813_v42, %v10563_v51 }
 0x1b1   : > { %8570 = vmatprep.mubr.msk.f32.mxu0 %vm1041_vm12, %v10207_v57  ;;  %vm1057_vm12 = vcmp.eq.s32.totalorder %v816_v43, %v10566_v52 }
 0x1b4   : > { %8571 = vmatmul.mubr.msk.f32.gmra.mrb[76].mxu0 %vm1040_vm13, %v10207_v57  ;;  %vm1056_vm13 = vcmp.eq.s32.totalorder %v816_v43, %v10563_v51 }
 0x1b5   : > { %8572 = vmatprep.mubr.msk.f32.mxu0 %vm1043_vm14, %v10207_v57  ;;  %vm1059_vm14 = vcmp.eq.s32.totalorder %v819_v44, %v10566_v52 }
 0x1b8   : > { %8573 = vmatmul.mubr.msk.f32.gmra.mrb[78].mxu0 %vm1042_vm15, %v10207_v57  ;;  %vm1058_vm15 = vcmp.eq.s32.totalorder %v819_v44, %v10563_v51 }
 0x1b9   : > { %8574 = vmatprep.mubr.msk.f32.mxu0 %vm1045_vm0, %v10207_v57  ;;  %vm1061_vm0 = vcmp.eq.s32.totalorder %v822_v45, %v10566_v52 }
 0x1bc   : > { %8575 = vmatmul.mubr.msk.f32.gmra.mrb[80].mxu0 %vm1044_vm1, %v10207_v57  ;;  %vm1060_vm1 = vcmp.eq.s32.totalorder %v822_v45, %v10563_v51 }
 0x1bd   : > { %8576 = vmatprep.mubr.msk.f32.mxu0 %vm1047_vm2, %v10207_v57  ;;  %vm1063_vm2 = vcmp.eq.s32.totalorder %v825_v46, %v10566_v52 }
 0x1c0   : > { %8577 = vmatmul.mubr.msk.f32.gmra.mrb[82].mxu0 %vm1046_vm3, %v10207_v57  ;;  %vm1062_vm3 = vcmp.eq.s32.totalorder %v825_v46, %v10563_v51  ;;  %v873_v46 = vpop.permute.xlu1 %872 }
 0x1c1   : > { %8578 = vmatprep.mubr.msk.f32.mxu0 %vm1049_vm4, %v10207_v57  ;;  %vm1065_vm4 = vcmp.eq.s32.totalorder %v828_v47, %v10566_v52 }
 0x1c4   : > { %8579 = vmatmul.mubr.msk.f32.gmra.mrb[84].mxu0 %vm1048_vm5, %v10207_v57  ;;  %vm1064_vm5 = vcmp.eq.s32.totalorder %v828_v47, %v10563_v51 }
 0x1c5   : > { %8580 = vmatprep.mubr.msk.f32.mxu0 %vm1051_vm6, %v10207_v57  ;;  %vm1067_vm6 = vcmp.eq.s32.totalorder %v831_v49, %v10566_v52 }
 0x1c8   : > { %8581 = vmatmul.mubr.msk.f32.gmra.mrb[86].mxu0 %vm1050_vm7, %v10207_v57  ;;  %vm1066_vm7 = vcmp.eq.s32.totalorder %v831_v49, %v10563_v51 }
 0x1c9   : > { %8582 = vmatprep.mubr.msk.f32.mxu0 %vm1053_vm8, %v10207_v57  ;;  %vm1069_vm8 = vcmp.eq.s32.totalorder %v834_v50, %v10566_v52 }
 0x1cc   : > { %8583 = vmatmul.mubr.msk.f32.gmra.mrb[88].mxu0 %vm1052_vm9, %v10207_v57  ;;  %vm1068_vm9 = vcmp.eq.s32.totalorder %v834_v50, %v10563_v51  ;;  %v461_v50 = vld [vmem:[%s10819_s14 + $0x60] sm:$0xff] }
 0x1cd   : > { %8584 = vmatprep.mubr.msk.f32.mxu0 %vm1055_vm10, %v10207_v57  ;;  %vm1071_vm10 = vcmp.eq.s32.totalorder %v837_v53, %v10566_v52 }
 0x1d0   : > { %8585 = vmatmul.mubr.msk.f32.gmra.mrb[90].mxu0 %vm1054_vm11, %v10207_v57  ;;  %vm1070_vm11 = vcmp.eq.s32.totalorder %v837_v53, %v10563_v51 }
 0x1d1   : > { %8586 = vmatprep.mubr.msk.f32.mxu0 %vm1057_vm12, %v10207_v57  ;;  %vm1073_vm12 = vcmp.eq.s32.totalorder %v840_v54, %v10566_v52 }
 0x1d4   : > { %8587 = vmatmul.mubr.msk.f32.gmra.mrb[92].mxu0 %vm1056_vm13, %v10207_v57  ;;  %vm1072_vm13 = vcmp.eq.s32.totalorder %v840_v54, %v10563_v51 }
 0x1d5   : > { %8588 = vmatprep.mubr.msk.f32.mxu0 %vm1059_vm14, %v10207_v57  ;;  %vm1075_vm14 = vcmp.eq.s32.totalorder %v843_v58, %v10566_v52 }
 0x1d8   : > { %8589 = vmatmul.mubr.msk.f32.gmra.mrb[94].mxu0 %vm1058_vm15, %v10207_v57  ;;  %vm1074_vm15 = vcmp.eq.s32.totalorder %v843_v58, %v10563_v51 }
 0x1d9   : > { %8590 = vmatprep.mubr.msk.f32.mxu0 %vm1061_vm0, %v10207_v57  ;;  %vm1077_vm0 = vcmp.eq.s32.totalorder %v846_v61, %v10566_v52 }
 0x1dc   : > { %8591 = vmatmul.mubr.msk.f32.gmra.mrb[96].mxu0 %vm1060_vm1, %v10207_v57  ;;  %vm1076_vm1 = vcmp.eq.s32.totalorder %v846_v61, %v10563_v51 }
 0x1dd   : > { %8592 = vmatprep.mubr.msk.f32.mxu0 %vm1063_vm2, %v10207_v57  ;;  %vm1079_vm2 = vcmp.eq.s32.totalorder %v849_v0, %v10566_v52 }
 0x1e0   : > { %8593 = vmatmul.mubr.msk.f32.gmra.mrb[98].mxu0 %vm1062_vm3, %v10207_v57  ;;  %vm1078_vm3 = vcmp.eq.s32.totalorder %v849_v0, %v10563_v51 }
 0x1e1   : > { %8594 = vmatprep.mubr.msk.f32.mxu0 %vm1065_vm4, %v10207_v57  ;;  %vm1081_vm4 = vcmp.eq.s32.totalorder %v852_v4, %v10566_v52 }
 0x1e4   : > { %8595 = vmatmul.mubr.msk.f32.gmra.mrb[100].mxu0 %vm1064_vm5, %v10207_v57  ;;  %vm1080_vm5 = vcmp.eq.s32.totalorder %v852_v4, %v10563_v51 }
 0x1e5   : > { %8596 = vmatprep.mubr.msk.f32.mxu0 %vm1067_vm6, %v10207_v57  ;;  %vm1083_vm6 = vcmp.eq.s32.totalorder %v855_v8, %v10566_v52 }
 0x1e8   : > { %8597 = vmatmul.mubr.msk.f32.gmra.mrb[102].mxu0 %vm1066_vm7, %v10207_v57  ;;  %vm1082_vm7 = vcmp.eq.s32.totalorder %v855_v8, %v10563_v51 }
 0x1e9   : > { %8598 = vmatprep.mubr.msk.f32.mxu0 %vm1069_vm8, %v10207_v57  ;;  %vm1085_vm8 = vcmp.eq.s32.totalorder %v858_v11, %v10566_v52 }
 0x1ec   : > { %8599 = vmatmul.mubr.msk.f32.gmra.mrb[104].mxu0 %vm1068_vm9, %v10207_v57  ;;  %vm1084_vm9 = vcmp.eq.s32.totalorder %v858_v11, %v10563_v51 }
 0x1ed   : > { %8600 = vmatprep.mubr.msk.f32.mxu0 %vm1071_vm10, %v10207_v57  ;;  %vm1087_vm10 = vcmp.eq.s32.totalorder %v861_v18, %v10566_v52 }
 0x1ef   : > { %v10951_v55 = vpop.f32.mrb[0].mxu0 }
 0x1f0   : > { %v1608_v56 = vpop.f32.mrb[1].mxu0  ;;  %8601 = vmatmul.mubr.msk.f32.gmra.mrb[106].mxu0 %vm1070_vm11, %v10207_v57  ;;  %vm1086_vm11 = vcmp.eq.s32.totalorder %v861_v18, %v10563_v51 }
 0x1f1   : > { %8602 = vmatprep.mubr.msk.f32.mxu0 %vm1073_vm12, %v10207_v57  ;;  %vm1089_vm12 = vcmp.eq.s32.totalorder %v864_v15, %v10566_v52 }
 0x1f3   : > { %v10957_v59 = vpop.f32.mrb[2].mxu0 }
 0x1f4   : > { %v1613_v60 = vpop.f32.mrb[3].mxu0  ;;  %8603 = vmatmul.mubr.msk.f32.gmra.mrb[108].mxu0 %vm1072_vm13, %v10207_v57  ;;  %vm1088_vm13 = vcmp.eq.s32.totalorder %v864_v15, %v10563_v51 }
 0x1f5   : > { %8604 = vmatprep.mubr.msk.f32.mxu0 %vm1075_vm14, %v10207_v57  ;;  %vm1091_vm14 = vcmp.eq.s32.totalorder %v867_v48, %v10566_v52 }
 0x1f7   : > { %v10963_v62 = vpop.f32.mrb[4].mxu0 }
 0x1f8   : > { %v1618_v63 = vpop.f32.mrb[5].mxu0  ;;  %8605 = vmatmul.mubr.msk.f32.gmra.mrb[110].mxu0 %vm1074_vm15, %v10207_v57  ;;  %vm1090_vm15 = vcmp.eq.s32.totalorder %v867_v48, %v10563_v51 }
 0x1f9   : > { %8606 = vmatprep.mubr.msk.f32.mxu0 %vm1077_vm0, %v10207_v57  ;;  %vm1093_vm0 = vcmp.eq.s32.totalorder %v870_v38, %v10566_v52  ;;  %v876_v63 = vpop.permute.xlu0 %875 }
 0x1fb   : > { %v10969_v2 = vpop.f32.mrb[6].mxu0  ;;  %v2195_v33 = vpop.f32.mrb[0].mxu1 }
 0x1fc   : > { %v1623_v3 = vpop.f32.mrb[7].mxu0  ;;  %8607 = vmatmul.mubr.msk.f32.gmra.mrb[112].mxu0 %vm1076_vm1, %v10207_v57  ;;  %v2196_v36 = vadd.f32 %v2195_v33, %v11008_v1  ;;  %v2197_v37 = vpop.f32.mrb[1].mxu1  ;;  %vm1092_vm1 = vcmp.eq.s32.totalorder %v870_v38, %v10563_v51  ;;  %v465_v38 = vld [vmem:[%s10819_s14 + $0x80] sm:$0xff] }
 0x1fd   : > { %8608 = vmatprep.mubr.msk.f32.mxu0 %vm1079_vm2, %v10207_v57  ;;  %v2198_v39 = vadd.f32 %v2197_v37, %v11011_v28  ;;  %vm1095_vm2 = vcmp.eq.s32.totalorder %v873_v46, %v10566_v52  ;;  %v882_v48 = vpop.permute.xlu0 %881 }
 0x1ff   : > { %v1626_v6 = vpop.f32.mrb[8].mxu0  ;;  %v2322_v43 = vcombine.low %v2196_v36, %v2198_v39  ;;  %v2323_v44 = vcombine.high %v2196_v36, %v2198_v39 }
 0x200   : > { %v1628_v7 = vpop.f32.mrb[9].mxu0  ;;  %8609 = vmatmul.mubr.msk.f32.gmra.mrb[114].mxu0 %vm1078_vm3, %v10207_v57  ;;  %3835 = vmatmul.mubr.f32.vlgmr.msra.gmra.mrb[16].mxu1 %v1626_v6  ;;  %vm1094_vm3 = vcmp.eq.s32.totalorder %v873_v46, %v10563_v51 }
 0x201   : > { %8610 = vmatprep.mubr.msk.f32.mxu0 %vm1081_vm4, %v10207_v57  ;;  %3840 = vmatprep.mubr.f32.mxu1 %v454_v5  ;;  %v2330_v47 = vrot.slane %v2322_v43, %v11020_v40  ;;  %v2337_v49 = vrot.slane %v2323_v44, %v11020_v40  ;;  %v462_v5 = vld [vmem:[%s10819_s14 + $0x68] sm:$0xff]  ;;  %vm1097_vm4 = vcmp.eq.s32.totalorder %v876_v63, %v10566_v52  ;;  %v888_v44 = vpop.permute.xlu0 %887 }
 0x203   : > { %v1631_v10 = vpop.f32.mrb[10].mxu0  ;;  %v2338_v54 = vcombine.high %v2330_v47, %v2330_v47  ;;  %v2339_v56 = vcombine.high %v2337_v49, %v2337_v49  ;;  %v11032_v58 = vrot.slane %v2330_v47, %v11020_v40  ;;  %v2353_v60 = vrot.slane %v2337_v49, %v11020_v40 }
 0x204   : > { %v1633_v12 = vpop.f32.mrb[11].mxu0  ;;  %8611 = vmatmul.mubr.msk.f32.gmra.mrb[116].mxu0 %vm1080_vm5, %v10207_v57  ;;  %3841 = vmatmul.mubr.f32.gmra.mrb[18].mxu1 %v1631_v10  ;;  %vm1096_vm5 = vcmp.eq.s32.totalorder %v876_v63, %v10563_v51 }
 0x205   : > { %8612 = vmatprep.mubr.msk.f32.mxu0 %vm1083_vm6, %v10207_v57  ;;  %3846 = vmatprep.mubr.f32.mxu1 %v455_v9  ;;  %15448 = vst [vmem:[#allocation19_spill] sm:$0xff] %v11032_v58  ;;  %v11039_v0 = vrot.slane %v2338_v54, %v11020_v40  ;;  %v2367_v3 = vrot.slane %v2339_v56, %v11020_v40  ;;  %v894_v56 = vpop.permute.xlu0 %893 }
 0x206   : > { %v2368_v4 = vcombine.high %v11032_v58, %v11032_v58  ;;  %v11047_v6 = vrot.slane %v2353_v60, %v10997_v19  ;;  %v11058_v12 = vrot.slane %v2353_v60, %v10999_v26  ;;  %v2369_v22 = vcombine.high %v2353_v60, %v2353_v60 }
 0x207   : > { %v1636_v14 = vpop.f32.mrb[12].mxu0  ;;  %15449 = vst [vmem:[#allocation20_spill] sm:$0xff] %v11039_v0  ;;  %v2370_v8 = vcombine.high %v11039_v0, %v11039_v0 }
 0x208   : > { %v1638_v16 = vpop.f32.mrb[13].mxu0  ;;  %8613 = vmatmul.mubr.msk.f32.gmra.mrb[118].mxu0 %vm1082_vm7, %v10207_v57  ;;  %3847 = vmatmul.mubr.f32.gmra.mrb[20].mxu1 %v1636_v14  ;;  %v11052_v9 = vrot.slane %v2368_v4, %v10997_v19  ;;  %v11055_v10 = vrot.slane %v2368_v4, %v10999_v26  ;;  %v11066_v14 = vrot.slane %v2367_v3, %v10999_v26 }
 0x209   : > { %8614 = vmatprep.mubr.msk.f32.mxu0 %vm1085_vm8, %v10207_v57  ;;  %3852 = vmatprep.mubr.f32.mxu1 %v456_v13  ;;  %v11063_v13 = vrot.slane %v2367_v3, %v10997_v19  ;;  %v879_v16 = vpop.permute.xlu1 %878  ;;  %v11070_v18 = vrot.slane %v2370_v8, %v10997_v19  ;;  %v11090_v30 = vrot.slane %v2369_v22, %v10997_v19 }
 0x20a   : > { %15450 = vst [vmem:[#allocation21_spill] sm:$0xff] %v11052_v9  ;;  %15451 = vst [vmem:[#allocation22_spill] sm:$0xff] %v11055_v10  ;;  %vm1099_vm6 = vcmp.eq.s32.totalorder %v879_v16, %v10566_v52  ;;  %vm1098_vm7 = vcmp.eq.s32.totalorder %v879_v16, %v10563_v51  ;;  %vm1101_vm8 = vcmp.eq.s32.totalorder %v882_v48, %v10566_v52  ;;  %v492_v16 = vld [vmem:[%s10819_s14 + $0x158] sm:$0xff] }
 0x20b   : > { %v1641_v21 = vpop.f32.mrb[14].mxu0 }
 0x20c   : > { %v1643_v17 = vpop.f32.mrb[15].mxu0  ;;  %8615 = vmatmul.mubr.msk.f32.gmra.mrb[120].mxu0 %vm1084_vm9, %v10207_v57  ;;  %3853 = vmatmul.mubr.f32.gmra.mrb[22].mxu1 %v1641_v21  ;;  %v463_v21 = vld [vmem:[%s10819_s14 + $0x70] sm:$0xff]  ;;  %vm1100_vm9 = vcmp.eq.s32.totalorder %v882_v48, %v10563_v51 }
 0x20d   : > { %8616 = vmatprep.mubr.msk.f32.mxu0 %vm1087_vm10, %v10207_v57  ;;  %3858 = vmatprep.mubr.f32.mxu1 %v457_v20  ;;  %v11073_v20 = vrot.slane %v2370_v8, %v10999_v26  ;;  %v885_v37 = vpop.permute.xlu1 %884 }
 0x20e   : > { %vm1103_vm10 = vcmp.eq.s32.totalorder %v885_v37, %v10566_v52 }
 0x20f   : > { %v1646_v25 = vpop.f32.mrb[16].mxu0 }
 0x210   : > { %v1648_v23 = vpop.f32.mrb[17].mxu0  ;;  %8617 = vmatmul.mubr.msk.f32.gmra.mrb[122].mxu0 %vm1086_vm11, %v10207_v57  ;;  %3859 = vmatmul.mubr.f32.gmra.mrb[24].mxu1 %v1646_v25  ;;  %vm1102_vm11 = vcmp.eq.s32.totalorder %v885_v37, %v10563_v51  ;;  %v470_v37 = vld [vmem:[%s10819_s14 + $0xa8] sm:$0xff] }
 0x211   : > { %8618 = vmatprep.mubr.msk.f32.mxu0 %vm1089_vm12, %v10207_v57  ;;  %3864 = vmatprep.mubr.f32.mxu1 %v458_v24  ;;  %vm1105_vm12 = vcmp.eq.s32.totalorder %v888_v44, %v10566_v52  ;;  %v891_v49 = vpop.permute.xlu1 %890 }
 0x213   : > { %v1651_v32 = vpop.f32.mrb[18].mxu0 }
 0x214   : > { %v1653_v35 = vpop.f32.mrb[19].mxu0  ;;  %8619 = vmatmul.mubr.msk.f32.gmra.mrb[124].mxu0 %vm1088_vm13, %v10207_v57  ;;  %3865 = vmatmul.mubr.f32.gmra.mrb[26].mxu1 %v1651_v32  ;;  %v2371_v32 = vcombine.high %v2367_v3, %v2367_v3  ;;  %vm1104_vm13 = vcmp.eq.s32.totalorder %v888_v44, %v10563_v51 }
 0x215   : > { %8620 = vmatprep.mubr.msk.f32.mxu0 %vm1091_vm14, %v10207_v57  ;;  %3870 = vmatprep.mubr.f32.mxu1 %v459_v31  ;;  %v11093_v31 = vrot.slane %v2369_v22, %v10999_v26  ;;  %vm1107_vm14 = vcmp.eq.s32.totalorder %v891_v49, %v10566_v52  ;;  %v897_v8 = vpop.permute.xlu1 %896  ;;  %v469_v22 = vld [vmem:[%s10819_s14 + $0xa0] sm:$0xff] }
 0x216   : > { %v11099_v35 = vrot.slane %v2371_v32, %v10997_v19  ;;  %v11102_v36 = vrot.slane %v2371_v32, %v10999_v26 }
 0x217   : > { %v1656_v42 = vpop.f32.mrb[20].mxu0 }
 0x218   : > { %v1658_v45 = vpop.f32.mrb[21].mxu0  ;;  %8621 = vmatmul.mubr.msk.f32.gmra.mrb[126].mxu0 %vm1090_vm15, %v10207_v57  ;;  %3871 = vmatmul.mubr.f32.gmra.mrb[28].mxu1 %v1656_v42  ;;  %vm1106_vm15 = vcmp.eq.s32.totalorder %v891_v49, %v10563_v51 }
 0x219   : > { %8622 = vmatprep.mubr.msk.f32.mxu0 %vm1093_vm0, %v10207_v57  ;;  %3876 = vmatprep.mubr.f32.mxu1 %v460_v41  ;;  %v466_v45 = vld [vmem:[%s10819_s14 + $0x88] sm:$0xff]  ;;  %vm1109_vm0 = vcmp.eq.s32.totalorder %v894_v56, %v10566_v52 }
 0x21b   : > { %v1661_v53 = vpop.f32.mrb[22].mxu0 }
 0x21c   : > { %v1663_v61 = vpop.f32.mrb[23].mxu0  ;;  %8623 = vmatmul.mubr.msk.f32.gmra.mrb[128].mxu0 %vm1092_vm1, %v10207_v57  ;;  %3877 = vmatmul.mubr.f32.gmra.mrb[30].mxu1 %v1661_v53  ;;  %v2201_v60 = vpop.f32.mrb[2].mxu1  ;;  %vm1108_vm1 = vcmp.eq.s32.totalorder %v894_v56, %v10563_v51 }
 0x21d   : > { %8624 = vmatprep.mubr.msk.f32.mxu0 %vm1095_vm2, %v10207_v57  ;;  %3882 = vmatprep.mubr.f32.mxu1 %v461_v50  ;;  %v467_v50 = vld [vmem:[%s10819_s14 + $0x90] sm:$0xff]  ;;  %v468_v61 = vld [vmem:[%s10819_s14 + $0x98] sm:$0xff]  ;;  %v11126_v63 = vadd.f32 %v2201_v60, %v11008_v1  ;;  %v2203_v3 = vpop.f32.mrb[3].mxu1  ;;  %vm1111_vm2 = vcmp.eq.s32.totalorder %v897_v8, %v10566_v52 }
 0x21f   : > { %v1666_v7 = vpop.f32.mrb[24].mxu0 }
 0x220   : > { %v1668_v11 = vpop.f32.mrb[25].mxu0  ;;  %8625 = vmatmul.mubr.msk.f32.gmra.mrb[130].mxu0 %vm1094_vm3, %v10207_v57  ;;  %3883 = vmatmul.mubr.f32.gmra.mrb[32].mxu1 %v1666_v7  ;;  %vm1110_vm3 = vcmp.eq.s32.totalorder %v897_v8, %v10563_v51 }
 0x221   : > { %8626 = vmatprep.mubr.msk.f32.mxu0 %vm1097_vm4, %v10207_v57  ;;  %3888 = vmatprep.mubr.f32.mxu1 %v462_v5  ;;  %v11130_v5 = vadd.f32 %v2203_v3, %v11011_v28 }
 0x223   : > { %v1671_v24 = vpop.f32.mrb[26].mxu0 }
 0x224   : > { %v1673_v27 = vpop.f32.mrb[27].mxu0  ;;  %8627 = vmatmul.mubr.msk.f32.gmra.mrb[132].mxu0 %vm1096_vm5, %v10207_v57  ;;  %3889 = vmatmul.mubr.f32.gmra.mrb[34].mxu1 %v1671_v24 }
 0x225   : > { %8628 = vmatprep.mubr.msk.f32.mxu0 %vm1099_vm6, %v10207_v57  ;;  %3894 = vmatprep.mubr.f32.mxu1 %v463_v21  ;;  %v2207_v21 = vpop.f32.mrb[4].mxu1 }
 0x226   : > { %v2208_v24 = vadd.f32 %v2207_v21, %v11008_v1  ;;  %v2209_v27 = vpop.f32.mrb[5].mxu1 }
 0x227   : > { %v1676_v33 = vpop.f32.mrb[28].mxu0 }
 0x228   : > { %v1678_v34 = vpop.f32.mrb[29].mxu0  ;;  %8629 = vmatmul.mubr.msk.f32.gmra.mrb[134].mxu0 %vm1098_vm7, %v10207_v57  ;;  %3895 = vmatmul.mubr.f32.gmra.mrb[36].mxu1 %v1676_v33  ;;  %v900_v33 = vpop.permute.xlu0 %899 }
 0x229   : > { %8630 = vmatprep.mubr.msk.f32.mxu0 %vm1101_vm8, %v10207_v57  ;;  %3900 = vmatprep.mubr.f32.mxu1 %v464_v29  ;;  %v2210_v29 = vadd.f32 %v2209_v27, %v11011_v28  ;;  %v2213_v34 = vpop.f32.mrb[6].mxu1  ;;  %vm1113_vm4 = vcmp.eq.s32.totalorder %v900_v33, %v10566_v52  ;;  %vm1112_vm5 = vcmp.eq.s32.totalorder %v900_v33, %v10563_v51 }
 0x22a   : > { %v2215_v44 = vpop.f32.mrb[7].mxu1 }
 0x22b   : > { %v1681_v42 = vpop.f32.mrb[30].mxu0  ;;  %v2219_v60 = vpop.f32.mrb[8].mxu1 }
 0x22c   : > { %v1683_v43 = vpop.f32.mrb[31].mxu0  ;;  %8631 = vmatmul.mubr.msk.f32.gmra.mrb[136].mxu0 %vm1100_vm9, %v10207_v57  ;;  %3901 = vmatmul.mubr.f32.gmra.mrb[38].mxu1 %v1681_v42  ;;  %v2423_v42 = vcombine.high %v2208_v24, %v2210_v29  ;;  %v2221_v21 = vpop.f32.mrb[9].mxu1 }
 0x22d   : > { %8632 = vmatprep.mubr.msk.f32.mxu0 %vm1103_vm10, %v10207_v57  ;;  %3906 = vmatprep.mubr.f32.mxu1 %v465_v38  ;;  %v2422_v38 = vcombine.low %v2208_v24, %v2210_v29  ;;  %v2214_v43 = vadd.f32 %v2213_v34, %v11008_v1  ;;  %v2222_v29 = vadd.f32 %v2221_v21, %v11011_v28 }
 0x22f   : > { %v1686_v46 = vpop.f32.mrb[32].mxu0  ;;  %v2430_v49 = vrot.slane %v2422_v38, %v11020_v40  ;;  %v906_v38 = vpop.permute.xlu0 %905 }
 0x230   : > { %v1688_v47 = vpop.f32.mrb[33].mxu0  ;;  %8633 = vmatmul.mubr.msk.f32.gmra.mrb[138].mxu0 %vm1102_vm11, %v10207_v57  ;;  %3907 = vmatmul.mubr.f32.gmra.mrb[40].mxu1 %v1686_v46  ;;  %v2216_v46 = vadd.f32 %v2215_v44, %v11011_v28  ;;  %vm1117_vm8 = vcmp.eq.s32.totalorder %v906_v38, %v10566_v52  ;;  %vm1116_vm9 = vcmp.eq.s32.totalorder %v906_v38, %v10563_v51 }
 0x231   : > { %8634 = vmatprep.mubr.msk.f32.mxu0 %vm1105_vm12, %v10207_v57  ;;  %3912 = vmatprep.mubr.f32.mxu1 %v466_v45  ;;  %v2438_v3 = vcombine.high %v2430_v49, %v2430_v49 }
 0x232   : > { %v2473_v56 = vcombine.high %v2214_v43, %v2216_v46 }
 0x233   : > { %v1691_v53 = vpop.f32.mrb[34].mxu0  ;;  %v11172_v34 = vrot.slane %v2438_v3, %v11020_v40 }
 0x234   : > { %v1693_v54 = vpop.f32.mrb[35].mxu0  ;;  %8635 = vmatmul.mubr.msk.f32.gmra.mrb[140].mxu0 %vm1104_vm13, %v10207_v57  ;;  %3913 = vmatmul.mubr.f32.gmra.mrb[42].mxu1 %v1691_v53  ;;  %v903_v53 = vpop.permute.xlu1 %902  ;;  %v2487_v27 = vrot.slane %v2473_v56, %v11020_v40 }
 0x235   : > { %8636 = vmatprep.mubr.msk.f32.mxu0 %vm1107_vm14, %v10207_v57  ;;  %3918 = vmatprep.mubr.f32.mxu1 %v467_v50  ;;  %v2437_v50 = vrot.slane %v2423_v42, %v11020_v40  ;;  %v2472_v54 = vcombine.low %v2214_v43, %v2216_v46  ;;  %vm1115_vm6 = vcmp.eq.s32.totalorder %v903_v53, %v10566_v52  ;;  %v472_v46 = vld [vmem:[%s10819_s14 + $0xb8] sm:$0xff] }
 0x236   : > { %v2489_v43 = vcombine.high %v2487_v27, %v2487_v27  ;;  %v11183_v33 = vrot.slane %v2487_v27, %v11020_v40  ;;  %vm1114_vm7 = vcmp.eq.s32.totalorder %v903_v53, %v10563_v51 }
 0x237   : > { %v1696_v4 = vpop.f32.mrb[36].mxu0  ;;  %v11161_v8 = vrot.slane %v2437_v50, %v11020_v40  ;;  %v2480_v24 = vrot.slane %v2472_v54, %v11020_v40 }
 0x238   : > { %v1698_v7 = vpop.f32.mrb[37].mxu0  ;;  %8637 = vmatmul.mubr.msk.f32.gmra.mrb[142].mxu0 %vm1106_vm15, %v10207_v57  ;;  %3919 = vmatmul.mubr.f32.gmra.mrb[44].mxu1 %v1696_v4  ;;  %v2439_v4 = vcombine.high %v2437_v50, %v2437_v50  ;;  %15452 = vst [vmem:[#allocation23_spill] sm:$0xff] %v11183_v33  ;;  %v15507_v33 = vcombine.low %v11058_v12, %v11066_v14 }
 0x239   : > { %8638 = vmatprep.mubr.msk.f32.mxu0 %vm1109_vm0, %v10207_v57  ;;  %3924 = vmatprep.mubr.f32.mxu1 %v468_v61  ;;  %v471_v61 = vld [vmem:[%s10819_s14 + $0xb0] sm:$0xff]  ;;  %v11158_v7 = vrot.slane %v2430_v49, %v11020_v40  ;;  %v2488_v42 = vcombine.high %v2480_v24, %v2480_v24  ;;  %v11179_v44 = vrot.slane %v2480_v24, %v11020_v40 }
 0x23b   : > { %v1701_v48 = vpop.f32.mrb[38].mxu0 }
 0x23c   : > { %v1703_v32 = vpop.f32.mrb[39].mxu0  ;;  %8639 = vmatmul.mubr.msk.f32.gmra.mrb[144].mxu0 %vm1108_vm1, %v10207_v57  ;;  %3925 = vmatmul.mubr.f32.gmra.mrb[46].mxu1 %v1701_v48  ;;  %v2220_v48 = vadd.f32 %v2219_v60, %v11008_v1  ;;  %v11188_v60 = vrot.slane %v2488_v42, %v11020_v40 }
 0x23d   : > { %8640 = vmatprep.mubr.msk.f32.mxu0 %vm1111_vm2, %v10207_v57  ;;  %3930 = vmatprep.mubr.f32.mxu1 %v469_v22 }
 0x23e   : > { %v2523_v49 = vcombine.high %v2220_v48, %v2222_v29 }
 0x23f   : > { %v1706_v45 = vpop.f32.mrb[40].mxu0 }
 0x240   : > { %v1708_v47 = vpop.f32.mrb[41].mxu0  ;;  %8641 = vmatmul.mubr.msk.f32.gmra.mrb[146].mxu0 %vm1110_vm3, %v10207_v57  ;;  %3931 = vmatmul.mubr.f32.gmra.mrb[48].mxu1 %v1706_v45  ;;  %v2225_v45 = vpop.f32.mrb[10].mxu1  ;;  %v2537_v53 = vrot.slane %v2523_v49, %v11020_v40 }
 0x241   : > { %8642 = vmatprep.mubr.msk.f32.mxu0 %vm1113_vm4, %v10207_v57  ;;  %3936 = vmatprep.mubr.f32.mxu1 %v470_v37  ;;  %v11175_v37 = vrot.slane %v2439_v4, %v11020_v40  ;;  %v2522_v47 = vcombine.low %v2220_v48, %v2222_v29  ;;  %v2226_v50 = vadd.f32 %v2225_v45, %v11008_v1  ;;  %v2227_v54 = vpop.f32.mrb[11].mxu1  ;;  %v473_v29 = vld [vmem:[%s10819_s14 + $0xc0] sm:$0xff] }
 0x242   : > { %v2228_v3 = vadd.f32 %v2227_v54, %v11011_v28  ;;  %v2231_v48 = vpop.f32.mrb[12].mxu1  ;;  %v2539_v42 = vcombine.high %v2537_v53, %v2537_v53  ;;  %v11205_v45 = vrot.slane %v2537_v53, %v11020_v40  ;;  %v912_v53 = vpop.permute.xlu0 %911 }
 0x243   : > { %v1711_v22 = vpop.f32.mrb[42].mxu0  ;;  %v2530_v21 = vrot.slane %v2522_v47, %v11020_v40  ;;  %v2233_v47 = vpop.f32.mrb[13].mxu1  ;;  %vm1121_vm12 = vcmp.eq.s32.totalorder %v912_v53, %v10566_v52  ;;  %vm1120_vm13 = vcmp.eq.s32.totalorder %v912_v53, %v10563_v51 }
 0x244   : > { %v1713_v32 = vpop.f32.mrb[43].mxu0  ;;  %8643 = vmatmul.mubr.msk.f32.gmra.mrb[148].mxu0 %vm1112_vm5, %v10207_v57  ;;  %3937 = vmatmul.mubr.f32.gmra.mrb[50].mxu1 %v1711_v22  ;;  %v909_v22 = vpop.permute.xlu1 %908  ;;  %v2572_v24 = vcombine.low %v2226_v50, %v2228_v3  ;;  %v2573_v27 = vcombine.high %v2226_v50, %v2228_v3  ;;  %15455 = vst [vmem:[#allocation26_spill] sm:$0xff] %v11205_v45 }
 0x245   : > { %8644 = vmatprep.mubr.msk.f32.mxu0 %vm1115_vm6, %v10207_v57  ;;  %3942 = vmatprep.mubr.f32.mxu1 %v471_v61  ;;  %v11191_v61 = vrot.slane %v2489_v43, %v11020_v40  ;;  %v2538_v32 = vcombine.high %v2530_v21, %v2530_v21  ;;  %v11202_v43 = vrot.slane %v2530_v21, %v11020_v40 }
 0x246   : > { %v2580_v54 = vrot.slane %v2572_v24, %v11020_v40  ;;  %v2234_v50 = vadd.f32 %v2233_v47, %v11011_v28  ;;  %vm1119_vm10 = vcmp.eq.s32.totalorder %v909_v22, %v10566_v52  ;;  %v11219_v21 = vrot.slane %v2539_v42, %v11020_v40  ;;  %v2237_v47 = vpop.f32.mrb[14].mxu1 }
 0x247   : > { %v1716_v56 = vpop.f32.mrb[44].mxu0  ;;  %15453 = vst [vmem:[#allocation24_spill] sm:$0xff] %v11191_v61  ;;  %15454 = vst [vmem:[#allocation25_spill] sm:$0xff] %v11202_v43  ;;  %v2238_v41 = vadd.f32 %v2237_v47, %v11008_v1  ;;  %v2239_v42 = vpop.f32.mrb[15].mxu1  ;;  %vm1118_vm11 = vcmp.eq.s32.totalorder %v909_v22, %v10563_v51 }
 0x248   : > { %v1718_v4 = vpop.f32.mrb[45].mxu0  ;;  %8645 = vmatmul.mubr.msk.f32.gmra.mrb[150].mxu0 %vm1114_vm7, %v10207_v57  ;;  %3943 = vmatmul.mubr.f32.gmra.mrb[52].mxu1 %v1716_v56  ;;  %v2587_v56 = vrot.slane %v2573_v27, %v11020_v40  ;;  %15457 = vst [vmem:[#allocation28_spill] sm:$0xff] %v11219_v21  ;;  %v2588_v24 = vcombine.high %v2580_v54, %v2580_v54 }
 0x249   : > { %8646 = vmatprep.mubr.msk.f32.mxu0 %vm1117_vm8, %v10207_v57  ;;  %3948 = vmatprep.mubr.f32.mxu1 %v472_v46  ;;  %v2232_v46 = vadd.f32 %v2231_v48, %v11008_v1  ;;  %v11216_v4 = vrot.slane %v2538_v32, %v11020_v40  ;;  %v11223_v48 = vrot.slane %v2580_v54, %v11020_v40 }
 0x24a   : > { %v2589_v27 = vcombine.high %v2587_v56, %v2587_v56  ;;  %v11227_v38 = vrot.slane %v2587_v56, %v11020_v40  ;;  %v2240_v15 = vadd.f32 %v2239_v42, %v11011_v28 }
 0x24b   : > { %v1721_v49 = vpop.f32.mrb[46].mxu0  ;;  %15456 = vst [vmem:[#allocation27_spill] sm:$0xff] %v11216_v4  ;;  %15458 = vst [vmem:[#allocation29_spill] sm:$0xff] %v11223_v48  ;;  %v2623_v32 = vcombine.high %v2232_v46, %v2234_v50  ;;  %v3248_v48 = vcombine.low %v11099_v35, %v11102_v36 }
 0x24c   : > { %v1723_v3 = vpop.f32.mrb[47].mxu0  ;;  %8647 = vmatmul.mubr.msk.f32.gmra.mrb[152].mxu0 %vm1116_vm9, %v10207_v57  ;;  %3949 = vmatmul.mubr.f32.gmra.mrb[54].mxu1 %v1721_v49  ;;  %15459 = vst [vmem:[#allocation30_spill] sm:$0xff] %v11227_v38  ;;  %v2622_v49 = vcombine.low %v2232_v46, %v2234_v50  ;;  %v11235_v54 = vrot.slane %v2589_v27, %v11020_v40  ;;  %v915_v46 = vpop.permute.xlu1 %914  ;;  %v475_v27 = vld [vmem:[%s10819_s14 + $0xd0] sm:$0xff] }
 0x24d   : > { %8648 = vmatprep.mubr.msk.f32.mxu0 %vm1119_vm10, %v10207_v57  ;;  %3954 = vmatprep.mubr.f32.mxu1 %v473_v29  ;;  %v474_v3 = vld [vmem:[%s10819_s14 + $0xc8] sm:$0xff]  ;;  %v11232_v29 = vrot.slane %v2588_v24, %v11020_v40  ;;  %v2637_v22 = vrot.slane %v2623_v32, %v11020_v40  ;;  %v2672_v50 = vcombine.low %v2238_v41, %v2240_v15 }
 0x24e   : > { %15461 = vst [vmem:[#allocation32_spill] sm:$0xff] %v11235_v54  ;;  %v2630_v1 = vrot.slane %v2622_v49, %v11020_v40  ;;  %v2673_v24 = vcombine.high %v2238_v41, %v2240_v15  ;;  %vm1123_vm14 = vcmp.eq.s32.totalorder %v915_v46, %v10566_v52  ;;  %vm1122_vm15 = vcmp.eq.s32.totalorder %v915_v46, %v10563_v51 }
 0x24f   : > { %v1726_v39 = vpop.f32.mrb[48].mxu0  ;;  %15460 = vst [vmem:[#allocation31_spill] sm:$0xff] %v11232_v29  ;;  %v2639_v17 = vcombine.high %v2637_v22, %v2637_v22  ;;  %v11248_v42 = vrot.slane %v2637_v22, %v11020_v40  ;;  %v2680_v49 = vrot.slane %v2672_v50, %v11020_v40  ;;  %v476_v50 = vld [vmem:[%s10819_s14 + $0xd8] sm:$0xff] }
 0x250   : > { %v1728_v56 = vpop.f32.mrb[49].mxu0  ;;  %8649 = vmatmul.mubr.msk.f32.gmra.mrb[154].mxu0 %vm1118_vm11, %v10207_v57  ;;  %3955 = vmatmul.mubr.f32.gmra.mrb[56].mxu1 %v1726_v39  ;;  %v2638_v47 = vcombine.high %v2630_v1, %v2630_v1  ;;  %v11245_v28 = vrot.slane %v2630_v1, %v11020_v40  ;;  %v2687_v32 = vrot.slane %v2673_v24, %v11020_v40 }
 0x251   : > { %8650 = vmatprep.mubr.msk.f32.mxu0 %vm1121_vm12, %v10207_v57  ;;  %3960 = vmatprep.mubr.f32.mxu1 %v474_v3  ;;  %15463 = vst [vmem:[#allocation34_spill] sm:$0xff] %v11248_v42  ;;  %v11259_v3 = vrot.slane %v2639_v17, %v11020_v40  ;;  %v918_v56 = vpop.permute.xlu0 %917  ;;  %v2688_v53 = vcombine.high %v2680_v49, %v2680_v49 }
 0x252   : > { %15462 = vst [vmem:[#allocation33_spill] sm:$0xff] %v11245_v28  ;;  %v11256_v41 = vrot.slane %v2638_v47, %v11020_v40  ;;  %v2689_v1 = vcombine.high %v2687_v32, %v2687_v32  ;;  %v11263_v22 = vrot.slane %v2680_v49, %v11020_v40  ;;  %v11267_v24 = vrot.slane %v2687_v32, %v11020_v40  ;;  %v921_v49 = vpop.permute.xlu1 %920  ;;  %v477_v32 = vld [vmem:[%s10819_s14 + $0xe0] sm:$0xff] }
 0x253   : > { %v1731_v39 = vpop.f32.mrb[50].mxu0  ;;  %15465 = vst [vmem:[#allocation36_spill] sm:$0xff] %v11259_v3  ;;  %v11271_v17 = vrot.slane %v2688_v53, %v11020_v40  ;;  %vm1125_vm0 = vcmp.eq.s32.totalorder %v918_v56, %v10566_v52  ;;  %vm1124_vm1 = vcmp.eq.s32.totalorder %v918_v56, %v10563_v51  ;;  %vm1127_vm2 = vcmp.eq.s32.totalorder %v921_v49, %v10566_v52  ;;  %v505_v3 = vld [vmem:[%s10819_s14 + $0x1c0] sm:$0xff] }
 0x254   : > { %v1733_v15 = vpop.f32.mrb[51].mxu0  ;;  %8651 = vmatmul.mubr.msk.f32.gmra.mrb[156].mxu0 %vm1120_vm13, %v10207_v57  ;;  %3961 = vmatmul.mubr.f32.gmra.mrb[58].mxu1 %v1731_v39  ;;  %15464 = vst [vmem:[#allocation35_spill] sm:$0xff] %v11256_v41  ;;  %15466 = vst [vmem:[#allocation37_spill] sm:$0xff] %v11263_v22  ;;  %v11274_v39 = vrot.slane %v2689_v1, %v11020_v40  ;;  %v478_v1 = vld [vmem:[%s10819_s14 + $0xe8] sm:$0xff]  ;;  %vm1126_vm3 = vcmp.eq.s32.totalorder %v921_v49, %v10563_v51 }
 0x255   : > { %8652 = vmatprep.mubr.msk.f32.mxu0 %vm1123_vm14, %v10207_v57  ;;  %3966 = vmatprep.mubr.f32.mxu1 %v475_v27  ;;  %15467 = vst [vmem:[#allocation38_spill] sm:$0xff] %v11267_v24  ;;  %15468 = vst [vmem:[#allocation39_spill] sm:$0xff] %v11271_v17  ;;  %v924_v53 = vpop.permute.xlu0 %923 }
 0x256   : > { %15469 = vst [vmem:[#allocation40_spill] sm:$0xff] %v11274_v39  ;;  %vm1129_vm4 = vcmp.eq.s32.totalorder %v924_v53, %v10566_v52  ;;  %v927_v56 = vpop.permute.xlu1 %926  ;;  %vm1128_vm5 = vcmp.eq.s32.totalorder %v924_v53, %v10563_v51  ;;  %v502_v39 = vld [vmem:[%s10819_s14 + $0x1a8] sm:$0xff] }
 0x257   : > { %v1736_v47 = vpop.f32.mrb[52].mxu0  ;;  %vm1131_vm6 = vcmp.eq.s32.totalorder %v927_v56, %v10566_v52  ;;  %vm1130_vm7 = vcmp.eq.s32.totalorder %v927_v56, %v10563_v51 }
 0x258   : > { %v1738_v27 = vpop.f32.mrb[53].mxu0  ;;  %8653 = vmatmul.mubr.msk.f32.gmra.mrb[158].mxu0 %vm1122_vm15, %v10207_v57  ;;  %3967 = vmatmul.mubr.f32.gmra.mrb[60].mxu1 %v1736_v47 }
 0x259   : > { %8654 = vmatprep.mubr.msk.f32.mxu0 %vm1125_vm0, %v10207_v57  ;;  %3972 = vmatprep.mubr.f32.mxu1 %v476_v50  ;;  %v479_v27 = vld [vmem:[%s10819_s14 + $0xf0] sm:$0xff]  ;;  %v930_v49 = vpop.permute.xlu0 %929 }
 0x25a   : > { %vm1133_vm8 = vcmp.eq.s32.totalorder %v930_v49, %v10566_v52  ;;  %v933_v53 = vpop.permute.xlu1 %932  ;;  %vm1132_vm9 = vcmp.eq.s32.totalorder %v930_v49, %v10563_v51 }
 0x25b   : > { %v1741_v46 = vpop.f32.mrb[54].mxu0  ;;  %vm1135_vm10 = vcmp.eq.s32.totalorder %v933_v53, %v10566_v52  ;;  %vm1134_vm11 = vcmp.eq.s32.totalorder %v933_v53, %v10563_v51 }
 0x25c   : > { %v1743_v15 = vpop.f32.mrb[55].mxu0  ;;  %8655 = vmatmul.mubr.msk.f32.gmra.mrb[160].mxu0 %vm1124_vm1, %v10207_v57  ;;  %3973 = vmatmul.mubr.f32.gmra.mrb[62].mxu1 %v1741_v46 }
 0x25d   : > { %8656 = vmatprep.mubr.msk.f32.mxu0 %vm1127_vm2, %v10207_v57  ;;  %3978 = vmatprep.mubr.f32.mxu1 %v477_v32  ;;  %v480_v15 = vld [vmem:[%s10819_s14 + $0xf8] sm:$0xff]  ;;  %v936_v56 = vpop.permute.xlu0 %935 }
 0x25e   : > { %vm1137_vm12 = vcmp.eq.s32.totalorder %v936_v56, %v10566_v52  ;;  %v939_v49 = vpop.permute.xlu1 %938  ;;  %vm1136_vm13 = vcmp.eq.s32.totalorder %v936_v56, %v10563_v51 }
 0x25f   : > { %v1746_v47 = vpop.f32.mrb[56].mxu0  ;;  %vm1139_vm14 = vcmp.eq.s32.totalorder %v939_v49, %v10566_v52  ;;  %vm1138_vm15 = vcmp.eq.s32.totalorder %v939_v49, %v10563_v51 }
 0x260   : > { %v1748_v50 = vpop.f32.mrb[57].mxu0  ;;  %8657 = vmatmul.mubr.msk.f32.gmra.mrb[162].mxu0 %vm1126_vm3, %v10207_v57  ;;  %3979 = vmatmul.mubr.f32.gmra.mrb[64].mxu1 %v1746_v47 }
 0x261   : > { %8658 = vmatprep.mubr.msk.f32.mxu0 %vm1129_vm4, %v10207_v57  ;;  %3984 = vmatprep.mubr.f32.mxu1 %v478_v1  ;;  %v481_v50 = vld [vmem:[%s10819_s14 + $0x100] sm:$0xff]  ;;  %v942_v53 = vpop.permute.xlu0 %941 }
 0x262   : > { %vm1141_vm0 = vcmp.eq.s32.totalorder %v942_v53, %v10566_v52  ;;  %v945_v56 = vpop.permute.xlu1 %944  ;;  %vm1140_vm1 = vcmp.eq.s32.totalorder %v942_v53, %v10563_v51 }
 0x263   : > { %v1751_v46 = vpop.f32.mrb[58].mxu0  ;;  %vm1143_vm2 = vcmp.eq.s32.totalorder %v945_v56, %v10566_v52  ;;  %vm1142_vm3 = vcmp.eq.s32.totalorder %v945_v56, %v10563_v51 }
 0x264   : > { %v1753_v32 = vpop.f32.mrb[59].mxu0  ;;  %8659 = vmatmul.mubr.msk.f32.gmra.mrb[164].mxu0 %vm1128_vm5, %v10207_v57  ;;  %3985 = vmatmul.mubr.f32.gmra.mrb[66].mxu1 %v1751_v46 }
 0x265   : > { %8660 = vmatprep.mubr.msk.f32.mxu0 %vm1131_vm6, %v10207_v57  ;;  %3990 = vmatprep.mubr.f32.mxu1 %v479_v27  ;;  %v482_v32 = vld [vmem:[%s10819_s14 + $0x108] sm:$0xff]  ;;  %v948_v49 = vpop.permute.xlu0 %947 }
 0x266   : > { %vm1145_vm4 = vcmp.eq.s32.totalorder %v948_v49, %v10566_v52  ;;  %v951_v53 = vpop.permute.xlu1 %950  ;;  %vm1144_vm5 = vcmp.eq.s32.totalorder %v948_v49, %v10563_v51 }
 0x267   : > { %v1756_v47 = vpop.f32.mrb[60].mxu0  ;;  %vm1147_vm6 = vcmp.eq.s32.totalorder %v951_v53, %v10566_v52 }
 0x268   : > { %v1758_v1 = vpop.f32.mrb[61].mxu0  ;;  %8661 = vmatmul.mubr.msk.f32.gmra.mrb[166].mxu0 %vm1130_vm7, %v10207_v57  ;;  %3991 = vmatmul.mubr.f32.gmra.mrb[68].mxu1 %v1756_v47  ;;  %vm1146_vm7 = vcmp.eq.s32.totalorder %v951_v53, %v10563_v51 }
 0x269   : > { %8662 = vmatprep.mubr.msk.f32.mxu0 %vm1133_vm8, %v10207_v57  ;;  %3996 = vmatprep.mubr.f32.mxu1 %v480_v15  ;;  %v483_v1 = vld [vmem:[%s10819_s14 + $0x110] sm:$0xff]  ;;  %v954_v56 = vpop.permute.xlu0 %953 }
 0x26a   : > { %vm1149_vm8 = vcmp.eq.s32.totalorder %v954_v56, %v10566_v52  ;;  %v957_v49 = vpop.permute.xlu1 %956 }
 0x26b   : > { %v1761_v46 = vpop.f32.mrb[62].mxu0 }
 0x26c   : > { %v1763_v27 = vpop.f32.mrb[63].mxu0  ;;  %8663 = vmatmul.mubr.msk.f32.gmra.mrb[168].mxu0 %vm1132_vm9, %v10207_v57  ;;  %3997 = vmatmul.mubr.f32.gmra.mrb[70].mxu1 %v1761_v46  ;;  %vm1148_vm9 = vcmp.eq.s32.totalorder %v954_v56, %v10563_v51  ;;  %v11351_v56 = vrot.slane %v11158_v7, %v10999_v26 }
 0x26d   : > { %8664 = vmatprep.mubr.msk.f32.mxu0 %vm1135_vm10, %v10207_v57  ;;  %4002 = vmatprep.mubr.f32.mxu1 %v481_v50  ;;  %v484_v27 = vld [vmem:[%s10819_s14 + $0x118] sm:$0xff]  ;;  %vm1151_vm10 = vcmp.eq.s32.totalorder %v957_v49, %v10566_v52  ;;  %v960_v53 = vpop.permute.xlu0 %959 }
 0x26e   : > { %15471 = vst [vmem:[#allocation42_spill] sm:$0xff] %v11351_v56 }
 0x26f   : > { %v1766_v47 = vpop.f32.mrb[64].mxu0 }
 0x270   : > { %v1768_v15 = vpop.f32.mrb[65].mxu0  ;;  %8665 = vmatmul.mubr.msk.f32.gmra.mrb[170].mxu0 %vm1134_vm11, %v10207_v57  ;;  %4003 = vmatmul.mubr.f32.gmra.mrb[72].mxu1 %v1766_v47  ;;  %vm1150_vm11 = vcmp.eq.s32.totalorder %v957_v49, %v10563_v51  ;;  %v491_v49 = vld [vmem:[%s10819_s14 + $0x150] sm:$0xff] }
 0x271   : > { %8666 = vmatprep.mubr.msk.f32.mxu0 %vm1137_vm12, %v10207_v57  ;;  %4008 = vmatprep.mubr.f32.mxu1 %v482_v32  ;;  %v485_v15 = vld [vmem:[%s10819_s14 + $0x120] sm:$0xff]  ;;  %vm1153_vm12 = vcmp.eq.s32.totalorder %v960_v53, %v10566_v52 }
 0x273   : > { %v1771_v46 = vpop.f32.mrb[66].mxu0 }
 0x274   : > { %v1773_v50 = vpop.f32.mrb[67].mxu0  ;;  %8667 = vmatmul.mubr.msk.f32.gmra.mrb[172].mxu0 %vm1136_vm13, %v10207_v57  ;;  %4009 = vmatmul.mubr.f32.gmra.mrb[74].mxu1 %v1771_v46  ;;  %vm1152_vm13 = vcmp.eq.s32.totalorder %v960_v53, %v10563_v51 }
 0x275   : > { %8668 = vmatprep.mubr.msk.f32.mxu0 %vm1139_vm14, %v10207_v57  ;;  %4014 = vmatprep.mubr.f32.mxu1 %v483_v1  ;;  %v486_v50 = vld [vmem:[%s10819_s14 + $0x128] sm:$0xff] }
 0x277   : > { %v1776_v47 = vpop.f32.mrb[68].mxu0 }
 0x278   : > { %v1778_v32 = vpop.f32.mrb[69].mxu0  ;;  %8669 = vmatmul.mubr.msk.f32.gmra.mrb[174].mxu0 %vm1138_vm15, %v10207_v57  ;;  %4015 = vmatmul.mubr.f32.gmra.mrb[76].mxu1 %v1776_v47 }
 0x279   : > { %8670 = vmatprep.mubr.msk.f32.mxu0 %vm1141_vm0, %v10207_v57  ;;  %4020 = vmatprep.mubr.f32.mxu1 %v484_v27  ;;  %v487_v32 = vld [vmem:[%s10819_s14 + $0x130] sm:$0xff] }
 0x27b   : > { %v1781_v46 = vpop.f32.mrb[70].mxu0 }
 0x27c   : > { %v1783_v1 = vpop.f32.mrb[71].mxu0  ;;  %8671 = vmatmul.mubr.msk.f32.gmra.mrb[176].mxu0 %vm1140_vm1, %v10207_v57  ;;  %4021 = vmatmul.mubr.f32.gmra.mrb[78].mxu1 %v1781_v46 }
 0x27d   : > { %8672 = vmatprep.mubr.msk.f32.mxu0 %vm1143_vm2, %v10207_v57  ;;  %4026 = vmatprep.mubr.f32.mxu1 %v485_v15  ;;  %v488_v1 = vld [vmem:[%s10819_s14 + $0x138] sm:$0xff] }
 0x27f   : > { %v1786_v47 = vpop.f32.mrb[72].mxu0 }
 0x280   : > { %v1788_v27 = vpop.f32.mrb[73].mxu0  ;;  %8673 = vmatmul.mubr.msk.f32.gmra.mrb[178].mxu0 %vm1142_vm3, %v10207_v57  ;;  %4027 = vmatmul.mubr.f32.gmra.mrb[80].mxu1 %v1786_v47  ;;  %vm7139_vm3 = vcmask 1043456  }
 0x281   : > { %8674 = vmatprep.mubr.msk.f32.mxu0 %vm1145_vm4, %v10207_v57  ;;  %4032 = vmatprep.mubr.f32.mxu1 %v486_v50  ;;  %v489_v27 = vld [vmem:[%s10819_s14 + $0x140] sm:$0xff] }
 0x283   : > { %v1791_v46 = vpop.f32.mrb[74].mxu0 }
 0x284   : > { %v1793_v15 = vpop.f32.mrb[75].mxu0  ;;  %8675 = vmatmul.mubr.msk.f32.gmra.mrb[180].mxu0 %vm1144_vm5, %v10207_v57  ;;  %4033 = vmatmul.mubr.f32.gmra.mrb[82].mxu1 %v1791_v46 }
 0x285   : > { %8676 = vmatprep.mubr.msk.f32.mxu0 %vm1147_vm6, %v10207_v57  ;;  %4038 = vmatprep.mubr.f32.mxu1 %v487_v32  ;;  %v490_v15 = vld [vmem:[%s10819_s14 + $0x148] sm:$0xff] }
 0x287   : > { %v1796_v47 = vpop.f32.mrb[76].mxu0 }
 0x288   : > { %v1798_v50 = vpop.f32.mrb[77].mxu0  ;;  %8677 = vmatmul.mubr.msk.f32.gmra.mrb[182].mxu0 %vm1146_vm7, %v10207_v57  ;;  %4039 = vmatmul.mubr.f32.gmra.mrb[84].mxu1 %v1796_v47  ;;  %v11347_v47 = vrot.slane %v11158_v7, %v10997_v19 }
 0x289   : > { %8678 = vmatprep.mubr.msk.f32.mxu0 %vm1149_vm8, %v10207_v57  ;;  %4044 = vmatprep.mubr.f32.mxu1 %v488_v1 }
 0x28a   : > { %15470 = vst [vmem:[#allocation41_spill] sm:$0xff] %v11347_v47 }
 0x28b   : > { %v1801_v46 = vpop.f32.mrb[78].mxu0 }
 0x28c   : > { %v1803_v32 = vpop.f32.mrb[79].mxu0  ;;  %8679 = vmatmul.mubr.msk.f32.gmra.mrb[184].mxu0 %vm1148_vm9, %v10207_v57  ;;  %4045 = vmatmul.mubr.f32.gmra.mrb[86].mxu1 %v1801_v46  ;;  %v11362_v46 = vrot.slane %v11172_v34, %v10999_v26 }
 0x28d   : > { %8680 = vmatprep.mubr.msk.f32.mxu0 %vm1151_vm10, %v10207_v57  ;;  %4050 = vmatprep.mubr.f32.mxu1 %v489_v27  ;;  %v11358_v27 = vrot.slane %v11172_v34, %v10997_v19  ;;  %v963_v32 = vpop.permute.xlu1 %962 }
 0x28e   : > { %15473 = vst [vmem:[#allocation44_spill] sm:$0xff] %v11362_v46  ;;  %vm1155_vm14 = vcmp.eq.s32.totalorder %v963_v32, %v10566_v52  ;;  %vm1154_vm15 = vcmp.eq.s32.totalorder %v963_v32, %v10563_v51  ;;  %v450_v52 = vld [vmem:[%s10819_s14 + $0x8] sm:$0xff]  ;;  %v2470_v51 = vcombine.high %v11172_v34, %v11172_v34 }
 0x28f   : > { %v1806_v1 = vpop.f32.mrb[80].mxu0  ;;  %15472 = vst [vmem:[#allocation43_spill] sm:$0xff] %v11358_v27 }
 0x290   : > { %v1808_v50 = vpop.f32.mrb[81].mxu0  ;;  %8681 = vmatmul.mubr.msk.f32.gmra.mrb[186].mxu0 %vm1150_vm11, %v10207_v57  ;;  %4051 = vmatmul.mubr.f32.gmra.mrb[88].mxu1 %v1806_v1 }
 0x291   : > { %8682 = vmatprep.mubr.msk.f32.mxu0 %vm1153_vm12, %v10207_v57  ;;  %4056 = vmatprep.mubr.f32.mxu1 %v490_v15  ;;  %v449_v15 = vld [vmem:[%s10819_s14] sm:$0xff]  ;;  %v2468_v50 = vcombine.high %v11158_v7, %v11158_v7 }
 0x293   : > { %v1811_v23 = vpop.f32.mrb[82].mxu0 }
 0x294   : > { %v1813_v25 = vpop.f32.mrb[83].mxu0  ;;  %8683 = vmatmul.mubr.msk.f32.gmra.mrb[188].mxu0 %vm1152_vm13, %v10207_v57  ;;  %4057 = vmatmul.mubr.f32.gmra.mrb[90].mxu1 %v1811_v23  ;;  %v11383_v23 = vrot.slane %v2468_v50, %v10997_v19 }
 0x295   : > { %8684 = vmatprep.mubr.msk.f32.mxu0 %vm1155_vm14, %v10207_v57  ;;  %4062 = vmatprep.mubr.f32.mxu1 %v491_v49  ;;  %v493_v25 = vld [vmem:[%s10819_s14 + $0x160] sm:$0xff]  ;;  %v11386_v49 = vrot.slane %v2468_v50, %v10999_v26  ;;  %v451_v50 = vld [vmem:[%s10819_s14 + $0x10] sm:$0xff] }
 0x296   : > { %15474 = vst [vmem:[#allocation45_spill] sm:$0xff] %v11383_v23 }
 0x297   : > { %v1816_v53 = vpop.f32.mrb[84].mxu0  ;;  %15475 = vst [vmem:[#allocation46_spill] sm:$0xff] %v11386_v49 }
 0x298   : > { %v1818_v1 = vpop.f32.mrb[85].mxu0  ;;  %8685 = vmatmul.mubr.msk.f32.gmra.mrb[190].mxu0 %vm1154_vm15, %v10207_v57  ;;  %4063 = vmatmul.mubr.f32.gmra.mrb[92].mxu1 %v1816_v53  ;;  %v11392_v57 = vrot.slane %v2470_v51, %v10997_v19 }
 0x299   : > { %3810 = vmatprep.mubr.f32.mxu0 %v449_v15  ;;  %4068 = vmatprep.mubr.f32.mxu1 %v492_v16  ;;  %v11395_v16 = vrot.slane %v2470_v51, %v10999_v26  ;;  %v494_v1 = vld [vmem:[%s10819_s14 + $0x168] sm:$0xff]  ;;  %v452_v51 = vld [vmem:[%s10819_s14 + $0x18] sm:$0xff] }
 0x29a   : > { %15476 = vst [vmem:[#allocation47_spill] sm:$0xff] %v11392_v57 }
 0x29b   : > { %v1821_v7 = vpop.f32.mrb[86].mxu0  ;;  %15477 = vst [vmem:[#allocation48_spill] sm:$0xff] %v11395_v16 }
 0x29c   : > { %v1823_v32 = vpop.f32.mrb[87].mxu0  ;;  %3811 = vmatmul.mubr.f32.vlgmr.msra.gmra.mrb[192].mxu0 %v10951_v55  ;;  %4069 = vmatmul.mubr.f32.gmra.mrb[94].mxu1 %v1821_v7 }
 0x29d   : > { %3816 = vmatprep.mubr.f32.mxu0 %v450_v52  ;;  %4074 = vmatprep.mubr.f32.mxu1 %v493_v25  ;;  %v495_v52 = vld [vmem:[%s10819_s14 + $0x170] sm:$0xff]  ;;  %v496_v32 = vld [vmem:[%s10819_s14 + $0x178] sm:$0xff] }
 0x29f   : > { %v1826_v15 = vpop.f32.mrb[88].mxu0 }
 0x2a0   : > { %v1828_v53 = vpop.f32.mrb[89].mxu0  ;;  %3817 = vmatmul.mubr.f32.gmra.mrb[194].mxu0 %v10957_v59  ;;  %4075 = vmatmul.mubr.f32.gmra.mrb[96].mxu1 %v1826_v15  ;;  %v497_v59 = vld [vmem:[%s10819_s14 + $0x180] sm:$0xff]  ;;  %v498_v15 = vld [vmem:[%s10819_s14 + $0x188] sm:$0xff] }
 0x2a1   : > { %3822 = vmatprep.mubr.f32.mxu0 %v451_v50  ;;  %4080 = vmatprep.mubr.f32.mxu1 %v494_v1 }
 0x2a3   : > { %v1831_v25 = vpop.f32.mrb[90].mxu0 }
 0x2a4   : > { %v1833_v7 = vpop.f32.mrb[91].mxu0  ;;  %3823 = vmatmul.mubr.f32.gmra.mrb[196].mxu0 %v10963_v62  ;;  %4081 = vmatmul.mubr.f32.gmra.mrb[98].mxu1 %v1831_v25  ;;  %v11413_v62 = vrot.slane %v11161_v8, %v10997_v19  ;;  %v2469_v25 = vcombine.high %v11161_v8, %v11161_v8 }
 0x2a5   : > { %3828 = vmatprep.mubr.f32.mxu0 %v452_v51  ;;  %4086 = vmatprep.mubr.f32.mxu1 %v495_v52  ;;  %v11422_v51 = vrot.slane %v11175_v37, %v10997_v19  ;;  %v11426_v52 = vrot.slane %v11175_v37, %v10999_v26 }
 0x2a6   : > { %15478 = vst [vmem:[#allocation49_spill] sm:$0xff] %v11413_v62 }
 0x2a7   : > { %v1836_v55 = vpop.f32.mrb[92].mxu0  ;;  %15480 = vst [vmem:[#allocation51_spill] sm:$0xff] %v11422_v51  ;;  %15481 = vst [vmem:[#allocation52_spill] sm:$0xff] %v11426_v52 }
 0x2a8   : > { %v1838_v34 = vpop.f32.mrb[93].mxu0  ;;  %3829 = vmatmul.mubr.f32.gmra.mrb[198].mxu0 %v10969_v2  ;;  %4087 = vmatmul.mubr.f32.gmra.mrb[100].mxu1 %v1836_v55  ;;  %v11417_v2 = vrot.slane %v11161_v8, %v10999_v26  ;;  %v11441_v8 = vrot.slane %v2469_v25, %v10999_v26 }
 0x2a9   : > { %4092 = vmatprep.mubr.f32.mxu1 %v496_v32  ;;  %v499_v34 = vld [vmem:[%s10819_s14 + $0x190] sm:$0xff] }
 0x2aa   : > { %15479 = vst [vmem:[#allocation50_spill] sm:$0xff] %v11417_v2  ;;  %15483 = vst [vmem:[#allocation54_spill] sm:$0xff] %v11441_v8 }
 0x2ab   : > { %v1841_v50 = vpop.f32.mrb[94].mxu0 }
 0x2ac   : > { %v1843_v1 = vpop.f32.mrb[95].mxu0  ;;  %4093 = vmatmul.mubr.f32.gmra.mrb[102].mxu1 %v1841_v50  ;;  %v501_v50 = vld [vmem:[%s10819_s14 + $0x1a0] sm:$0xff] }
 0x2ad   : > { %4098 = vmatprep.mubr.f32.mxu1 %v497_v59  ;;  %v2471_v59 = vcombine.high %v11175_v37, %v11175_v37 }
 0x2af   : > { %v1846_v53 = vpop.f32.mrb[96].mxu0  ;;  %v11447_v37 = vrot.slane %v2471_v59, %v10999_v26 }
 0x2b0   : > { %v1848_v7 = vpop.f32.mrb[97].mxu0  ;;  %4099 = vmatmul.mubr.f32.gmra.mrb[104].mxu1 %v1846_v53  ;;  %v11438_v53 = vrot.slane %v2469_v25, %v10997_v19 }
 0x2b1   : > { %4104 = vmatprep.mubr.f32.mxu1 %v498_v15  ;;  %v500_v15 = vld [vmem:[%s10819_s14 + $0x198] sm:$0xff]  ;;  %v11444_v7 = vrot.slane %v2471_v59, %v10997_v19  ;;  %15485 = vst [vmem:[#allocation56_spill] sm:$0xff] %v11447_v37 }
 0x2b2   : > { %15482 = vst [vmem:[#allocation53_spill] sm:$0xff] %v11438_v53 }
 0x2b3   : > { %v1851_v55 = vpop.f32.mrb[98].mxu0  ;;  %15484 = vst [vmem:[#allocation55_spill] sm:$0xff] %v11444_v7 }
 0x2b4   : > { %v1853_v32 = vpop.f32.mrb[99].mxu0  ;;  %4105 = vmatmul.mubr.f32.gmra.mrb[106].mxu1 %v1851_v55 }
 0x2b5   : > { %4110 = vmatprep.mubr.f32.mxu1 %v499_v34  ;;  %v503_v32 = vld [vmem:[%s10819_s14 + $0x1b0] sm:$0xff] }
 0x2b7   : > { %v1856_v34 = vpop.f32.mrb[100].mxu0 }
 0x2b8   : > { %v1858_v55 = vpop.f32.mrb[101].mxu0  ;;  %4111 = vmatmul.mubr.f32.gmra.mrb[108].mxu1 %v1856_v34 }
 0x2b9   : > { %4116 = vmatprep.mubr.f32.mxu1 %v500_v15  ;;  %v15486_v55 = vcombine.low %v11126_v63, %v11130_v5 }
 0x2bb   : > { %v1861_v25 = vpop.f32.mrb[102].mxu0  ;;  %v2380_v34 = vrot.slane %v15486_v55, %v11020_v40  ;;  %v11478_v55 = vrot.slane %v11188_v60, %v10999_v26 }
 0x2bc   : > { %v1863_v11 = vpop.f32.mrb[103].mxu0  ;;  %4117 = vmatmul.mubr.f32.gmra.mrb[110].mxu1 %v1861_v25 }
 0x2bd   : > { %4122 = vmatprep.mubr.f32.mxu1 %v501_v50  ;;  %v2388_v15 = vcombine.high %v2380_v34, %v2380_v34  ;;  %v504_v11 = vld [vmem:[%s10819_s14 + $0x1b8] sm:$0xff]  ;;  %15490 = vst [vmem:[#allocation60_spill] sm:$0xff] %v11478_v55 }
 0x2bf   : > { %v1866_v59 = vpop.f32.mrb[104].mxu0  ;;  %v2410_v50 = vrot.slane %v2388_v15, %v11020_v40  ;;  %v15491_v15 = vcombine.high %v11126_v63, %v11130_v5 }
 0x2c0   : > { %v1868_v24 = vpop.f32.mrb[105].mxu0  ;;  %4123 = vmatmul.mubr.f32.gmra.mrb[112].mxu1 %v1866_v59 }
 0x2c1   : > { %4128 = vmatprep.mubr.f32.mxu1 %v502_v39  ;;  %v11465_v24 = vrot.slane %v11179_v44, %v10997_v19  ;;  %v11469_v39 = vrot.slane %v11179_v44, %v10999_v26  ;;  %v2420_v59 = vcombine.high %v2410_v50, %v2410_v50  ;;  %v11493_v42 = vrot.slane %v2410_v50, %v10999_v26 }
 0x2c3   : > { %v1871_v1 = vpop.f32.mrb[106].mxu0  ;;  %15487 = vst [vmem:[#allocation57_spill] sm:$0xff] %v11465_v24  ;;  %15488 = vst [vmem:[#allocation58_spill] sm:$0xff] %v11469_v39  ;;  %v11506_v38 = vrot.slane %v2420_v59, %v10997_v19  ;;  %v11509_v41 = vrot.slane %v2420_v59, %v10999_v26  ;;  %v15495_v24 = vcombine.low %v11052_v9, %v11070_v18 }
 0x2c4   : > { %v1873_v17 = vpop.f32.mrb[107].mxu0  ;;  %4129 = vmatmul.mubr.f32.gmra.mrb[114].mxu1 %v1871_v1 }
 0x2c5   : > { %4134 = vmatprep.mubr.f32.mxu1 %v503_v32  ;;  %v2396_v17 = vrot.slane %v2380_v34, %v11020_v40  ;;  %v3245_v34 = vcombine.high %v11063_v13, %v11066_v14  ;;  %15492 = vst [vmem:[#allocation61_spill] sm:$0xff] %v11506_v38 }
 0x2c7   : > { %v1876_v25 = vpop.f32.mrb[108].mxu0  ;;  %v2418_v28 = vcombine.high %v2396_v17, %v2396_v17  ;;  %v11512_v29 = vcombine.low %v3245_v34, %v11063_v13  ;;  %v11524_v45 = vrot.slane %v2396_v17, %v10999_v26 }
 0x2c8   : > { %v1878_v22 = vpop.f32.mrb[109].mxu0  ;;  %4135 = vmatmul.mubr.f32.gmra.mrb[116].mxu1 %v1876_v25  ;;  %v3244_v25 = vcombine.low %v11063_v13, %v11066_v14 }
 0x2c9   : > { %4140 = vmatprep.mubr.f32.mxu1 %v504_v11  ;;  %v11474_v22 = vrot.slane %v11188_v60, %v10997_v19  ;;  %v2387_v11 = vrot.slane %v15491_v15, %v11020_v40  ;;  %v3240_v15 = vcombine.low %v11070_v18, %v11073_v20  ;;  %v11533_v39 = vrot.slane %v2418_v28, %v10997_v19 }
 0x2ca   : > { %v11521_v21 = vcombine.high %v11066_v14, %v3244_v25  ;;  %v11536_v25 = vrot.slane %v2418_v28, %v10999_v26  ;;  %v15496_v28 = vcombine.low %v11055_v10, %v11073_v20 }
 0x2cb   : > { %v1881_v1 = vpop.f32.mrb[110].mxu0  ;;  %15489 = vst [vmem:[#allocation59_spill] sm:$0xff] %v11474_v22  ;;  %v2389_v63 = vcombine.high %v2387_v11, %v2387_v11  ;;  %v8693_v0 = vcombine.high %v11073_v20, %v3240_v15  ;;  %15493 = vst [vmem:[#allocation62_spill] sm:$0xff] %v11533_v39  ;;  %v3257_v15 = vcombine.high %v11506_v38, %v11509_v41 }
 0x2cc   : > { %v1883_v32 = vpop.f32.mrb[111].mxu0  ;;  %4141 = vmatmul.mubr.f32.gmra.mrb[118].mxu1 %v1881_v1  ;;  %v506_v1 = vld [vmem:[%s10819_s14 + $0x1c8] sm:$0xff]  ;;  %15494 = vst [vmem:[#allocation63_spill] sm:$0xff] %v11536_v25 }
 0x2cd   : > { %4146 = vmatprep.mubr.f32.mxu1 %v505_v3  ;;  %v11490_v32 = vrot.slane %v2410_v50, %v10997_v19  ;;  %v3241_v3 = vcombine.high %v11070_v18, %v11073_v20  ;;  %v3249_v50 = vcombine.high %v11099_v35, %v11102_v36  ;;  %v2417_v62 = vrot.slane %v2389_v63, %v11020_v40 }
 0x2ce   : > { %v2518_v20 = vcombine.high %v11179_v44, %v11179_v44  ;;  %v3256_v44 = vcombine.low %v11506_v38, %v11509_v41 }
 0x2cf   : > { %v1886_v5 = vpop.f32.mrb[112].mxu0  ;;  %v3253_v59 = vcombine.high %v11490_v32, %v11493_v42  ;;  %v3252_v34 = vcombine.low %v11490_v32, %v11493_v42  ;;  %v8692_v43 = vcombine.low %v3241_v3, %v11070_v18  ;;  %v11543_v3 = vcombine.low %v3249_v50, %v11099_v35 }
 0x2d0   : > { %v1888_v54 = vpop.f32.mrb[113].mxu0  ;;  %4147 = vmatmul.mubr.f32.gmra.mrb[120].mxu1 %v1886_v5  ;;  %v507_v5 = vld [vmem:[%s10819_s14 + $0x1d0] sm:$0xff]  ;;  %v11554_v18 = vcombine.high %v11102_v36, %v3248_v48 }
 0x2d1   : > { %4152 = vmatprep.mubr.f32.mxu1 %v506_v1  ;;  %v11517_v54 = vrot.slane %v2396_v17, %v10997_v19  ;;  %v2403_v17 = vrot.slane %v2387_v11, %v11020_v40  ;;  %v11562_v11 = vcombine.low %v3253_v59, %v11490_v32  ;;  %v11565_v40 = vcombine.high %v11493_v42, %v3252_v34 }
 0x2d2   : > { %v11575_v34 = vcombine.low %v3257_v15, %v11506_v38  ;;  %v11591_v15 = vrot.slane %v2417_v62, %v10999_v26 }
 0x2d3   : > { %v1891_v1 = vpop.f32.mrb[114].mxu0  ;;  %v3836_v4 = vpop.f32.mrb[16].mxu1 }
 0x2d4   : > { %v3837_v8 = vadd.f32 %v15495_v24, %v3836_v4  ;;  %v1893_v53 = vpop.f32.mrb[115].mxu0  ;;  %v3838_v2 = vpop.f32.mrb[17].mxu1  ;;  %4153 = vmatmul.mubr.f32.gmra.mrb[122].mxu1 %v1891_v1  ;;  %15497 = vst [vmem:[#allocation64_spill] sm:$0xff] %v11575_v34  ;;  %v11597_v1 = vrot.slane %v2518_v20, %v10999_v26 }
 0x2d5   : > { %v11551_v49 = vadd.f32 %v15496_v28, %v3838_v2  ;;  %4158 = vmatprep.mubr.f32.mxu1 %v507_v5  ;;  %v508_v53 = vld [vmem:[%s10819_s14 + $0x1d8] sm:$0xff]  ;;  %v2421_v5 = vcombine.high %v2417_v62, %v2417_v62 }
 0x2d6   : > { %v8818_v2 = vmul.f32 -1.442695, %v3837_v8  ;;  %v11580_v8 = vrot.slane %v2403_v17, %v10997_v19  ;;  %15499 = vst [vmem:[#allocation66_spill] sm:$0xff] %v11597_v1 }
 0x2d7   : > { %v5255_v48 = vand.u32 2147483647, %v11551_v49  ;;  %v1896_v63 = vpop.f32.mrb[116].mxu0  ;;  %v3842_v50 = vpop.f32.mrb[18].mxu1  ;;  %vm5063_vm0 = vcmp.ne.f32.partialorder %v11551_v49, %v11551_v49 }
 0x2d8   : > { %v3843_v59 = vadd.f32 %v8692_v43, %v3842_v50  ;;  %v1898_v28 = vpop.f32.mrb[117].mxu0  ;;  %v3844_v24 = vpop.f32.mrb[19].mxu1  ;;  %4159 = vmatmul.mubr.f32.gmra.mrb[124].mxu1 %v1896_v63  ;;  %v2520_v43 = vcombine.high %v11188_v60, %v11188_v60  ;;  %v509_v50 = vld [vmem:[%s10819_s14 + $0x1e0] sm:$0xff]  ;;  %v11588_v63 = vrot.slane %v2417_v62, %v10997_v19  ;;  %9185 = vpow2.f32 %v8818_v2 }
 0x2d9   : > { %v5351_v4 = vsub.f32 0.0, %v5255_v48  ;;  %v11582_v10 = vadd.f32 %v8693_v0, %v3844_v24  ;;  %4164 = vmatprep.mubr.f32.mxu1 %v508_v53  ;;  %v11594_v28 = vrot.slane %v2518_v20, %v10997_v19  ;;  %v2419_v60 = vcombine.high %v2403_v17, %v2403_v17 }
 0x2da   : > { %v8819_v48 = vmul.f32 -1.442695, %v3843_v59  ;;  %v11601_v62 = vrot.slane %v2403_v17, %v10999_v26  ;;  %v11604_v56 = vrot.slane %v2520_v43, %v10997_v19  ;;  %v11607_v20 = vrot.slane %v2520_v43, %v10999_v26  ;;  %v510_v17 = vld [vmem:[%s10819_s14 + $0x1e8] sm:$0xff] }
 0x2db   : > { %15498 = vst [vmem:[#allocation65_spill] sm:$0xff] %v11594_v28  ;;  %v5451_v0 = vmul.f32 1.442695, %v5351_v4  ;;  %v5256_v53 = vand.u32 2147483647, %v11582_v10  ;;  %v1901_v24 = vpop.f32.mrb[118].mxu0  ;;  %v11611_v59 = vrot.slane %v2421_v5, %v10997_v19  ;;  %v11629_v34 = vrot.slane %v2419_v60, %v10997_v19 }
 0x2dc   : > { %v3848_v9 = vpop.f32.mrb[20].mxu1  ;;  %v1903_v23 = vpop.f32.mrb[119].mxu0  ;;  %4165 = vmatmul.mubr.f32.gmra.mrb[126].mxu1 %v1901_v24  ;;  %15500 = vst [vmem:[#allocation67_spill] sm:$0xff] %v11604_v56  ;;  %15501 = vst [vmem:[#allocation68_spill] sm:$0xff] %v11607_v20  ;;  %v11618_v24 = vrot.slane %v2421_v5, %v10999_v26  ;;  %v15505_v43 = vcombine.low %v11047_v6, %v11063_v13  ;;  %v11636_v28 = vrot.slane %v2419_v60, %v10999_v26 }
 0x2dd   : > { %9187 = vpow2.f32 %v5451_v0  ;;  %v5352_v4 = vsub.f32 0.0, %v5256_v53  ;;  %v3849_v2 = vadd.f32 %v3848_v9, %v11047_v6  ;;  %v3850_v47 = vpop.f32.mrb[21].mxu1  ;;  %4170 = vmatprep.mubr.f32.mxu1 %v509_v50  ;;  %15502 = vst [vmem:[#allocation69_spill] sm:$0xff] %v11611_v59  ;;  %v3261_v50 = vcombine.high %v11588_v63, %v11591_v15  ;;  %15504 = vst [vmem:[#allocation71_spill] sm:$0xff] %v11629_v34  ;;  %v511_v6 = vld [vmem:[%s10819_s14 + $0x1f0] sm:$0xff] }
 0x2de   : > { %v11614_v23 = vadd.f32 %v3850_v47, %v11058_v12  ;;  %15503 = vst [vmem:[#allocation70_spill] sm:$0xff] %v11618_v24  ;;  %v3260_v47 = vcombine.low %v11588_v63, %v11591_v15  ;;  %9189 = vpow2.f32 %v8819_v48  ;;  %15506 = vst [vmem:[#allocation72_spill] sm:$0xff] %v11636_v28  ;;  %v11644_v48 = vcombine.high %v11509_v41, %v3256_v44 }
 0x2df   : > { %v5453_v53 = vmul.f32 1.442695, %v5352_v4  ;;  %v1906_v9 = vpop.f32.mrb[120].mxu0  ;;  %v3854_v61 = vpop.f32.mrb[22].mxu1  ;;  %v8820_v38 = vmul.f32 -1.442695, %v3849_v2  ;;  %v3265_v60 = vcombine.high %v11611_v59, %v11618_v24  ;;  %v3264_v44 = vcombine.low %v11611_v59, %v11618_v24 }
 0x2e0   : > { %v5257_v5 = vand.u32 2147483647, %v11614_v23  ;;  %v3855_v0 = vadd.f32 %v15505_v43, %v3854_v61  ;;  %v1908_v4 = vpop.f32.mrb[121].mxu0  ;;  %v3856_v1 = vpop.f32.mrb[23].mxu1  ;;  %4171 = vmatmul.mubr.f32.gmra.mrb[128].mxu1 %v1906_v9  ;;  %vm5064_vm1 = vcmp.ne.f32.partialorder %v11582_v10, %v11582_v10  ;;  %vm5065_vm5 = vcmp.ne.f32.partialorder %v11614_v23, %v11614_v23 }
 0x2e1   : > { %9191 = vpow2.f32 %v5453_v53  ;;  %v11641_v25 = vadd.f32 %v15507_v33, %v3856_v1  ;;  %4176 = vmatprep.mubr.f32.mxu1 %v510_v17  ;;  %v11655_v33 = vcombine.low %v3261_v50, %v11588_v63  ;;  %v11658_v1 = vcombine.high %v11591_v15, %v3260_v47 }
 0x2e2   : > { %v5353_v39 = vsub.f32 0.0, %v5257_v5  ;;  %v9186_v4 = vpop.eup %9185  ;;  %9193 = vpow2.f32 %v8820_v38  ;;  %v8821_v47 = vmul.f32 -1.442695, %v3855_v0 }
 0x2e3   : > { %v5258_v2 = vand.u32 2147483647, %v11641_v25  ;;  %v1911_v12 = vpop.f32.mrb[122].mxu0  ;;  %v3860_v14 = vpop.f32.mrb[24].mxu1  ;;  %15508 = vst [vmem:[#allocation73_spill] sm:$0xff] %v11655_v33  ;;  %15509 = vst [vmem:[#allocation74_spill] sm:$0xff] %v11658_v1  ;;  %vm5066_vm8 = vcmp.ne.f32.partialorder %v11641_v25, %v11641_v25 }
 0x2e4   : > { %v5455_v17 = vmul.f32 1.442695, %v5353_v39  ;;  %v3861_v43 = vadd.f32 %v11512_v29, %v3860_v14  ;;  %v1913_v53 = vpop.f32.mrb[123].mxu0  ;;  %v3862_v9 = vpop.f32.mrb[25].mxu1  ;;  %4177 = vmatmul.mubr.f32.gmra.mrb[130].mxu1 %v1911_v12  ;;  %v512_v39 = vld [vmem:[%s10819_s14 + $0x1f8] sm:$0xff]  ;;  %v11672_v29 = vcombine.low %v3265_v60, %v11611_v59  ;;  %v3269_v12 = vcombine.high %v11358_v27, %v11362_v46  ;;  %v523_v33 = vld [vmem:[%s10819_s14 + $0x250] sm:$0xff] }
 0x2e5   : > { %v5354_v61 = vsub.f32 0.0, %v5258_v2  ;;  %v11668_v13 = vadd.f32 %v11521_v21, %v3862_v9  ;;  %4182 = vmatprep.mubr.f32.mxu1 %v511_v6  ;;  %v3268_v14 = vcombine.low %v11358_v27, %v11362_v46  ;;  %v11681_v21 = vcombine.high %v11618_v24, %v3264_v44 }
 0x2e6   : > { %9195 = vpow2.f32 %v5455_v17  ;;  %15510 = vst [vmem:[#allocation75_spill] sm:$0xff] %v11672_v29  ;;  %v3273_v6 = vcombine.high %v11392_v57, %v11395_v16  ;;  %v3272_v60 = vcombine.low %v11392_v57, %v11395_v16  ;;  %v4679_v17 = vadd.f32 1.0, %v9186_v4 }
 0x2e7   : > { %v11678_v53 = vpop.eup %9187  ;;  %v5457_v38 = vmul.f32 1.442695, %v5354_v61  ;;  %v1916_v0 = vpop.f32.mrb[124].mxu0  ;;  %15511 = vst [vmem:[#allocation76_spill] sm:$0xff] %v11681_v21  ;;  %v3277_v61 = vcombine.high %v11422_v51, %v11426_v52  ;;  %v3276_v44 = vcombine.low %v11422_v51, %v11426_v52  ;;  %9197 = vpow2.f32 %v8821_v47 }
 0x2e8   : > { %v3866_v2 = vpop.f32.mrb[26].mxu1  ;;  %v5671_v9 = vadd.f32 1.0, %v11678_v53  ;;  %v1918_v50 = vpop.f32.mrb[125].mxu0  ;;  %4183 = vmatmul.mubr.f32.gmra.mrb[132].mxu1 %v1916_v0  ;;  %v5259_v21 = vand.u32 2147483647, %v11668_v13  ;;  %v11699_v0 = vcombine.low %v3269_v12, %v11358_v27  ;;  %v11702_v59 = vcombine.high %v11362_v46, %v3268_v14 }
 0x2e9   : > { %v3868_v5 = vpop.f32.mrb[27].mxu1  ;;  %v3867_v29 = vadd.f32 %v3866_v2, %v11090_v30  ;;  %4188 = vmatprep.mubr.f32.mxu1 %v512_v39  ;;  %v9190_v4 = vpop.eup %9189  ;;  %v513_v50 = vld [vmem:[%s10819_s14 + $0x200] sm:$0xff]  ;;  %v3281_v47 = vcombine.high %v11444_v7, %v11447_v37  ;;  %v5674_v2 = vmul.f32 -0.5, %v11678_v53  ;;  %v11711_v14 = vcombine.low %v3273_v6, %v11392_v57 }
 0x2ea   : > { %v11695_v24 = vadd.f32 %v3868_v5, %v11093_v31  ;;  %9199 = vlog2.f32 %v5671_v9  ;;  %15512 = vst [vmem:[#allocation77_spill] sm:$0xff] %v11699_v0  ;;  %15513 = vst [vmem:[#allocation78_spill] sm:$0xff] %v11702_v59  ;;  %v8822_v5 = vmul.f32 -1.442695, %v3861_v43  ;;  %v5355_v34 = vsub.f32 0.0, %v5259_v21 }
 0x2eb   : > { %v11706_v28 = vpop.eup %9191  ;;  %9201 = vpow2.f32 %v5457_v38  ;;  %v1921_v39 = vpop.f32.mrb[126].mxu0  ;;  %15514 = vst [vmem:[#allocation79_spill] sm:$0xff] %v11711_v14  ;;  %v11714_v59 = vcombine.high %v11395_v16, %v3272_v60  ;;  %v11717_v46 = vcombine.low %v3277_v61, %v11422_v51  ;;  %v11720_v38 = vcombine.high %v11426_v52, %v3276_v44 }
 0x2ec   : > { %v3872_v1 = vpop.f32.mrb[28].mxu1  ;;  %v5680_v9 = vadd.f32 1.0, %v11706_v28  ;;  %v1923_v12 = vpop.f32.mrb[127].mxu0  ;;  %4189 = vmatmul.mubr.f32.gmra.mrb[134].mxu1 %v1921_v39  ;;  %9203 = vrcp.f32 %v4679_v17  ;;  %v5459_v43 = vmul.f32 1.442695, %v5355_v34  ;;  %v11724_v21 = vrot.slane %v11032_v58, %v10997_v19 }
 0x2ed   : > { %v3874_v0 = vpop.f32.mrb[29].mxu1  ;;  %15515 = vst [vmem:[#allocation80_spill] sm:$0xff] %v11714_v59  ;;  %15516 = vst [vmem:[#allocation81_spill] sm:$0xff] %v11717_v46  ;;  %4194 = vmatprep.mubr.f32.mxu1 %v513_v50  ;;  %v4680_v39 = vadd.f32 1.0, %v9190_v4  ;;  %v5260_v6 = vand.u32 2147483647, %v11695_v24  ;;  %v11729_v60 = vcombine.low %v3281_v47, %v11444_v7  ;;  %v9194_v61 = vpop.eup %9193  ;;  %v15520_v34 = vcombine.low %v11090_v30, %v11099_v35 }
 0x2ee   : > { %15517 = vst [vmem:[#allocation82_spill] sm:$0xff] %v11720_v38  ;;  %15518 = vst [vmem:[#allocation83_spill] sm:$0xff] %v11724_v21  ;;  %9205 = vlog2.f32 %v5680_v9  ;;  %v514_v12 = vld [vmem:[%s10819_s14 + $0x208] sm:$0xff]  ;;  %v5675_v46 = vadd.f32 1.0, %v5674_v2  ;;  %v15521_v44 = vcombine.low %v11093_v31, %v11102_v36  ;;  %v5683_v21 = vmul.f32 -0.5, %v11706_v28 }
 0x2ef   : > { %15519 = vst [vmem:[#allocation84_spill] sm:$0xff] %v11729_v60  ;;  %9207 = vpow2.f32 %v8822_v5  ;;  %v3873_v17 = vadd.f32 %v15520_v34, %v3872_v1  ;;  %v1926_v4 = vpop.f32.mrb[128].mxu0  ;;  %v3878_v9 = vpop.f32.mrb[30].mxu1  ;;  %v5356_v47 = vsub.f32 0.0, %v5260_v6  ;;  %v4967_v35 = vmax.f32 %v11551_v49, 0.0 }
 0x2f0   : > { %v11737_v50 = vadd.f32 %v15521_v44, %v3874_v0  ;;  %v11739_v58 = vpop.eup %9195  ;;  %9209 = vpow2.f32 %v5459_v43  ;;  %v11743_v2 = vadd.f32 %v11543_v3, %v3878_v9  ;;  %v1928_v5 = vpop.f32.mrb[129].mxu0  ;;  %4195 = vmatmul.mubr.f32.gmra.mrb[136].mxu1 %v1926_v4  ;;  %v8823_v36 = vmul.f32 -1.442695, %v3867_v29  ;;  %v515_v3 = vld [vmem:[%s10819_s14 + $0x210] sm:$0xff] }
 0x2f1   : > { %v3880_v30 = vpop.f32.mrb[31].mxu1  ;;  %v5689_v31 = vadd.f32 1.0, %v11739_v58  ;;  %4200 = vmatprep.mubr.f32.mxu1 %v514_v12  ;;  %v5677_v1 = vand.u32 2147483647, %v11678_v53  ;;  %9211 = vrcp.f32 %v4680_v39  ;;  %v5461_v43 = vmul.f32 1.442695, %v5356_v47  ;;  %v9198_v6 = vpop.eup %9197 }
 0x2f2   : > { %v5676_v34 = vmul.f32 %v11678_v53, %v5675_v46  ;;  %v4681_v44 = vadd.f32 1.0, %v9194_v61  ;;  %v5684_v29 = vadd.f32 1.0, %v5683_v21  ;;  %v5261_v12 = vand.u32 2147483647, %v11737_v50 }
 0x2f3   : > { %9213 = vlog2.f32 %v5689_v31  ;;  %v1931_v9 = vpop.f32.mrb[130].mxu0  ;;  %v3884_v5 = vpop.f32.mrb[32].mxu1  ;;  %v11756_v39 = vadd.f32 %v11554_v18, %v3880_v30  ;;  %v5692_v61 = vmul.f32 -0.5, %v11739_v58  ;;  %v516_v31 = vld [vmem:[%s10819_s14 + $0x218] sm:$0xff]  ;;  %vm5678_vm2 = vcmp.lt.f32.partialorder %v5677_v1, 0.0004427343 }
 0x2f4   : > { %v9200_v60 = vpop.eup %9199  ;;  %9215 = vpow2.f32 %v5461_v43  ;;  %v1933_v47 = vpop.f32.mrb[131].mxu0  ;;  %4201 = vmatmul.mubr.f32.gmra.mrb[138].mxu1 %v1931_v9  ;;  %v11766_v21 = vadd.f32 %v3884_v5, %v11517_v54  ;;  %v5686_v18 = vand.u32 2147483647, %v11706_v28  ;;  %v5357_v4 = vsub.f32 0.0, %v5261_v12  ;;  %v517_v30 = vld [vmem:[%s10819_s14 + $0x220] sm:$0xff] }
 0x2f5   : > { %v11758_v0 = vpop.f32.mrb[33].mxu1  ;;  %v11760_v46 = vpop.eup %9201  ;;  %v5673_v53 = vmul.f32 0.6931472, %v9200_v60  ;;  %9217 = vpow2.f32 %v8823_v36  ;;  %4206 = vmatprep.mubr.f32.mxu1 %v515_v3  ;;  %v4682_v47 = vadd.f32 1.0, %v9198_v6  ;;  %v5685_v3 = vmul.f32 %v11706_v28, %v5684_v29 }
 0x2f6   : > { %v5698_v43 = vadd.f32 1.0, %v11760_v46  ;;  %v9204_v60 = vpop.eup %9203  ;;  %9219 = vrcp.f32 %v4681_v44  ;;  %v8824_v1 = vmul.f32 -1.442695, %v3873_v17  ;;  %v5695_v6 = vand.u32 2147483647, %v11739_v58 }
 0x2f7   : > { %v5679_v9 = vsel %vm5678_vm2, %v5676_v34, %v5673_v53  ;;  %v1936_v38 = vpop.f32.mrb[132].mxu0  ;;  %v11772_v36 = vpop.f32.mrb[34].mxu1  ;;  %v5693_v34 = vadd.f32 1.0, %v5692_v61  ;;  %v5701_v44 = vmul.f32 -0.5, %v11760_v46  ;;  %vm5687_vm4 = vcmp.lt.f32.partialorder %v5686_v18, 0.0004427343 }
 0x2f8   : > { %v9206_v5 = vpop.eup %9205  ;;  %v6503_v52 = vadd.f32 %v5679_v9, %v4967_v35  ;;  %9221 = vlog2.f32 %v5698_v43  ;;  %v1938_v51 = vpop.f32.mrb[133].mxu0  ;;  %4207 = vmatmul.mubr.f32.gmra.mrb[140].mxu1 %v1936_v38  ;;  %v5262_v38 = vand.u32 2147483647, %v11756_v39  ;;  %vm11799_vm6 = vcmp.lt.f32.partialorder %v5695_v6, 0.0004427343 }
 0x2f9   : > { %v11775_v59 = vpop.f32.mrb[35].mxu1  ;;  %v9208_v14 = vpop.eup %9207  ;;  %v5682_v16 = vmul.f32 0.6931472, %v9206_v5  ;;  %4212 = vmatprep.mubr.f32.mxu1 %v516_v31  ;;  %v5463_v51 = vmul.f32 1.442695, %v5357_v4  ;;  %9223 = vrcp.f32 %v4682_v47  ;;  %v5702_v5 = vadd.f32 1.0, %v5701_v44 }
 0x2fa   : > { %v11780_v12 = vpop.eup %9209  ;;  %v6599_v28 = vsel %vm5063_vm0, %v11551_v49, %v6503_v52  ;;  %v15522_v49 = vmax.f32 %v11582_v10, 0.0  ;;  %v4683_v18 = vadd.f32 1.0, %v9208_v14  ;;  %9225 = vpow2.f32 %v8824_v1 }
 0x2fb   : > { %v11789_v17 = vmul.f32 %v9204_v60, %v6599_v28  ;;  %v5688_v35 = vsel %vm5687_vm4, %v5685_v3, %v5682_v16  ;;  %v5707_v29 = vadd.f32 1.0, %v11780_v12  ;;  %v1941_v53 = vpop.f32.mrb[134].mxu0  ;;  %v11792_v61 = vpop.f32.mrb[36].mxu1  ;;  %v5358_v43 = vsub.f32 0.0, %v5262_v38  ;;  %v518_v38 = vld [vmem:[%s10819_s14 + $0x228] sm:$0xff] }
 0x2fc   : > { %v9212_v31 = vpop.eup %9211  ;;  %v6504_v52 = vadd.f32 %v5688_v35, %v15522_v49  ;;  %v1943_v4 = vpop.f32.mrb[135].mxu0  ;;  %4213 = vmatmul.mubr.f32.gmra.mrb[142].mxu1 %v1941_v53  ;;  %v5694_v16 = vmul.f32 %v11739_v58, %v5693_v34  ;;  %v5710_v28 = vmul.f32 -0.5, %v11780_v12  ;;  %v5704_v53 = vand.u32 2147483647, %v11760_v46 }
 0x2fd   : > { %v11796_v9 = vpop.f32.mrb[37].mxu1  ;;  %v9214_v60 = vpop.eup %9213  ;;  %9227 = vlog2.f32 %v5707_v29  ;;  %4218 = vmatprep.mubr.f32.mxu1 %v517_v30  ;;  %v6887_v34 = vcombine.high %v11789_v17, %v11789_v17  ;;  %v8825_v30 = vmul.f32 -1.442695, %v11743_v2  ;;  %v15525_v2 = vmax.f32 %v11614_v23, 0.0 }
 0x2fe   : > { %v11803_v3 = vpop.eup %9215  ;;  %v6600_v14 = vsel %vm5064_vm1, %v11582_v10, %v6504_v52  ;;  %v5691_v1 = vmul.f32 0.6931472, %v9214_v60  ;;  %9229 = vpow2.f32 %v5463_v51  ;;  %v5465_v51 = vmul.f32 1.442695, %v5358_v43  ;;  %v519_v43 = vld [vmem:[%s10819_s14 + $0x230] sm:$0xff] }
 0x2ff   : > { %v9218_v58 = vpop.eup %9217  ;;  %v6696_v6 = vmul.f32 %v9212_v31, %v6600_v14  ;;  %v5716_v44 = vadd.f32 1.0, %v11803_v3  ;;  %v1946_v35 = vpop.f32.mrb[136].mxu0  ;;  %9231 = vrcp.f32 %v4683_v18  ;;  %v5711_v47 = vadd.f32 1.0, %v5710_v28 }
 0x300   : > { %v11815_v29 = vpop.f32.mrb[38].mxu1  ;;  %v5697_v10 = vsel %vm11799_vm6, %v5694_v16, %v5691_v1  ;;  %v1948_v49 = vpop.f32.mrb[137].mxu0  ;;  %4219 = vmatmul.mubr.f32.gmra.mrb[144].mxu1 %v1946_v35  ;;  %v5703_v16 = vmul.f32 %v11760_v46, %v5702_v5  ;;  %v4684_v1 = vadd.f32 1.0, %v9218_v58  ;;  %v5719_v18 = vmul.f32 -0.5, %v11803_v3 }
 0x301   : > { %v11820_v52 = vpop.f32.mrb[39].mxu1  ;;  %v9220_v31 = vpop.eup %9219  ;;  %v6888_v4 = vcombine.high %v6696_v6, %v6696_v6  ;;  %v7014_v60 = vcombine.low %v6887_v34, %v6696_v6  ;;  %v6505_v14 = vadd.f32 %v5697_v10, %v15525_v2  ;;  %9233 = vlog2.f32 %v5716_v44  ;;  %4224 = vmatprep.mubr.f32.mxu1 %v518_v38 }
 0x302   : > { %v9222_v57 = vpop.eup %9221  ;;  %9235 = vpow2.f32 %v5465_v51  ;;  %vm5705_vm7 = vcmp.lt.f32.partialorder %v5704_v53, 0.0004427343  ;;  %vm5067_vm10 = vcmp.ne.f32.partialorder %v11668_v13, %v11668_v13  ;;  %vm5068_vm12 = vcmp.ne.f32.partialorder %v11695_v24, %v11695_v24 }
 0x303   : > { %v7164_v49 = vsel %vm7139_vm3, %v6888_v4, 0.0  ;;  %v6601_v34 = vsel %vm5065_vm5, %v11614_v23, %v6505_v14  ;;  %v5700_v6 = vmul.f32 0.6931472, %v9222_v57  ;;  %v1951_v35 = vpop.f32.mrb[138].mxu0  ;;  %v11832_v44 = vpop.f32.mrb[40].mxu1  ;;  %9237 = vpow2.f32 %v8825_v30  ;;  %v520_v14 = vld [vmem:[%s10819_s14 + $0x238] sm:$0xff] }
 0x304   : > { %v11834_v38 = vadd.f32 %v7164_v49, %v7014_v60  ;;  %v6697_v46 = vmul.f32 %v9220_v31, %v6601_v34  ;;  %v1953_v5 = vpop.f32.mrb[139].mxu0  ;;  %v11836_v28 = vpop.f32.mrb[41].mxu1  ;;  %4225 = vmatmul.mubr.f32.gmra.mrb[146].mxu1 %v1951_v35  ;;  %v5713_v4 = vand.u32 2147483647, %v11780_v12  ;;  %v11841_v57 = vadd.f32 %v11758_v0, %v11524_v45 }
 0x305   : > { %v9224_v58 = vpop.eup %9223  ;;  %v5706_v10 = vsel %vm5705_vm7, %v5703_v16, %v5700_v6  ;;  %v15526_v23 = vcombine.low %v11517_v54, %v11490_v32  ;;  %4230 = vmatprep.mubr.f32.mxu1 %v519_v43  ;;  %v15527_v31 = vmax.f32 %v11641_v25, 0.0  ;;  %v15528_v0 = vcombine.low %v11524_v45, %v11493_v42 }
 0x306   : > { %v9226_v30 = vpop.eup %9225  ;;  %v6889_v53 = vcombine.high %v6697_v46, %v6697_v46  ;;  %v4971_v32 = vmax.f32 %v11668_v13, 0.0  ;;  %v5712_v54 = vmul.f32 %v11780_v12, %v5711_v47  ;;  %9239 = vrcp.f32 %v4684_v1 }
 0x307   : > { %v11847_v51 = vadd.f32 %v15526_v23, %v11772_v36  ;;  %v6506_v60 = vadd.f32 %v5706_v10, %v15527_v31  ;;  %v11857_v2 = vadd.f32 %v15528_v0, %v11775_v59  ;;  %v9228_v16 = vpop.eup %9227  ;;  %v5720_v36 = vadd.f32 1.0, %v5719_v18  ;;  %v1956_v43 = vpop.f32.mrb[140].mxu0 }
 0x308   : > { %v11862_v49 = vpop.eup %9229  ;;  %v7015_v34 = vcombine.low %v6697_v46, %v6889_v53  ;;  %v5709_v35 = vmul.f32 0.6931472, %v9228_v16  ;;  %v5263_v45 = vand.u32 2147483647, %v11841_v57  ;;  %v11866_v42 = vpop.f32.mrb[42].mxu1  ;;  %4231 = vmatmul.mubr.f32.gmra.mrb[148].mxu1 %v1956_v43  ;;  %v521_v46 = vld [vmem:[%s10819_s14 + $0x240] sm:$0xff]  ;;  %v3280_v10 = vcombine.low %v11444_v7, %v11447_v37 }
 0x309   : > { %v6602_v6 = vsel %vm5066_vm8, %v11641_v25, %v6506_v60  ;;  %v1958_v59 = vpop.f32.mrb[141].mxu0  ;;  %vm5714_vm9 = vcmp.lt.f32.partialorder %v5713_v4, 0.0004427343  ;;  %v5722_v12 = vand.u32 2147483647, %v11803_v3  ;;  %v5725_v47 = vadd.f32 1.0, %v11862_v49  ;;  %4236 = vmatprep.mubr.f32.mxu1 %v520_v14  ;;  %v9232_v18 = vpop.eup %9231 }
 0x30a   : > { %v6698_v5 = vmul.f32 %v9224_v58, %v6602_v6  ;;  %v11870_v1 = vpop.f32.mrb[43].mxu1  ;;  %v5715_v25 = vsel %vm5714_vm9, %v5712_v54, %v5709_v35  ;;  %v3285_v58 = vcombine.high %v11474_v22, %v11478_v55  ;;  %v4685_v31 = vadd.f32 1.0, %v9226_v30 }
 0x30b   : > { %v9234_v4 = vpop.eup %9233  ;;  %v6507_v53 = vadd.f32 %v5715_v25, %v4971_v32  ;;  %9241 = vlog2.f32 %v5725_v47  ;;  %v1961_v60 = vpop.f32.mrb[142].mxu0  ;;  %v5721_v54 = vmul.f32 %v11803_v3, %v5720_v36  ;;  %v5359_v43 = vsub.f32 0.0, %v5263_v45 }
 0x30c   : > { %v7172_v23 = vsel %vm7139_vm3, %v6698_v5, 0.0  ;;  %v11880_v0 = vpop.f32.mrb[44].mxu1  ;;  %v5718_v16 = vmul.f32 0.6931472, %v9234_v4  ;;  %v1963_v6 = vpop.f32.mrb[143].mxu0  ;;  %4237 = vmatmul.mubr.f32.gmra.mrb[150].mxu1 %v1961_v60  ;;  %v7166_v32 = vrot.slane %v11834_v38, 4  ;;  %v6890_v36 = vcombine.high %v6698_v5, %v6698_v5 }
 0x30d   : > { %v11882_v14 = vadd.f32 %v7172_v23, %v7015_v34  ;;  %v11885_v35 = vpop.f32.mrb[45].mxu1  ;;  %v11887_v59 = vpop.eup %9235  ;;  %v6603_v30 = vsel %vm5067_vm10, %v11668_v13, %v6507_v53  ;;  %v4972_v34 = vmax.f32 %v11695_v24, 0.0  ;;  %vm5723_vm11 = vcmp.lt.f32.partialorder %v5722_v12, 0.0004427343  ;;  %4242 = vmatprep.mubr.f32.mxu1 %v521_v46  ;;  %v522_v4 = vld [vmem:[%s10819_s14 + $0x248] sm:$0xff] }
 0x30e   : > { %v9238_v3 = vpop.eup %9237  ;;  %v6699_v45 = vmul.f32 %v9232_v18, %v6603_v30  ;;  %v5724_v47 = vsel %vm5723_vm11, %v5721_v54, %v5718_v16  ;;  %v5728_v25 = vmul.f32 -0.5, %v11862_v49  ;;  %v5734_v60 = vadd.f32 1.0, %v11887_v59 }
 0x30f   : > { %v6508_v23 = vadd.f32 %v5724_v47, %v4972_v34  ;;  %v8826_v6 = vmul.f32 -1.442695, %v11766_v21  ;;  %v1966_v13 = vpop.f32.mrb[144].mxu0  ;;  %v11901_v53 = vpop.f32.mrb[46].mxu1  ;;  %9243 = vrcp.f32 %v4685_v31  ;;  %v5467_v5 = vmul.f32 1.442695, %v5359_v43 }
 0x310   : > { %v6891_v12 = vcombine.high %v6699_v45, %v6699_v45  ;;  %v7016_v46 = vcombine.low %v6890_v36, %v6699_v45  ;;  %v1968_v18 = vpop.f32.mrb[145].mxu0  ;;  %v11903_v16 = vpop.f32.mrb[47].mxu1  ;;  %4243 = vmatmul.mubr.f32.gmra.mrb[152].mxu1 %v1966_v13  ;;  %v7167_v30 = vadd.f32 %v7166_v32, %v11834_v38  ;;  %v4686_v47 = vadd.f32 1.0, %v9238_v3 }
 0x311   : > { %v9240_v54 = vpop.eup %9239  ;;  %v6604_v34 = vsel %vm5068_vm12, %v11695_v24, %v6508_v23  ;;  %9245 = vlog2.f32 %v5734_v60  ;;  %4248 = vmatprep.mubr.f32.mxu1 %v522_v4  ;;  %v5729_v27 = vadd.f32 1.0, %v5728_v25  ;;  %v11910_v31 = vcombine.high %v11447_v37, %v3280_v10  ;;  %v524_v18 = vld [vmem:[%s10819_s14 + $0x258] sm:$0xff] }
 0x312   : > { %v7180_v21 = vsel %vm7139_vm3, %v6891_v12, 0.0  ;;  %v6700_v7 = vmul.f32 %v9240_v54, %v6604_v34  ;;  %v5731_v36 = vand.u32 2147483647, %v11862_v49  ;;  %9247 = vpow2.f32 %v8826_v6 }
 0x313   : > { %15529 = vst [vmem:[#allocation85_spill] sm:$0xff] %v11910_v31  ;;  %v11912_v43 = vadd.f32 %v7180_v21, %v7016_v46  ;;  %v1971_v45 = vpop.f32.mrb[146].mxu0  ;;  %v11915_v38 = vpop.f32.mrb[48].mxu1  ;;  %v5737_v32 = vmul.f32 -0.5, %v11887_v59  ;;  %9249 = vpow2.f32 %v5467_v5  ;;  %v11923_v10 = vcombine.low %v3285_v58, %v11474_v22 }
 0x314   : > { %v1973_v3 = vpop.f32.mrb[147].mxu0  ;;  %v11920_v25 = vpop.f32.mrb[49].mxu1  ;;  %4249 = vmatmul.mubr.f32.gmra.mrb[154].mxu1 %v1971_v45  ;;  %v7168_v60 = vrot.slane %v7167_v30, 2  ;;  %v4973_v6 = vmax.f32 %v11737_v50, 0.0  ;;  %9251 = vrcp.f32 %v4686_v47  ;;  %v7174_v12 = vrot.slane %v11882_v14, 4 }
 0x315   : > { %15530 = vst [vmem:[#allocation86_spill] sm:$0xff] %v11923_v10  ;;  %v9242_v23 = vpop.eup %9241  ;;  %4254 = vmatprep.mubr.f32.mxu1 %v523_v33  ;;  %v5730_v5 = vmul.f32 %v11862_v49, %v5729_v27  ;;  %v8827_v58 = vmul.f32 -1.442695, %v11847_v51  ;;  %v6892_v54 = vcombine.high %v6700_v7, %v6700_v7  ;;  %vm5732_vm13 = vcmp.lt.f32.partialorder %v5731_v36, 0.0004427343  ;;  %v15531_v27 = vld [vmem:[#allocation62_spill] sm:$0xff] }
 0x316   : > { %v5727_v46 = vmul.f32 0.6931472, %v9242_v23  ;;  %v5264_v34 = vand.u32 2147483647, %v11857_v2  ;;  %v3897_v21 = vadd.f32 %v11562_v11, %v11792_v61  ;;  %v5738_v3 = vadd.f32 1.0, %v5737_v32 }
 0x317   : > { %v1976_v47 = vpop.f32.mrb[148].mxu0  ;;  %v11937_v33 = vpop.f32.mrb[50].mxu1  ;;  %v11941_v23 = vadd.f32 %v11565_v40, %v11796_v9  ;;  %v11945_v51 = vadd.f32 %v11815_v29, %v15531_v27  ;;  %v7169_v13 = vadd.f32 %v7168_v60, %v7167_v30  ;;  %v5740_v61 = vand.u32 2147483647, %v11887_v59  ;;  %v525_v29 = vld [vmem:[%s10819_s14 + $0x260] sm:$0xff] }
 0x318   : > { %v5733_v45 = vsel %vm5732_vm13, %v5730_v5, %v5727_v46  ;;  %v1978_v49 = vpop.f32.mrb[149].mxu0  ;;  %v11947_v36 = vpop.f32.mrb[51].mxu1  ;;  %4255 = vmatmul.mubr.f32.gmra.mrb[156].mxu1 %v1976_v47  ;;  %v5360_v4 = vsub.f32 0.0, %v5264_v34  ;;  %v7175_v46 = vadd.f32 %v7174_v12, %v11882_v14  ;;  %vm5069_vm14 = vcmp.ne.f32.partialorder %v11737_v50, %v11737_v50 }
 0x319   : > { %v6509_v11 = vadd.f32 %v5733_v45, %v4973_v6  ;;  %4260 = vmatprep.mubr.f32.mxu1 %v524_v18  ;;  %v9244_v32 = vpop.eup %9243  ;;  %v4974_v40 = vmax.f32 %v11756_v39, 0.0  ;;  %v5265_v9 = vand.u32 2147483647, %v11941_v23  ;;  %v7017_v49 = vcombine.low %v6700_v7, %v6892_v54  ;;  %v15532_v7 = vld [vmem:[#allocation63_spill] sm:$0xff] }
 0x31a   : > { %9253 = vpow2.f32 %v8827_v58  ;;  %v5469_v60 = vmul.f32 1.442695, %v5360_v4  ;;  %v5739_v14 = vmul.f32 %v11887_v59, %v5738_v3  ;;  %v7170_v31 = vrot.slane %v7169_v13, 1  ;;  %v526_v3 = vld [vmem:[%s10819_s14 + $0x268] sm:$0xff] }
 0x31b   : > { %v9246_v5 = vpop.eup %9245  ;;  %v6605_v30 = vsel %vm5069_vm14, %v11737_v50, %v6509_v11  ;;  %v1981_v6 = vpop.f32.mrb[150].mxu0  ;;  %v5361_v12 = vsub.f32 0.0, %v5265_v9  ;;  %vm5741_vm15 = vcmp.lt.f32.partialorder %v5740_v61, 0.0004427343  ;;  %v11964_v50 = vadd.f32 %v11820_v52, %v15532_v7 }
 0x31c   : > { %v11957_v34 = vpop.f32.mrb[52].mxu1  ;;  %v6701_v18 = vmul.f32 %v9244_v32, %v6605_v30  ;;  %v5736_v47 = vmul.f32 0.6931472, %v9246_v5  ;;  %v1983_v45 = vpop.f32.mrb[151].mxu0  ;;  %4261 = vmatmul.mubr.f32.gmra.mrb[158].mxu1 %v1981_v6  ;;  %9255 = vpow2.f32 %v5469_v60  ;;  %v7176_v58 = vrot.slane %v7175_v46, 2 }
 0x31d   : > { %v11960_v24 = vpop.f32.mrb[53].mxu1  ;;  %v9248_v10 = vpop.eup %9247  ;;  %4266 = vmatprep.mubr.f32.mxu1 %v525_v29  ;;  %v15533_v11 = vcombine.low %v11474_v22, %v11478_v55  ;;  %v8828_v29 = vmul.f32 -1.442695, %v3897_v21  ;;  %vm5070_vm0 = vcmp.ne.f32.partialorder %v11756_v39, %v11756_v39  ;;  %v5471_v6 = vmul.f32 1.442695, %v5361_v12 }
 0x31e   : > { %v11966_v4 = vpop.eup %9249  ;;  %v7188_v54 = vsel %vm7139_vm3, %v6701_v18, 0.0  ;;  %v5742_v59 = vsel %vm5741_vm15, %v5739_v14, %v5736_v47  ;;  %v15535_v14 = vcombine.high %v11604_v56, %v11607_v20  ;;  %v7171_v21 = vadd.f32 %v7170_v31, %v7169_v13 }
 0x31f   : > { %v11974_v32 = vcombine.high %v11478_v55, %v15533_v11  ;;  %v9252_v61 = vpop.eup %9251  ;;  %v11976_v9 = vadd.f32 %v7188_v54, %v7017_v49  ;;  %v6510_v5 = vadd.f32 %v5742_v59, %v4974_v40  ;;  %v5743_v52 = vadd.f32 1.0, %v11966_v4  ;;  %v1986_v30 = vpop.f32.mrb[152].mxu0  ;;  %v15537_v40 = vld [vmem:[#allocation23_spill] sm:$0xff] }
 0x320   : > { %v11979_v60 = vpop.f32.mrb[54].mxu1  ;;  %v1988_v47 = vpop.f32.mrb[153].mxu0  ;;  %4267 = vmatmul.mubr.f32.gmra.mrb[160].mxu1 %v1986_v30  ;;  %v11987_v49 = vcombine.low %v15535_v14, %v11604_v56  ;;  %v11991_v45 = vrot.slane %v15537_v40, %v10997_v19  ;;  %v15539_v12 = vcombine.low %v11604_v56, %v11607_v20  ;;  %v12005_v30 = vld [vmem:[%s15333_s7] ss:$0 sm:$0xff]  ;;  %v6893_v31 = vcombine.high %v6701_v18, %v6701_v18 }
 0x321   : > { %15534 = vst [vmem:[#allocation62_spill] sm:$0xff] %v11974_v32  ;;  %v6606_v54 = vsel %vm5070_vm0, %v11756_v39, %v6510_v5  ;;  %9257 = vlog2.f32 %v5743_v52  ;;  %v11994_v59 = vpop.f32.mrb[55].mxu1  ;;  %4272 = vmatprep.mubr.f32.mxu1 %v526_v3  ;;  %v7182_v47 = vrot.slane %v11912_v43, 4  ;;  %v527_v39 = vld [vmem:[%s10819_s14 + $0x270] sm:$0xff]  ;;  %v7177_v5 = vadd.f32 %v7176_v58, %v7175_v46 }
 0x322   : > { %15536 = vst [vmem:[#allocation63_spill] sm:$0xff] %v11987_v49  ;;  %15538 = vst [vmem:[#allocation87_spill] sm:$0xff] %v11991_v45  ;;  %v12000_v11 = vcombine.high %v11607_v20, %v15539_v12  ;;  %v6702_v13 = vmul.f32 %v9252_v61, %v6606_v54  ;;  %9259 = vpow2.f32 %v5471_v6  ;;  %v4687_v52 = vadd.f32 1.0, %v9248_v10 }
 0x323   : > { %9261 = vpow2.f32 %v8828_v29  ;;  %v1991_v3 = vpop.f32.mrb[154].mxu0  ;;  %v12009_v14 = vpop.f32.mrb[56].mxu1  ;;  %v12013_v12 = vrot.slane %v15537_v40, %v10999_v26  ;;  %v5746_v49 = vmul.f32 -0.5, %v11966_v4  ;;  %v5266_v18 = vand.u32 2147483647, %v11964_v50  ;;  %v15542_v29 = vld [vmem:[#allocation61_spill] sm:$0xff] }
 0x324   : > { %15540 = vst [vmem:[#allocation88_spill] sm:$0xff] %v12000_v11  ;;  %v6894_v45 = vcombine.high %v6702_v13, %v6702_v13  ;;  %v7018_v11 = vcombine.low %v6893_v31, %v6702_v13  ;;  %v1993_v61 = vpop.f32.mrb[155].mxu0  ;;  %v12017_v6 = vpop.f32.mrb[57].mxu1  ;;  %4273 = vmatmul.mubr.f32.gmra.mrb[162].mxu1 %v1991_v3  ;;  %v7662_v46 = vmul.f32 %v12005_v30, %v7171_v21  ;;  %v8829_v58 = vmul.f32 -1.442695, %v11945_v51 }
 0x325   : > { %15541 = vst [vmem:[#allocation89_spill] sm:$0xff] %v12013_v12  ;;  %v9254_v10 = vpop.eup %9253  ;;  %v15543_v54 = vcombine.low %v15531_v27, %v15542_v29  ;;  %v15544_v31 = vcombine.low %v15532_v7, %v11509_v41  ;;  %4278 = vmatprep.mubr.f32.mxu1 %v527_v39  ;;  %v12034_v3 = vld [vmem:[%s15334_s8] ss:$0 sm:$0xff]  ;;  %v7183_v21 = vadd.f32 %v7182_v47, %v11912_v43  ;;  %v5362_v61 = vsub.f32 0.0, %v5266_v18  ;;  %v15545_v27 = vld [vmem:[#allocation64_spill] sm:$0xff] }
 0x326   : > { %v7196_v51 = vsel %vm7139_vm3, %v6894_v45, 0.0  ;;  %v528_v29 = vld [vmem:[%s10819_s14 + $0x278] sm:$0xff]  ;;  %v7178_v41 = vrot.slane %v7177_v5, 1  ;;  %9263 = vrcp.f32 %v4687_v52  ;;  %v5749_v7 = vand.u32 2147483647, %v11966_v4 }
 0x327   : > { %v3909_v40 = vadd.f32 %v15543_v54, %v11832_v44  ;;  %v12029_v13 = vadd.f32 %v15544_v31, %v11836_v28  ;;  %v12040_v44 = vadd.f32 %v15545_v27, %v11866_v42  ;;  %v12043_v54 = vpop.eup %9255  ;;  %v12045_v28 = vadd.f32 %v7196_v51, %v7018_v11  ;;  %v1996_v39 = vpop.f32.mrb[156].mxu0  ;;  %v15547_v11 = vld [vmem:[#allocation24_spill] sm:$0xff] }
 0x328   : > { %v12048_v31 = vpop.f32.mrb[58].mxu1  ;;  %v12052_v43 = vsel %vm7139_vm3, %v11789_v17, 0.0  ;;  %v5747_v45 = vadd.f32 1.0, %v5746_v49  ;;  %v5752_v42 = vadd.f32 1.0, %v12043_v54  ;;  %v1998_v47 = vpop.f32.mrb[157].mxu0  ;;  %4279 = vmatmul.mubr.f32.gmra.mrb[164].mxu1 %v1996_v39  ;;  %v12059_v52 = vrot.slane %v15547_v11, %v10997_v19 }
 0x329   : > { %15546 = vst [vmem:[#allocation61_spill] sm:$0xff] %v12052_v43  ;;  %v12055_v18 = vpop.f32.mrb[59].mxu1  ;;  %v12062_v51 = vadd.f32 %v12034_v3, %v7662_v46  ;;  %v4975_v27 = vmax.f32 %v11841_v57, 0.0  ;;  %9265 = vpow2.f32 %v8829_v58  ;;  %v5473_v17 = vmul.f32 1.442695, %v5362_v61  ;;  %4284 = vmatprep.mubr.f32.mxu1 %v528_v29  ;;  %v529_v47 = vld [vmem:[%s10819_s14 + $0x280] sm:$0xff] }
 0x32a   : > { %15548 = vst [vmem:[#allocation64_spill] sm:$0xff] %v12059_v52  ;;  %v7184_v43 = vrot.slane %v7183_v21, 2  ;;  %v4688_v49 = vadd.f32 1.0, %v9254_v10  ;;  %9267 = vlog2.f32 %v5752_v42  ;;  %v7179_v39 = vadd.f32 %v7178_v41, %v7177_v5 }
 0x32b   : > { %15549 = vst [vmem:[#allocation90_spill] sm:$0xff] %v12062_v51  ;;  %v9258_v12 = vpop.eup %9257  ;;  %v7190_v20 = vrot.slane %v11976_v9, 4  ;;  %vm12068_vm1 = vcmp.lt.f32.partialorder %v5749_v7, 0.0004427343  ;;  %9269 = vpow2.f32 %v5473_v17  ;;  %v2001_v46 = vpop.f32.mrb[158].mxu0  ;;  %v5748_v10 = vmul.f32 %v11966_v4, %v5747_v45 }
 0x32c   : > { %v12072_v11 = vpop.f32.mrb[60].mxu1  ;;  %v12074_v58 = vpop.eup %9259  ;;  %v5745_v61 = vmul.f32 0.6931472, %v9258_v12  ;;  %v5755_v29 = vmul.f32 -0.5, %v12043_v54  ;;  %v5267_v5 = vand.u32 2147483647, %v12029_v13  ;;  %4285 = vmatmul.mubr.f32.gmra.mrb[166].mxu1 %v2001_v46  ;;  %vm5071_vm2 = vcmp.ne.f32.partialorder %v11841_v57, %v11841_v57 }
 0x32d   : > { %v9262_v41 = vpop.eup %9261  ;;  %v5761_v42 = vadd.f32 1.0, %v12074_v58  ;;  %v8830_v17 = vmul.f32 -1.442695, %v3909_v40  ;;  %v2003_v26 = vpop.f32.mrb[159].mxu0  ;;  %4290 = vmatprep.mubr.f32.mxu1 %v529_v47  ;;  %v7185_v4 = vadd.f32 %v7184_v43, %v7183_v21  ;;  %9271 = vrcp.f32 %v4688_v49  ;;  %v530_v46 = vld [vmem:[%s10819_s14 + $0x288] sm:$0xff] }
 0x32e   : > { %v12083_v52 = vpop.f32.mrb[61].mxu1  ;;  %v5751_v12 = vsel %vm12068_vm1, %v5748_v10, %v5745_v61  ;;  %v5363_v45 = vsub.f32 0.0, %v5267_v5  ;;  %v7663_v56 = vmul.f32 %v12005_v30, %v7179_v39  ;;  %v7191_v7 = vadd.f32 %v7190_v20, %v11976_v9  ;;  %v531_v10 = vld [vmem:[%s10819_s14 + $0x290] sm:$0xff] }
 0x32f   : > { %v6511_v51 = vadd.f32 %v5751_v12, %v4975_v27  ;;  %9273 = vlog2.f32 %v5761_v42  ;;  %v2006_v32 = vpop.f32.mrb[160].mxu0  ;;  %v12090_v55 = vpop.f32.mrb[62].mxu1  ;;  %v5756_v26 = vadd.f32 1.0, %v5755_v29  ;;  %v4689_v40 = vadd.f32 1.0, %v9262_v41 }
 0x330   : > { %v5475_v21 = vmul.f32 1.442695, %v5363_v45  ;;  %v2008_v19 = vpop.f32.mrb[161].mxu0  ;;  %4291 = vmatmul.mubr.f32.gmra.mrb[168].mxu1 %v2006_v32  ;;  %v9264_v43 = vpop.eup %9263  ;;  %vm5072_vm4 = vcmp.ne.f32.partialorder %v11857_v2, %v11857_v2  ;;  %v5764_v20 = vmul.f32 -0.5, %v12074_v58  ;;  %9275 = vpow2.f32 %v8830_v17 }
 0x331   : > { %v6607_v49 = vsel %vm5071_vm2, %v11841_v57, %v6511_v51  ;;  %v12102_v9 = vadd.f32 %v11644_v48, %v11870_v1  ;;  %v12104_v27 = vpop.f32.mrb[63].mxu1  ;;  %4296 = vmatprep.mubr.f32.mxu1 %v530_v46  ;;  %v7186_v32 = vrot.slane %v7185_v4, 1  ;;  %v5758_v61 = vand.u32 2147483647, %v12043_v54 }
 0x332   : > { %v6703_v39 = vmul.f32 %v9264_v43, %v6607_v49  ;;  %9277 = vpow2.f32 %v5475_v21  ;;  %v12109_v51 = vadd.f32 %v12034_v3, %v7663_v56  ;;  %v7192_v29 = vrot.slane %v7191_v7, 2 }
 0x333   : > { %v9266_v57 = vpop.eup %9265  ;;  %v5268_v41 = vand.u32 2147483647, %v12102_v9  ;;  %v2011_v48 = vpop.f32.mrb[162].mxu0  ;;  %v5757_v17 = vmul.f32 %v12043_v54, %v5756_v26  ;;  %9279 = vrcp.f32 %v4689_v40  ;;  %v3921_v12 = vadd.f32 %v11880_v0, %v11580_v8 }
 0x334   : > { %15552 = vst [vmem:[#allocation91_spill] sm:$0xff] %v12109_v51  ;;  %v12113_v1 = vpop.f32.mrb[64].mxu1  ;;  %v9268_v42 = vpop.eup %9267  ;;  %v12120_v56 = vadd.f32 %v11885_v35, %v11601_v62  ;;  %4297 = vmatmul.mubr.f32.gmra.mrb[170].mxu1 %v2011_v48  ;;  %v5765_v43 = vadd.f32 1.0, %v5764_v20  ;;  %v15553_v54 = vcombine.low %v11580_v8, %v11588_v63  ;;  %v6895_v0 = vcombine.high %v6703_v39, %v6703_v39  ;;  %v532_v48 = vld [vmem:[%s10819_s14 + $0x298] sm:$0xff] }
 0x335   : > { %v2013_v45 = vpop.f32.mrb[163].mxu0  ;;  %v12122_v46 = vpop.f32.mrb[65].mxu1  ;;  %v5754_v19 = vmul.f32 0.6931472, %v9268_v42  ;;  %v5364_v49 = vsub.f32 0.0, %v5268_v41  ;;  %4302 = vmatprep.mubr.f32.mxu1 %v531_v10  ;;  %vm5073_vm6 = vcmp.ne.f32.partialorder %v11941_v23, %v11941_v23  ;;  %v12137_v42 = vadd.f32 %v7186_v32, %v7185_v4 }
 0x336   : > { %v12124_v21 = vpop.eup %9269  ;;  %v12130_v26 = vadd.f32 %v15553_v54, %v11901_v53  ;;  %vm5759_vm5 = vcmp.lt.f32.partialorder %v5758_v61, 0.0004427343  ;;  %v8831_v40 = vmul.f32 -1.442695, %v12040_v44  ;;  %v5767_v41 = vand.u32 2147483647, %v12074_v58 }
 0x337   : > { %v5770_v35 = vadd.f32 1.0, %v12124_v21  ;;  %v5760_v20 = vsel %vm5759_vm5, %v5757_v17, %v5754_v19  ;;  %v5477_v45 = vmul.f32 1.442695, %v5364_v49  ;;  %v2016_v8 = vpop.f32.mrb[164].mxu0  ;;  %v12140_v63 = vpop.f32.mrb[66].mxu1  ;;  %v12142_v10 = vadd.f32 %v7192_v29, %v7191_v7 }
 0x338   : > { %v9272_v53 = vpop.eup %9271  ;;  %v15554_v61 = vmax.f32 %v11857_v2, 0.0  ;;  %v4690_v5 = vadd.f32 1.0, %v9266_v57  ;;  %v2018_v44 = vpop.f32.mrb[165].mxu0  ;;  %4303 = vmatmul.mubr.f32.gmra.mrb[172].mxu1 %v2016_v8  ;;  %v5766_v32 = vmul.f32 %v12074_v58, %v5765_v43  ;;  %v5773_v17 = vmul.f32 -0.5, %v12124_v21 }
 0x339   : > { %9281 = vlog2.f32 %v5770_v35  ;;  %v12146_v47 = vpop.f32.mrb[67].mxu1  ;;  %v9274_v4 = vpop.eup %9273  ;;  %4308 = vmatprep.mubr.f32.mxu1 %v532_v48  ;;  %v7019_v7 = vcombine.low %v6703_v39, %v6895_v0  ;;  %v8832_v49 = vmul.f32 -1.442695, %v3921_v12  ;;  %v533_v35 = vld [vmem:[%s10819_s14 + $0x2a0] sm:$0xff]  ;;  %vm5768_vm7 = vcmp.lt.f32.partialorder %v5767_v41, 0.0004427343 }
 0x33a   : > { %v6512_v54 = vadd.f32 %v5760_v20, %v15554_v61  ;;  %9283 = vpow2.f32 %v5477_v45  ;;  %v5763_v29 = vmul.f32 0.6931472, %v9274_v4  ;;  %v9276_v20 = vpop.eup %9275  ;;  %v5269_v58 = vand.u32 2147483647, %v12120_v56 }
 0x33b   : > { %9285 = vpow2.f32 %v8831_v40  ;;  %v2021_v43 = vpop.f32.mrb[166].mxu0  ;;  %v12157_v61 = vpop.f32.mrb[68].mxu1  ;;  %v5776_v0 = vand.u32 2147483647, %v12124_v21  ;;  %v5774_v44 = vadd.f32 1.0, %v5773_v17  ;;  %vm5074_vm8 = vcmp.ne.f32.partialorder %v11964_v50, %v11964_v50 }
 0x33c   : > { %v6608_v57 = vsel %vm5072_vm4, %v11857_v2, %v6512_v54  ;;  %v12159_v45 = vpop.eup %9277  ;;  %v5769_v39 = vsel %vm5768_vm7, %v5766_v32, %v5763_v29  ;;  %9287 = vrcp.f32 %v4690_v5  ;;  %v15555_v2 = vcombine.low %v11601_v62, %v11591_v15  ;;  %v2023_v48 = vpop.f32.mrb[167].mxu0  ;;  %4309 = vmatmul.mubr.f32.gmra.mrb[174].mxu1 %v2021_v43 }
 0x33d   : > { %v6704_v8 = vmul.f32 %v9272_v53, %v6608_v57  ;;  %v12168_v40 = vpop.f32.mrb[69].mxu1  ;;  %v15556_v53 = vmax.f32 %v11941_v23, 0.0  ;;  %v5779_v5 = vadd.f32 1.0, %v12159_v45  ;;  %4314 = vmatprep.mubr.f32.mxu1 %v533_v35  ;;  %v9280_v4 = vpop.eup %9279  ;;  %9289 = vpow2.f32 %v8832_v49 }
 0x33e   : > { %v12166_v12 = vadd.f32 %v15555_v2, %v11903_v16  ;;  %v534_v16 = vld [vmem:[%s10819_s14 + $0x2a8] sm:$0xff]  ;;  %v4691_v17 = vadd.f32 1.0, %v9276_v20  ;;  %v5365_v29 = vsub.f32 0.0, %v5269_v58  ;;  %vm12185_vm9 = vcmp.lt.f32.partialorder %v5776_v0, 0.0004427343 }
 0x33f   : > { %v7204_v41 = vsel %vm7139_vm3, %v6704_v8, 0.0  ;;  %v6513_v54 = vadd.f32 %v5769_v39, %v15556_v53  ;;  %9291 = vlog2.f32 %v5779_v5  ;;  %v2026_v35 = vpop.f32.mrb[168].mxu0  ;;  %v12183_v43 = vpop.f32.mrb[70].mxu1  ;;  %v6896_v39 = vcombine.high %v6704_v8, %v6704_v8 }
 0x340   : > { %v7205_v62 = vadd.f32 %v7204_v41, %v7019_v7  ;;  %v2028_v48 = vpop.f32.mrb[169].mxu0  ;;  %v12189_v41 = vpop.f32.mrb[71].mxu1  ;;  %4315 = vmatmul.mubr.f32.gmra.mrb[176].mxu1 %v2026_v35  ;;  %v5479_v20 = vmul.f32 1.442695, %v5365_v29  ;;  %v8833_v58 = vmul.f32 -1.442695, %v12130_v26  ;;  %vm5075_vm10 = vcmp.ne.f32.partialorder %v12029_v13, %v12029_v13 }
 0x341   : > { %v6609_v57 = vsel %vm5073_vm6, %v11941_v23, %v6513_v54  ;;  %v5775_v23 = vmul.f32 %v12124_v21, %v5774_v44  ;;  %v5270_v53 = vand.u32 2147483647, %v12166_v12  ;;  %4320 = vmatprep.mubr.f32.mxu1 %v534_v16  ;;  %v5782_v0 = vmul.f32 -0.5, %v12159_v45  ;;  %v15559_v21 = vld [vmem:[#allocation73_spill] sm:$0xff] }
 0x342   : > { %v7206_v2 = vrot.slane %v7205_v62, 4  ;;  %v6705_v7 = vmul.f32 %v9280_v4, %v6609_v57  ;;  %v535_v57 = vld [vmem:[%s10819_s14 + $0x2b0] sm:$0xff]  ;;  %9293 = vpow2.f32 %v5479_v20  ;;  %v12200_v44 = vadd.f32 %v15559_v21, %v11915_v38 }
 0x343   : > { %v9282_v8 = vpop.eup %9281  ;;  %v5366_v35 = vsub.f32 0.0, %v5270_v53  ;;  %v2031_v26 = vpop.f32.mrb[170].mxu0  ;;  %9295 = vrcp.f32 %v4691_v17  ;;  %v15560_v17 = vmax.f32 %v11964_v50, 0.0  ;;  %v5783_v22 = vadd.f32 1.0, %v5782_v0 }
 0x344   : > { %v7207_v54 = vadd.f32 %v7206_v2, %v7205_v62  ;;  %v6897_v5 = vcombine.high %v6705_v7, %v6705_v7  ;;  %v7020_v4 = vcombine.low %v6896_v39, %v6705_v7  ;;  %v12196_v15 = vpop.eup %9283  ;;  %v5772_v48 = vmul.f32 0.6931472, %v9282_v8  ;;  %v12202_v29 = vpop.f32.mrb[72].mxu1  ;;  %4321 = vmatmul.mubr.f32.gmra.mrb[178].mxu1 %v2031_v26 }
 0x345   : > { %v5788_v39 = vadd.f32 1.0, %v12196_v15  ;;  %v2033_v2 = vpop.f32.mrb[171].mxu0  ;;  %v12206_v7 = vpop.f32.mrb[73].mxu1  ;;  %v5785_v8 = vand.u32 2147483647, %v12159_v45  ;;  %4326 = vmatprep.mubr.f32.mxu1 %v535_v57  ;;  %vm5076_vm12 = vcmp.ne.f32.partialorder %v12102_v9, %v12102_v9  ;;  %vm7859_vm13 = vcmask 1041409  }
 0x346   : > { %v7208_v16 = vrot.slane %v7207_v54, 2  ;;  %v7212_v62 = vsel %vm7139_vm3, %v6897_v5, 0.0  ;;  %v9286_v20 = vpop.eup %9285  ;;  %v5778_v38 = vsel %vm12185_vm9, %v5775_v23, %v5772_v48  ;;  %v5481_v21 = vmul.f32 1.442695, %v5366_v35  ;;  %v536_v2 = vld [vmem:[%s10819_s14 + $0x2b8] sm:$0xff] }
 0x347   : > { %v7213_v53 = vadd.f32 %v7212_v62, %v7020_v4  ;;  %v9288_v19 = vpop.eup %9287  ;;  %v6514_v5 = vadd.f32 %v5778_v38, %v15560_v17  ;;  %9297 = vlog2.f32 %v5788_v39  ;;  %v5791_v4 = vmul.f32 -0.5, %v12196_v15  ;;  %v2036_v49 = vpop.f32.mrb[172].mxu0  ;;  %v15564_v17 = vld [vmem:[#allocation74_spill] sm:$0xff] }
 0x348   : > { %v7209_v32 = vadd.f32 %v7208_v16, %v7207_v54  ;;  %9299 = vpow2.f32 %v5481_v21  ;;  %v12217_v23 = vpop.f32.mrb[74].mxu1  ;;  %v9290_v48 = vpop.eup %9289  ;;  %v15562_v54 = vrot.slane %v12142_v10, 1  ;;  %v4692_v35 = vadd.f32 1.0, %v9286_v20  ;;  %4327 = vmatmul.mubr.f32.gmra.mrb[180].mxu1 %v2036_v49 }
 0x349   : > { %v7214_v37 = vrot.slane %v7213_v53, 4  ;;  %15561 = vst [vmem:[#allocation73_spill] sm:$0xff] %v12217_v23  ;;  %v6610_v0 = vsel %vm5074_vm8, %v11964_v50, %v6514_v5  ;;  %9301 = vpow2.f32 %v8833_v58  ;;  %v2038_v26 = vpop.f32.mrb[173].mxu0  ;;  %v12228_v16 = vpop.f32.mrb[75].mxu1  ;;  %v12232_v23 = vadd.f32 %v15564_v17, %v11920_v25  ;;  %4332 = vmatprep.mubr.f32.mxu1 %v536_v2 }
 0x34a   : > { %v12222_v57 = vadd.f32 %v15562_v54, %v12142_v10  ;;  %15563 = vst [vmem:[#allocation92_spill] sm:$0xff] %v12228_v16  ;;  %v9292_v62 = vpop.eup %9291  ;;  %v7210_v39 = vrot.slane %v7209_v32, 1  ;;  %v6706_v21 = vmul.f32 %v9288_v19, %v6610_v0  ;;  %v5784_v54 = vmul.f32 %v12159_v45, %v5783_v22  ;;  %v537_v0 = vld [vmem:[%s10819_s14 + $0x2c0] sm:$0xff] }
 0x34b   : > { %v7215_v38 = vadd.f32 %v7214_v37, %v7213_v53  ;;  %v5781_v10 = vmul.f32 0.6931472, %v9292_v62  ;;  %vm12235_vm11 = vcmp.lt.f32.partialorder %v5785_v8, 0.0004427343  ;;  %v4980_v58 = vmax.f32 %v12102_v9, 0.0  ;;  %v2041_v19 = vpop.f32.mrb[174].mxu0 }
 0x34c   : > { %v6898_v5 = vcombine.high %v6706_v21, %v6706_v21  ;;  %v5792_v49 = vadd.f32 1.0, %v5791_v4  ;;  %v5794_v37 = vand.u32 2147483647, %v12196_v15  ;;  %v12241_v53 = vpop.f32.mrb[76].mxu1  ;;  %9303 = vrcp.f32 %v4692_v35  ;;  %v2043_v8 = vpop.f32.mrb[175].mxu0  ;;  %4333 = vmatmul.mubr.f32.gmra.mrb[182].mxu1 %v2041_v19 }
 0x34d   : > { %v7216_v20 = vrot.slane %v7215_v38, 2  ;;  %v5787_v25 = vsel %vm12235_vm11, %v5784_v54, %v5781_v10  ;;  %v4693_v22 = vadd.f32 1.0, %v9290_v48  ;;  %v5271_v45 = vand.u32 2147483647, %v12232_v23  ;;  %v12246_v2 = vpop.f32.mrb[77].mxu1  ;;  %v12249_v26 = vpop.eup %9293  ;;  %v15569_v10 = vld [vmem:[#allocation71_spill] sm:$0xff]  ;;  %4338 = vmatprep.mubr.f32.mxu1 %v537_v0 }
 0x34e   : > { %15567 = vst [vmem:[#allocation74_spill] sm:$0xff] %v12246_v2  ;;  %v7211_v4 = vadd.f32 %v7210_v39, %v7209_v32  ;;  %v15568_v17 = vmax.f32 %v12029_v13, 0.0  ;;  %v3939_v48 = vadd.f32 %v11937_v33, %v15569_v10  ;;  %v9296_v35 = vpop.eup %9295  ;;  %v5797_v50 = vadd.f32 1.0, %v12249_v26 }
 0x34f   : > { %v7217_v62 = vadd.f32 %v7216_v20, %v7215_v38  ;;  %v8834_v32 = vmul.f32 -1.442695, %v12200_v44  ;;  %v7021_v38 = vcombine.low %v6706_v21, %v6898_v5  ;;  %v2046_v33 = vpop.f32.mrb[176].mxu0  ;;  %v12265_v8 = vpop.f32.mrb[78].mxu1  ;;  %v5793_v54 = vmul.f32 %v12196_v15, %v5792_v49 }
 0x350   : > { %v6515_v16 = vadd.f32 %v5787_v25, %v15568_v17  ;;  %v5367_v25 = vsub.f32 0.0, %v5271_v45  ;;  %15570 = vst [vmem:[#allocation71_spill] sm:$0xff] %v12265_v8  ;;  %vm12268_vm14 = vcmp.lt.f32.partialorder %v5794_v37, 0.0004427343  ;;  %9305 = vlog2.f32 %v5797_v50  ;;  %v2048_v44 = vpop.f32.mrb[177].mxu0  ;;  %v12272_v21 = vpop.f32.mrb[79].mxu1  ;;  %4339 = vmatmul.mubr.f32.gmra.mrb[184].mxu1 %v2046_v33 }
 0x351   : > { %v7218_v39 = vrot.slane %v7217_v62, 1  ;;  %v9298_v0 = vpop.eup %9297  ;;  %15573 = vst [vmem:[#allocation93_spill] sm:$0xff] %v12272_v21  ;;  %9307 = vrcp.f32 %v4693_v22  ;;  %v5800_v49 = vmul.f32 -0.5, %v12249_v26  ;;  %v538_v50 = vld [vmem:[%s10819_s14 + $0x2c8] sm:$0xff]  ;;  %vm5077_vm15 = vcmp.ne.f32.partialorder %v12120_v56, %v12120_v56 }
 0x352   : > { %v6611_v20 = vsel %vm5075_vm10, %v12029_v13, %v6515_v16  ;;  %v12274_v5 = vpop.eup %9299  ;;  %v7667_v13 = vmul.f32 %v12005_v30, %v7211_v4  ;;  %v5790_v45 = vmul.f32 0.6931472, %v9298_v0  ;;  %9309 = vpow2.f32 %v8834_v32  ;;  %4344 = vmatprep.mubr.f32.mxu1 %v538_v50  ;;  %v15574_v0 = vld [vmem:[#allocation72_spill] sm:$0xff] }
 0x353   : > { %v6707_v17 = vmul.f32 %v9296_v35, %v6611_v20  ;;  %v7219_v16 = vadd.f32 %v7218_v39, %v7217_v62  ;;  %v9302_v35 = vpop.eup %9301  ;;  %v5806_v37 = vadd.f32 1.0, %v12274_v5  ;;  %v5483_v20 = vmul.f32 1.442695, %v5367_v25  ;;  %v2051_v4 = vpop.f32.mrb[178].mxu0 }
 0x354   : > { %v5796_v33 = vsel %vm12268_vm14, %v5793_v54, %v5790_v45  ;;  %v12284_v62 = vpop.f32.mrb[80].mxu1  ;;  %v5809_v39 = vmul.f32 -0.5, %v12274_v5  ;;  %v12289_v8 = vadd.f32 %v11947_v36, %v15574_v0  ;;  %v2053_v25 = vpop.f32.mrb[179].mxu0  ;;  %4345 = vmatmul.mubr.f32.gmra.mrb[186].mxu1 %v2051_v4  ;;  %v7738_v19 = vadd.f32 %v12034_v3, %v7667_v13  ;;  %v15575_v4 = vld [vmem:[#allocation69_spill] sm:$0xff] }
 0x355   : > { %v7220_v15 = vsel %vm7139_vm3, %v6707_v17, 0.0  ;;  %v7668_v44 = vmul.f32 %v12005_v30, %v7219_v16  ;;  %v6516_v22 = vadd.f32 %v5796_v33, %v4980_v58  ;;  %9311 = vlog2.f32 %v5806_v37  ;;  %v12291_v2 = vpop.f32.mrb[81].mxu1 }
 0x356   : > { %v7221_v21 = vadd.f32 %v7220_v15, %v7021_v38  ;;  %v4694_v38 = vadd.f32 1.0, %v9302_v35  ;;  %v9304_v16 = vpop.eup %9303  ;;  %v5801_v45 = vadd.f32 1.0, %v5800_v49  ;;  %v5803_v36 = vand.u32 2147483647, %v12249_v26 }
 0x357   : > { %v7739_v54 = vadd.f32 %v12034_v3, %v7668_v44  ;;  %v6612_v58 = vsel %vm5076_vm12, %v12102_v9, %v6516_v22  ;;  %9313 = vpow2.f32 %v5483_v20  ;;  %v6899_v37 = vcombine.high %v6707_v17, %v6707_v17 }
 0x358   : > { %v7222_v32 = vrot.slane %v7221_v21, 4  ;;  %v6708_v33 = vmul.f32 %v9304_v16, %v6612_v58  ;;  %v5810_v13 = vadd.f32 1.0, %v5809_v39  ;;  %v8835_v35 = vmul.f32 -1.442695, %v3939_v48  ;;  %v15579_v39 = vld [vmem:[#allocation70_spill] sm:$0xff] }
 0x359   : > { %v7879_v15 = vrot.slane %v7739_v54, 7  ;;  %v5272_v44 = vand.u32 2147483647, %v12289_v8  ;;  %v15576_v9 = vcombine.low %v15569_v10, %v15575_v4  ;;  %vm12310_vm0 = vcmp.lt.f32.partialorder %v5803_v36, 0.0004427343  ;;  %v2056_v36 = vpop.f32.mrb[180].mxu0 }
 0x35a   : > { %v7223_v50 = vadd.f32 %v7222_v32, %v7221_v21  ;;  %v6900_v17 = vcombine.high %v6708_v33, %v6708_v33  ;;  %v7022_v21 = vcombine.low %v6899_v37, %v6708_v33  ;;  %v9306_v25 = vpop.eup %9305  ;;  %9315 = vrcp.f32 %v4694_v38  ;;  %v12323_v33 = vpop.f32.mrb[82].mxu1  ;;  %v15583_v54 = vld [vmem:[#allocation76_spill] sm:$0xff] }
 0x35b   : > { %v3945_v49 = vadd.f32 %v15576_v9, %v11957_v34  ;;  %v12308_v22 = vsel %vm7859_vm13, %v7879_v15, %v7738_v19  ;;  %v5368_v48 = vsub.f32 0.0, %v5272_v44  ;;  %v15580_v32 = vcombine.low %v15574_v0, %v15579_v39  ;;  %v539_v34 = vld [vmem:[%s10819_s14 + $0x2d0] sm:$0xff]  ;;  %v9308_v10 = vpop.eup %9307  ;;  %v12326_v4 = vpop.f32.mrb[83].mxu1 }
 0x35c   : > { %v7224_v20 = vrot.slane %v7223_v50, 2  ;;  %v7228_v58 = vsel %vm7139_vm3, %v6900_v17, 0.0  ;;  %v5799_v15 = vmul.f32 0.6931472, %v9306_v25  ;;  %v5802_v37 = vmul.f32 %v12249_v26, %v5801_v45  ;;  %4350 = vmatprep.mubr.f32.mxu1 %v539_v34 }
 0x35d   : > { %v12318_v16 = vadd.f32 %v15580_v32, %v11960_v24  ;;  %vm7862_vm1 = vcmask 1042434   ;;  %v7229_v38 = vadd.f32 %v7228_v58, %v7022_v21  ;;  %v5812_v44 = vand.u32 2147483647, %v12274_v5  ;;  %v2058_v24 = vpop.f32.mrb[181].mxu0  ;;  %4351 = vmatmul.mubr.f32.gmra.mrb[188].mxu1 %v2056_v36 }
 0x35e   : > { %v7225_v19 = vadd.f32 %v7224_v20, %v7223_v50  ;;  %9317 = vpow2.f32 %v8835_v35  ;;  %v5485_v0 = vmul.f32 1.442695, %v5368_v48  ;;  %v9310_v50 = vpop.eup %9309  ;;  %v5805_v20 = vsel %vm12310_vm0, %v5802_v37, %v5799_v15  ;;  %v15582_v35 = vld [vmem:[#allocation75_spill] sm:$0xff] }
 0x35f   : > { %v5811_v26 = vmul.f32 %v12274_v5, %v5810_v13  ;;  %v5273_v45 = vand.u32 2147483647, %v12318_v16  ;;  %v9312_v17 = vpop.eup %9311  ;;  %v7230_v25 = vrot.slane %v7229_v38, 4  ;;  %v15581_v21 = vmax.f32 %v12120_v56, 0.0 }
 0x360   : > { %v7226_v9 = vrot.slane %v7225_v19, 1  ;;  %9319 = vpow2.f32 %v5485_v0  ;;  %v3951_v48 = vadd.f32 %v15582_v35, %v11979_v60  ;;  %v5808_v34 = vmul.f32 0.6931472, %v9312_v17  ;;  %v2061_v17 = vpop.f32.mrb[182].mxu0 }
 0x361   : > { %v6517_v39 = vadd.f32 %v5805_v20, %v15581_v21  ;;  %v5369_v58 = vsub.f32 0.0, %v5273_v45  ;;  %v12338_v15 = vadd.f32 %v15583_v54, %v11994_v59  ;;  %v12340_v5 = vpop.eup %9313  ;;  %v7231_v13 = vadd.f32 %v7230_v25, %v7229_v38 }
 0x362   : > { %v7227_v32 = vadd.f32 %v7226_v9, %v7225_v19  ;;  %vm5813_vm2 = vcmp.lt.f32.partialorder %v5812_v44, 0.0004427343  ;;  %v8836_v36 = vmul.f32 -1.442695, %v3945_v49  ;;  %v5815_v24 = vadd.f32 1.0, %v12340_v5  ;;  %v540_v9 = vld [vmem:[%s10819_s14 + $0x2d8] sm:$0xff] }
 0x363   : > { %v6613_v37 = vsel %vm5077_vm15, %v12120_v56, %v6517_v39  ;;  %v5814_v19 = vsel %vm5813_vm2, %v5811_v26, %v5808_v34  ;;  %v7232_v20 = vrot.slane %v7231_v13, 2  ;;  %vm5078_vm4 = vcmp.ne.f32.partialorder %v12166_v12, %v12166_v12  ;;  %v12354_v56 = vpop.f32.mrb[84].mxu1  ;;  %4356 = vmatprep.mubr.f32.mxu1 %v540_v9  ;;  %v2063_v26 = vpop.f32.mrb[183].mxu0 }
 0x364   : > { %v7669_v0 = vmul.f32 %v12005_v30, %v7227_v32  ;;  %v6709_v60 = vmul.f32 %v9308_v10, %v6613_v37  ;;  %v15584_v59 = vmax.f32 %v12166_v12, 0.0  ;;  %v5818_v45 = vmul.f32 -0.5, %v12340_v5  ;;  %v12357_v25 = vpop.f32.mrb[85].mxu1  ;;  %4357 = vmatmul.mubr.f32.gmra.mrb[190].mxu1 %v2061_v17  ;;  %v9316_v21 = vpop.eup %9315 }
 0x365   : > { %9321 = vlog2.f32 %v5815_v24  ;;  %v5487_v44 = vmul.f32 1.442695, %v5369_v58  ;;  %v15585_v39 = vrot.slane %v12045_v28, 4  ;;  %v7233_v32 = vadd.f32 %v7232_v20, %v7231_v13 }
 0x366   : > { %v6518_v38 = vadd.f32 %v5814_v19, %v15584_v59  ;;  %v7740_v49 = vadd.f32 %v12034_v3, %v7669_v0  ;;  %v6901_v10 = vcombine.high %v6709_v60, %v6709_v60  ;;  %9323 = vpow2.f32 %v8836_v36 }
 0x367   : > { %v12362_v35 = vadd.f32 %v15585_v39, %v12045_v28  ;;  %v4695_v0 = vadd.f32 1.0, %v9310_v50  ;;  %v12373_v9 = vmul.f32 %v12005_v30, %v12137_v42  ;;  %v7234_v28 = vrot.slane %v7233_v32, 1 }
 0x368   : > { %v6614_v34 = vsel %vm5078_vm4, %v12166_v12, %v6518_v38  ;;  %v7881_v54 = vrot.slane %v7740_v49, 6  ;;  %v7023_v37 = vcombine.low %v6709_v60, %v6901_v10  ;;  %v9318_v19 = vpop.eup %9317  ;;  %9325 = vpow2.f32 %v5487_v44  ;;  %v2066_v49 = vpop.f32.mrb[184].mxu0 }
 0x369   : > { %v12368_v58 = vmul.f32 %v9316_v21, %v6614_v34  ;;  %v12377_v13 = vmul.f32 %v12005_v30, %v12222_v57  ;;  %v5819_v50 = vadd.f32 1.0, %v5818_v45  ;;  %v7235_v42 = vadd.f32 %v7234_v28, %v7233_v32  ;;  %v12387_v10 = vpop.f32.mrb[86].mxu1  ;;  %v541_v21 = vld [vmem:[%s10819_s14 + $0x2e0] sm:$0xff]  ;;  %v2068_v39 = vpop.f32.mrb[185].mxu0 }
 0x36a   : > { %v7882_v12 = vsel %vm7862_vm1, %v7881_v54, %v12308_v22  ;;  %v12383_v60 = vpop.eup %9319  ;;  %vm7865_vm5 = vcmask 1043459   ;;  %9327 = vrcp.f32 %v4695_v0  ;;  %v4696_v38 = vadd.f32 1.0, %v9318_v19  ;;  %v15586_v54 = vld [vmem:[#allocation41_spill] sm:$0xff]  ;;  %4362 = vmatprep.mubr.f32.mxu1 %v541_v21  ;;  %v15590_v21 = vld [vmem:[#allocation44_spill] sm:$0xff] }
 0x36b   : > { %v7236_v36 = vsel %vm7139_vm3, %v12368_v58, 0.0  ;;  %v5824_v57 = vadd.f32 1.0, %v12383_v60  ;;  %v8837_v17 = vmul.f32 -1.442695, %v3951_v48  ;;  %v7670_v22 = vmul.f32 %v12005_v30, %v7235_v42  ;;  %4363 = vmatmul.mubr.f32.gmra.mrb[192].mxu1 %v2066_v49 }
 0x36c   : > { %v7237_v59 = vadd.f32 %v7236_v36, %v7023_v37  ;;  %v4983_v45 = vmax.f32 %v12232_v23, 0.0  ;;  %v5274_v26 = vand.u32 2147483647, %v12338_v15  ;;  %v5820_v32 = vmul.f32 %v12340_v5, %v5819_v50  ;;  %v12397_v37 = vpop.f32.mrb[87].mxu1  ;;  %v15587_v36 = vld [vmem:[#allocation42_spill] sm:$0xff]  ;;  %v15588_v50 = vld [vmem:[#allocation43_spill] sm:$0xff] }
 0x36d   : > { %v5821_v34 = vand.u32 2147483647, %v12340_v5  ;;  %9329 = vlog2.f32 %v5824_v57  ;;  %v3957_v48 = vadd.f32 %v12009_v14, %v15586_v54  ;;  %v7741_v0 = vadd.f32 %v12034_v3, %v7670_v22 }
 0x36e   : > { %v7238_v44 = vrot.slane %v7237_v59, 4  ;;  %v5370_v28 = vsub.f32 0.0, %v5274_v26  ;;  %v12402_v42 = vadd.f32 %v12017_v6, %v15587_v36  ;;  %9331 = vrcp.f32 %v4696_v38 }
 0x36f   : > { %v9322_v39 = vpop.eup %9321  ;;  %v5827_v5 = vmul.f32 -0.5, %v12383_v60  ;;  %v15589_v14 = vcombine.low %v15586_v54, %v15588_v50  ;;  %v15591_v22 = vcombine.low %v15587_v36, %v15590_v21  ;;  %v7883_v26 = vrot.slane %v7741_v0, 5 }
 0x370   : > { %v7239_v19 = vadd.f32 %v7238_v44, %v7237_v59  ;;  %v9324_v44 = vpop.eup %9323  ;;  %v5817_v24 = vmul.f32 0.6931472, %v9322_v39  ;;  %v5489_v49 = vmul.f32 1.442695, %v5370_v28  ;;  %vm5822_vm6 = vcmp.lt.f32.partialorder %v5821_v34, 0.0004427343 }
 0x371   : > { %v3963_v57 = vadd.f32 %v15589_v14, %v12048_v31  ;;  %v12413_v59 = vadd.f32 %v15591_v22, %v12055_v18  ;;  %v5830_v38 = vand.u32 2147483647, %v12383_v60  ;;  %9333 = vpow2.f32 %v8837_v17 }
 0x372   : > { %v7240_v6 = vrot.slane %v7239_v19, 2  ;;  %v5275_v20 = vand.u32 2147483647, %v12402_v42  ;;  %v12417_v51 = vpop.eup %9325  ;;  %v12420_v31 = vsel %vm7865_vm5, %v7883_v26, %v7882_v12  ;;  %v5823_v36 = vsel %vm5822_vm6, %v5820_v32, %v5817_v24  ;;  %v12434_v26 = vpop.f32.mrb[88].mxu1 }
 0x373   : > { %9335 = vpow2.f32 %v5489_v49  ;;  %vm7868_vm7 = vcmask 1044484   ;;  %v6519_v18 = vadd.f32 %v5823_v36, %v4983_v45  ;;  %v5828_v0 = vadd.f32 1.0, %v5827_v5  ;;  %v542_v45 = vld [vmem:[%s10819_s14 + $0x2e8] sm:$0xff] }
 0x374   : > { %v7241_v54 = vadd.f32 %v7240_v6, %v7239_v19  ;;  %v4697_v39 = vadd.f32 1.0, %v9324_v44  ;;  %v5833_v34 = vadd.f32 1.0, %v12417_v51  ;;  %vm5079_vm8 = vcmp.ne.f32.partialorder %v12232_v23, %v12232_v23  ;;  %v9328_v14 = vpop.eup %9327  ;;  %v2071_v44 = vpop.f32.mrb[186].mxu0  ;;  %4368 = vmatprep.mubr.f32.mxu1 %v542_v45 }
 0x375   : > { %v4984_v17 = vmax.f32 %v12289_v8, 0.0  ;;  %v5371_v50 = vsub.f32 0.0, %v5275_v20  ;;  %v6902_v12 = vcombine.high %v12368_v58, %v12368_v58  ;;  %v6615_v24 = vsel %vm5079_vm8, %v12232_v23, %v6519_v18  ;;  %v2073_v49 = vpop.f32.mrb[187].mxu0  ;;  %4369 = vmatmul.mubr.f32.gmra.mrb[194].mxu1 %v2071_v44 }
 0x376   : > { %v7242_v28 = vrot.slane %v7241_v54, 1  ;;  %vm12429_vm9 = vcmp.lt.f32.partialorder %v5830_v38, 0.0004427343  ;;  %9337 = vlog2.f32 %v5833_v34  ;;  %v6711_v5 = vmul.f32 %v9328_v14, %v6615_v24  ;;  %v12439_v38 = vpop.f32.mrb[89].mxu1  ;;  %v15594_v14 = vld [vmem:[#allocation77_spill] sm:$0xff] }
 0x377   : > { %v8838_v21 = vmul.f32 -1.442695, %v3957_v48  ;;  %v5491_v22 = vmul.f32 1.442695, %v5371_v50  ;;  %v9330_v20 = vpop.eup %9329  ;;  %v5829_v6 = vmul.f32 %v12383_v60, %v5828_v0  ;;  %9339 = vrcp.f32 %v4697_v39  ;;  %v15595_v0 = vld [vmem:[#allocation78_spill] sm:$0xff] }
 0x378   : > { %v7243_v19 = vadd.f32 %v7242_v28, %v7241_v54  ;;  %v5836_v23 = vmul.f32 -0.5, %v12417_v51  ;;  %v5276_v58 = vand.u32 2147483647, %v12413_v59  ;;  %v6903_v48 = vcombine.high %v6711_v5, %v6711_v5  ;;  %v9332_v34 = vpop.eup %9331 }
 0x379   : > { %v7024_v36 = vcombine.low %v6902_v12, %v6711_v5  ;;  %v5826_v18 = vmul.f32 0.6931472, %v9330_v20  ;;  %v8839_v28 = vmul.f32 -1.442695, %v3963_v57  ;;  %v3969_v60 = vadd.f32 %v15594_v14, %v12072_v11  ;;  %v543_v20 = vld [vmem:[%s10819_s14 + $0x2f0] sm:$0xff] }
 0x37a   : > { %v7671_v54 = vmul.f32 %v12005_v30, %v7243_v19  ;;  %v5372_v50 = vsub.f32 0.0, %v5276_v58  ;;  %v12446_v39 = vadd.f32 %v15595_v0, %v12083_v52  ;;  %v7244_v45 = vsel %vm7139_vm3, %v6903_v48, 0.0  ;;  %4374 = vmatprep.mubr.f32.mxu1 %v543_v20 }
 0x37b   : > { %v5832_v30 = vsel %vm12429_vm9, %v5829_v6, %v5826_v18  ;;  %9341 = vpow2.f32 %v5491_v22  ;;  %v9334_v12 = vpop.eup %9333  ;;  %v7245_v19 = vadd.f32 %v7244_v45, %v7024_v36  ;;  %v5839_v5 = vand.u32 2147483647, %v12417_v51  ;;  %v2076_v6 = vpop.f32.mrb[188].mxu0 }
 0x37c   : > { %v7742_v24 = vadd.f32 %v12034_v3, %v7671_v54  ;;  %v6520_v57 = vadd.f32 %v5832_v30, %v4984_v17  ;;  %9343 = vpow2.f32 %v8838_v21  ;;  %vm5080_vm10 = vcmp.ne.f32.partialorder %v12289_v8, %v12289_v8  ;;  %v12460_v17 = vpop.f32.mrb[90].mxu1  ;;  %v2078_v48 = vpop.f32.mrb[189].mxu0  ;;  %4375 = vmatmul.mubr.f32.gmra.mrb[196].mxu1 %v2076_v6 }
 0x37d   : > { %v12453_v11 = vpop.eup %9335  ;;  %v5837_v52 = vadd.f32 1.0, %v5836_v23  ;;  %v5493_v3 = vmul.f32 1.442695, %v5372_v50  ;;  %v7246_v58 = vrot.slane %v7245_v19, 4  ;;  %9345 = vpow2.f32 %v8839_v28  ;;  %v12467_v36 = vpop.f32.mrb[91].mxu1 }
 0x37e   : > { %v7885_v44 = vrot.slane %v7742_v24, 4  ;;  %v6616_v32 = vsel %vm5080_vm10, %v12289_v8, %v6520_v57  ;;  %v5842_v22 = vadd.f32 1.0, %v12453_v11  ;;  %v4985_v54 = vmax.f32 %v12318_v16, 0.0 }
 0x37f   : > { %v6712_v49 = vmul.f32 %v9332_v34, %v6616_v32  ;;  %v4698_v23 = vadd.f32 1.0, %v9334_v12  ;;  %v7247_v18 = vadd.f32 %v7246_v58, %v7245_v19  ;;  %vm5081_vm11 = vcmp.ne.f32.partialorder %v12318_v16, %v12318_v16  ;;  %v15596_v19 = vld [vmem:[#allocation45_spill] sm:$0xff]  ;;  %v15597_v32 = vld [vmem:[#allocation46_spill] sm:$0xff] }
 0x380   : > { %v12464_v21 = vsel %vm7868_vm7, %v7885_v44, %v12420_v31  ;;  %v9338_v8 = vpop.eup %9337  ;;  %9347 = vlog2.f32 %v5842_v22  ;;  %v5277_v28 = vand.u32 2147483647, %v12446_v39  ;;  %v5838_v31 = vmul.f32 %v12417_v51, %v5837_v52  ;;  %v15598_v52 = vld [vmem:[#allocation47_spill] sm:$0xff] }
 0x381   : > { %v5835_v50 = vmul.f32 0.6931472, %v9338_v8  ;;  %9349 = vpow2.f32 %v5493_v3  ;;  %v8840_v34 = vmul.f32 -1.442695, %v3969_v60  ;;  %v9340_v14 = vpop.eup %9339  ;;  %v7248_v0 = vrot.slane %v7247_v18, 2 }
 0x382   : > { %v6904_v24 = vcombine.high %v6712_v49, %v6712_v49  ;;  %vm5840_vm12 = vcmp.lt.f32.partialorder %v5839_v5, 0.0004427343  ;;  %v5373_v45 = vsub.f32 0.0, %v5277_v28  ;;  %9351 = vrcp.f32 %v4698_v23 }
 0x383   : > { %v5841_v30 = vsel %vm5840_vm12, %v5838_v31, %v5835_v50  ;;  %v5845_v12 = vmul.f32 -0.5, %v12453_v11  ;;  %v3975_v57 = vadd.f32 %v12090_v55, %v15596_v19  ;;  %v7249_v44 = vadd.f32 %v7248_v0, %v7247_v18  ;;  %v15600_v55 = vld [vmem:[#allocation48_spill] sm:$0xff]  ;;  %v2081_v0 = vpop.f32.mrb[190].mxu0 }
 0x384   : > { %v6521_v20 = vadd.f32 %v5841_v30, %v4985_v54  ;;  %v5495_v58 = vmul.f32 1.442695, %v5373_v45  ;;  %v12478_v51 = vadd.f32 %v12104_v27, %v15597_v32  ;;  %vm7871_vm14 = vcmask 1045509   ;;  %v544_v31 = vld [vmem:[%s10819_s14 + $0x2f8] sm:$0xff]  ;;  %s15280_s14 = scalar_lea.hbm %s15755_s16, %s8918_s27 }
 0x385   : > { %v12480_v60 = vpop.eup %9341  ;;  %v5848_v5 = vand.u32 2147483647, %v12453_v11  ;;  %9353 = vpow2.f32 %v8840_v34  ;;  %v15599_v3 = vcombine.low %v15596_v19, %v15598_v52  ;;  %v15601_v6 = vcombine.low %v15597_v32, %v15600_v55  ;;  %4380 = vmatprep.mubr.f32.mxu1 %v544_v31 }
 0x386   : > { %v9344_v27 = vpop.eup %9343  ;;  %v7250_v23 = vrot.slane %v7249_v44, 1  ;;  %v7025_v48 = vcombine.low %v6712_v49, %v6904_v24  ;;  %v6617_v8 = vsel %vm5081_vm11, %v12318_v16, %v6521_v20  ;;  %v5851_v18 = vadd.f32 1.0, %v12480_v60  ;;  %v12507_v24 = vpop.f32.mrb[92].mxu1  ;;  %4381 = vmatmul.mubr.f32.gmra.mrb[198].mxu1 %v2081_v0  ;;  %v12518_v20 = vld [vmem:[%s15333_s7] ss:$0 sm:$0xff] }
 0x387   : > { %v12487_v22 = vadd.f32 %v15599_v3, %v12113_v1  ;;  %v12493_v54 = vadd.f32 %v15601_v6, %v12122_v46  ;;  %v12500_v28 = vmul.f32 %v9340_v14, %v6617_v8  ;;  %v4986_v1 = vmax.f32 %v12338_v15, 0.0  ;;  %v9346_v34 = vpop.eup %9345  ;;  %v12513_v19 = vpop.f32.mrb[93].mxu1 }
 0x388   : > { %v5846_v50 = vadd.f32 1.0, %v5845_v12  ;;  %9355 = vpow2.f32 %v5495_v58  ;;  %v7251_v46 = vadd.f32 %v7250_v23, %v7249_v44  ;;  %vm5082_vm15 = vcmp.ne.f32.partialorder %v12338_v15, %v12338_v15  ;;  %v2083_v12 = vpop.f32.mrb[191].mxu0 }
 0x389   : > { %9357 = vlog2.f32 %v5851_v18  ;;  %v7252_v16 = vsel %vm7139_vm3, %v12500_v28, 0.0  ;;  %v4699_v14 = vadd.f32 1.0, %v9344_v27  ;;  %v5854_v45 = vmul.f32 -0.5, %v12480_v60  ;;  %v12533_v18 = vld [vmem:[%s15334_s8] ss:$0 sm:$0xff]  ;;  %v12539_v30 = vpop.f32.mrb[192].mxu0 }
 0x38a   : > { %v9348_v44 = vpop.eup %9347  ;;  %v7672_v58 = vmul.f32 %v12518_v20, %v7251_v46  ;;  %v7253_v32 = vadd.f32 %v7252_v16, %v7025_v48  ;;  %vm12521_vm0 = vcmp.lt.f32.partialorder %v5848_v5, 0.0004427343  ;;  %v5278_v3 = vand.u32 2147483647, %v12478_v51 }
 0x38b   : > { %v12526_v55 = vpop.eup %9349  ;;  %v5844_v6 = vmul.f32 0.6931472, %v9348_v44  ;;  %v5847_v27 = vmul.f32 %v12453_v11, %v5846_v50  ;;  %v5857_v23 = vand.u32 2147483647, %v12480_v60  ;;  %v4700_v8 = vadd.f32 1.0, %v9346_v34 }
 0x38c   : > { %v7743_v5 = vadd.f32 %v12533_v18, %v7672_v58  ;;  %v7254_v48 = vrot.slane %v7253_v32, 4  ;;  %v5860_v31 = vadd.f32 1.0, %v12526_v55  ;;  %v8841_v46 = vmul.f32 -1.442695, %v3975_v57  ;;  %v9352_v0 = vpop.eup %9351  ;;  %v15610_v57 = vld [vmem:[#allocation80_spill] sm:$0xff] }
 0x38d   : > { %v5850_v16 = vsel %vm12521_vm0, %v5847_v27, %v5844_v6  ;;  %9359 = vrcp.f32 %v4699_v14  ;;  %v5855_v11 = vadd.f32 1.0, %v5854_v45  ;;  %v5374_v50 = vsub.f32 0.0, %v5278_v3 }
 0x38e   : > { %v7887_v12 = vrot.slane %v7743_v5, 3  ;;  %v7255_v34 = vadd.f32 %v7254_v48, %v7253_v32  ;;  %v6522_v44 = vadd.f32 %v5850_v16, %v4986_v1  ;;  %9361 = vlog2.f32 %v5860_v31 }
 0x38f   : > { %v9354_v49 = vpop.eup %9353  ;;  %v6905_v58 = vcombine.high %v12500_v28, %v12500_v28  ;;  %vm5083_vm2 = vcmp.ne.f32.partialorder %v12402_v42, %v12402_v42  ;;  %vm12545_vm4 = vcmp.lt.f32.partialorder %v5857_v23, 0.0004427343  ;;  %9363 = vrcp.f32 %v4700_v8 }
 0x390   : > { %v5497_v14 = vmul.f32 1.442695, %v5374_v50  ;;  %v12551_v45 = vsel %vm7871_vm14, %v7887_v12, %v12464_v21  ;;  %v7256_v1 = vrot.slane %v7255_v34, 2  ;;  %v6618_v32 = vsel %vm5082_vm15, %v12338_v15, %v6522_v44 }
 0x391   : > { %9365 = vpow2.f32 %v8841_v46  ;;  %v6714_v52 = vmul.f32 %v9352_v0, %v6618_v32  ;;  %v5863_v3 = vmul.f32 -0.5, %v12526_v55  ;;  %v5279_v6 = vand.u32 2147483647, %v12493_v54 }
 0x392   : > { %v12557_v28 = vpop.eup %9355  ;;  %9367 = vpow2.f32 %v5497_v14  ;;  %v7257_v23 = vadd.f32 %v7256_v1, %v7255_v34  ;;  %v5856_v21 = vmul.f32 %v12480_v60, %v5855_v11  ;;  %v5866_v8 = vand.u32 2147483647, %v12526_v55 }
 0x393   : > { %v9358_v27 = vpop.eup %9357  ;;  %v5869_v5 = vadd.f32 1.0, %v12557_v28  ;;  %vm7874_vm6 = vcmask 1046534   ;;  %v6906_v48 = vcombine.high %v6714_v52, %v6714_v52  ;;  %v7026_v15 = vcombine.low %v6905_v58, %v6714_v52 }
 0x394   : > { %v5853_v31 = vmul.f32 0.6931472, %v9358_v27  ;;  %v5375_v46 = vsub.f32 0.0, %v5279_v6  ;;  %v7258_v16 = vrot.slane %v7257_v23, 1  ;;  %v4701_v0 = vadd.f32 1.0, %v9354_v49 }
 0x395   : > { %9369 = vlog2.f32 %v5869_v5  ;;  %v8842_v50 = vmul.f32 -1.442695, %v12487_v22  ;;  %v7260_v12 = vsel %vm7139_vm3, %v6906_v48, 0.0  ;;  %v5864_v60 = vadd.f32 1.0, %v5863_v3  ;;  %v15609_v22 = vld [vmem:[#allocation79_spill] sm:$0xff]  ;;  %v15611_v3 = vld [vmem:[#allocation49_spill] sm:$0xff] }
 0x396   : > { %v5859_v34 = vsel %vm12545_vm4, %v5856_v21, %v5853_v31  ;;  %v5499_v11 = vmul.f32 1.442695, %v5375_v46  ;;  %v7259_v44 = vadd.f32 %v7258_v16, %v7257_v23  ;;  %v7261_v14 = vadd.f32 %v7260_v12, %v7026_v15 }
 0x397   : > { %v15606_v1 = vmax.f32 %v12402_v42, 0.0  ;;  %vm12570_vm8 = vcmp.lt.f32.partialorder %v5866_v8, 0.0004427343  ;;  %v9360_v49 = vpop.eup %9359  ;;  %v5872_v52 = vmul.f32 -0.5, %v12557_v28  ;;  %v3987_v6 = vadd.f32 %v15609_v22, %v12140_v63 }
 0x398   : > { %v12579_v27 = vadd.f32 %v15610_v57, %v12146_v47  ;;  %v12583_v23 = vadd.f32 %v12157_v61, %v15611_v3  ;;  %v9362_v21 = vpop.eup %9361  ;;  %v7673_v8 = vmul.f32 %v12518_v20, %v7259_v44  ;;  %v7262_v5 = vrot.slane %v7261_v14, 4 }
 0x399   : > { %v6523_v32 = vadd.f32 %v5859_v34, %v15606_v1  ;;  %9371 = vpow2.f32 %v5499_v11  ;;  %v9364_v15 = vpop.eup %9363  ;;  %v5862_v31 = vmul.f32 0.6931472, %v9362_v21  ;;  %v5865_v47 = vmul.f32 %v12526_v55, %v5864_v60 }
 0x39a   : > { %9373 = vrcp.f32 %v4701_v0  ;;  %v7744_v61 = vadd.f32 %v12533_v18, %v7673_v8  ;;  %v7263_v16 = vadd.f32 %v7262_v5, %v7261_v14  ;;  %v5875_v12 = vand.u32 2147483647, %v12557_v28 }
 0x39b   : > { %v6619_v48 = vsel %vm5083_vm2, %v12402_v42, %v6523_v32  ;;  %v9366_v46 = vpop.eup %9365  ;;  %9375 = vpow2.f32 %v8842_v50  ;;  %v5868_v42 = vsel %vm12570_vm8, %v5865_v47, %v5862_v31  ;;  %v5873_v11 = vadd.f32 1.0, %v5872_v52 }
 0x39c   : > { %v6715_v63 = vmul.f32 %v9360_v49, %v6619_v48  ;;  %v12593_v34 = vpop.eup %9367  ;;  %v5280_v1 = vand.u32 2147483647, %v12579_v27  ;;  %v7889_v32 = vrot.slane %v7744_v61, 2  ;;  %v7264_v49 = vrot.slane %v7263_v16, 2  ;;  %v15613_v61 = vld [vmem:[#allocation50_spill] sm:$0xff] }
 0x39d   : > { %v15612_v55 = vmax.f32 %v12413_v59, 0.0  ;;  %v5878_v60 = vadd.f32 1.0, %v12593_v34  ;;  %vm5084_vm9 = vcmp.ne.f32.partialorder %v12413_v59, %v12413_v59  ;;  %v4989_v50 = vmax.f32 %v12446_v39, 0.0 }
 0x39e   : > { %v6907_v44 = vcombine.high %v6715_v63, %v6715_v63  ;;  %v4702_v22 = vadd.f32 1.0, %v9366_v46  ;;  %v7890_v58 = vsel %vm7874_vm6, %v7889_v32, %v12551_v45  ;;  %v7265_v52 = vadd.f32 %v7264_v49, %v7263_v16 }
 0x39f   : > { %v6524_v0 = vadd.f32 %v5868_v42, %v15612_v55  ;;  %v9370_v57 = vpop.eup %9369  ;;  %9377 = vlog2.f32 %v5878_v60  ;;  %v5874_v48 = vmul.f32 %v12557_v28, %v5873_v11  ;;  %vm5876_vm10 = vcmp.lt.f32.partialorder %v5875_v12, 0.0004427343 }
 0x3a0   : > { %v7027_v14 = vcombine.low %v6715_v63, %v6907_v44  ;;  %v5871_v5 = vmul.f32 0.6931472, %v9370_v57  ;;  %v5881_v63 = vmul.f32 -0.5, %v12593_v34  ;;  %v7266_v31 = vrot.slane %v7265_v52, 1 }
 0x3a1   : > { %v6620_v21 = vsel %vm5084_vm9, %v12413_v59, %v6524_v0  ;;  %v5376_v47 = vsub.f32 0.0, %v5280_v1  ;;  %v12611_v46 = vadd.f32 %v12168_v40, %v15613_v61  ;;  %vm7877_vm11 = vcmask 1047559  }
 0x3a2   : > { %v6716_v8 = vmul.f32 %v9364_v15, %v6620_v21  ;;  %v5877_v16 = vsel %vm5876_vm10, %v5874_v48, %v5871_v5  ;;  %v8843_v44 = vmul.f32 -1.442695, %v3987_v6  ;;  %v7267_v15 = vadd.f32 %v7266_v31, %v7265_v52 }
 0x3a3   : > { %v12614_v59 = vpop.eup %9371  ;;  %v6525_v32 = vadd.f32 %v5877_v16, %v4989_v50  ;;  %v5501_v28 = vmul.f32 1.442695, %v5376_v47  ;;  %vm5085_vm12 = vcmp.ne.f32.partialorder %v12446_v39, %v12446_v39  ;;  %9379 = vrcp.f32 %v4702_v22 }
 0x3a4   : > { %v7268_v45 = vsel %vm7139_vm3, %v6716_v8, 0.0  ;;  %v9374_v11 = vpop.eup %9373  ;;  %v5882_v12 = vadd.f32 1.0, %v5881_v63  ;;  %v5887_v40 = vadd.f32 1.0, %v12614_v59  ;;  %v7674_v49 = vmul.f32 %v12518_v20, %v7267_v15  ;;  %v15614_v15 = vld [vmem:[#allocation51_spill] sm:$0xff] }
 0x3a5   : > { %v7269_v42 = vadd.f32 %v7268_v45, %v7027_v14  ;;  %v9376_v1 = vpop.eup %9375  ;;  %v6621_v6 = vsel %vm5085_vm12, %v12446_v39, %v6525_v32  ;;  %9381 = vpow2.f32 %v5501_v28  ;;  %v6908_v0 = vcombine.high %v6716_v8, %v6716_v8  ;;  %v15616_v32 = vld [vmem:[#allocation52_spill] sm:$0xff] }
 0x3a6   : > { %v6717_v60 = vmul.f32 %v9374_v11, %v6621_v6  ;;  %v4990_v14 = vmax.f32 %v12478_v51, 0.0  ;;  %9383 = vlog2.f32 %v5887_v40  ;;  %v7745_v50 = vadd.f32 %v12533_v18, %v7674_v49 }
 0x3a7   : > { %v7270_v55 = vrot.slane %v7269_v42, 4  ;;  %v5884_v22 = vand.u32 2147483647, %v12593_v34  ;;  %9385 = vpow2.f32 %v8843_v44  ;;  %v5883_v5 = vmul.f32 %v12593_v34, %v5882_v12 }
 0x3a8   : > { %v6909_v52 = vcombine.high %v6717_v60, %v6717_v60  ;;  %v7028_v21 = vcombine.low %v6908_v0, %v6717_v60  ;;  %v4703_v48 = vadd.f32 1.0, %v9376_v1  ;;  %v7891_v39 = vrot.slane %v7745_v50, 1  ;;  %v9987_v1 = vld [vmem:[%s10457_s19 + $0x8] sm:$0xff] }
 0x3a9   : > { %v7271_v57 = vadd.f32 %v7270_v55, %v7269_v42  ;;  %v9378_v63 = vpop.eup %9377  ;;  %v5890_v8 = vmul.f32 -0.5, %v12614_v59  ;;  %v5281_v47 = vand.u32 2147483647, %v12611_v46  ;;  %v15615_v44 = vcombine.low %v15611_v3, %v15614_v15 }
 0x3aa   : > { %v7276_v45 = vsel %vm7139_vm3, %v6909_v52, 0.0  ;;  %v5880_v16 = vmul.f32 0.6931472, %v9378_v63  ;;  %v15617_v34 = vcombine.low %v15613_v61, %v15616_v32  ;;  %v7892_v11 = vsel %vm7877_vm11, %v7891_v39, %v7890_v58 }
 0x3ab   : > { %v7272_v31 = vrot.slane %v7271_v57, 2  ;;  %v3999_v42 = vadd.f32 %v15615_v44, %v12183_v43  ;;  %v7277_v12 = vadd.f32 %v7276_v45, %v7028_v21  ;;  %vm5885_vm15 = vcmp.lt.f32.partialorder %v5884_v22, 0.0004427343 }
 0x3ac   : > { %v12636_v28 = vadd.f32 %v15617_v34, %v12189_v41  ;;  %v8844_v40 = vmul.f32 -1.442695, %v12583_v23  ;;  %v12641_v49 = vadd.f32 %v9987_v1, %v7892_v11  ;;  %v5886_v6 = vsel %vm5885_vm15, %v5883_v5, %v5880_v16 }
 0x3ad   : > { %v7273_v55 = vadd.f32 %v7272_v31, %v7271_v57  ;;  %9387 = vrcp.f32 %v4703_v48  ;;  %v7278_v3 = vrot.slane %v7277_v12, 4  ;;  %v6526_v43 = vadd.f32 %v5886_v6, %v4990_v14  ;;  %v9380_v61 = vpop.eup %9379 }
 0x3ae   : > { %v5891_v0 = vadd.f32 1.0, %v5890_v8  ;;  %v5893_v60 = vand.u32 2147483647, %v12614_v59  ;;  %v8018_v41 = vand.u32 2147483647, %v12641_v49  ;;  %vm5086_vm0 = vcmp.ne.f32.partialorder %v12478_v51, %v12478_v51 }
 0x3af   : > { %v4991_v58 = vmax.f32 %v12493_v54, 0.0  ;;  %v5377_v23 = vsub.f32 0.0, %v5281_v47  ;;  %v12648_v50 = vpop.eup %9381  ;;  %v7279_v22 = vadd.f32 %v7278_v3, %v7277_v12  ;;  %v6622_v57 = vsel %vm5086_vm0, %v12478_v51, %v6526_v43  ;;  %v15618_v3 = vld [vmem:[#allocation81_spill] sm:$0xff] }
 0x3b0   : > { %9389 = vpow2.f32 %v8844_v40  ;;  %v8845_v52 = vmul.f32 -1.442695, %v3999_v42  ;;  %v9384_v14 = vpop.eup %9383  ;;  %v8026_v21 = vsub.f32 0.0, %v8018_v41  ;;  %v7274_v5 = vrot.slane %v7273_v55, 1 }
 0x3b1   : > { %v6718_v48 = vmul.f32 %v9380_v61, %v6622_v57  ;;  %v5896_v63 = vadd.f32 1.0, %v12648_v50  ;;  %v9386_v39 = vpop.eup %9385  ;;  %v7280_v31 = vrot.slane %v7279_v22, 2  ;;  %v5889_v8 = vmul.f32 0.6931472, %v9384_v14 }
 0x3b2   : > { %v5892_v45 = vmul.f32 %v12614_v59, %v5891_v0  ;;  %vm5894_vm2 = vcmp.lt.f32.partialorder %v5893_v60, 0.0004427343  ;;  %v8035_v47 = vmul.f32 1.442695, %v8026_v21  ;;  %v5503_v15 = vmul.f32 1.442695, %v5377_v23 }
 0x3b3   : > { %v6910_v16 = vcombine.high %v6718_v48, %v6718_v48  ;;  %9391 = vlog2.f32 %v5896_v63  ;;  %v7281_v44 = vadd.f32 %v7280_v31, %v7279_v22  ;;  %vm5087_vm4 = vcmp.ne.f32.partialorder %v12493_v54, %v12493_v54  ;;  %v15619_v0 = vld [vmem:[#allocation82_spill] sm:$0xff]  ;;  %v15621_v23 = vld [vmem:[#allocation73_spill] sm:$0xff] }
 0x3b4   : > { %v5895_v51 = vsel %vm5894_vm2, %v5892_v45, %v5889_v8  ;;  %9393 = vpow2.f32 %v8845_v52  ;;  %v7275_v42 = vadd.f32 %v7274_v5, %v7273_v55  ;;  %v4704_v34 = vadd.f32 1.0, %v9386_v39 }
 0x3b5   : > { %9395 = vpow2.f32 %v8035_v47  ;;  %v6527_v32 = vadd.f32 %v5895_v51, %v4991_v58  ;;  %v7282_v11 = vrot.slane %v7281_v44, 1  ;;  %v7029_v12 = vcombine.low %v6718_v48, %v6910_v16  ;;  %v15620_v58 = vld [vmem:[#allocation53_spill] sm:$0xff]  ;;  %v15623_v47 = vld [vmem:[#allocation54_spill] sm:$0xff]  ;;  %v15624_v16 = vld [vmem:[#allocation92_spill] sm:$0xff] }
 0x3b6   : > { %v5899_v40 = vmul.f32 -0.5, %v12648_v50  ;;  %v5282_v59 = vand.u32 2147483647, %v12636_v28  ;;  %9397 = vpow2.f32 %v5503_v15  ;;  %v4005_v43 = vadd.f32 %v15618_v3, %v12202_v29 }
 0x3b7   : > { %v9388_v1 = vpop.eup %9387  ;;  %v6623_v6 = vsel %vm5087_vm4, %v12493_v54, %v6527_v32  ;;  %v12662_v60 = vadd.f32 %v15619_v0, %v12206_v7  ;;  %v7283_v55 = vadd.f32 %v7282_v11, %v7281_v44  ;;  %v4011_v22 = vadd.f32 %v15621_v23, %v15620_v58  ;;  %v15625_v32 = vld [vmem:[#allocation55_spill] sm:$0xff] }
 0x3b8   : > { %v12664_v61 = vmul.f32 %v9388_v1, %v6623_v6  ;;  %v5378_v41 = vsub.f32 0.0, %v5282_v59  ;;  %v15622_v57 = vrot.slane %v12362_v35, 2  ;;  %9399 = vrcp.f32 %v4704_v34 }
 0x3b9   : > { %v4992_v54 = vmax.f32 %v12579_v27, 0.0  ;;  %v5283_v29 = vand.u32 2147483647, %v12662_v60  ;;  %v7675_v7 = vmul.f32 %v12518_v20, %v7275_v42  ;;  %v7676_v21 = vmul.f32 %v12518_v20, %v7283_v55 }
 0x3ba   : > { %v12671_v52 = vadd.f32 %v15622_v57, %v12362_v35  ;;  %v9390_v14 = vpop.eup %9389  ;;  %v7284_v5 = vsel %vm7139_vm3, %v12664_v61, 0.0  ;;  %v8846_v48 = vmul.f32 -1.442695, %v4005_v43  ;;  %v5900_v39 = vadd.f32 1.0, %v5899_v40 }
 0x3bb   : > { %v7285_v63 = vadd.f32 %v7284_v5, %v7029_v12  ;;  %v5505_v31 = vmul.f32 1.442695, %v5378_v41  ;;  %v5379_v8 = vsub.f32 0.0, %v5283_v29  ;;  %v7747_v35 = vadd.f32 %v12533_v18, %v7676_v21 }
 0x3bc   : > { %vm5088_vm8 = vcmp.ne.f32.partialorder %v12579_v27, %v12579_v27  ;;  %v5902_v45 = vand.u32 2147483647, %v12648_v50  ;;  %v12685_v15 = vadd.f32 %v15624_v16, %v15623_v47  ;;  %v15626_v34 = vcombine.low %v15620_v58, %v15625_v32  ;;  %v15628_v32 = vld [vmem:[#allocation56_spill] sm:$0xff] }
 0x3bd   : > { %v9392_v44 = vpop.eup %9391  ;;  %v7286_v51 = vrot.slane %v7285_v63, 4  ;;  %9401 = vpow2.f32 %v5505_v31  ;;  %v5507_v42 = vmul.f32 1.442695, %v5379_v8  ;;  %v7746_v40 = vadd.f32 %v12533_v18, %v7675_v7 }
 0x3be   : > { %v4017_v11 = vadd.f32 %v15626_v34, %v12241_v53  ;;  %v9394_v12 = vpop.eup %9393  ;;  %v7893_v59 = vrot.slane %v7747_v35, 7  ;;  %v5898_v1 = vmul.f32 0.6931472, %v9392_v44  ;;  %9403 = vpow2.f32 %v8846_v48 }
 0x3bf   : > { %v9396_v6 = vpop.eup %9395  ;;  %v7287_v3 = vadd.f32 %v7286_v51, %v7285_v63  ;;  %v5901_v43 = vmul.f32 %v12648_v50, %v5900_v39  ;;  %9405 = vpow2.f32 %v5507_v42  ;;  %v5284_v0 = vand.u32 2147483647, %v12685_v15 }
 0x3c0   : > { %v8058_v55 = vadd.f32 1.0, %v9396_v6  ;;  %v12695_v41 = vsel %vm7859_vm13, %v7893_v59, %v7746_v40  ;;  %vm5903_vm9 = vcmp.lt.f32.partialorder %v5902_v45, 0.0004427343  ;;  %v8847_v58 = vmul.f32 -1.442695, %v4011_v22  ;;  %v12697_v53 = vpop.eup %9397 }
 0x3c1   : > { %v7288_v23 = vrot.slane %v7287_v3, 2  ;;  %v5904_v57 = vsel %vm5903_vm9, %v5901_v43, %v5898_v1  ;;  %v4993_v29 = vmax.f32 %v12611_v46, 0.0  ;;  %v5380_v7 = vsub.f32 0.0, %v5284_v0  ;;  %v12718_v43 = vpop.f32.mrb[94].mxu1  ;;  %v12720_v0 = vpop.f32.mrb[193].mxu0 }
 0x3c2   : > { %v7994_v21 = vmax.f32 %v12641_v49, 0.0  ;;  %9407 = vlog2.f32 %v8058_v55  ;;  %v6528_v50 = vadd.f32 %v5904_v57, %v4992_v54  ;;  %v4994_v5 = vmax.f32 %v12636_v28, 0.0  ;;  %v9400_v48 = vpop.eup %9399 }
 0x3c3   : > { %v8061_v63 = vmul.f32 -0.5, %v9396_v6  ;;  %v7289_v39 = vadd.f32 %v7288_v23, %v7287_v3  ;;  %v4705_v31 = vadd.f32 1.0, %v9390_v14  ;;  %v5905_v8 = vadd.f32 1.0, %v12697_v53  ;;  %v15627_v14 = vld [vmem:[#allocation74_spill] sm:$0xff] }
 0x3c4   : > { %v6911_v22 = vcombine.high %v12664_v61, %v12664_v61  ;;  %v6624_v35 = vsel %vm5088_vm8, %v12579_v27, %v6528_v50  ;;  %9409 = vpow2.f32 %v8847_v58  ;;  %v5509_v45 = vmul.f32 1.442695, %v5380_v7 }
 0x3c5   : > { %v7290_v16 = vrot.slane %v7289_v39, 1  ;;  %v6720_v54 = vmul.f32 %v9400_v48, %v6624_v35  ;;  %9411 = vlog2.f32 %v5905_v8  ;;  %v4706_v44 = vadd.f32 1.0, %v9394_v12 }
 0x3c6   : > { %v8064_v51 = vand.u32 2147483647, %v9396_v6  ;;  %v5908_v42 = vmul.f32 -0.5, %v12697_v53  ;;  %9413 = vpow2.f32 %v5509_v45  ;;  %v15629_v34 = vcombine.low %v15623_v47, %v15628_v32 }
 0x3c7   : > { %v12716_v40 = vpop.eup %9401  ;;  %v8062_v59 = vadd.f32 1.0, %v8061_v63  ;;  %v7291_v27 = vadd.f32 %v7290_v16, %v7289_v39  ;;  %v6912_v1 = vcombine.high %v6720_v54, %v6720_v54  ;;  %v7030_v3 = vcombine.low %v6911_v22, %v6720_v54 }
 0x3c8   : > { %v12714_v61 = vadd.f32 %v15629_v34, %v15627_v14  ;;  %v9404_v12 = vpop.eup %9403  ;;  %9415 = vrcp.f32 %v4705_v31  ;;  %v5911_v55 = vand.u32 2147483647, %v12697_v53  ;;  %v5914_v58 = vadd.f32 1.0, %v12716_v40 }
 0x3c9   : > { %v8848_v23 = vmul.f32 -1.442695, %v4017_v11  ;;  %v12724_v47 = vpop.eup %9405  ;;  %vm8002_vm10 = vcmp.ne.f32.partialorder %v12641_v49, %v12641_v49  ;;  %v7677_v57 = vmul.f32 %v12518_v20, %v7291_v27  ;;  %v7292_v7 = vsel %vm7139_vm3, %v6912_v1, 0.0  ;;  %v15634_v27 = vld [vmem:[#allocation71_spill] sm:$0xff]  ;;  %v15635_v1 = vld [vmem:[#allocation84_spill] sm:$0xff] }
 0x3ca   : > { %9417 = vrcp.f32 %v4706_v44  ;;  %v4995_v50 = vmax.f32 %v12662_v60, 0.0  ;;  %vm12731_vm12 = vcmp.lt.f32.partialorder %v8064_v51, 0.0004427343  ;;  %v7293_v63 = vadd.f32 %v7292_v7, %v7030_v3 }
 0x3cb   : > { %v5909_v39 = vadd.f32 1.0, %v5908_v42  ;;  %9419 = vlog2.f32 %v5914_v58  ;;  %v8063_v11 = vmul.f32 %v9396_v6, %v8062_v59  ;;  %v7748_v31 = vadd.f32 %v12533_v18, %v7677_v57  ;;  %v12745_v42 = vpop.f32.mrb[95].mxu1 }
 0x3cc   : > { %v4707_v8 = vadd.f32 1.0, %v9404_v12  ;;  %v5923_v22 = vadd.f32 1.0, %v12724_v47  ;;  %v9408_v35 = vpop.eup %9407  ;;  %v7294_v45 = vrot.slane %v7293_v63, 4  ;;  %vm5089_vm15 = vcmp.ne.f32.partialorder %v12611_v46, %v12611_v46 }
 0x3cd   : > { %vm12739_vm0 = vcmp.lt.f32.partialorder %v5911_v55, 0.0004427343  ;;  %v5917_v54 = vmul.f32 -0.5, %v12716_v40  ;;  %9421 = vpow2.f32 %v8848_v23  ;;  %v8060_v44 = vmul.f32 0.6931472, %v9408_v35 }
 0x3ce   : > { %v7895_v51 = vrot.slane %v7748_v31, 6  ;;  %9423 = vlog2.f32 %v5923_v22  ;;  %v5926_v6 = vmul.f32 -0.5, %v12724_v47  ;;  %v9410_v14 = vpop.eup %9409  ;;  %v7295_v32 = vadd.f32 %v7294_v45, %v7293_v63 }
 0x3cf   : > { %v5910_v34 = vmul.f32 %v12697_v53, %v5909_v39  ;;  %v5285_v59 = vand.u32 2147483647, %v12714_v61  ;;  %v4023_v3 = vadd.f32 %v15635_v1, %v15634_v27  ;;  %v9412_v12 = vpop.eup %9411  ;;  %v8066_v55 = vsel %vm12731_vm12, %v8063_v11, %v8060_v44 }
 0x3d0   : > { %v12755_v58 = vsel %vm7862_vm1, %v7895_v51, %v12695_v41  ;;  %v5920_v23 = vand.u32 2147483647, %v12716_v40  ;;  %9425 = vrcp.f32 %v4707_v8  ;;  %v12758_v57 = vpop.eup %9413  ;;  %v8122_v53 = vadd.f32 %v8066_v55, %v7994_v21 }
 0x3d1   : > { %v7296_v7 = vrot.slane %v7295_v32, 2  ;;  %v5907_v63 = vmul.f32 0.6931472, %v9412_v12  ;;  %v5381_v39 = vsub.f32 0.0, %v5285_v59  ;;  %vm5090_vm2 = vcmp.ne.f32.partialorder %v12636_v28, %v12636_v28  ;;  %v15640_v12 = vld [vmem:[#allocation57_spill] sm:$0xff] }
 0x3d2   : > { %v5918_v48 = vadd.f32 1.0, %v5917_v54  ;;  %v5927_v11 = vadd.f32 1.0, %v5926_v6  ;;  %v4708_v31 = vadd.f32 1.0, %v9410_v14  ;;  %v5932_v41 = vadd.f32 1.0, %v12758_v57  ;;  %v9416_v22 = vpop.eup %9415 }
 0x3d3   : > { %v8130_v8 = vsel %vm8002_vm10, %v12641_v49, %v8122_v53  ;;  %v7297_v35 = vadd.f32 %v7296_v7, %v7295_v32  ;;  %v5913_v21 = vsel %vm12739_vm0, %v5910_v34, %v5907_v63  ;;  %v5511_v45 = vmul.f32 1.442695, %v5381_v39  ;;  %v15638_v32 = vld [vmem:[#allocation93_spill] sm:$0xff] }
 0x3d4   : > { %v9418_v44 = vpop.eup %9417  ;;  %8138 = vst [vmem:[%s12773_s26 + $0x8] sm:$0xff] %v8130_v8  ;;  %v6529_v54 = vadd.f32 %v5913_v21, %v4993_v29  ;;  %vm12778_vm4 = vcmp.lt.f32.partialorder %v5920_v23, 0.0004427343  ;;  %9427 = vlog2.f32 %v5932_v41  ;;  %v5935_v49 = vmul.f32 -0.5, %v12758_v57  ;;  %v15639_v34 = vld [vmem:[#allocation85_spill] sm:$0xff] }
 0x3d5   : > { %v9420_v6 = vpop.eup %9419  ;;  %v7298_v16 = vrot.slane %v7297_v35, 1  ;;  %vm5091_vm8 = vcmp.ne.f32.partialorder %v12662_v60, %v12662_v60  ;;  %v5929_v14 = vand.u32 2147483647, %v12724_v47  ;;  %9429 = vpow2.f32 %v5511_v45 }
 0x3d6   : > { %v12788_v59 = vadd.f32 %v15639_v34, %v15638_v32  ;;  %v6625_v29 = vsel %vm5089_vm15, %v12611_v46, %v6529_v54  ;;  %v5916_v27 = vmul.f32 0.6931472, %v9420_v6  ;;  %v5919_v1 = vmul.f32 %v12716_v40, %v5918_v48 }
 0x3d7   : > { %v4029_v55 = vadd.f32 %v12284_v62, %v15640_v12  ;;  %v9422_v23 = vpop.eup %9421  ;;  %v7299_v53 = vadd.f32 %v7298_v16, %v7297_v35  ;;  %v6721_v7 = vmul.f32 %v9416_v22, %v6625_v29  ;;  %v5928_v63 = vmul.f32 %v12724_v47, %v5927_v11  ;;  %v15641_v47 = vld [vmem:[#allocation58_spill] sm:$0xff] }
 0x3d8   : > { %9431 = vrcp.f32 %v4708_v31  ;;  %v9424_v39 = vpop.eup %9423  ;;  %v5922_v41 = vsel %vm12778_vm4, %v5919_v1, %v5916_v27  ;;  %v5936_v8 = vadd.f32 1.0, %v5935_v49  ;;  %v8849_v21 = vmul.f32 -1.442695, %v4023_v3  ;;  %v15642_v31 = vld [vmem:[#allocation59_spill] sm:$0xff] }
 0x3d9   : > { %v5286_v46 = vand.u32 2147483647, %v12788_v59  ;;  %v7678_v45 = vmul.f32 %v12518_v20, %v7299_v53  ;;  %v6913_v40 = vcombine.high %v6721_v7, %v6721_v7  ;;  %v6530_v62 = vadd.f32 %v5922_v41, %v4994_v5 }
 0x3da   : > { %v5925_v48 = vmul.f32 0.6931472, %v9424_v39  ;;  %v9426_v35 = vpop.eup %9425  ;;  %vm5930_vm9 = vcmp.lt.f32.partialorder %v5929_v14, 0.0004427343  ;;  %v12806_v11 = vadd.f32 %v12291_v2, %v15641_v47  ;;  %v15643_v3 = vcombine.low %v15640_v12, %v15642_v31 }
 0x3db   : > { %v5382_v22 = vsub.f32 0.0, %v5286_v46  ;;  %v7749_v51 = vadd.f32 %v12533_v18, %v7678_v45  ;;  %v7031_v49 = vcombine.low %v6721_v7, %v6913_v40  ;;  %v6626_v5 = vsel %vm5090_vm2, %v12636_v28, %v6530_v62 }
 0x3dc   : > { %v12812_v54 = vadd.f32 %v15643_v3, %v12323_v33  ;;  %v5931_v6 = vsel %vm5930_vm9, %v5928_v63, %v5925_v48  ;;  %v6722_v16 = vmul.f32 %v9418_v44, %v6626_v5  ;;  %v5938_v14 = vand.u32 2147483647, %v12758_v57 }
 0x3dd   : > { %v6531_v2 = vadd.f32 %v5931_v6, %v4995_v50  ;;  %v5513_v32 = vmul.f32 1.442695, %v5382_v22  ;;  %v7897_v34 = vrot.slane %v7749_v51, 5  ;;  %v5937_v33 = vmul.f32 %v12758_v57, %v5936_v8 }
 0x3de   : > { %9433 = vpow2.f32 %v8849_v21  ;;  %v5287_v29 = vand.u32 2147483647, %v12806_v11  ;;  %v9428_v27 = vpop.eup %9427  ;;  %v6914_v1 = vcombine.high %v6722_v16, %v6722_v16  ;;  %v7300_v12 = vsel %vm7139_vm3, %v6722_v16, 0.0 }
 0x3df   : > { %v6627_v28 = vsel %vm5091_vm8, %v12662_v60, %v6531_v2  ;;  %9435 = vpow2.f32 %v5513_v32  ;;  %v9430_v50 = vpop.eup %9429  ;;  %v12831_v44 = vsel %vm7865_vm5, %v7897_v34, %v12755_v58  ;;  %v7301_v53 = vadd.f32 %v7300_v12, %v7031_v49 }
 0x3e0   : > { %v6723_v57 = vmul.f32 %v9426_v35, %v6627_v28  ;;  %v5934_v7 = vmul.f32 0.6931472, %v9428_v27  ;;  %v4996_v63 = vmax.f32 %v12685_v15, 0.0  ;;  %vm5939_vm10 = vcmp.lt.f32.partialorder %v5938_v14, 0.0004427343  ;;  %v15644_v14 = vld [vmem:[#allocation60_spill] sm:$0xff] }
 0x3e1   : > { %v5941_v39 = vadd.f32 1.0, %v9430_v50  ;;  %v5383_v41 = vsub.f32 0.0, %v5287_v29  ;;  %v7302_v21 = vrot.slane %v7301_v53, 4  ;;  %v12836_v60 = vadd.f32 %v12533_v18, %v12373_v9 }
 0x3e2   : > { %v9432_v8 = vpop.eup %9431  ;;  %v6915_v46 = vcombine.high %v6723_v57, %v6723_v57  ;;  %v7032_v45 = vcombine.low %v6914_v1, %v6723_v57  ;;  %v5940_v40 = vsel %vm5939_vm10, %v5937_v33, %v5934_v7  ;;  %vm5092_vm12 = vcmp.ne.f32.partialorder %v12685_v15, %v12685_v15 }
 0x3e3   : > { %v6532_v58 = vadd.f32 %v5940_v40, %v4996_v63  ;;  %9437 = vlog2.f32 %v5941_v39  ;;  %v7303_v62 = vadd.f32 %v7302_v21, %v7301_v53  ;;  %v8850_v35 = vmul.f32 -1.442695, %v4029_v55  ;;  %v12864_v53 = vpop.f32.mrb[96].mxu1 }
 0x3e4   : > { %v7308_v48 = vsel %vm7139_vm3, %v6915_v46, 0.0  ;;  %v5515_v22 = vmul.f32 1.442695, %v5383_v41  ;;  %v4709_v51 = vadd.f32 1.0, %v9422_v23  ;;  %v5944_v49 = vmul.f32 -0.5, %v9430_v50 }
 0x3e5   : > { %v7309_v31 = vadd.f32 %v7308_v48, %v7032_v45  ;;  %v6628_v3 = vsel %vm5092_vm12, %v12685_v15, %v6532_v58  ;;  %v12844_v5 = vadd.f32 %v12533_v18, %v12377_v13  ;;  %v7202_v9 = vrot.slane %v12671_v52, 1  ;;  %v15646_v15 = vld [vmem:[#allocation86_spill] sm:$0xff] }
 0x3e6   : > { %v7304_v6 = vrot.slane %v7303_v62, 2  ;;  %v6724_v16 = vmul.f32 %v9432_v8, %v6628_v3  ;;  %9439 = vpow2.f32 %v5515_v22  ;;  %v15645_v55 = vcombine.low %v15641_v47, %v15644_v14  ;;  %v15647_v13 = vld [vmem:[#allocation62_spill] sm:$0xff] }
 0x3e7   : > { %v7310_v2 = vrot.slane %v7309_v31, 4  ;;  %v4041_v23 = vadd.f32 %v15646_v15, %v12354_v56  ;;  %v5947_v29 = vand.u32 2147483647, %v9430_v50  ;;  %9441 = vpow2.f32 %v8850_v35 }
 0x3e8   : > { %v12851_v32 = vadd.f32 %v15645_v55, %v12326_v4  ;;  %v9434_v34 = vpop.eup %9433  ;;  %v7305_v33 = vadd.f32 %v7304_v6, %v7303_v62  ;;  %v12857_v27 = vadd.f32 %v15647_v13, %v12357_v25  ;;  %9443 = vrcp.f32 %v4709_v51  ;;  %v12862_v4 = vpop.f32.mrb[194].mxu0 }
 0x3e9   : > { %v12859_v1 = vpop.eup %9435  ;;  %v7311_v12 = vadd.f32 %v7310_v2, %v7309_v31  ;;  %v5945_v28 = vadd.f32 1.0, %v5944_v49  ;;  %v12867_v56 = vadd.f32 %v7202_v9, %v12671_v52  ;;  %v8851_v25 = vmul.f32 -1.442695, %v12812_v54  ;;  %v12871_v63 = vpop.f32.mrb[195].mxu0  ;;  %v15650_v49 = vld [vmem:[#allocation65_spill] sm:$0xff]  ;;  %v15651_v2 = vld [vmem:[#allocation66_spill] sm:$0xff] }
 0x3ea   : > { %v5288_v47 = vand.u32 2147483647, %v12851_v32  ;;  %v7306_v57 = vrot.slane %v7305_v33, 1  ;;  %v5950_v7 = vadd.f32 1.0, %v12859_v1  ;;  %v4997_v41 = vmax.f32 %v12714_v61, 0.0  ;;  %v12882_v31 = vpop.f32.mrb[97].mxu1 }
 0x3eb   : > { %v7312_v39 = vrot.slane %v7311_v12, 2  ;;  %vm5093_vm15 = vcmp.ne.f32.partialorder %v12714_v61, %v12714_v61  ;;  %vm12876_vm0 = vcmp.lt.f32.partialorder %v5947_v29, 0.0004427343  ;;  %v4710_v52 = vadd.f32 1.0, %v9434_v34 }
 0x3ec   : > { %v5384_v8 = vsub.f32 0.0, %v5288_v47  ;;  %v7307_v21 = vadd.f32 %v7306_v57, %v7305_v33  ;;  %9445 = vlog2.f32 %v5950_v7  ;;  %v6916_v58 = vcombine.high %v6724_v16, %v6724_v16 }
 0x3ed   : > { %v9438_v45 = vpop.eup %9437  ;;  %v7313_v40 = vadd.f32 %v7312_v39, %v7311_v12  ;;  %v5946_v54 = vmul.f32 %v9430_v50, %v5945_v28  ;;  %v5953_v22 = vmul.f32 -0.5, %v12859_v1  ;;  %9447 = vpow2.f32 %v8851_v25 }
 0x3ee   : > { %v5517_v62 = vmul.f32 1.442695, %v5384_v8  ;;  %v7679_v48 = vmul.f32 %v12518_v20, %v7307_v21  ;;  %v5943_v35 = vmul.f32 0.6931472, %v9438_v45  ;;  %v5289_v51 = vand.u32 2147483647, %v12857_v27 }
 0x3ef   : > { %v7314_v3 = vrot.slane %v7313_v40, 1  ;;  %v4047_v9 = vadd.f32 %v12387_v10, %v15650_v49  ;;  %v12892_v14 = vadd.f32 %v12397_v37, %v15651_v2  ;;  %v7033_v34 = vcombine.low %v6724_v16, %v6916_v58 }
 0x3f0   : > { %9449 = vpow2.f32 %v5517_v62  ;;  %v7750_v6 = vadd.f32 %v12533_v18, %v7679_v48  ;;  %v5949_v50 = vsel %vm12876_vm0, %v5946_v54, %v5943_v35  ;;  %v12894_v55 = vpop.eup %9439  ;;  %v5385_v29 = vsub.f32 0.0, %v5289_v51  ;;  %v15654_v48 = vld [vmem:[#allocation67_spill] sm:$0xff] }
 0x3f1   : > { %9451 = vrcp.f32 %v4710_v52  ;;  %v7315_v15 = vadd.f32 %v7314_v3, %v7313_v40  ;;  %v6533_v33 = vadd.f32 %v5949_v50, %v4997_v41  ;;  %v9442_v13 = vpop.eup %9441  ;;  %v5956_v10 = vand.u32 2147483647, %v12859_v1  ;;  %v15656_v3 = vld [vmem:[#allocation68_spill] sm:$0xff] }
 0x3f2   : > { %v7899_v12 = vrot.slane %v7750_v6, 4  ;;  %v5959_v28 = vadd.f32 1.0, %v12894_v55  ;;  %v8852_v47 = vmul.f32 -1.442695, %v4041_v23  ;;  %v9444_v57 = vpop.eup %9443  ;;  %v5954_v25 = vadd.f32 1.0, %v5953_v22 }
 0x3f3   : > { %v7680_v7 = vmul.f32 %v12518_v20, %v7315_v15  ;;  %v6629_v37 = vsel %vm5093_vm15, %v12714_v61, %v6533_v33  ;;  %v5519_v39 = vmul.f32 1.442695, %v5385_v29  ;;  %v4998_v8 = vmax.f32 %v12788_v59, 0.0 }
 0x3f4   : > { %v7900_v16 = vsel %vm7868_vm7, %v7899_v12, %v12831_v44  ;;  %v6725_v41 = vmul.f32 %v9444_v57, %v6629_v37  ;;  %9453 = vlog2.f32 %v5959_v28  ;;  %vm5094_vm2 = vcmp.ne.f32.partialorder %v12788_v59, %v12788_v59  ;;  %v12940_v28 = vpop.f32.mrb[196].mxu0 }
 0x3f5   : > { %v7751_v21 = vadd.f32 %v12533_v18, %v7680_v7  ;;  %v4711_v20 = vadd.f32 1.0, %v9442_v13  ;;  %9455 = vpow2.f32 %v5519_v39  ;;  %vm12910_vm4 = vcmp.lt.f32.partialorder %v5956_v10, 0.0004427343  ;;  %v12949_v37 = vpop.f32.mrb[197].mxu0 }
 0x3f6   : > { %v9446_v23 = vpop.eup %9445  ;;  %v7316_v46 = vsel %vm7139_vm3, %v6725_v41, 0.0  ;;  %v5962_v44 = vmul.f32 -0.5, %v12894_v55  ;;  %9457 = vpow2.f32 %v8852_v47  ;;  %v5955_v18 = vmul.f32 %v12859_v1, %v5954_v25  ;;  %v12942_v47 = vpop.f32.mrb[98].mxu1 }
 0x3f7   : > { %v7901_v52 = vrot.slane %v7751_v21, 3  ;;  %v7317_v45 = vadd.f32 %v7316_v46, %v7033_v34  ;;  %v5952_v40 = vmul.f32 0.6931472, %v9446_v23  ;;  %v9448_v58 = vpop.eup %9447  ;;  %v8853_v54 = vmul.f32 -1.442695, %v4047_v9  ;;  %v15658_v34 = vld [vmem:[#allocation63_spill] sm:$0xff] }
 0x3f8   : > { %v5290_v62 = vand.u32 2147483647, %v12892_v14  ;;  %v15655_v35 = vcombine.low %v15650_v49, %v15654_v48  ;;  %v15657_v51 = vcombine.low %v15651_v2, %v15656_v3  ;;  %v12936_v33 = vadd.f32 %v15658_v34, %v12460_v17 }
 0x3f9   : > { %v12930_v15 = vsel %vm7871_vm14, %v7901_v52, %v7900_v16  ;;  %v7318_v1 = vrot.slane %v7317_v45, 4  ;;  %v5958_v9 = vsel %vm12910_vm4, %v5955_v18, %v5952_v40  ;;  %9459 = vrcp.f32 %v4711_v20 }
 0x3fa   : > { %v4053_v22 = vadd.f32 %v15655_v35, %v12434_v26  ;;  %v12925_v6 = vadd.f32 %v15657_v51, %v12439_v38  ;;  %v12927_v50 = vpop.eup %9449  ;;  %v6534_v49 = vadd.f32 %v5958_v9, %v4998_v8  ;;  %v5963_v29 = vadd.f32 1.0, %v5962_v44 }
 0x3fb   : > { %v9452_v26 = vpop.eup %9451  ;;  %v5968_v38 = vadd.f32 1.0, %v12927_v50  ;;  %v7319_v2 = vadd.f32 %v7318_v1, %v7317_v45  ;;  %v4999_v13 = vmax.f32 %v12806_v11, 0.0  ;;  %v4712_v12 = vadd.f32 1.0, %v9448_v58 }
 0x3fc   : > { %v5386_v10 = vsub.f32 0.0, %v5290_v62  ;;  %v6917_v57 = vcombine.high %v6725_v41, %v6725_v41  ;;  %v6630_v17 = vsel %vm5094_vm2, %v12788_v59, %v6534_v49  ;;  %v5965_v7 = vand.u32 2147483647, %v12894_v55 }
 0x3fd   : > { %9461 = vlog2.f32 %v5968_v38  ;;  %v7320_v25 = vrot.slane %v7319_v2, 2  ;;  %v6726_v39 = vmul.f32 %v9452_v26, %v6630_v17  ;;  %vm5095_vm8 = vcmp.ne.f32.partialorder %v12806_v11, %v12806_v11  ;;  %v12972_v38 = vld [vmem:[%s15333_s7] ss:$0 sm:$0xff] }
 0x3fe   : > { %9463 = vpow2.f32 %v8853_v54  ;;  %v5521_v16 = vmul.f32 1.442695, %v5386_v10  ;;  %v9454_v8 = vpop.eup %9453  ;;  %v5964_v41 = vmul.f32 %v12894_v55, %v5963_v29  ;;  %v5971_v21 = vmul.f32 -0.5, %v12927_v50  ;;  %v15659_v10 = vld [vmem:[#allocation88_spill] sm:$0xff] }
 0x3ff   : > { %v5291_v20 = vand.u32 2147483647, %v12925_v6  ;;  %v12956_v59 = vpop.eup %9455  ;;  %v7321_v23 = vadd.f32 %v7320_v25, %v7319_v2  ;;  %v6918_v46 = vcombine.high %v6726_v39, %v6726_v39  ;;  %v7034_v61 = vcombine.low %v6917_v57, %v6726_v39  ;;  %v15660_v25 = vld [vmem:[#allocation87_spill] sm:$0xff]  ;;  %v15661_v39 = vld [vmem:[#allocation89_spill] sm:$0xff] }
 0x400   : > { %v5961_v44 = vmul.f32 0.6931472, %v9454_v8  ;;  %v9458_v52 = vpop.eup %9457  ;;  %vm5966_vm9 = vcmp.lt.f32.partialorder %v5965_v7, 0.0004427343  ;;  %v5000_v45 = vmax.f32 %v12851_v32, 0.0  ;;  %v5977_v40 = vadd.f32 1.0, %v12956_v59 }
 0x401   : > { %9465 = vpow2.f32 %v5521_v16  ;;  %v7322_v18 = vrot.slane %v7321_v23, 1  ;;  %v7324_v55 = vsel %vm7139_vm3, %v6918_v46, 0.0  ;;  %v5972_v48 = vadd.f32 1.0, %v5971_v21 }
 0x402   : > { %v5967_v58 = vsel %vm5966_vm9, %v5964_v41, %v5961_v44  ;;  %9467 = vrcp.f32 %v4712_v12  ;;  %v7325_v54 = vadd.f32 %v7324_v55, %v7034_v61  ;;  %vm5096_vm10 = vcmp.ne.f32.partialorder %v12851_v32, %v12851_v32  ;;  %v12989_v41 = vld [vmem:[%s15334_s8] ss:$0 sm:$0xff]  ;;  %v12996_v55 = vpop.f32.mrb[99].mxu1 }
 0x403   : > { %v6535_v62 = vadd.f32 %v5967_v58, %v4999_v13  ;;  %9469 = vlog2.f32 %v5977_v40  ;;  %v7323_v35 = vadd.f32 %v7322_v18, %v7321_v23  ;;  %v4713_v3 = vadd.f32 1.0, %v9458_v52  ;;  %v9460_v9 = vpop.eup %9459  ;;  %v12998_v58 = vpop.f32.mrb[198].mxu0 }
 0x404   : > { %v5980_v51 = vmul.f32 -0.5, %v12956_v59  ;;  %v5387_v1 = vsub.f32 0.0, %v5291_v20  ;;  %v7326_v34 = vrot.slane %v7325_v54, 4  ;;  %v5974_v49 = vand.u32 2147483647, %v12927_v50 }
 0x405   : > { %v6631_v26 = vsel %vm5095_vm8, %v12806_v11, %v6535_v62  ;;  %v8854_v29 = vmul.f32 -1.442695, %v4053_v22  ;;  %v7681_v2 = vmul.f32 %v12972_v38, %v7323_v35  ;;  %v12977_v57 = vadd.f32 %v15659_v10, %v12467_v36 }
 0x406   : > { %v6727_v13 = vmul.f32 %v9460_v9, %v6631_v26  ;;  %v5523_v12 = vmul.f32 1.442695, %v5387_v1  ;;  %v7327_v7 = vadd.f32 %v7326_v34, %v7325_v54  ;;  %v5973_v11 = vmul.f32 %v12927_v50, %v5972_v48 }
 0x407   : > { %v9462_v17 = vpop.eup %9461  ;;  %v4065_v22 = vadd.f32 %v12507_v24, %v15660_v25  ;;  %v12984_v16 = vadd.f32 %v12513_v19, %v15661_v39  ;;  %v7752_v36 = vadd.f32 %v12989_v41, %v7681_v2  ;;  %v5981_v20 = vadd.f32 1.0, %v5980_v51  ;;  %v13005_v51 = vpop.f32.mrb[100].mxu1 }
 0x408   : > { %v9464_v8 = vpop.eup %9463  ;;  %v5970_v21 = vmul.f32 0.6931472, %v9462_v17  ;;  %9471 = vpow2.f32 %v5523_v12  ;;  %v7328_v23 = vrot.slane %v7327_v7, 2  ;;  %v6919_v50 = vcombine.high %v6727_v13, %v6727_v13 }
 0x409   : > { %vm5975_vm12 = vcmp.lt.f32.partialorder %v5974_v49, 0.0004427343  ;;  %9473 = vrcp.f32 %v4713_v3  ;;  %v7903_v24 = vrot.slane %v7752_v36, 2  ;;  %v5292_v19 = vand.u32 2147483647, %v12977_v57 }
 0x40a   : > { %v5976_v46 = vsel %vm5975_vm12, %v5973_v11, %v5970_v21  ;;  %9475 = vpow2.f32 %v8854_v29  ;;  %v7329_v44 = vadd.f32 %v7328_v23, %v7327_v7  ;;  %v5983_v40 = vand.u32 2147483647, %v12956_v59  ;;  %v15662_v21 = vld [vmem:[#allocation83_spill] sm:$0xff] }
 0x40b   : > { %v12993_v61 = vpop.eup %9465  ;;  %v6536_v52 = vadd.f32 %v5976_v46, %v5000_v45  ;;  %v4714_v18 = vadd.f32 1.0, %v9464_v8  ;;  %v7904_v62 = vsel %vm7874_vm6, %v7903_v24, %v12930_v15  ;;  %v5001_v48 = vmax.f32 %v12857_v27, 0.0  ;;  %v13007_v45 = vpop.f32.mrb[199].mxu0 }
 0x40c   : > { %v9468_v54 = vpop.eup %9467  ;;  %v5982_v35 = vmul.f32 %v12956_v59, %v5981_v20  ;;  %v5986_v3 = vadd.f32 1.0, %v12993_v61  ;;  %v7330_v9 = vrot.slane %v7329_v44, 1  ;;  %v7035_v34 = vcombine.low %v6727_v13, %v6919_v50 }
 0x40d   : > { %v9470_v1 = vpop.eup %9469  ;;  %v6632_v26 = vsel %vm5096_vm10, %v12851_v32, %v6536_v52  ;;  %v5388_v49 = vsub.f32 0.0, %v5292_v19  ;;  %v8855_v59 = vmul.f32 -1.442695, %v12936_v33  ;;  %vm5984_vm15 = vcmp.lt.f32.partialorder %v5983_v40, 0.0004427343 }
 0x40e   : > { %v6728_v15 = vmul.f32 %v9468_v54, %v6632_v26  ;;  %v5979_v29 = vmul.f32 0.6931472, %v9470_v1  ;;  %9477 = vlog2.f32 %v5986_v3  ;;  %v7331_v2 = vadd.f32 %v7330_v9, %v7329_v44 }
 0x40f   : > { %9479 = vrcp.f32 %v4714_v18  ;;  %v5525_v12 = vmul.f32 1.442695, %v5388_v49  ;;  %v5989_v13 = vmul.f32 -0.5, %v12993_v61  ;;  %v8856_v7 = vmul.f32 -1.442695, %v4065_v22 }
 0x410   : > { %v7332_v10 = vsel %vm7139_vm3, %v6728_v15, 0.0  ;;  %v5985_v17 = vsel %vm5984_vm15, %v5982_v35, %v5979_v29  ;;  %v7682_v11 = vmul.f32 %v12972_v38, %v7331_v2  ;;  %vm5097_vm0 = vcmp.ne.f32.partialorder %v12857_v27, %v12857_v27 }
 0x411   : > { %v7333_v8 = vadd.f32 %v7332_v10, %v7035_v34  ;;  %v6537_v32 = vadd.f32 %v5985_v17, %v5001_v48  ;;  %9481 = vpow2.f32 %v5525_v12  ;;  %v5293_v33 = vand.u32 2147483647, %v12984_v16 }
 0x412   : > { %v13017_v36 = vpop.eup %9471  ;;  %9483 = vpow2.f32 %v8855_v59  ;;  %v13024_v20 = vadd.f32 %v12539_v30, %v15662_v21  ;;  %v7753_v22 = vadd.f32 %v12989_v41, %v7682_v11  ;;  %v6920_v44 = vcombine.high %v6728_v15, %v6728_v15  ;;  %v9990_v15 = vld [vmem:[%s10457_s19 + $0x10] sm:$0xff] }
 0x413   : > { %v9474_v23 = vpop.eup %9473  ;;  %v7334_v50 = vrot.slane %v7333_v8, 4  ;;  %v6633_v24 = vsel %vm5097_vm0, %v12857_v27, %v6537_v32  ;;  %v5995_v46 = vadd.f32 1.0, %v13017_v36  ;;  %v5990_v40 = vadd.f32 1.0, %v5989_v13 }
 0x414   : > { %v9476_v19 = vpop.eup %9475  ;;  %v6729_v52 = vmul.f32 %v9474_v23, %v6633_v24  ;;  %9485 = vpow2.f32 %v8856_v7  ;;  %v7905_v18 = vrot.slane %v7753_v22, 1  ;;  %v5389_v48 = vsub.f32 0.0, %v5293_v33 }
 0x415   : > { %v7335_v54 = vadd.f32 %v7334_v50, %v7333_v8  ;;  %9487 = vlog2.f32 %v5995_v46  ;;  %v13031_v30 = vmul.f32 %v12972_v38, %v12867_v56  ;;  %v5992_v27 = vand.u32 2147483647, %v12993_v61 }
 0x416   : > { %v6921_v35 = vcombine.high %v6729_v52, %v6729_v52  ;;  %v7036_v3 = vcombine.low %v6920_v44, %v6729_v52  ;;  %v7906_v1 = vsel %vm7877_vm11, %v7905_v18, %v7904_v62  ;;  %v4715_v34 = vadd.f32 1.0, %v9476_v19  ;;  %v15663_v44 = vld [vmem:[#allocation64_spill] sm:$0xff] }
 0x417   : > { %v7336_v9 = vrot.slane %v7335_v54, 2  ;;  %v5527_v26 = vmul.f32 1.442695, %v5389_v48  ;;  %v13036_v29 = vadd.f32 %v9990_v15, %v7906_v1  ;;  %v5002_v2 = vmax.f32 %v12892_v14, 0.0 }
 0x418   : > { %v9478_v49 = vpop.eup %9477  ;;  %v7340_v59 = vsel %vm7139_vm3, %v6921_v35, 0.0  ;;  %v5998_v56 = vmul.f32 -0.5, %v13017_v36  ;;  %v5991_v13 = vmul.f32 %v12993_v61, %v5990_v40  ;;  %vm5098_vm2 = vcmp.ne.f32.partialorder %v12892_v14, %v12892_v14 }
 0x419   : > { %v9480_v12 = vpop.eup %9479  ;;  %v7341_v10 = vadd.f32 %v7340_v59, %v7036_v3  ;;  %v5988_v17 = vmul.f32 0.6931472, %v9478_v49  ;;  %9489 = vpow2.f32 %v5527_v26  ;;  %v8019_v62 = vand.u32 2147483647, %v13036_v29 }
 0x41a   : > { %v7337_v7 = vadd.f32 %v7336_v9, %v7335_v54  ;;  %vm5993_vm4 = vcmp.lt.f32.partialorder %v5992_v27, 0.0004427343  ;;  %9491 = vrcp.f32 %v4715_v34  ;;  %v6001_v33 = vand.u32 2147483647, %v13017_v36 }
 0x41b   : > { %v13045_v11 = vpop.eup %9481  ;;  %v7342_v8 = vrot.slane %v7341_v10, 4  ;;  %v5994_v32 = vsel %vm5993_vm4, %v5991_v13, %v5988_v17  ;;  %v8027_v22 = vsub.f32 0.0, %v8019_v62  ;;  %v5999_v24 = vadd.f32 1.0, %v5998_v56 }
 0x41c   : > { %v9484_v23 = vpop.eup %9483  ;;  %v6538_v50 = vadd.f32 %v5994_v32, %v5002_v2  ;;  %v6004_v61 = vadd.f32 1.0, %v13045_v11  ;;  %v5003_v19 = vmax.f32 %v12925_v6, 0.0  ;;  %vm5099_vm8 = vcmp.ne.f32.partialorder %v12925_v6, %v12925_v6  ;;  %v15667_v2 = vld [vmem:[#allocation19_spill] sm:$0xff]  ;;  %v15668_v32 = vld [vmem:[#allocation24_spill] sm:$0xff] }
 0x41d   : > { %v7343_v46 = vadd.f32 %v7342_v8, %v7341_v10  ;;  %v8742_v52 = vcombine.low %v15660_v25, %v15663_v44  ;;  %v8037_v18 = vmul.f32 1.442695, %v8027_v22  ;;  %v7338_v54 = vrot.slane %v7337_v7, 1  ;;  %v15669_v22 = vld [vmem:[#allocation17_spill] sm:$0xff] }
 0x41e   : > { %v9486_v40 = vpop.eup %9485  ;;  %v6634_v48 = vsel %vm5098_vm2, %v12892_v14, %v6538_v50  ;;  %9493 = vlog2.f32 %v6004_v61  ;;  %vm13058_vm9 = vcmp.lt.f32.partialorder %v6001_v33, 0.0004427343  ;;  %v4716_v9 = vadd.f32 1.0, %v9484_v23  ;;  %v15666_v14 = vld [vmem:[#allocation18_spill] sm:$0xff]  ;;  %v15670_v50 = vld [vmem:[#allocation20_spill] sm:$0xff] }
 0x41f   : > { %v9488_v35 = vpop.eup %9487  ;;  %v7344_v3 = vrot.slane %v7343_v46, 2  ;;  %v6730_v27 = vmul.f32 %v9480_v12, %v6634_v48  ;;  %9495 = vpow2.f32 %v8037_v18  ;;  %v6000_v25 = vmul.f32 %v13017_v36, %v5999_v24 }
 0x420   : > { %v5997_v34 = vmul.f32 0.6931472, %v9488_v35  ;;  %v13064_v26 = vadd.f32 %v8742_v52, %v12718_v43  ;;  %v4717_v59 = vadd.f32 1.0, %v9486_v40  ;;  %v13068_v56 = vrot.slane %v15667_v2, %v15666_v14 }
 0x421   : > { %v7345_v49 = vadd.f32 %v7344_v3, %v7343_v46  ;;  %v6922_v15 = vcombine.high %v6730_v27, %v6730_v27  ;;  %v7339_v12 = vadd.f32 %v7338_v54, %v7337_v7  ;;  %v5004_v17 = vmax.f32 %v12977_v57, 0.0 }
 0x422   : > { %v6003_v10 = vsel %vm13058_vm9, %v6000_v25, %v5997_v34  ;;  %v6007_v13 = vmul.f32 -0.5, %v13045_v11  ;;  %v13078_v8 = vadd.f32 %v12720_v0, %v13068_v56  ;;  %v13082_v33 = vrot.slane %v15668_v32, %v15666_v14 }
 0x423   : > { %v13074_v62 = vpop.eup %9489  ;;  %v7346_v36 = vrot.slane %v7345_v49, 1  ;;  %v6539_v43 = vadd.f32 %v6003_v10, %v5003_v19  ;;  %9497 = vrcp.f32 %v4716_v9  ;;  %v8814_v23 = vmul.f32 -1.442695, %v13024_v20 }
 0x424   : > { %v6013_v7 = vadd.f32 1.0, %v13074_v62  ;;  %v13088_v24 = vrot.slane %v15670_v50, %v15669_v22  ;;  %v9492_v61 = vpop.eup %9491  ;;  %v7037_v19 = vcombine.low %v6730_v27, %v6922_v15  ;;  %9499 = vrcp.f32 %v4717_v59 }
 0x425   : > { %v7347_v46 = vadd.f32 %v7346_v36, %v7345_v49  ;;  %v6635_v0 = vsel %vm5099_vm8, %v12925_v6, %v6539_v43  ;;  %v6008_v40 = vadd.f32 1.0, %v6007_v13  ;;  %v6010_v18 = vand.u32 2147483647, %v13045_v11 }
 0x426   : > { %v6731_v52 = vmul.f32 %v9492_v61, %v6635_v0  ;;  %9501 = vlog2.f32 %v6013_v7  ;;  %v7683_v20 = vmul.f32 %v12972_v38, %v7339_v12  ;;  %vm5100_vm10 = vcmp.ne.f32.partialorder %v12977_v57, %v12977_v57 }
 0x427   : > { %v7684_v54 = vmul.f32 %v12972_v38, %v7347_v46  ;;  %v5251_v48 = vand.u32 2147483647, %v13078_v8  ;;  %v8743_v35 = vcombine.low %v15661_v39, %v13082_v33  ;;  %v5005_v27 = vmax.f32 %v12984_v16, 0.0 }
 0x428   : > { %v9494_v3 = vpop.eup %9493  ;;  %v7348_v6 = vsel %vm7139_vm3, %v6731_v52, 0.0  ;;  %9503 = vpow2.f32 %v8814_v23  ;;  %v8686_v1 = vcombine.low %v15662_v21, %v13088_v24  ;;  %v6016_v49 = vmul.f32 -0.5, %v13074_v62 }
 0x429   : > { %v7755_v9 = vadd.f32 %v12989_v41, %v7684_v54  ;;  %v7349_v34 = vadd.f32 %v7348_v6, %v7037_v19  ;;  %v6006_v25 = vmul.f32 0.6931472, %v9494_v3  ;;  %v13108_v15 = vpop.eup %9495  ;;  %v6009_v59 = vmul.f32 %v13045_v11, %v6008_v40 }
 0x42a   : > { %v5347_v39 = vsub.f32 0.0, %v5251_v48  ;;  %v13112_v2 = vadd.f32 %v8743_v35, %v12745_v42  ;;  %v3819_v12 = vadd.f32 %v8686_v1, %v12862_v4  ;;  %v8067_v10 = vadd.f32 1.0, %v13108_v15 }
 0x42b   : > { %v7754_v21 = vadd.f32 %v12989_v41, %v7683_v20  ;;  %v7907_v13 = vrot.slane %v7755_v9, 7  ;;  %vm6011_vm12 = vcmp.lt.f32.partialorder %v6010_v18, 0.0004427343  ;;  %v7350_v36 = vrot.slane %v7349_v34, 4 }
 0x42c   : > { %v6012_v43 = vsel %vm6011_vm12, %v6009_v59, %v6006_v25  ;;  %v5443_v7 = vmul.f32 1.442695, %v5347_v39  ;;  %v3293_v23 = vcombine.high %v15663_v44, %v13082_v33  ;;  %v7995_v11 = vmax.f32 %v13036_v29, 0.0 }
 0x42d   : > { %9505 = vlog2.f32 %v8067_v10  ;;  %v13121_v42 = vsel %vm7859_vm13, %v7907_v13, %v7754_v21  ;;  %vm5101_vm15 = vcmp.ne.f32.partialorder %v12984_v16, %v12984_v16  ;;  %v6017_v4 = vadd.f32 1.0, %v6016_v49  ;;  %v9498_v61 = vpop.eup %9497 }
 0x42e   : > { %v7351_v46 = vadd.f32 %v7350_v36, %v7349_v34  ;;  %v6540_v19 = vadd.f32 %v6012_v43, %v5004_v17  ;;  %v6019_v0 = vand.u32 2147483647, %v13074_v62  ;;  %9507 = vpow2.f32 %v5443_v7  ;;  %v9500_v40 = vpop.eup %9499 }
 0x42f   : > { %v8070_v18 = vmul.f32 -0.5, %v13108_v15  ;;  %v6923_v20 = vcombine.high %v6731_v52, %v6731_v52  ;;  %v8857_v54 = vmul.f32 -1.442695, %v13064_v26  ;;  %v5294_v48 = vand.u32 2147483647, %v13112_v2 }
 0x430   : > { %v9502_v35 = vpop.eup %9501  ;;  %v7352_v3 = vrot.slane %v7351_v46, 2  ;;  %v6636_v6 = vsel %vm5100_vm10, %v12977_v57, %v6540_v19  ;;  %v8744_v17 = vcombine.low %v3293_v23, %v15663_v44  ;;  %v13136_v1 = vrot.slane %v15670_v50, %v15666_v14 }
 0x431   : > { %v6732_v9 = vmul.f32 %v9498_v61, %v6636_v6  ;;  %v6015_v34 = vmul.f32 0.6931472, %v9502_v35  ;;  %v6018_v52 = vmul.f32 %v13074_v62, %v6017_v4  ;;  %v5390_v26 = vsub.f32 0.0, %v5294_v48 }
 0x432   : > { %v9504_v25 = vpop.eup %9503  ;;  %v7353_v49 = vadd.f32 %v7352_v3, %v7351_v46  ;;  %vm6020_vm0 = vcmp.lt.f32.partialorder %v6019_v0, 0.0004427343  ;;  %v4077_v59 = vadd.f32 %v8744_v17, %v12864_v53  ;;  %v8687_v39 = vcombine.low %v13068_v56, %v13136_v1 }
 0x433   : > { %v6924_v57 = vcombine.high %v6732_v9, %v6732_v9  ;;  %v7038_v10 = vcombine.low %v6923_v20, %v6732_v9  ;;  %v6021_v21 = vsel %vm6020_vm0, %v6018_v52, %v6015_v34  ;;  %v5529_v13 = vmul.f32 1.442695, %v5390_v26 }
 0x434   : > { %v8071_v36 = vadd.f32 1.0, %v8070_v18  ;;  %v7354_v50 = vrot.slane %v7353_v49, 1  ;;  %v6541_v43 = vadd.f32 %v6021_v21, %v5005_v27  ;;  %v13143_v7 = vadd.f32 %v8687_v39, %v12871_v63 }
 0x435   : > { %v8073_v62 = vand.u32 2147483647, %v13108_v15  ;;  %v7356_v23 = vsel %vm7139_vm3, %v6924_v57, 0.0  ;;  %9509 = vpow2.f32 %v5529_v13  ;;  %v8815_v4 = vmul.f32 -1.442695, %v3819_v12 }
 0x436   : > { %v7355_v53 = vadd.f32 %v7354_v50, %v7353_v49  ;;  %v7357_v61 = vadd.f32 %v7356_v23, %v7038_v10  ;;  %v6637_v56 = vsel %vm5101_vm15, %v12984_v16, %v6541_v43  ;;  %9511 = vpow2.f32 %v8857_v54  ;;  %v13181_v10 = vpop.f32.mrb[101].mxu1 }
 0x437   : > { %v9506_v46 = vpop.eup %9505  ;;  %vm8003_vm2 = vcmp.ne.f32.partialorder %v13036_v29, %v13036_v29  ;;  %v13153_v63 = vmul.f32 %v9500_v40, %v6637_v56  ;;  %v5252_v27 = vand.u32 2147483647, %v13143_v7  ;;  %v3292_v19 = vcombine.low %v15663_v44, %v13082_v33 }
 0x438   : > { %v13158_v12 = vpop.eup %9507  ;;  %v8069_v0 = vmul.f32 0.6931472, %v9506_v46  ;;  %v8072_v18 = vmul.f32 %v13108_v15, %v8071_v36  ;;  %v7685_v20 = vmul.f32 %v12972_v38, %v7355_v53  ;;  %v7358_v16 = vrot.slane %v7357_v61, 4  ;;  %v13192_v36 = vpop.f32.mrb[102].mxu1 }
 0x439   : > { %vm8074_vm4 = vcmp.lt.f32.partialorder %v8073_v62, 0.0004427343  ;;  %v5635_v54 = vadd.f32 1.0, %v13158_v12  ;;  %9513 = vpow2.f32 %v8815_v4  ;;  %v8858_v48 = vmul.f32 -1.442695, %v4077_v59  ;;  %v13196_v4 = vpop.f32.mrb[103].mxu1 }
 0x43a   : > { %v8075_v40 = vsel %vm8074_vm4, %v8072_v18, %v8069_v0  ;;  %v7756_v35 = vadd.f32 %v12989_v41, %v7685_v20  ;;  %v7359_v3 = vadd.f32 %v7358_v16, %v7357_v61  ;;  %v5348_v6 = vsub.f32 0.0, %v5252_v27  ;;  %v15671_v61 = vld [vmem:[#allocation23_spill] sm:$0xff] }
 0x43b   : > { %v8123_v44 = vadd.f32 %v8075_v40, %v7995_v11  ;;  %9515 = vlog2.f32 %v5635_v54  ;;  %v8745_v15 = vcombine.high %v13082_v33, %v3292_v19  ;;  %v3237_v17 = vcombine.high %v13088_v24, %v13136_v1 }
 0x43c   : > { %v7909_v9 = vrot.slane %v7756_v35, 6  ;;  %v7360_v34 = vrot.slane %v7359_v3, 2  ;;  %v5638_v52 = vmul.f32 -0.5, %v13158_v12  ;;  %v5445_v26 = vmul.f32 1.442695, %v5348_v6 }
 0x43d   : > { %v8131_v49 = vsel %vm8003_vm2, %v13036_v29, %v8123_v44  ;;  %v4675_v59 = vadd.f32 1.0, %v9504_v25  ;;  %9517 = vpow2.f32 %v8858_v48  ;;  %v13175_v11 = vadd.f32 %v8745_v15, %v12882_v31  ;;  %v15672_v44 = vld [vmem:[#allocation21_spill] sm:$0xff] }
 0x43e   : > { %v7870_v33 = vrot.slane %v12836_v60, 3  ;;  %8139 = vst [vmem:[%s12773_s26 + $0x10] sm:$0xff] %v8131_v49  ;;  %v7910_v39 = vsel %vm7862_vm1, %v7909_v9, %v13121_v42  ;;  %v7361_v57 = vadd.f32 %v7360_v34, %v7359_v3  ;;  %9519 = vpow2.f32 %v5445_v26 }
 0x43f   : > { %v13183_v21 = vpop.eup %9509  ;;  %v7873_v13 = vrot.slane %v12844_v5, 2  ;;  %v13188_v29 = vadd.f32 %v12989_v41, %v13031_v30  ;;  %v5295_v31 = vand.u32 2147483647, %v13175_v11  ;;  %v8688_v25 = vcombine.low %v3237_v17, %v13088_v24 }
 0x440   : > { %v9512_v50 = vpop.eup %9511  ;;  %v7362_v42 = vrot.slane %v7361_v57, 1  ;;  %v4963_v43 = vmax.f32 %v13078_v8, 0.0  ;;  %v5639_v62 = vadd.f32 1.0, %v5638_v52  ;;  %v6022_v23 = vadd.f32 1.0, %v13183_v21 }
 0x441   : > { %9521 = vrcp.f32 %v4675_v59  ;;  %v5391_v53 = vsub.f32 0.0, %v5295_v31  ;;  %v3825_v30 = vadd.f32 %v8688_v25, %v12940_v28  ;;  %v2519_v56 = vcombine.high %v15671_v61, %v15671_v61  ;;  %v15673_v59 = vld [vmem:[#allocation22_spill] sm:$0xff] }
 0x442   : > { %v7363_v46 = vadd.f32 %v7362_v42, %v7361_v57  ;;  %vm5059_vm8 = vcmp.ne.f32.partialorder %v13078_v8, %v13078_v8  ;;  %v5006_v27 = vmax.f32 %v13112_v2, 0.0  ;;  %9523 = vlog2.f32 %v6022_v23 }
 0x443   : > { %v9514_v19 = vpop.eup %9513  ;;  %v4718_v0 = vadd.f32 1.0, %v9512_v50  ;;  %v5641_v18 = vand.u32 2147483647, %v13158_v12  ;;  %v5531_v20 = vmul.f32 1.442695, %v5391_v53  ;;  %v13206_v16 = vrot.slane %v2519_v56, %v15669_v22 }
 0x444   : > { %v7686_v28 = vmul.f32 %v12972_v38, %v7363_v46  ;;  %v5640_v54 = vmul.f32 %v13158_v12, %v5639_v62  ;;  %v6025_v48 = vmul.f32 -0.5, %v13183_v21  ;;  %v3236_v40 = vcombine.low %v13088_v24, %v13136_v1 }
 0x445   : > { %v9516_v35 = vpop.eup %9515  ;;  %9525 = vpow2.f32 %v5531_v20  ;;  %v4083_v3 = vadd.f32 %v12942_v47, %v13206_v16  ;;  %v13216_v6 = vrot.slane %v2519_v56, %v15666_v14  ;;  %v3831_v15 = vadd.f32 %v12998_v58, %v15672_v44 }
 0x446   : > { %v7757_v17 = vadd.f32 %v12989_v41, %v7686_v28  ;;  %v5637_v9 = vmul.f32 0.6931472, %v9516_v35  ;;  %v8689_v12 = vcombine.high %v13136_v1, %v3236_v40  ;;  %v13224_v34 = vcombine.high %v15668_v32, %v15668_v32 }
 0x447   : > { %v9518_v24 = vpop.eup %9517  ;;  %v6925_v52 = vcombine.high %v13153_v63, %v13153_v63  ;;  %9527 = vrcp.f32 %v4718_v0  ;;  %vm5642_vm9 = vcmp.lt.f32.partialorder %v5641_v18, 0.0004427343  ;;  %v13230_v47 = vadd.f32 %v12996_v55, %v13216_v6 }
 0x448   : > { %v13232_v58 = vpop.eup %9519  ;;  %v7911_v26 = vrot.slane %v7757_v17, 5  ;;  %v5643_v49 = vsel %vm5642_vm9, %v5640_v54, %v5637_v9  ;;  %v13235_v1 = vadd.f32 %v8689_v12, %v12949_v37  ;;  %v13239_v32 = vadd.f32 %v13007_v45, %v15673_v59  ;;  %v13271_v17 = vpop.f32.mrb[104].mxu1 }
 0x449   : > { %v6499_v57 = vadd.f32 %v5643_v49, %v4963_v43  ;;  %vm5102_vm10 = vcmp.ne.f32.partialorder %v13112_v2, %v13112_v2  ;;  %v6026_v31 = vadd.f32 1.0, %v6025_v48  ;;  %v5644_v25 = vadd.f32 1.0, %v13232_v58 }
 0x44a   : > { %v13245_v55 = vsel %vm7865_vm5, %v7911_v26, %v7910_v39  ;;  %v6028_v50 = vand.u32 2147483647, %v13183_v21  ;;  %v4676_v42 = vadd.f32 1.0, %v9514_v19  ;;  %v13250_v37 = vrot.slane %v13224_v34, %v15669_v22 }
 0x44b   : > { %v9522_v62 = vpop.eup %9521  ;;  %v6595_v45 = vsel %vm5059_vm8, %v13078_v8, %v6499_v57  ;;  %v4719_v43 = vadd.f32 1.0, %v9518_v24  ;;  %v4964_v23 = vmax.f32 %v13143_v7, 0.0  ;;  %9529 = vlog2.f32 %v5644_v25 }
 0x44c   : > { %v9524_v53 = vpop.eup %9523  ;;  %v7039_v39 = vcombine.low %v13153_v63, %v6925_v52  ;;  %v13258_v61 = vmul.f32 %v9522_v62, %v6595_v45  ;;  %v8816_v56 = vmul.f32 -1.442695, %v3825_v30  ;;  %v5253_v46 = vand.u32 2147483647, %v13235_v1  ;;  %v13274_v52 = vpop.f32.mrb[105].mxu1 }
 0x44d   : > { %v6024_v19 = vmul.f32 0.6931472, %v9524_v53  ;;  %v6027_v0 = vmul.f32 %v13183_v21, %v6026_v31  ;;  %v5647_v18 = vmul.f32 -0.5, %v13232_v58  ;;  %v5296_v20 = vand.u32 2147483647, %v13230_v47  ;;  %v13280_v49 = vpop.f32.mrb[106].mxu1 }
 0x44e   : > { %vm6029_vm12 = vcmp.lt.f32.partialorder %v6028_v50, 0.0004427343  ;;  %9531 = vrcp.f32 %v4676_v42  ;;  %v5349_v8 = vsub.f32 0.0, %v5253_v46  ;;  %v8746_v28 = vcombine.low %v13206_v16, %v13250_v37  ;;  %v15676_v31 = vld [vmem:[#allocation25_spill] sm:$0xff] }
 0x44f   : > { %v13266_v54 = vpop.eup %9525  ;;  %v6030_v63 = vsel %vm6029_vm12, %v6027_v0, %v6024_v19  ;;  %9533 = vrcp.f32 %v4719_v43  ;;  %v8859_v30 = vmul.f32 -1.442695, %v4083_v3  ;;  %v5392_v48 = vsub.f32 0.0, %v5296_v20 }
 0x450   : > { %v6542_v40 = vadd.f32 %v6030_v63, %v5006_v27  ;;  %v5650_v35 = vand.u32 2147483647, %v13232_v58  ;;  %v6031_v21 = vadd.f32 1.0, %v13266_v54  ;;  %v5254_v44 = vand.u32 2147483647, %v13239_v32 }
 0x451   : > { %v9528_v9 = vpop.eup %9527  ;;  %v5648_v12 = vadd.f32 1.0, %v5647_v18  ;;  %9535 = vpow2.f32 %v8816_v56  ;;  %v5447_v24 = vmul.f32 1.442695, %v5349_v8  ;;  %v4089_v16 = vadd.f32 %v8746_v28, %v13005_v51  ;;  %v13287_v51 = vpop.f32.mrb[107].mxu1 }
 0x452   : > { %v6638_v27 = vsel %vm5102_vm10, %v13112_v2, %v6542_v40  ;;  %9537 = vlog2.f32 %v6031_v21  ;;  %v5533_v3 = vmul.f32 1.442695, %v5392_v48  ;;  %v8817_v26 = vmul.f32 -1.442695, %v3831_v15  ;;  %v13295_v25 = vpop.f32.mrb[108].mxu1 }
 0x453   : > { %v13282_v59 = vmul.f32 %v9528_v9, %v6638_v27  ;;  %vm5060_vm15 = vcmp.ne.f32.partialorder %v13143_v7, %v13143_v7  ;;  %v5007_v57 = vmax.f32 %v13175_v11, 0.0  ;;  %9539 = vpow2.f32 %v8859_v30  ;;  %v13301_v43 = vpop.f32.mrb[109].mxu1 }
 0x454   : > { %vm13289_vm0 = vcmp.lt.f32.partialorder %v5650_v35, 0.0004427343  ;;  %9541 = vpow2.f32 %v5447_v24  ;;  %v5350_v2 = vsub.f32 0.0, %v5254_v44  ;;  %v2977_v15 = vrot.slane %v13224_v34, %v15666_v14  ;;  %v13303_v19 = vpop.f32.mrb[110].mxu1 }
 0x455   : > { %v9530_v50 = vpop.eup %9529  ;;  %v7364_v42 = vsel %vm7139_vm3, %v13282_v59, 0.0  ;;  %v5649_v62 = vmul.f32 %v13232_v58, %v5648_v12  ;;  %v6034_v45 = vmul.f32 -0.5, %v13266_v54  ;;  %9543 = vpow2.f32 %v5533_v3  ;;  %v13310_v20 = vpop.f32.mrb[111].mxu1 }
 0x456   : > { %v7365_v53 = vadd.f32 %v7364_v42, %v7039_v39  ;;  %v5646_v56 = vmul.f32 0.6931472, %v9530_v50  ;;  %9545 = vpow2.f32 %v8817_v26  ;;  %v5449_v46 = vmul.f32 1.442695, %v5350_v2  ;;  %v13315_v30 = vpop.f32.mrb[112].mxu1 }
 0x457   : > { %v6883_v34 = vcombine.high %v13258_v61, %v13258_v61  ;;  %v8747_v0 = vcombine.low %v13216_v6, %v2977_v15  ;;  %v3297_v18 = vcombine.high %v13250_v37, %v2977_v15  ;;  %v3296_v58 = vcombine.low %v13250_v37, %v2977_v15  ;;  %v13325_v44 = vpop.f32.mrb[113].mxu1 }
 0x458   : > { %v9532_v8 = vpop.eup %9531  ;;  %v7366_v28 = vrot.slane %v7365_v53, 4  ;;  %v5652_v39 = vsel %vm13289_vm0, %v5649_v62, %v5646_v56  ;;  %v4965_v63 = vmax.f32 %v13235_v1, 0.0  ;;  %9547 = vpow2.f32 %v5449_v46  ;;  %v13358_v56 = vpop.f32.mrb[114].mxu1 }
 0x459   : > { %v9534_v48 = vpop.eup %9533  ;;  %v6500_v6 = vadd.f32 %v5652_v39, %v4964_v23  ;;  %vm5103_vm2 = vcmp.ne.f32.partialorder %v13175_v11, %v13175_v11  ;;  %v6035_v40 = vadd.f32 1.0, %v6034_v45  ;;  %v6037_v35 = vand.u32 2147483647, %v13266_v54 }
 0x45a   : > { %v13323_v21 = vadd.f32 %v8747_v0, %v13181_v10  ;;  %v7367_v9 = vadd.f32 %v7366_v28, %v7365_v53  ;;  %v8860_v12 = vmul.f32 -1.442695, %v4089_v16  ;;  %v8748_v24 = vcombine.low %v3297_v18, %v13250_v37 }
 0x45b   : > { %v8749_v27 = vcombine.high %v2977_v15, %v3296_v58  ;;  %v9536_v3 = vpop.eup %9535  ;;  %v7011_v26 = vcombine.low %v13258_v61, %v6883_v34  ;;  %v6596_v23 = vsel %vm5060_vm15, %v13143_v7, %v6500_v6  ;;  %v13335_v2 = vrot.slane %v15676_v31, %v15669_v22  ;;  %v13364_v34 = vpop.f32.mrb[115].mxu1 }
 0x45c   : > { %v13339_v10 = vrot.slane %v15676_v31, %v15666_v14  ;;  %v9538_v16 = vpop.eup %9537  ;;  %v7368_v50 = vrot.slane %v7367_v9, 2  ;;  %v13341_v37 = vmul.f32 %v9532_v8, %v6596_v23  ;;  %v13344_v15 = vadd.f32 %v8748_v24, %v13192_v36 }
 0x45d   : > { %v13347_v61 = vadd.f32 %v8749_v27, %v13196_v4  ;;  %v9540_v42 = vpop.eup %9539  ;;  %v6033_v7 = vmul.f32 0.6931472, %v9538_v16  ;;  %v6036_v62 = vmul.f32 %v13266_v54, %v6035_v40  ;;  %v13352_v45 = vadd.f32 %v13271_v17, %v13335_v2 }
 0x45e   : > { %v13356_v53 = vadd.f32 %v13274_v52, %v13339_v10  ;;  %v13360_v46 = vpop.eup %9541  ;;  %v7369_v36 = vadd.f32 %v7368_v50, %v7367_v9  ;;  %v7140_v4 = vsel %vm7139_vm3, %v13341_v37, 0.0  ;;  %vm6038_vm4 = vcmp.lt.f32.partialorder %v6037_v35, 0.0004427343 }
 0x45f   : > { %9549 = vpow2.f32 %v8860_v12  ;;  %v13366_v54 = vpop.eup %9543  ;;  %v7141_v17 = vadd.f32 %v7140_v4, %v7011_v26  ;;  %v6039_v0 = vsel %vm6038_vm4, %v6036_v62, %v6033_v7  ;;  %v4677_v18 = vadd.f32 1.0, %v9536_v3 }
 0x460   : > { %v5653_v52 = vadd.f32 1.0, %v13360_v46  ;;  %v9546_v58 = vpop.eup %9545  ;;  %v7370_v8 = vrot.slane %v7369_v36, 1  ;;  %v6543_v28 = vadd.f32 %v6039_v0, %v5007_v57  ;;  %v6040_v39 = vadd.f32 1.0, %v13366_v54 }
 0x461   : > { %v5297_v6 = vand.u32 2147483647, %v13323_v21  ;;  %v7142_v40 = vrot.slane %v7141_v17, 4  ;;  %v4720_v35 = vadd.f32 1.0, %v9540_v42  ;;  %v5008_v9 = vmax.f32 %v13230_v47, 0.0 }
 0x462   : > { %9551 = vlog2.f32 %v5653_v52  ;;  %v13374_v12 = vpop.eup %9547  ;;  %v7371_v24 = vadd.f32 %v7370_v8, %v7369_v36  ;;  %v6639_v27 = vsel %vm5103_vm2, %v13175_v11, %v6543_v28  ;;  %v5656_v3 = vmul.f32 -0.5, %v13360_v46 }
 0x463   : > { %9553 = vlog2.f32 %v6040_v39  ;;  %v6926_v57 = vcombine.high %v13282_v59, %v13282_v59  ;;  %v6735_v26 = vmul.f32 %v9534_v48, %v6639_v27  ;;  %v6043_v23 = vmul.f32 -0.5, %v13366_v54 }
 0x464   : > { %v4966_v16 = vmax.f32 %v13239_v32, 0.0  ;;  %v7687_v50 = vmul.f32 %v12972_v38, %v7371_v24  ;;  %9555 = vrcp.f32 %v4677_v18  ;;  %v5662_v42 = vadd.f32 1.0, %v13374_v12 }
 0x465   : > { %v5393_v7 = vsub.f32 0.0, %v5297_v6  ;;  %v7143_v62 = vadd.f32 %v7142_v40, %v7141_v17  ;;  %v6927_v36 = vcombine.high %v6735_v26, %v6735_v26  ;;  %v7040_v11 = vcombine.low %v6926_v57, %v6735_v26 }
 0x466   : > { %v4678_v4 = vadd.f32 1.0, %v9546_v58  ;;  %v7758_v0 = vadd.f32 %v12989_v41, %v7687_v50  ;;  %9557 = vrcp.f32 %v4720_v35  ;;  %v5657_v52 = vadd.f32 1.0, %v5656_v3  ;;  %v13394_v41 = vpop.f32.mrb[116].mxu1 }
 0x467   : > { %v5659_v59 = vand.u32 2147483647, %v13360_v46  ;;  %v7372_v48 = vsel %vm7139_vm3, %v6927_v36, 0.0  ;;  %v6044_v8 = vadd.f32 1.0, %v6043_v23  ;;  %v6046_v28 = vand.u32 2147483647, %v13366_v54 }
 0x468   : > { %9559 = vlog2.f32 %v5662_v42  ;;  %v7913_v18 = vrot.slane %v7758_v0, 4  ;;  %v7373_v39 = vadd.f32 %v7372_v48, %v7040_v11  ;;  %vm5061_vm8 = vcmp.ne.f32.partialorder %v13235_v1, %v13235_v1  ;;  %v13401_v24 = vpop.f32.mrb[117].mxu1 }
 0x469   : > { %v9550_v38 = vpop.eup %9549  ;;  %v5665_v17 = vmul.f32 -0.5, %v13374_v12  ;;  %v5535_v58 = vmul.f32 1.442695, %v5393_v7  ;;  %v6884_v6 = vcombine.high %v13341_v37, %v13341_v37  ;;  %v7144_v40 = vrot.slane %v7143_v62, 2  ;;  %v13411_v37 = vpop.f32.mrb[118].mxu1 }
 0x46a   : > { %vm5104_vm9 = vcmp.ne.f32.partialorder %v13230_v47, %v13230_v47  ;;  %9561 = vrcp.f32 %v4678_v4  ;;  %v8861_v35 = vmul.f32 -1.442695, %v13344_v15  ;;  %v13405_v27 = vsel %vm7868_vm7, %v7913_v18, %v13245_v55  ;;  %v13416_v7 = vpop.f32.mrb[119].mxu1 }
 0x46b   : > { %v7374_v3 = vrot.slane %v7373_v39, 4  ;;  %vm13407_vm10 = vcmp.lt.f32.partialorder %v5659_v59, 0.0004427343  ;;  %9563 = vpow2.f32 %v5535_v58  ;;  %v5658_v23 = vmul.f32 %v13360_v46, %v5657_v52 }
 0x46c   : > { %v9552_v26 = vpop.eup %9551  ;;  %v6045_v50 = vmul.f32 %v13366_v54, %v6044_v8  ;;  %v4721_v15 = vadd.f32 1.0, %v9550_v38  ;;  %v5298_v42 = vand.u32 2147483647, %v13347_v61  ;;  %vm13418_vm12 = vcmp.lt.f32.partialorder %v6046_v28, 0.0004427343  ;;  %v15681_v28 = vld [vmem:[#allocation27_spill] sm:$0xff] }
 0x46d   : > { %v9554_v55 = vpop.eup %9553  ;;  %v7375_v36 = vadd.f32 %v7374_v3, %v7373_v39  ;;  %v5655_v11 = vmul.f32 0.6931472, %v9552_v26  ;;  %v5666_v0 = vadd.f32 1.0, %v5665_v17  ;;  %v7145_v59 = vadd.f32 %v7144_v40, %v7143_v62 }
 0x46e   : > { %v6042_v48 = vmul.f32 0.6931472, %v9554_v55  ;;  %v5668_v18 = vand.u32 2147483647, %v13374_v12  ;;  %v5394_v46 = vsub.f32 0.0, %v5298_v42  ;;  %v9556_v52 = vpop.eup %9555  ;;  %vm5062_vm15 = vcmp.ne.f32.partialorder %v13239_v32, %v13239_v32 }
 0x46f   : > { %v7376_v54 = vrot.slane %v7375_v36, 2  ;;  %v5661_v8 = vsel %vm13407_vm10, %v5658_v23, %v5655_v11  ;;  %v5299_v38 = vand.u32 2147483647, %v13356_v53  ;;  %v13430_v39 = vrot.slane %v15681_v28, %v15669_v22 }
 0x470   : > { %v6501_v62 = vadd.f32 %v5661_v8, %v4965_v63  ;;  %v6048_v17 = vsel %vm13418_vm12, %v6045_v50, %v6042_v48  ;;  %9565 = vpow2.f32 %v8861_v35  ;;  %v5537_v58 = vmul.f32 1.442695, %v5394_v46  ;;  %v9558_v40 = vpop.eup %9557 }
 0x471   : > { %v7377_v3 = vadd.f32 %v7376_v54, %v7375_v36  ;;  %v6544_v57 = vadd.f32 %v6048_v17, %v5008_v9  ;;  %v5667_v26 = vmul.f32 %v13374_v12, %v5666_v0  ;;  %v8750_v23 = vcombine.low %v13335_v2, %v13430_v39 }
 0x472   : > { %v9560_v42 = vpop.eup %9559  ;;  %v6597_v63 = vsel %vm5061_vm8, %v13235_v1, %v6501_v62  ;;  %9567 = vpow2.f32 %v5537_v58  ;;  %v5395_v50 = vsub.f32 0.0, %v5299_v38  ;;  %v13447_v35 = vrot.slane %v15681_v28, %v15666_v14 }
 0x473   : > { %v7378_v55 = vrot.slane %v7377_v3, 1  ;;  %v6693_v36 = vmul.f32 %v9556_v52, %v6597_v63  ;;  %v6640_v9 = vsel %vm5104_vm9, %v13230_v47, %v6544_v57  ;;  %v5664_v2 = vmul.f32 0.6931472, %v9560_v42 }
 0x474   : > { %v9562_v12 = vpop.eup %9561  ;;  %v13453_v11 = vmul.f32 %v9558_v40, %v6640_v9  ;;  %vm5669_vm0 = vcmp.lt.f32.partialorder %v5668_v18, 0.0004427343  ;;  %v4107_v1 = vadd.f32 %v8750_v23, %v13280_v49  ;;  %v8751_v4 = vcombine.low %v13339_v10, %v13447_v35  ;;  %v13467_v49 = vld [vmem:[%s15333_s7] ss:$0 sm:$0xff] }
 0x475   : > { %v13458_v0 = vpop.eup %9563  ;;  %v7379_v48 = vadd.f32 %v7378_v55, %v7377_v3  ;;  %v6885_v46 = vcombine.high %v6693_v36, %v6693_v36  ;;  %v7012_v52 = vcombine.low %v6884_v6, %v6693_v36  ;;  %v5670_v54 = vsel %vm5669_vm0, %v5667_v26, %v5664_v2 }
 0x476   : > { %v7146_v8 = vrot.slane %v7145_v59, 1  ;;  %v6502_v47 = vadd.f32 %v5670_v54, %v4966_v16  ;;  %v6049_v38 = vadd.f32 1.0, %v13458_v0  ;;  %v8862_v62 = vmul.f32 -1.442695, %v13352_v45  ;;  %v13480_v16 = vld [vmem:[%s15334_s8] ss:$0 sm:$0xff] }
 0x477   : > { %v7688_v10 = vmul.f32 %v13467_v49, %v7379_v48  ;;  %v7148_v18 = vsel %vm7139_vm3, %v6885_v46, 0.0  ;;  %v6052_v6 = vmul.f32 -0.5, %v13458_v0  ;;  %v5539_v17 = vmul.f32 1.442695, %v5395_v50 }
 0x478   : > { %v7876_v58 = vrot.slane %v13188_v29, 1  ;;  %v7149_v40 = vadd.f32 %v7148_v18, %v7012_v52  ;;  %v6598_v45 = vsel %vm5062_vm15, %v13239_v32, %v6502_v47  ;;  %9569 = vlog2.f32 %v6049_v38  ;;  %v15682_v38 = vld [vmem:[#allocation61_spill] sm:$0xff] }
 0x479   : > { %v7759_v3 = vadd.f32 %v13480_v16, %v7688_v10  ;;  %9571 = vrcp.f32 %v4721_v15  ;;  %v6694_v57 = vmul.f32 %v9562_v12, %v6598_v45  ;;  %v5009_v26 = vmax.f32 %v13323_v21, 0.0  ;;  %v13507_v10 = vpop.f32.mrb[120].mxu1 }
 0x47a   : > { %v9566_v23 = vpop.eup %9565  ;;  %v7147_v42 = vadd.f32 %v7146_v8, %v7145_v59  ;;  %v7150_v63 = vrot.slane %v7149_v40, 4  ;;  %v5010_v50 = vmax.f32 %v13347_v61, 0.0  ;;  %9573 = vpow2.f32 %v8862_v62 }
 0x47b   : > { %v7915_v55 = vrot.slane %v7759_v3, 3  ;;  %v6886_v32 = vcombine.high %v6694_v57, %v6694_v57  ;;  %v6053_v36 = vadd.f32 1.0, %v6052_v6  ;;  %9575 = vpow2.f32 %v5539_v17 }
 0x47c   : > { %v13485_v9 = vpop.eup %9567  ;;  %v7151_v2 = vadd.f32 %v7150_v63, %v7149_v40  ;;  %v13488_v48 = vadd.f32 %v8751_v4, %v13287_v51  ;;  %v3301_v15 = vcombine.high %v13430_v39, %v13447_v35  ;;  %v2568_v59 = vcombine.high %v15676_v31, %v15676_v31  ;;  %v13512_v40 = vpop.f32.mrb[121].mxu1 }
 0x47d   : > { %v13496_v12 = vsel %vm7871_vm14, %v7915_v55, %v13405_v27  ;;  %v7013_v46 = vcombine.low %v6694_v57, %v6886_v32  ;;  %v6058_v52 = vadd.f32 1.0, %v13485_v9  ;;  %v8863_v54 = vmul.f32 -1.442695, %v4107_v1 }
 0x47e   : > { %v7659_v8 = vmul.f32 %v13467_v49, %v7147_v42  ;;  %v7152_v47 = vrot.slane %v7151_v2, 2  ;;  %v6928_v51 = vcombine.high %v13453_v11, %v13453_v11  ;;  %v6055_v4 = vand.u32 2147483647, %v13458_v0 }
 0x47f   : > { %v7157_v62 = vadd.f32 %v15682_v38, %v7013_v46  ;;  %vm5105_vm2 = vcmp.ne.f32.partialorder %v13323_v21, %v13323_v21  ;;  %v6054_v31 = vmul.f32 %v13458_v0, %v6053_v36  ;;  %v4722_v27 = vadd.f32 1.0, %v9566_v23 }
 0x480   : > { %9577 = vlog2.f32 %v6058_v52  ;;  %v7153_v1 = vadd.f32 %v7152_v47, %v7151_v2  ;;  %v6061_v18 = vmul.f32 -0.5, %v13485_v9  ;;  %v5300_v6 = vand.u32 2147483647, %v13488_v48 }
 0x481   : > { %v8752_v17 = vcombine.low %v3301_v15, %v13430_v39  ;;  %v7158_v45 = vrot.slane %v7157_v62, 4  ;;  %9579 = vpow2.f32 %v8863_v54  ;;  %v3300_v3 = vcombine.low %v13430_v39, %v13447_v35 }
 0x482   : > { %v13517_v0 = vrot.slane %v2568_v59, %v15669_v22  ;;  %v9570_v57 = vpop.eup %9569  ;;  %v7154_v23 = vrot.slane %v7153_v1, 1  ;;  %v5396_v42 = vsub.f32 0.0, %v5300_v6  ;;  %v13521_v55 = vrot.slane %v2568_v59, %v15666_v14 }
 0x483   : > { %v4113_v63 = vadd.f32 %v8752_v17, %v13295_v25  ;;  %v9572_v32 = vpop.eup %9571  ;;  %v7159_v36 = vadd.f32 %v7158_v45, %v7157_v62  ;;  %v6051_v2 = vmul.f32 0.6931472, %v9570_v57  ;;  %v8753_v15 = vcombine.high %v13447_v35, %v3300_v3 }
 0x484   : > { %v4119_v46 = vadd.f32 %v13303_v19, %v13517_v0  ;;  %v9574_v39 = vpop.eup %9573  ;;  %v7155_v52 = vadd.f32 %v7154_v23, %v7153_v1  ;;  %vm6056_vm4 = vcmp.lt.f32.partialorder %v6055_v4, 0.0004427343  ;;  %v5541_v54 = vmul.f32 1.442695, %v5396_v42 }
 0x485   : > { %v13528_v47 = vadd.f32 %v13310_v20, %v13521_v55  ;;  %v9576_v25 = vpop.eup %9575  ;;  %v7160_v38 = vrot.slane %v7159_v36, 2  ;;  %v6057_v59 = vsel %vm6056_vm4, %v6054_v31, %v6051_v2  ;;  %9581 = vrcp.f32 %v4722_v27 }
 0x486   : > { %v13531_v62 = vadd.f32 %v8753_v15, %v13301_v43  ;;  %v7660_v35 = vmul.f32 %v13467_v49, %v7155_v52  ;;  %v6545_v6 = vadd.f32 %v6057_v59, %v5009_v26  ;;  %vm5106_vm8 = vcmp.ne.f32.partialorder %v13347_v61, %v13347_v61 }
 0x487   : > { %v6062_v19 = vadd.f32 1.0, %v6061_v18  ;;  %v6067_v4 = vadd.f32 1.0, %v9576_v25  ;;  %v7730_v1 = vadd.f32 %v13480_v16, %v7659_v8  ;;  %v7161_v17 = vadd.f32 %v7160_v38, %v7159_v36 }
 0x488   : > { %v6064_v20 = vand.u32 2147483647, %v13485_v9  ;;  %9583 = vpow2.f32 %v5541_v54  ;;  %v7731_v31 = vadd.f32 %v13480_v16, %v7660_v35  ;;  %v7041_v27 = vcombine.low %v13453_v11, %v6928_v51  ;;  %v13552_v35 = vpop.f32.mrb[122].mxu1 }
 0x489   : > { %v6641_v43 = vsel %vm5105_vm2, %v13323_v21, %v6545_v6  ;;  %9585 = vlog2.f32 %v6067_v4  ;;  %v7162_v45 = vrot.slane %v7161_v17, 1  ;;  %v4723_v3 = vadd.f32 1.0, %v9574_v39 }
 0x48a   : > { %v9578_v26 = vpop.eup %9577  ;;  %v6737_v18 = vmul.f32 %v9572_v32, %v6641_v43  ;;  %v6070_v57 = vmul.f32 -0.5, %v9576_v25  ;;  %v7858_v8 = vrot.slane %v7731_v31, 7  ;;  %v6063_v42 = vmul.f32 %v13485_v9, %v6062_v19 }
 0x48b   : > { %v6060_v23 = vmul.f32 0.6931472, %v9578_v26  ;;  %v6073_v36 = vand.u32 2147483647, %v9576_v25  ;;  %v9580_v2 = vpop.eup %9579  ;;  %v7163_v15 = vadd.f32 %v7162_v45, %v7161_v17  ;;  %vm6065_vm9 = vcmp.lt.f32.partialorder %v6064_v20, 0.0004427343 }
 0x48c   : > { %v7380_v11 = vsel %vm7139_vm3, %v6737_v18, 0.0  ;;  %v5011_v51 = vmax.f32 %v13356_v53, 0.0  ;;  %v7860_v21 = vsel %vm7859_vm13, %v7858_v8, %v7730_v1  ;;  %v8864_v38 = vmul.f32 -1.442695, %v4113_v63  ;;  %v13560_v1 = vpop.f32.mrb[123].mxu1 }
 0x48d   : > { %v7381_v52 = vadd.f32 %v7380_v11, %v7041_v27  ;;  %v6066_v54 = vsel %vm6065_vm9, %v6063_v42, %v6060_v23  ;;  %v7661_v32 = vmul.f32 %v13467_v49, %v7163_v15  ;;  %v6071_v59 = vadd.f32 1.0, %v6070_v57  ;;  %v13570_v27 = vpop.f32.mrb[124].mxu1 }
 0x48e   : > { %v6546_v39 = vadd.f32 %v6066_v54, %v5010_v50  ;;  %v5301_v9 = vand.u32 2147483647, %v13531_v62  ;;  %9587 = vrcp.f32 %v4723_v3  ;;  %vm13554_vm10 = vcmp.lt.f32.partialorder %v6073_v36, 0.0004427343  ;;  %v13572_v3 = vpop.f32.mrb[125].mxu1 }
 0x48f   : > { %v7382_v6 = vrot.slane %v7381_v52, 4  ;;  %v13558_v4 = vmul.f32 -1.442695, %v4119_v46  ;;  %v9582_v63 = vpop.eup %9581  ;;  %v7732_v17 = vadd.f32 %v13480_v16, %v7661_v32  ;;  %vm5107_vm12 = vcmp.ne.f32.partialorder %v13356_v53, %v13356_v53 }
 0x490   : > { %v6642_v50 = vsel %vm5106_vm8, %v13347_v61, %v6546_v39  ;;  %v5397_v20 = vsub.f32 0.0, %v5301_v9  ;;  %v5302_v31 = vand.u32 2147483647, %v13528_v47  ;;  %v6929_v46 = vcombine.high %v6737_v18, %v6737_v18 }
 0x491   : > { %v7383_v43 = vadd.f32 %v7382_v6, %v7381_v52  ;;  %v6738_v26 = vmul.f32 %v9582_v63, %v6642_v50  ;;  %v4724_v45 = vadd.f32 1.0, %v9580_v2  ;;  %v7861_v8 = vrot.slane %v7732_v17, 6  ;;  %v15685_v2 = vld [vmem:[#allocation90_spill] sm:$0xff] }
 0x492   : > { %v9584_v57 = vpop.eup %9583  ;;  %v6072_v23 = vmul.f32 %v9576_v25, %v6071_v59  ;;  %9589 = vpow2.f32 %v8864_v38  ;;  %v2570_v61 = vcombine.high %v15681_v28, %v15681_v28  ;;  %v5543_v52 = vmul.f32 1.442695, %v5397_v20  ;;  %v15687_v38 = vld [vmem:[#allocation91_spill] sm:$0xff] }
 0x493   : > { %v9586_v42 = vpop.eup %9585  ;;  %v7384_v36 = vrot.slane %v7383_v43, 2  ;;  %v6930_v15 = vcombine.high %v6738_v26, %v6738_v26  ;;  %v7042_v11 = vcombine.low %v6929_v46, %v6738_v26  ;;  %v6076_v54 = vadd.f32 1.0, %v9584_v57 }
 0x494   : > { %v7863_v32 = vsel %vm7862_vm1, %v7861_v8, %v7860_v21  ;;  %v6069_v18 = vmul.f32 0.6931472, %v9586_v42  ;;  %v5398_v39 = vsub.f32 0.0, %v5302_v31  ;;  %v15686_v9 = vrot.slane %v15685_v2, 5 }
 0x495   : > { %v7385_v63 = vadd.f32 %v7384_v36, %v7383_v43  ;;  %v7388_v25 = vsel %vm7139_vm3, %v6930_v15, 0.0  ;;  %9591 = vlog2.f32 %v6076_v54  ;;  %v15688_v28 = vrot.slane %v15687_v38, 4 }
 0x496   : > { %v7866_v6 = vsel %vm7865_vm5, %v15686_v9, %v7863_v32  ;;  %v7389_v17 = vadd.f32 %v7388_v25, %v7042_v11  ;;  %v6075_v21 = vsel %vm13554_vm10, %v6072_v23, %v6069_v18  ;;  %v13587_v50 = vrot.slane %v2570_v61, %v15669_v22 }
 0x497   : > { %v7869_v59 = vsel %vm7868_vm7, %v15688_v28, %v7866_v6  ;;  %v7386_v31 = vrot.slane %v7385_v63, 1  ;;  %v6547_v46 = vadd.f32 %v6075_v21, %v5011_v51  ;;  %v6079_v43 = vmul.f32 -0.5, %v9584_v57 }
 0x498   : > { %v7872_v20 = vsel %vm7871_vm14, %v7870_v33, %v7869_v59  ;;  %v7390_v8 = vrot.slane %v7389_v17, 4  ;;  %9593 = vrcp.f32 %v4724_v45  ;;  %v6082_v42 = vand.u32 2147483647, %v9584_v57  ;;  %v9588_v19 = vpop.eup %9587  ;;  %v9993_v33 = vld [vmem:[%s10457_s19] sm:$0xff] }
 0x499   : > { %v7875_v26 = vsel %vm7874_vm6, %v7873_v13, %v7872_v20  ;;  %v7387_v36 = vadd.f32 %v7386_v31, %v7385_v63  ;;  %v6643_v60 = vsel %vm5107_vm12, %v13356_v53, %v6547_v46  ;;  %9595 = vpow2.f32 %v5543_v52  ;;  %v13611_v52 = vpop.f32.mrb[126].mxu1 }
 0x49a   : > { %v7878_v23 = vsel %vm7877_vm11, %v7876_v58, %v7875_v26  ;;  %v7391_v5 = vadd.f32 %v7390_v8, %v7389_v17  ;;  %v6739_v13 = vmul.f32 %v9588_v19, %v6643_v60  ;;  %v3009_v45 = vrot.slane %v2570_v61, %v15666_v14 }
 0x49b   : > { %v13603_v51 = vadd.f32 %v9993_v33, %v7878_v23  ;;  %v7689_v15 = vmul.f32 %v13467_v49, %v7387_v36  ;;  %v6080_v11 = vadd.f32 1.0, %v6079_v43  ;;  %v5545_v29 = vmul.f32 1.442695, %v5398_v39  ;;  %v13620_v39 = vpop.f32.mrb[127].mxu1 }
 0x49c   : > { %v8754_v58 = vcombine.low %v13517_v0, %v13587_v50  ;;  %v9590_v54 = vpop.eup %9589  ;;  %v7392_v18 = vrot.slane %v7391_v5, 2  ;;  %v5012_v53 = vmax.f32 %v13488_v48, 0.0  ;;  %vm13614_vm15 = vcmp.lt.f32.partialorder %v6082_v42, 0.0004427343 }
 0x49d   : > { %v8017_v32 = vand.u32 2147483647, %v13603_v51  ;;  %v7760_v2 = vadd.f32 %v13480_v16, %v7689_v15  ;;  %9597 = vpow2.f32 %v13558_v4  ;;  %v8755_v63 = vcombine.low %v13521_v55, %v3009_v45 }
 0x49e   : > { %v4125_v61 = vadd.f32 %v8754_v58, %v13315_v30  ;;  %v7393_v6 = vadd.f32 %v7392_v18, %v7391_v5  ;;  %9599 = vpow2.f32 %v5545_v29  ;;  %v6081_v28 = vmul.f32 %v9584_v57, %v6080_v11 }
 0x49f   : > { %v8025_v0 = vsub.f32 0.0, %v8017_v32  ;;  %v9592_v25 = vpop.eup %9591  ;;  %v7917_v38 = vrot.slane %v7760_v2, 2  ;;  %v3305_v17 = vcombine.high %v13587_v50, %v3009_v45  ;;  %v13625_v4 = vadd.f32 %v8755_v63, %v13325_v44 }
 0x4a0   : > { %v8866_v59 = vmul.f32 -1.442695, %v4125_v61  ;;  %v7394_v20 = vrot.slane %v7393_v6, 1  ;;  %v6078_v31 = vmul.f32 0.6931472, %v9592_v25  ;;  %v6931_v46 = vcombine.high %v6739_v13, %v6739_v13 }
 0x4a1   : > { %v8033_v21 = vmul.f32 1.442695, %v8025_v0  ;;  %v7918_v30 = vsel %vm7874_vm6, %v7917_v38, %v13496_v12  ;;  %v8756_v43 = vcombine.low %v3305_v17, %v13587_v50  ;;  %v3304_v55 = vcombine.low %v13587_v50, %v3009_v45 }
 0x4a2   : > { %v9594_v26 = vpop.eup %9593  ;;  %v7395_v57 = vadd.f32 %v7394_v20, %v7393_v6  ;;  %v6084_v8 = vsel %vm13614_vm15, %v6081_v28, %v6078_v31  ;;  %vm5108_vm0 = vcmp.ne.f32.partialorder %v13488_v48, %v13488_v48  ;;  %v5303_v19 = vand.u32 2147483647, %v13625_v4  ;;  %v15691_v6 = vld [vmem:[#allocation26_spill] sm:$0xff] }
 0x4a3   : > { %9601 = vpow2.f32 %v8033_v21  ;;  %v13633_v42 = vpop.eup %9595  ;;  %v6548_v44 = vadd.f32 %v6084_v8, %v5012_v53  ;;  %v4131_v12 = vadd.f32 %v8756_v43, %v13358_v56  ;;  %v4725_v36 = vadd.f32 1.0, %v9590_v54 }
 0x4a4   : > { %v7690_v23 = vmul.f32 %v13467_v49, %v7395_v57  ;;  %v6085_v50 = vadd.f32 1.0, %v13633_v42  ;;  %9603 = vpow2.f32 %v8866_v59  ;;  %v7043_v60 = vcombine.low %v6739_v13, %v6931_v46 }
 0x4a5   : > { %v6644_v33 = vsel %vm5108_vm0, %v13488_v48, %v6548_v44  ;;  %v5399_v5 = vsub.f32 0.0, %v5303_v19  ;;  %v8757_v15 = vcombine.high %v3009_v45, %v3304_v55  ;;  %v6088_v56 = vmul.f32 -0.5, %v13633_v42 }
 0x4a6   : > { %v7761_v11 = vadd.f32 %v13480_v16, %v7690_v23  ;;  %v13643_v29 = vmul.f32 %v9594_v26, %v6644_v33  ;;  %9605 = vlog2.f32 %v6085_v50  ;;  %v8867_v13 = vmul.f32 -1.442695, %v4131_v12 }
 0x4a7   : > { %v9598_v58 = vpop.eup %9597  ;;  %v5547_v32 = vmul.f32 1.442695, %v5399_v5  ;;  %v13647_v54 = vadd.f32 %v8757_v15, %v13364_v34  ;;  %9607 = vrcp.f32 %v4725_v36  ;;  %v5013_v2 = vmax.f32 %v13531_v62, 0.0  ;;  %v9994_v34 = vld [vmem:[%s10457_s19 + $0x18] sm:$0xff] }
 0x4a8   : > { %v9600_v18 = vpop.eup %9599  ;;  %v7919_v53 = vrot.slane %v7761_v11, 1  ;;  %v7396_v48 = vsel %vm7139_vm3, %v13643_v29, 0.0  ;;  %v4726_v0 = vadd.f32 1.0, %v9598_v58  ;;  %v13655_v63 = vrot.slane %v15691_v6, %v15669_v22 }
 0x4a9   : > { %v7397_v45 = vadd.f32 %v7396_v48, %v7043_v60  ;;  %v6094_v9 = vadd.f32 1.0, %v9600_v18  ;;  %9609 = vpow2.f32 %v5547_v32  ;;  %v6089_v28 = vadd.f32 1.0, %v6088_v56 }
 0x4aa   : > { %v7920_v61 = vsel %vm7877_vm11, %v7919_v53, %v7918_v30  ;;  %v6097_v17 = vmul.f32 -0.5, %v9600_v18  ;;  %v5304_v21 = vand.u32 2147483647, %v13647_v54  ;;  %v4137_v20 = vadd.f32 %v13394_v41, %v13655_v63 }
 0x4ab   : > { %v13658_v25 = vadd.f32 %v9994_v34, %v7920_v61  ;;  %v7398_v38 = vrot.slane %v7397_v45, 4  ;;  %9611 = vlog2.f32 %v6094_v9  ;;  %v7993_v31 = vmax.f32 %v13603_v51, 0.0 }
 0x4ac   : > { %9613 = vpow2.f32 %v8867_v13  ;;  %vm5109_vm2 = vcmp.ne.f32.partialorder %v13531_v62, %v13531_v62  ;;  %v5014_v46 = vmax.f32 %v13528_v47, 0.0  ;;  %v6091_v57 = vand.u32 2147483647, %v13633_v42 }
 0x4ad   : > { %v9602_v59 = vpop.eup %9601  ;;  %v8020_v55 = vand.u32 2147483647, %v13658_v25  ;;  %v7399_v26 = vadd.f32 %v7398_v38, %v7397_v45  ;;  %9615 = vrcp.f32 %v4726_v0  ;;  %v6090_v8 = vmul.f32 %v13633_v42, %v6089_v28 }
 0x4ae   : > { %v8049_v30 = vadd.f32 1.0, %v9602_v59  ;;  %v9604_v43 = vpop.eup %9603  ;;  %v6100_v44 = vand.u32 2147483647, %v9600_v18  ;;  %v5400_v41 = vsub.f32 0.0, %v5304_v21  ;;  %v8052_v12 = vmul.f32 -0.5, %v9602_v59 }
 0x4af   : > { %v8028_v23 = vsub.f32 0.0, %v8020_v55  ;;  %v7400_v36 = vrot.slane %v7399_v26, 2  ;;  %v6098_v50 = vadd.f32 1.0, %v6097_v17  ;;  %v4727_v33 = vadd.f32 1.0, %v9604_v43 }
 0x4b0   : > { %9617 = vlog2.f32 %v8049_v30  ;;  %v9606_v19 = vpop.eup %9605  ;;  %v5549_v5 = vmul.f32 1.442695, %v5400_v41  ;;  %v3017_v15 = vrot.slane %v15691_v6, %v15666_v14  ;;  %vm6092_vm4 = vcmp.lt.f32.partialorder %v6091_v57, 0.0004427343 }
 0x4b1   : > { %v6087_v60 = vmul.f32 0.6931472, %v9606_v19  ;;  %v8039_v11 = vmul.f32 1.442695, %v8028_v23  ;;  %v7401_v58 = vadd.f32 %v7400_v36, %v7399_v26  ;;  %vm5110_vm8 = vcmp.ne.f32.partialorder %v13528_v47, %v13528_v47  ;;  %v9608_v56 = vpop.eup %9607 }
 0x4b2   : > { %v5015_v42 = vmax.f32 %v13625_v4, 0.0  ;;  %v8055_v32 = vand.u32 2147483647, %v9602_v59  ;;  %9619 = vpow2.f32 %v5549_v5  ;;  %v13676_v48 = vadd.f32 %v13401_v24, %v3017_v15 }
 0x4b3   : > { %v6093_v53 = vsel %vm6092_vm4, %v6090_v8, %v6087_v60  ;;  %v13678_v13 = vpop.eup %9609  ;;  %v8053_v45 = vadd.f32 1.0, %v8052_v12  ;;  %9621 = vpow2.f32 %v8039_v11  ;;  %v6932_v9 = vcombine.high %v13643_v29, %v13643_v29 }
 0x4b4   : > { %v6549_v61 = vadd.f32 %v6093_v53, %v5013_v2  ;;  %v6099_v34 = vmul.f32 %v9600_v18, %v6098_v50  ;;  %vm13682_vm9 = vcmp.lt.f32.partialorder %v6100_v44, 0.0004427343  ;;  %9623 = vrcp.f32 %v4727_v33  ;;  %v15694_v18 = vld [vmem:[#allocation28_spill] sm:$0xff] }
 0x4b5   : > { %v9612_v0 = vpop.eup %9611  ;;  %v6103_v28 = vadd.f32 1.0, %v13678_v13  ;;  %vm8001_vm10 = vcmp.ne.f32.partialorder %v13603_v51, %v13603_v51  ;;  %v7402_v24 = vrot.slane %v7401_v58, 1  ;;  %v13695_v21 = vrot.slane %v15694_v18, %v15669_v22 }
 0x4b6   : > { %v9614_v17 = vpop.eup %9613  ;;  %v6645_v29 = vsel %vm5109_vm2, %v13531_v62, %v6549_v61  ;;  %v6096_v2 = vmul.f32 0.6931472, %v9612_v0  ;;  %vm13697_vm12 = vcmp.lt.f32.partialorder %v8055_v32, 0.0004427343  ;;  %v13703_v55 = vrot.slane %v15694_v18, %v15666_v14 }
 0x4b7   : > { %v6741_v43 = vmul.f32 %v9608_v56, %v6645_v29  ;;  %9625 = vlog2.f32 %v6103_v28  ;;  %v9616_v26 = vpop.eup %9615  ;;  %v8054_v57 = vmul.f32 %v9602_v59, %v8053_v45  ;;  %v8868_v8 = vmul.f32 -1.442695, %v4137_v20 }
 0x4b8   : > { %v6102_v62 = vsel %vm13682_vm9, %v6099_v34, %v6096_v2  ;;  %v5305_v44 = vand.u32 2147483647, %v13676_v48  ;;  %v4728_v36 = vadd.f32 1.0, %v9614_v17  ;;  %v7403_v60 = vadd.f32 %v7402_v24, %v7401_v58 }
 0x4b9   : > { %v6933_v19 = vcombine.high %v6741_v43, %v6741_v43  ;;  %v7044_v12 = vcombine.low %v6932_v9, %v6741_v43  ;;  %v6550_v23 = vadd.f32 %v6102_v62, %v5014_v46  ;;  %v6106_v33 = vmul.f32 -0.5, %v13678_v13 }
 0x4ba   : > { %v9618_v41 = vpop.eup %9617  ;;  %v8758_v5 = vcombine.low %v13655_v63, %v13695_v21  ;;  %v5401_v11 = vsub.f32 0.0, %v5305_v44  ;;  %v8759_v56 = vcombine.low %v3017_v15, %v13703_v55  ;;  %9627 = vpow2.f32 %v8868_v8 }
 0x4bb   : > { %v8051_v50 = vmul.f32 0.6931472, %v9618_v41  ;;  %v7404_v59 = vsel %vm7139_vm3, %v6933_v19, 0.0  ;;  %v6646_v20 = vsel %vm5110_vm8, %v13528_v47, %v6550_v23  ;;  %v6109_v45 = vand.u32 2147483647, %v13678_v13 }
 0x4bc   : > { %v7405_v32 = vadd.f32 %v7404_v59, %v7044_v12  ;;  %v6742_v58 = vmul.f32 %v9616_v26, %v6646_v20  ;;  %v13719_v53 = vpop.eup %9619  ;;  %v4143_v9 = vadd.f32 %v8758_v5, %v13411_v37  ;;  %v13726_v47 = vadd.f32 %v8759_v56, %v13416_v7 }
 0x4bd   : > { %v8057_v46 = vsel %vm13697_vm12, %v8054_v57, %v8051_v50  ;;  %v13728_v15 = vpop.eup %9621  ;;  %v6107_v0 = vadd.f32 1.0, %v6106_v33  ;;  %9629 = vrcp.f32 %v4728_v36  ;;  %v6112_v34 = vadd.f32 1.0, %v13719_v53 }
 0x4be   : > { %v8121_v63 = vadd.f32 %v8057_v46, %v7993_v31  ;;  %v7406_v61 = vrot.slane %v7405_v32, 4  ;;  %v9624_v38 = vpop.eup %9623  ;;  %v8076_v28 = vadd.f32 1.0, %v13728_v15  ;;  %v7691_v37 = vmul.f32 %v13467_v49, %v7403_v60 }
 0x4bf   : > { %v5551_v17 = vmul.f32 1.442695, %v5401_v11  ;;  %vm5111_vm15 = vcmp.ne.f32.partialorder %v13625_v4, %v13625_v4  ;;  %9631 = vlog2.f32 %v6112_v34  ;;  %v6115_v24 = vmul.f32 -0.5, %v13719_v53 }
 0x4c0   : > { %v8129_v31 = vsel %vm8001_vm10, %v13603_v51, %v8121_v63  ;;  %v7407_v7 = vadd.f32 %v7406_v61, %v7405_v32  ;;  %v7996_v2 = vmax.f32 %v13658_v25, 0.0  ;;  %9633 = vlog2.f32 %v8076_v28 }
 0x4c1   : > { %8137 = vst [vmem:[%s12773_s26] sm:$0xff] %v8129_v31  ;;  %v9626_v29 = vpop.eup %9625  ;;  %v5016_v30 = vmax.f32 %v13647_v54, 0.0  ;;  %v3309_v51 = vcombine.high %v13695_v21, %v13703_v55  ;;  %v6934_v26 = vcombine.high %v6742_v58, %v6742_v58  ;;  %v6108_v62 = vmul.f32 %v13678_v13, %v6107_v0 }
 0x4c2   : > { %v7408_v43 = vrot.slane %v7407_v7, 2  ;;  %v6105_v57 = vmul.f32 0.6931472, %v9626_v29  ;;  %v8079_v8 = vmul.f32 -0.5, %v13728_v15  ;;  %v7762_v44 = vadd.f32 %v13480_v16, %v7691_v37 }
 0x4c3   : > { %vm6110_vm0 = vcmp.lt.f32.partialorder %v6109_v45, 0.0004427343  ;;  %9635 = vpow2.f32 %v5551_v17  ;;  %v8082_v41 = vand.u32 2147483647, %v13728_v15  ;;  %v6116_v23 = vadd.f32 1.0, %v6115_v24 }
 0x4c4   : > { %v7409_v19 = vadd.f32 %v7408_v43, %v7407_v7  ;;  %v6111_v12 = vsel %vm6110_vm0, %v6108_v62, %v6105_v57  ;;  %v8869_v50 = vmul.f32 -1.442695, %v4143_v9  ;;  %v5306_v60 = vand.u32 2147483647, %v13726_v47  ;;  %v9628_v13 = vpop.eup %9627  ;;  %v4172_v43 = vpop.f32.mrb[128].mxu1 }
 0x4c5   : > { %v6551_v36 = vadd.f32 %v6111_v12, %v5015_v42  ;;  %v8760_v33 = vcombine.low %v3309_v51, %v13695_v21  ;;  %v7045_v59 = vcombine.low %v6742_v58, %v6934_v26  ;;  %v3308_v20 = vcombine.low %v13695_v21, %v13703_v55 }
 0x4c6   : > { %v7410_v5 = vrot.slane %v7409_v19, 1  ;;  %v2569_v11 = vcombine.high %v15691_v6, %v15691_v6  ;;  %v8080_v56 = vadd.f32 1.0, %v8079_v8  ;;  %vm5112_vm2 = vcmp.ne.f32.partialorder %v13647_v54, %v13647_v54 }
 0x4c7   : > { %v6647_v42 = vsel %vm5111_vm15, %v13625_v4, %v6551_v36  ;;  %v5402_v46 = vsub.f32 0.0, %v5306_v60  ;;  %v4149_v32 = vadd.f32 %v8760_v33, %v13507_v10  ;;  %v9630_v63 = vpop.eup %9629  ;;  %vm8004_vm4 = vcmp.ne.f32.partialorder %v13658_v25, %v13658_v25 }
 0x4c8   : > { %v7411_v21 = vadd.f32 %v7410_v5, %v7409_v19  ;;  %v6743_v58 = vmul.f32 %v9624_v38, %v6647_v42  ;;  %v6118_v6 = vand.u32 2147483647, %v13719_v53  ;;  %v8761_v45 = vcombine.high %v13703_v55, %v3308_v20  ;;  %v15697_v42 = vld [vmem:[#allocation29_spill] sm:$0xff] }
 0x4c9   : > { %v6117_v9 = vmul.f32 %v13719_v53, %v6116_v23  ;;  %9637 = vpow2.f32 %v8869_v50  ;;  %v5553_v4 = vmul.f32 1.442695, %v5402_v46  ;;  %v13770_v61 = vrot.slane %v2569_v11, %v15669_v22  ;;  %v9632_v0 = vpop.eup %9631 }
 0x4ca   : > { %v7692_v10 = vmul.f32 %v13467_v49, %v7411_v21  ;;  %v7412_v34 = vsel %vm7139_vm3, %v6743_v58, 0.0  ;;  %v13775_v31 = vadd.f32 %v8761_v45, %v13512_v40  ;;  %v2571_v38 = vcombine.high %v15694_v18, %v15694_v18  ;;  %v9634_v28 = vpop.eup %9633 }
 0x4cb   : > { %v7413_v55 = vadd.f32 %v7412_v34, %v7045_v59  ;;  %v6114_v37 = vmul.f32 0.6931472, %v9632_v0  ;;  %9639 = vpow2.f32 %v5553_v4  ;;  %v4155_v53 = vadd.f32 %v13552_v35, %v13770_v61  ;;  %v13787_v35 = vpop.f32.mrb[129].mxu1 }
 0x4cc   : > { %v8078_v17 = vmul.f32 0.6931472, %v9634_v28  ;;  %v8081_v7 = vmul.f32 %v13728_v15, %v8080_v56  ;;  %v7763_v24 = vadd.f32 %v13480_v16, %v7692_v10  ;;  %vm6119_vm8 = vcmp.lt.f32.partialorder %v6118_v6, 0.0004427343  ;;  %v13794_v23 = vpop.f32.mrb[130].mxu1 }
 0x4cd   : > { %v13783_v29 = vpop.eup %9635  ;;  %vm8083_vm9 = vcmp.lt.f32.partialorder %v8082_v41, 0.0004427343  ;;  %v7414_v40 = vrot.slane %v7413_v55, 4  ;;  %v6120_v51 = vsel %vm6119_vm8, %v6117_v9, %v6114_v37  ;;  %v5307_v18 = vand.u32 2147483647, %v13775_v31  ;;  %v13804_v60 = vpop.f32.mrb[131].mxu1 }
 0x4ce   : > { %v8084_v26 = vsel %vm8083_vm9, %v8081_v7, %v8078_v17  ;;  %v7921_v57 = vrot.slane %v7763_v24, 7  ;;  %v6552_v62 = vadd.f32 %v6120_v51, %v5016_v30  ;;  %v6121_v8 = vadd.f32 1.0, %v13783_v29 }
 0x4cf   : > { %v8124_v15 = vadd.f32 %v8084_v26, %v7996_v2  ;;  %v7415_v19 = vadd.f32 %v7414_v40, %v7413_v55  ;;  %v8870_v12 = vmul.f32 -1.442695, %v4149_v32  ;;  %v13792_v41 = vrot.slane %v2571_v38, %v15669_v22 }
 0x4d0   : > { %v13797_v36 = vsel %vm7859_vm13, %v7921_v57, %v7762_v44  ;;  %v6648_v30 = vsel %vm5112_vm2, %v13647_v54, %v6552_v62  ;;  %9641 = vlog2.f32 %v6121_v8  ;;  %v6124_v50 = vmul.f32 -0.5, %v13783_v29  ;;  %v13810_v44 = vpop.f32.mrb[132].mxu1 }
 0x4d1   : > { %v8132_v2 = vsel %vm8004_vm4, %v13658_v25, %v8124_v15  ;;  %v6935_v33 = vcombine.high %v6743_v58, %v6743_v58  ;;  %v7416_v5 = vrot.slane %v7415_v19, 2  ;;  %v6744_v59 = vmul.f32 %v9630_v63, %v6648_v30  ;;  %v13818_v32 = vpop.f32.mrb[133].mxu1 }
 0x4d2   : > { %8140 = vst [vmem:[%s12773_s26 + $0x18] sm:$0xff] %v8132_v2  ;;  %v4729_v20 = vadd.f32 1.0, %v9628_v13  ;;  %v5403_v56 = vsub.f32 0.0, %v5307_v18  ;;  %v3033_v54 = vrot.slane %v2569_v11, %v15666_v14  ;;  %v13816_v46 = vrot.slane %v15697_v42, %v15669_v22  ;;  %v13820_v58 = vpop.f32.mrb[134].mxu1 }
 0x4d3   : > { %v9638_v21 = vpop.eup %9637  ;;  %v7417_v6 = vadd.f32 %v7416_v5, %v7415_v19  ;;  %v6936_v45 = vcombine.high %v6744_v59, %v6744_v59  ;;  %v7046_v25 = vcombine.low %v6935_v33, %v6744_v59  ;;  %9643 = vpow2.f32 %v8870_v12  ;;  %v13827_v4 = vpop.f32.mrb[135].mxu1 }
 0x4d4   : > { %v6125_v63 = vadd.f32 1.0, %v6124_v50  ;;  %v5555_v9 = vmul.f32 1.442695, %v5403_v56  ;;  %v13823_v13 = vadd.f32 %v13560_v1, %v3033_v54  ;;  %v8762_v11 = vcombine.low %v13770_v61, %v13792_v41  ;;  %v13835_v37 = vpop.f32.mrb[136].mxu1 }
 0x4d5   : > { %v13829_v0 = vpop.eup %9639  ;;  %v7418_v10 = vrot.slane %v7417_v6, 1  ;;  %v7420_v34 = vsel %vm7139_vm3, %v6936_v45, 0.0  ;;  %v8871_v28 = vmul.f32 -1.442695, %v4155_v53  ;;  %v13833_v55 = vadd.f32 %v4172_v43, %v13816_v46  ;;  %v13841_v61 = vpop.f32.mrb[137].mxu1 }
 0x4d6   : > { %v7421_v17 = vadd.f32 %v7420_v34, %v7046_v25  ;;  %9645 = vrcp.f32 %v4729_v20  ;;  %v6130_v1 = vadd.f32 1.0, %v13829_v0  ;;  %v13839_v7 = vrot.slane %v2571_v38, %v15666_v14  ;;  %v13846_v53 = vpop.f32.mrb[138].mxu1 }
 0x4d7   : > { %v7419_v24 = vadd.f32 %v7418_v10, %v7417_v6  ;;  %v5017_v40 = vmax.f32 %v13676_v48, 0.0  ;;  %vm5113_vm10 = vcmp.ne.f32.partialorder %v13676_v48, %v13676_v48  ;;  %9647 = vpow2.f32 %v5555_v9  ;;  %v13849_v26 = vpop.f32.mrb[139].mxu1 }
 0x4d8   : > { %v7422_v51 = vrot.slane %v7421_v17, 4  ;;  %v6127_v18 = vand.u32 2147483647, %v13783_v29  ;;  %v4730_v43 = vadd.f32 1.0, %v9638_v21  ;;  %9649 = vlog2.f32 %v6130_v1 }
 0x4d9   : > { %v7693_v38 = vmul.f32 %v13467_v49, %v7419_v24  ;;  %v6126_v57 = vmul.f32 %v13783_v29, %v6125_v63  ;;  %9651 = vpow2.f32 %v8871_v28  ;;  %v5308_v62 = vand.u32 2147483647, %v13823_v13 }
 0x4da   : > { %v9642_v8 = vpop.eup %9641  ;;  %v7423_v15 = vadd.f32 %v7422_v51, %v7421_v17  ;;  %v6133_v19 = vmul.f32 -0.5, %v13829_v0  ;;  %v4161_v12 = vadd.f32 %v8762_v11, %v13570_v27  ;;  %v8763_v30 = vcombine.low %v3033_v54, %v13839_v7 }
 0x4db   : > { %v7764_v50 = vadd.f32 %v13480_v16, %v7693_v38  ;;  %v6123_v2 = vmul.f32 0.6931472, %v9642_v8  ;;  %v5404_v33 = vsub.f32 0.0, %v5308_v62  ;;  %v3313_v5 = vcombine.high %v13792_v41, %v13839_v7 }
 0x4dc   : > { %v7424_v59 = vrot.slane %v7423_v15, 2  ;;  %vm6128_vm12 = vcmp.lt.f32.partialorder %v6127_v18, 0.0004427343  ;;  %9653 = vrcp.f32 %v4730_v43  ;;  %v13861_v29 = vadd.f32 %v8763_v30, %v13572_v3 }
 0x4dd   : > { %v9644_v20 = vpop.eup %9643  ;;  %v7923_v56 = vrot.slane %v7764_v50, 6  ;;  %v6129_v21 = vsel %vm6128_vm12, %v6126_v57, %v6123_v2  ;;  %v6136_v27 = vand.u32 2147483647, %v13829_v0  ;;  %v5557_v6 = vmul.f32 1.442695, %v5404_v33  ;;  %v13891_v2 = vpop.f32.mrb[140].mxu1 }
 0x4de   : > { %v7425_v54 = vadd.f32 %v7424_v59, %v7423_v15  ;;  %v6553_v45 = vadd.f32 %v6129_v21, %v5017_v40  ;;  %v6134_v25 = vadd.f32 1.0, %v6133_v19  ;;  %v8764_v63 = vcombine.low %v3313_v5, %v13792_v41 }
 0x4df   : > { %v7924_v9 = vsel %vm7862_vm1, %v7923_v56, %v13797_v36  ;;  %9655 = vpow2.f32 %v5557_v6  ;;  %v8872_v11 = vmul.f32 -1.442695, %v4161_v12  ;;  %v3312_v3 = vcombine.low %v13792_v41, %v13839_v7 }
 0x4e0   : > { %v9646_v10 = vpop.eup %9645  ;;  %v7426_v34 = vrot.slane %v7425_v54, 1  ;;  %v6649_v28 = vsel %vm5113_vm10, %v13676_v48, %v6553_v45  ;;  %v5309_v17 = vand.u32 2147483647, %v13861_v29  ;;  %v4167_v1 = vadd.f32 %v8764_v63, %v13611_v52 }
 0x4e1   : > { %v13875_v24 = vpop.eup %9647  ;;  %v6745_v40 = vmul.f32 %v9646_v10, %v6649_v28  ;;  %v5018_v36 = vmax.f32 %v13726_v47, 0.0  ;;  %vm13878_vm15 = vcmp.lt.f32.partialorder %v6136_v27, 0.0004427343  ;;  %v4731_v43 = vadd.f32 1.0, %v9644_v20 }
 0x4e2   : > { %v9650_v51 = vpop.eup %9649  ;;  %v7427_v18 = vadd.f32 %v7426_v34, %v7425_v54  ;;  %v6139_v38 = vadd.f32 1.0, %v13875_v24  ;;  %v6135_v62 = vmul.f32 %v13829_v0, %v6134_v25  ;;  %9657 = vpow2.f32 %v8872_v11  ;;  %v15700_v11 = vld [vmem:[#allocation31_spill] sm:$0xff] }
 0x4e3   : > { %v9652_v57 = vpop.eup %9651  ;;  %v6132_v48 = vmul.f32 0.6931472, %v9650_v51  ;;  %v5405_v52 = vsub.f32 0.0, %v5309_v17  ;;  %v6937_v15 = vcombine.high %v6745_v40, %v6745_v40  ;;  %v8765_v19 = vcombine.high %v13839_v7, %v3312_v3  ;;  %v13897_v7 = vpop.f32.mrb[141].mxu1 }
 0x4e4   : > { %v7694_v8 = vmul.f32 %v13467_v49, %v7427_v18  ;;  %9659 = vlog2.f32 %v6139_v38  ;;  %vm5114_vm0 = vcmp.ne.f32.partialorder %v13726_v47, %v13726_v47  ;;  %v5019_v30 = vmax.f32 %v13775_v31, 0.0  ;;  %v13901_v21 = vpop.f32.mrb[142].mxu1 }
 0x4e5   : > { %v6138_v12 = vsel %vm13878_vm15, %v6135_v62, %v6132_v48  ;;  %v5559_v50 = vmul.f32 1.442695, %v5405_v52  ;;  %9661 = vrcp.f32 %v4731_v43  ;;  %v13895_v49 = vadd.f32 %v8765_v19, %v13620_v39  ;;  %v13909_v54 = vpop.f32.mrb[143].mxu1 }
 0x4e6   : > { %v9654_v0 = vpop.eup %9653  ;;  %v7765_v33 = vadd.f32 %v13480_v16, %v7694_v8  ;;  %v6554_v5 = vadd.f32 %v6138_v12, %v5018_v36  ;;  %v6142_v59 = vmul.f32 -0.5, %v13875_v24  ;;  %v4732_v20 = vadd.f32 1.0, %v9652_v57 }
 0x4e7   : > { %v5020_v56 = vmax.f32 %v13823_v13, 0.0  ;;  %9663 = vpow2.f32 %v5559_v50  ;;  %v7047_v6 = vcombine.low %v6745_v40, %v6937_v15  ;;  %v3049_v39 = vrot.slane %v15697_v42, %v15666_v14 }
 0x4e8   : > { %v7925_v27 = vrot.slane %v7765_v33, 5  ;;  %v6650_v16 = vsel %vm5114_vm0, %v13726_v47, %v6554_v5  ;;  %v5310_v63 = vand.u32 2147483647, %v13895_v49  ;;  %v13918_v3 = vrot.slane %v15700_v11, %v15669_v22 }
 0x4e9   : > { %v13911_v45 = vpop.eup %9655  ;;  %v13913_v25 = vmul.f32 %v9654_v0, %v6650_v16  ;;  %v3057_v10 = vrot.slane %v15700_v11, %v15666_v14  ;;  %v6145_v34 = vand.u32 2147483647, %v13875_v24  ;;  %v8873_v17 = vmul.f32 -1.442695, %v4167_v1 }
 0x4ea   : > { %v13923_v47 = vsel %vm7865_vm5, %v7925_v27, %v7924_v9  ;;  %v6148_v28 = vadd.f32 1.0, %v13911_v45  ;;  %vm5115_vm2 = vcmp.ne.f32.partialorder %v13775_v31, %v13775_v31  ;;  %v6143_v36 = vadd.f32 1.0, %v6142_v59 }
 0x4eb   : > { %v7428_v40 = vsel %vm7139_vm3, %v13913_v25, 0.0  ;;  %9665 = vrcp.f32 %v4732_v20  ;;  %v5406_v51 = vsub.f32 0.0, %v5310_v63  ;;  %v6151_v41 = vmul.f32 -0.5, %v13911_v45 }
 0x4ec   : > { %v7429_v18 = vadd.f32 %v7428_v40, %v7047_v6  ;;  %9667 = vlog2.f32 %v6148_v28  ;;  %v5021_v9 = vmax.f32 %v13861_v29, 0.0  ;;  %v9658_v43 = vpop.eup %9657  ;;  %v13934_v57 = vadd.f32 %v13787_v35, %v3049_v39 }
 0x4ed   : > { %v5561_v38 = vmul.f32 1.442695, %v5406_v51  ;;  %v8766_v1 = vcombine.low %v13816_v46, %v13918_v3  ;;  %v8767_v48 = vcombine.low %v3049_v39, %v3057_v10  ;;  %vm13938_vm4 = vcmp.lt.f32.partialorder %v6145_v34, 0.0004427343 }
 0x4ee   : > { %v9660_v62 = vpop.eup %9659  ;;  %v7430_v52 = vrot.slane %v7429_v18, 4  ;;  %9669 = vpow2.f32 %v8873_v17  ;;  %v8874_v15 = vmul.f32 -1.442695, %v13833_v55  ;;  %v6144_v12 = vmul.f32 %v13875_v24, %v6143_v36 }
 0x4ef   : > { %v6141_v19 = vmul.f32 0.6931472, %v9660_v62  ;;  %v5022_v50 = vmax.f32 %v13895_v49, 0.0  ;;  %9671 = vpow2.f32 %v5561_v38  ;;  %v9662_v35 = vpop.eup %9661  ;;  %v4733_v33 = vadd.f32 1.0, %v9658_v43 }
 0x4f0   : > { %v7431_v0 = vadd.f32 %v7430_v52, %v7429_v18  ;;  %v5311_v46 = vand.u32 2147483647, %v13934_v57  ;;  %v4179_v5 = vadd.f32 %v8766_v1, %v13794_v23  ;;  %v6152_v27 = vadd.f32 1.0, %v6151_v41  ;;  %v13967_v41 = vpop.f32.mrb[144].mxu1 }
 0x4f1   : > { %v13947_v59 = vpop.eup %9663  ;;  %v6147_v20 = vsel %vm13938_vm4, %v6144_v12, %v6141_v19  ;;  %v13952_v55 = vadd.f32 %v8767_v48, %v13804_v60  ;;  %v3317_v24 = vcombine.high %v13918_v3, %v3057_v10  ;;  %v3316_v63 = vcombine.low %v13918_v3, %v3057_v10  ;;  %v13971_v62 = vpop.f32.mrb[145].mxu1 }
 0x4f2   : > { %v7432_v6 = vrot.slane %v7431_v0, 2  ;;  %v6555_v16 = vadd.f32 %v6147_v20, %v5019_v30  ;;  %v6157_v39 = vadd.f32 1.0, %v13947_v59  ;;  %vm5116_vm8 = vcmp.ne.f32.partialorder %v13823_v13, %v13823_v13 }
 0x4f3   : > { %v6154_v23 = vand.u32 2147483647, %v13911_v45  ;;  %9673 = vpow2.f32 %v8874_v15  ;;  %v5407_v34 = vsub.f32 0.0, %v5311_v46  ;;  %v8875_v28 = vmul.f32 -1.442695, %v4179_v5 }
 0x4f4   : > { %v6938_v60 = vcombine.high %v13913_v25, %v13913_v25  ;;  %v7433_v17 = vadd.f32 %v7432_v6, %v7431_v0  ;;  %v6651_v30 = vsel %vm5115_vm2, %v13775_v31, %v6555_v16  ;;  %9675 = vlog2.f32 %v6157_v39  ;;  %v13996_v16 = vld [vmem:[%s15334_s8] ss:$0 sm:$0xff] }
 0x4f5   : > { %v9666_v40 = vpop.eup %9665  ;;  %v6747_v36 = vmul.f32 %v9662_v35, %v6651_v30  ;;  %v6153_v51 = vmul.f32 %v13911_v45, %v6152_v27  ;;  %9677 = vrcp.f32 %v4733_v33  ;;  %v5563_v18 = vmul.f32 1.442695, %v5407_v34  ;;  %v13984_v33 = vld [vmem:[%s15333_s7] ss:$0 sm:$0xff] }
 0x4f6   : > { %v9668_v43 = vpop.eup %9667  ;;  %v7434_v38 = vrot.slane %v7433_v17, 1  ;;  %v6160_v1 = vmul.f32 -0.5, %v13947_v59  ;;  %v8768_v25 = vcombine.low %v3317_v24, %v13918_v3  ;;  %v8769_v48 = vcombine.high %v3057_v10, %v3316_v63 }
 0x4f7   : > { %v6939_v52 = vcombine.high %v6747_v36, %v6747_v36  ;;  %v7048_v31 = vcombine.low %v6938_v60, %v6747_v36  ;;  %v6150_v8 = vmul.f32 0.6931472, %v9668_v43  ;;  %9679 = vpow2.f32 %v8875_v28 }
 0x4f8   : > { %v9670_v15 = vpop.eup %9669  ;;  %v7435_v19 = vadd.f32 %v7434_v38, %v7433_v17  ;;  %vm6155_vm9 = vcmp.lt.f32.partialorder %v6154_v23, 0.0004427343  ;;  %9681 = vpow2.f32 %v5563_v18  ;;  %v5312_v45 = vand.u32 2147483647, %v13952_v55 }
 0x4f9   : > { %v13974_v12 = vpop.eup %9671  ;;  %v7436_v35 = vsel %vm7139_vm3, %v6939_v52, 0.0  ;;  %v6156_v0 = vsel %vm6155_vm9, %v6153_v51, %v6150_v8  ;;  %v4185_v3 = vadd.f32 %v8768_v25, %v13810_v44  ;;  %v13979_v10 = vadd.f32 %v8769_v48, %v13818_v32 }
 0x4fa   : > { %v7695_v46 = vmul.f32 %v13984_v33, %v7435_v19  ;;  %v7437_v5 = vadd.f32 %v7436_v35, %v7048_v31  ;;  %v6556_v20 = vadd.f32 %v6156_v0, %v5020_v56  ;;  %v6166_v27 = vadd.f32 1.0, %v13974_v12 }
 0x4fb   : > { %vm5117_vm10 = vcmp.ne.f32.partialorder %v13861_v29, %v13861_v29  ;;  %v6161_v44 = vadd.f32 1.0, %v6160_v1  ;;  %v6163_v32 = vand.u32 2147483647, %v13947_v59  ;;  %v5408_v24 = vsub.f32 0.0, %v5312_v45 }
 0x4fc   : > { %v8876_v6 = vmul.f32 -1.442695, %v4185_v3  ;;  %v7766_v39 = vadd.f32 %v13996_v16, %v7695_v46  ;;  %v7438_v63 = vrot.slane %v7437_v5, 4  ;;  %v6652_v56 = vsel %vm5116_vm8, %v13823_v13, %v6556_v20  ;;  %v14006_v13 = vpop.f32.mrb[146].mxu1 }
 0x4fd   : > { %9683 = vlog2.f32 %v6166_v27  ;;  %v9674_v23 = vpop.eup %9673  ;;  %v6748_v34 = vmul.f32 %v9666_v40, %v6652_v56  ;;  %v4734_v28 = vadd.f32 1.0, %v9670_v15  ;;  %v6169_v60 = vmul.f32 -0.5, %v13974_v12  ;;  %v14013_v31 = vpop.f32.mrb[147].mxu1 }
 0x4fe   : > { %v5565_v17 = vmul.f32 1.442695, %v5408_v24  ;;  %v9676_v30 = vpop.eup %9675  ;;  %v7927_v36 = vrot.slane %v7766_v39, 4  ;;  %v7439_v51 = vadd.f32 %v7438_v63, %v7437_v5  ;;  %v5023_v18 = vmax.f32 %v13934_v57, 0.0  ;;  %v14017_v45 = vpop.f32.mrb[148].mxu1 }
 0x4ff   : > { %9685 = vpow2.f32 %v8876_v6  ;;  %v9678_v43 = vpop.eup %9677  ;;  %v6940_v38 = vcombine.high %v6748_v34, %v6748_v34  ;;  %v6159_v1 = vmul.f32 0.6931472, %v9676_v30  ;;  %v6162_v25 = vmul.f32 %v13947_v59, %v6161_v44  ;;  %v14023_v5 = vpop.f32.mrb[149].mxu1 }
 0x500   : > { %9687 = vpow2.f32 %v5565_v17  ;;  %v14010_v40 = vsel %vm7868_vm7, %v7927_v36, %v13923_v47  ;;  %v7440_v48 = vrot.slane %v7439_v51, 2  ;;  %vm6164_vm12 = vcmp.lt.f32.partialorder %v6163_v32, 0.0004427343 }
 0x501   : > { %v5313_v52 = vand.u32 2147483647, %v13979_v10  ;;  %v9680_v8 = vpop.eup %9679  ;;  %v6165_v15 = vsel %vm6164_vm12, %v6162_v25, %v6159_v1  ;;  %9689 = vrcp.f32 %v4734_v28  ;;  %v6170_v19 = vadd.f32 1.0, %v6169_v60 }
 0x502   : > { %v2618_v59 = vcombine.high %v15697_v42, %v15697_v42  ;;  %v14019_v35 = vpop.eup %9681  ;;  %v7441_v0 = vadd.f32 %v7440_v48, %v7439_v51  ;;  %v6557_v47 = vadd.f32 %v6165_v15, %v5021_v9  ;;  %v4735_v3 = vadd.f32 1.0, %v9674_v23 }
 0x503   : > { %v5409_v46 = vsub.f32 0.0, %v5313_v52  ;;  %v7049_v20 = vcombine.low %v6748_v34, %v6940_v38  ;;  %vm5118_vm15 = vcmp.ne.f32.partialorder %v13895_v49, %v13895_v49  ;;  %v6172_v27 = vand.u32 2147483647, %v13974_v12 }
 0x504   : > { %v6175_v42 = vadd.f32 1.0, %v14019_v35  ;;  %v5024_v44 = vmax.f32 %v13952_v55, 0.0  ;;  %v7442_v32 = vrot.slane %v7441_v0, 1  ;;  %v6653_v9 = vsel %vm5117_vm10, %v13861_v29, %v6557_v47 }
 0x505   : > { %v5567_v24 = vmul.f32 1.442695, %v5409_v46  ;;  %v14035_v6 = vrot.slane %v2618_v59, %v15669_v22  ;;  %v6749_v39 = vmul.f32 %v9678_v43, %v6653_v9  ;;  %v6171_v63 = vmul.f32 %v13974_v12, %v6170_v19 }
 0x506   : > { %9691 = vlog2.f32 %v6175_v42  ;;  %v6178_v56 = vmul.f32 -0.5, %v14019_v35  ;;  %v7443_v34 = vadd.f32 %v7442_v32, %v7441_v0  ;;  %v14042_v60 = vrot.slane %v2618_v59, %v15666_v14 }
 0x507   : > { %v9684_v23 = vpop.eup %9683  ;;  %9693 = vpow2.f32 %v5567_v24  ;;  %v4191_v28 = vadd.f32 %v13820_v58, %v14035_v6  ;;  %v7444_v29 = vsel %vm7139_vm3, %v6749_v39, 0.0  ;;  %v4736_v30 = vadd.f32 1.0, %v9680_v8 }
 0x508   : > { %v6168_v17 = vmul.f32 0.6931472, %v9684_v23  ;;  %v2620_v36 = vcombine.high %v15700_v11, %v15700_v11  ;;  %v7696_v51 = vmul.f32 %v13984_v33, %v7443_v34  ;;  %v7445_v43 = vadd.f32 %v7444_v29, %v7049_v20  ;;  %v14080_v34 = vpop.f32.mrb[150].mxu1 }
 0x509   : > { %v9686_v12 = vpop.eup %9685  ;;  %vm6173_vm0 = vcmp.lt.f32.partialorder %v6172_v27, 0.0004427343  ;;  %v14050_v38 = vadd.f32 %v13827_v4, %v14042_v60  ;;  %9695 = vrcp.f32 %v4735_v3  ;;  %v6179_v25 = vadd.f32 1.0, %v6178_v56 }
 0x50a   : > { %v14052_v58 = vpop.eup %9687  ;;  %v6174_v1 = vsel %vm6173_vm0, %v6171_v63, %v6168_v17  ;;  %v6181_v48 = vand.u32 2147483647, %v14019_v35  ;;  %v7767_v52 = vadd.f32 %v13996_v16, %v7696_v51  ;;  %v7446_v8 = vrot.slane %v7445_v43, 4 }
 0x50b   : > { %v6558_v11 = vadd.f32 %v6174_v1, %v5022_v50  ;;  %v6184_v15 = vadd.f32 1.0, %v14052_v58  ;;  %v9690_v19 = vpop.eup %9689  ;;  %9697 = vrcp.f32 %v4736_v30  ;;  %v4737_v59 = vadd.f32 1.0, %v9686_v12  ;;  %v14086_v30 = vpop.f32.mrb[151].mxu1 }
 0x50c   : > { %v14060_v4 = vrot.slane %v2620_v36, %v15669_v22  ;;  %v14063_v0 = vrot.slane %v2620_v36, %v15666_v14  ;;  %v7929_v47 = vrot.slane %v7767_v52, 3  ;;  %v7447_v3 = vadd.f32 %v7446_v8, %v7445_v43 }
 0x50d   : > { %v6654_v46 = vsel %vm5118_vm15, %v13895_v49, %v6558_v11  ;;  %vm5119_vm2 = vcmp.ne.f32.partialorder %v13934_v57, %v13934_v57  ;;  %9699 = vlog2.f32 %v6184_v15  ;;  %v6941_v50 = vcombine.high %v6749_v39, %v6749_v39 }
 0x50e   : > { %v6750_v20 = vmul.f32 %v9690_v19, %v6654_v46  ;;  %v6180_v27 = vmul.f32 %v14019_v35, %v6179_v25  ;;  %v8877_v42 = vmul.f32 -1.442695, %v4191_v28  ;;  %v14074_v32 = vsel %vm7871_vm14, %v7929_v47, %v14010_v40 }
 0x50f   : > { %v7448_v9 = vrot.slane %v7447_v3, 2  ;;  %v6187_v24 = vmul.f32 -0.5, %v14052_v58  ;;  %v5314_v63 = vand.u32 2147483647, %v14050_v38  ;;  %9701 = vrcp.f32 %v4737_v59 }
 0x510   : > { %v9692_v56 = vpop.eup %9691  ;;  %v6942_v49 = vcombine.high %v6750_v20, %v6750_v20  ;;  %v7050_v23 = vcombine.low %v6941_v50, %v6750_v20  ;;  %v8770_v39 = vcombine.low %v14035_v6, %v14060_v4  ;;  %v8771_v17 = vcombine.low %v14042_v60, %v14063_v0 }
 0x511   : > { %v14082_v35 = vpop.eup %9693  ;;  %v7449_v28 = vadd.f32 %v7448_v9, %v7447_v3  ;;  %v6177_v29 = vmul.f32 0.6931472, %v9692_v56  ;;  %v5410_v40 = vsub.f32 0.0, %v5314_v63  ;;  %vm6182_vm4 = vcmp.lt.f32.partialorder %v6181_v48, 0.0004427343 }
 0x512   : > { %v7452_v36 = vsel %vm7139_vm3, %v6942_v49, 0.0  ;;  %v6193_v12 = vadd.f32 1.0, %v14082_v35  ;;  %9703 = vpow2.f32 %v8877_v42  ;;  %vm5120_vm8 = vcmp.ne.f32.partialorder %v13952_v55, %v13952_v55 }
 0x513   : > { %v7450_v51 = vrot.slane %v7449_v28, 1  ;;  %v7453_v6 = vadd.f32 %v7452_v36, %v7050_v23  ;;  %v6183_v43 = vsel %vm6182_vm4, %v6180_v27, %v6177_v29  ;;  %v5569_v1 = vmul.f32 1.442695, %v5410_v40  ;;  %v9696_v25 = vpop.eup %9695 }
 0x514   : > { %v6559_v52 = vadd.f32 %v6183_v43, %v5023_v18  ;;  %v6188_v60 = vadd.f32 1.0, %v6187_v24  ;;  %v6190_v8 = vand.u32 2147483647, %v14052_v58  ;;  %9705 = vlog2.f32 %v6193_v12 }
 0x515   : > { %v7451_v11 = vadd.f32 %v7450_v51, %v7449_v28  ;;  %v7454_v48 = vrot.slane %v7453_v6, 4  ;;  %9707 = vpow2.f32 %v5569_v1  ;;  %v4197_v15 = vadd.f32 %v8770_v39, %v13835_v37  ;;  %v9698_v19 = vpop.eup %9697 }
 0x516   : > { %v6655_v59 = vsel %vm5119_vm2, %v13934_v57, %v6559_v52  ;;  %v6196_v18 = vmul.f32 -0.5, %v14082_v35  ;;  %v14102_v47 = vadd.f32 %v8771_v17, %v13841_v61  ;;  %v3321_v3 = vcombine.high %v14060_v4, %v14063_v0 }
 0x517   : > { %v9700_v46 = vpop.eup %9699  ;;  %v7697_v50 = vmul.f32 %v13984_v33, %v7451_v11  ;;  %v7455_v20 = vadd.f32 %v7454_v48, %v7453_v6  ;;  %v6751_v27 = vmul.f32 %v9696_v25, %v6655_v59  ;;  %v8878_v37 = vmul.f32 -1.442695, %v4197_v15 }
 0x518   : > { %v6186_v42 = vmul.f32 0.6931472, %v9700_v46  ;;  %v6189_v9 = vmul.f32 %v14052_v58, %v6188_v60  ;;  %vm6191_vm9 = vcmp.lt.f32.partialorder %v6190_v8, 0.0004427343  ;;  %v5315_v57 = vand.u32 2147483647, %v14102_v47 }
 0x519   : > { %v7768_v24 = vadd.f32 %v13996_v16, %v7697_v50  ;;  %v7456_v63 = vrot.slane %v7455_v20, 2  ;;  %v6943_v61 = vcombine.high %v6751_v27, %v6751_v27  ;;  %v6199_v56 = vand.u32 2147483647, %v14082_v35  ;;  %v9702_v49 = vpop.eup %9701 }
 0x51a   : > { %v6192_v23 = vsel %vm6191_vm9, %v6189_v9, %v6186_v42  ;;  %v6197_v39 = vadd.f32 1.0, %v6196_v18  ;;  %v5411_v28 = vsub.f32 0.0, %v5315_v57  ;;  %v8772_v29 = vcombine.low %v3321_v3, %v14060_v4 }
 0x51b   : > { %v7931_v40 = vrot.slane %v7768_v24, 2  ;;  %v7457_v17 = vadd.f32 %v7456_v63, %v7455_v20  ;;  %v6560_v58 = vadd.f32 %v6192_v23, %v5024_v44  ;;  %9709 = vpow2.f32 %v8878_v37  ;;  %v15703_v44 = vld [vmem:[#allocation30_spill] sm:$0xff] }
 0x51c   : > { %v9704_v36 = vpop.eup %9703  ;;  %v7051_v12 = vcombine.low %v6751_v27, %v6943_v61  ;;  %v5571_v51 = vmul.f32 1.442695, %v5411_v28  ;;  %v4203_v6 = vadd.f32 %v8772_v29, %v13846_v53  ;;  %v3320_v43 = vcombine.low %v14060_v4, %v14063_v0 }
 0x51d   : > { %v7932_v1 = vsel %vm7874_vm6, %v7931_v40, %v14074_v32  ;;  %v7458_v25 = vrot.slane %v7457_v17, 1  ;;  %v6656_v52 = vsel %vm5120_vm8, %v13952_v55, %v6560_v58  ;;  %v14125_v60 = vrot.slane %v15703_v44, %v15669_v22 }
 0x51e   : > { %v9706_v8 = vpop.eup %9705  ;;  %v6752_v11 = vmul.f32 %v9698_v19, %v6656_v52  ;;  %v5025_v53 = vmax.f32 %v13979_v10, 0.0  ;;  %9711 = vpow2.f32 %v5571_v51  ;;  %v6198_v32 = vmul.f32 %v14082_v35, %v6197_v39 }
 0x51f   : > { %v9708_v48 = vpop.eup %9707  ;;  %v7459_v4 = vadd.f32 %v7458_v25, %v7457_v17  ;;  %v6195_v15 = vmul.f32 0.6931472, %v9706_v8  ;;  %v4209_v59 = vadd.f32 %v13891_v2, %v14125_v60  ;;  %vm6200_vm10 = vcmp.lt.f32.partialorder %v6199_v56, 0.0004427343 }
 0x520   : > { %v7460_v18 = vsel %vm7139_vm3, %v6752_v11, 0.0  ;;  %v6202_v55 = vadd.f32 1.0, %v9708_v48  ;;  %v8773_v3 = vcombine.high %v14063_v0, %v3320_v43  ;;  %v4738_v27 = vadd.f32 1.0, %v9704_v36  ;;  %v9997_v36 = vld [vmem:[%s10457_s19 + $0x20] sm:$0xff] }
 0x521   : > { %v7698_v46 = vmul.f32 %v13984_v33, %v7459_v4  ;;  %v7461_v19 = vadd.f32 %v7460_v18, %v7051_v12  ;;  %v6201_v50 = vsel %vm6200_vm10, %v6198_v32, %v6195_v15  ;;  %vm5121_vm12 = vcmp.ne.f32.partialorder %v13979_v10, %v13979_v10 }
 0x522   : > { %v6561_v20 = vadd.f32 %v6201_v50, %v5025_v53  ;;  %9713 = vlog2.f32 %v6202_v55  ;;  %v14135_v37 = vadd.f32 %v8773_v3, %v13849_v26  ;;  %v6205_v9 = vmul.f32 -0.5, %v9708_v48  ;;  %v15706_v3 = vld [vmem:[#allocation32_spill] sm:$0xff] }
 0x523   : > { %v7769_v35 = vadd.f32 %v13996_v16, %v7698_v46  ;;  %v7462_v42 = vrot.slane %v7461_v19, 4  ;;  %v8879_v0 = vmul.f32 -1.442695, %v4203_v6  ;;  %v14143_v57 = vrot.slane %v15703_v44, %v15666_v14 }
 0x524   : > { %v6657_v2 = vsel %vm5121_vm12, %v13979_v10, %v6561_v20  ;;  %v6944_v61 = vcombine.high %v6752_v11, %v6752_v11  ;;  %9715 = vrcp.f32 %v4738_v27  ;;  %v6208_v23 = vand.u32 2147483647, %v9708_v48 }
 0x525   : > { %v9710_v24 = vpop.eup %9709  ;;  %v7933_v63 = vrot.slane %v7769_v35, 1  ;;  %v7463_v26 = vadd.f32 %v7462_v42, %v7461_v19  ;;  %v6753_v56 = vmul.f32 %v9702_v49, %v6657_v2  ;;  %v5316_v39 = vand.u32 2147483647, %v14135_v37 }
 0x526   : > { %v14148_v28 = vadd.f32 %v13897_v7, %v14143_v57  ;;  %v6206_v51 = vadd.f32 1.0, %v6205_v9  ;;  %9717 = vpow2.f32 %v8879_v0  ;;  %v8880_v7 = vmul.f32 -1.442695, %v4209_v59 }
 0x527   : > { %v7934_v10 = vsel %vm7877_vm11, %v7933_v63, %v7932_v1  ;;  %v7464_v29 = vrot.slane %v7463_v26, 2  ;;  %v6945_v40 = vcombine.high %v6753_v56, %v6753_v56  ;;  %v7052_v17 = vcombine.low %v6944_v61, %v6753_v56 }
 0x528   : > { %v14151_v58 = vpop.eup %9711  ;;  %v14154_v12 = vadd.f32 %v9997_v36, %v7934_v10  ;;  %v5412_v49 = vsub.f32 0.0, %v5316_v39  ;;  %v5026_v8 = vmax.f32 %v14050_v38, 0.0  ;;  %vm14160_vm15 = vcmp.lt.f32.partialorder %v6208_v23, 0.0004427343 }
 0x529   : > { %v7465_v6 = vadd.f32 %v7464_v29, %v7463_v26  ;;  %v7468_v43 = vsel %vm7139_vm3, %v6945_v40, 0.0  ;;  %v6211_v25 = vadd.f32 1.0, %v14151_v58  ;;  %v4739_v4 = vadd.f32 1.0, %v9710_v24 }
 0x52a   : > { %v8021_v52 = vand.u32 2147483647, %v14154_v12  ;;  %v7469_v1 = vadd.f32 %v7468_v43, %v7052_v17  ;;  %v5573_v55 = vmul.f32 1.442695, %v5412_v49  ;;  %v14166_v46 = vrot.slane %v15706_v3, %v15669_v22 }
 0x52b   : > { %v7466_v11 = vrot.slane %v7465_v6, 1  ;;  %9719 = vlog2.f32 %v6211_v25  ;;  %v6207_v19 = vmul.f32 %v9708_v48, %v6206_v51  ;;  %v6214_v50 = vmul.f32 -0.5, %v14151_v58 }
 0x52c   : > { %v9714_v15 = vpop.eup %9713  ;;  %v8029_v32 = vsub.f32 0.0, %v8021_v52  ;;  %v7470_v18 = vrot.slane %v7469_v1, 4  ;;  %9721 = vpow2.f32 %v8880_v7  ;;  %vm5122_vm0 = vcmp.ne.f32.partialorder %v14050_v38, %v14050_v38 }
 0x52d   : > { %v6204_v59 = vmul.f32 0.6931472, %v9714_v15  ;;  %v7467_v27 = vadd.f32 %v7466_v11, %v7465_v6  ;;  %9723 = vpow2.f32 %v5573_v55  ;;  %v5317_v2 = vand.u32 2147483647, %v14148_v28 }
 0x52e   : > { %v8041_v20 = vmul.f32 1.442695, %v8029_v32  ;;  %v7471_v35 = vadd.f32 %v7470_v18, %v7469_v1  ;;  %9725 = vrcp.f32 %v4739_v4  ;;  %v9716_v9 = vpop.eup %9715  ;;  %v8774_v24 = vcombine.low %v14125_v60, %v14166_v46 }
 0x52f   : > { %v6210_v42 = vsel %vm14160_vm15, %v6207_v19, %v6204_v59  ;;  %v6215_v63 = vadd.f32 1.0, %v6214_v50  ;;  %v6217_v61 = vand.u32 2147483647, %v14151_v58  ;;  %v5413_v26 = vsub.f32 0.0, %v5317_v2 }
 0x530   : > { %9727 = vpow2.f32 %v8041_v20  ;;  %v7472_v0 = vrot.slane %v7471_v35, 2  ;;  %v6562_v48 = vadd.f32 %v6210_v42, %v5026_v8  ;;  %v3089_v56 = vrot.slane %v15706_v3, %v15666_v14  ;;  %v9718_v23 = vpop.eup %9717 }
 0x531   : > { %v7699_v39 = vmul.f32 %v13984_v33, %v7467_v27  ;;  %v4215_v40 = vadd.f32 %v8774_v24, %v13901_v21  ;;  %v5575_v60 = vmul.f32 1.442695, %v5413_v26  ;;  %v5027_v6 = vmax.f32 %v14102_v47, 0.0 }
 0x532   : > { %v7473_v10 = vadd.f32 %v7472_v0, %v7471_v35  ;;  %v6658_v29 = vsel %vm5122_vm0, %v14050_v38, %v6562_v48  ;;  %v8775_v36 = vcombine.low %v14143_v57, %v3089_v56  ;;  %v3325_v51 = vcombine.high %v14166_v46, %v3089_v56 }
 0x533   : > { %v6754_v17 = vmul.f32 %v9716_v9, %v6658_v29  ;;  %v6216_v25 = vmul.f32 %v14151_v58, %v6215_v63  ;;  %v4740_v7 = vadd.f32 1.0, %v9718_v23  ;;  %9729 = vpow2.f32 %v5575_v60 }
 0x534   : > { %v7474_v49 = vrot.slane %v7473_v10, 1  ;;  %v14190_v52 = vadd.f32 %v8775_v36, %v13909_v54  ;;  %v8776_v8 = vcombine.low %v3325_v51, %v14166_v46  ;;  %v7770_v57 = vadd.f32 %v13996_v16, %v7699_v39 }
 0x535   : > { %v9720_v43 = vpop.eup %9719  ;;  %v6946_v1 = vcombine.high %v6754_v17, %v6754_v17  ;;  %vm5123_vm2 = vcmp.ne.f32.partialorder %v14102_v47, %v14102_v47  ;;  %vm6218_vm4 = vcmp.lt.f32.partialorder %v6217_v61, 0.0004427343  ;;  %v5028_v53 = vmax.f32 %v14135_v37, 0.0 }
 0x536   : > { %v7475_v38 = vadd.f32 %v7474_v49, %v7473_v10  ;;  %v6213_v21 = vmul.f32 0.6931472, %v9720_v43  ;;  %v9722_v11 = vpop.eup %9721  ;;  %v5318_v54 = vand.u32 2147483647, %v14190_v52  ;;  %v4221_v32 = vadd.f32 %v8776_v8, %v13967_v41 }
 0x537   : > { %v9724_v58 = vpop.eup %9723  ;;  %9731 = vrcp.f32 %v4740_v7  ;;  %v2619_v19 = vcombine.high %v15703_v44, %v15703_v44  ;;  %v7053_v27 = vcombine.low %v6754_v17, %v6946_v1  ;;  %v8881_v35 = vmul.f32 -1.442695, %v4215_v40 }
 0x538   : > { %v7700_v4 = vmul.f32 %v13984_v33, %v7475_v38  ;;  %v6219_v15 = vsel %vm6218_vm4, %v6216_v25, %v6213_v21  ;;  %v9726_v18 = vpop.eup %9725  ;;  %v6220_v59 = vadd.f32 1.0, %v9724_v58  ;;  %v3324_v42 = vcombine.low %v14166_v46, %v3089_v56 }
 0x539   : > { %v6563_v55 = vadd.f32 %v6219_v15, %v5027_v6  ;;  %v4741_v9 = vadd.f32 1.0, %v9722_v11  ;;  %v5414_v0 = vsub.f32 0.0, %v5318_v54  ;;  %v6223_v44 = vmul.f32 -0.5, %v9724_v58 }
 0x53a   : > { %v9728_v50 = vpop.eup %9727  ;;  %v7771_v20 = vadd.f32 %v13996_v16, %v7700_v4  ;;  %9733 = vlog2.f32 %v6220_v59  ;;  %v5029_v61 = vmax.f32 %v14148_v28, 0.0  ;;  %v14212_v26 = vrot.slane %v2619_v19, %v15669_v22  ;;  %v4244_v59 = vpop.f32.mrb[152].mxu1 }
 0x53b   : > { %v8085_v2 = vadd.f32 1.0, %v9728_v50  ;;  %v6659_v41 = vsel %vm5123_vm2, %v14102_v47, %v6563_v55  ;;  %v8088_v63 = vmul.f32 -0.5, %v9728_v50  ;;  %v8091_v46 = vand.u32 2147483647, %v9728_v50 }
 0x53c   : > { %v7935_v48 = vrot.slane %v7771_v20, 7  ;;  %v14208_v24 = vmul.f32 %v9726_v18, %v6659_v41  ;;  %v8777_v39 = vcombine.high %v3089_v56, %v3324_v42  ;;  %v6226_v40 = vand.u32 2147483647, %v9724_v58  ;;  %v15711_v18 = vld [vmem:[#allocation33_spill] sm:$0xff] }
 0x53d   : > { %9735 = vlog2.f32 %v8085_v2  ;;  %v14219_v10 = vpop.eup %9729  ;;  %v5577_v17 = vmul.f32 1.442695, %v5414_v0  ;;  %v6224_v60 = vadd.f32 1.0, %v6223_v44  ;;  %v8089_v49 = vadd.f32 1.0, %v8088_v63 }
 0x53e   : > { %v14215_v23 = vsel %vm7859_vm13, %v7935_v48, %v7770_v57  ;;  %v7476_v47 = vsel %vm7139_vm3, %v14208_v24, 0.0  ;;  %9737 = vpow2.f32 %v8881_v35  ;;  %v6229_v36 = vadd.f32 1.0, %v14219_v10 }
 0x53f   : > { %v7477_v29 = vadd.f32 %v7476_v47, %v7053_v27  ;;  %9739 = vrcp.f32 %v4741_v9  ;;  %v14223_v51 = vadd.f32 %v8777_v39, %v13971_v62  ;;  %v4227_v43 = vadd.f32 %v14006_v13, %v14212_v26 }
 0x540   : > { %9741 = vpow2.f32 %v5577_v17  ;;  %v7997_v56 = vmax.f32 %v14154_v12, 0.0  ;;  %vm14228_vm8 = vcmp.lt.f32.partialorder %v8091_v46, 0.0004427343  ;;  %v8882_v7 = vmul.f32 -1.442695, %v4221_v32 }
 0x541   : > { %v7478_v6 = vrot.slane %v7477_v29, 4  ;;  %9743 = vlog2.f32 %v6229_v36  ;;  %v9732_v38 = vpop.eup %9731  ;;  %v6947_v1 = vcombine.high %v14208_v24, %v14208_v24  ;;  %vm5124_vm9 = vcmp.ne.f32.partialorder %v14135_v37, %v14135_v37 }
 0x542   : > { %vm14236_vm10 = vcmp.lt.f32.partialorder %v6226_v40, 0.0004427343  ;;  %v5319_v13 = vand.u32 2147483647, %v14223_v51  ;;  %vm8005_vm12 = vcmp.ne.f32.partialorder %v14154_v12, %v14154_v12  ;;  %v6225_v8 = vmul.f32 %v9724_v58, %v6224_v60 }
 0x543   : > { %v7479_v62 = vadd.f32 %v7478_v6, %v7477_v29  ;;  %v6232_v11 = vmul.f32 -0.5, %v14219_v10  ;;  %v14245_v57 = vrot.slane %v2619_v19, %v15666_v14  ;;  %v2621_v4 = vcombine.high %v15706_v3, %v15706_v3  ;;  %v14263_v3 = vpop.f32.mrb[153].mxu1 }
 0x544   : > { %v8090_v15 = vmul.f32 %v9728_v50, %v8089_v49  ;;  %v5415_v32 = vsub.f32 0.0, %v5319_v13  ;;  %v14251_v55 = vrot.slane %v15711_v18, %v15669_v22  ;;  %v9734_v20 = vpop.eup %9733  ;;  %v8883_v27 = vmul.f32 -1.442695, %v4227_v43  ;;  %v14268_v0 = vpop.f32.mrb[154].mxu1 }
 0x545   : > { %v7480_v54 = vrot.slane %v7479_v62, 2  ;;  %v14255_v58 = vadd.f32 %v14013_v31, %v14245_v57  ;;  %v14258_v19 = vrot.slane %v2621_v4, %v15669_v22  ;;  %v14261_v35 = vrot.slane %v2621_v4, %v15666_v14  ;;  %v14271_v63 = vpop.f32.mrb[155].mxu1 }
 0x546   : > { %v6222_v2 = vmul.f32 0.6931472, %v9734_v20  ;;  %v5579_v41 = vmul.f32 1.442695, %v5415_v32  ;;  %v14266_v9 = vadd.f32 %v4244_v59, %v14251_v55  ;;  %v6233_v31 = vadd.f32 1.0, %v6232_v11  ;;  %v14277_v40 = vpop.f32.mrb[156].mxu1 }
 0x547   : > { %v9736_v50 = vpop.eup %9735  ;;  %v7481_v42 = vadd.f32 %v7480_v54, %v7479_v62  ;;  %9745 = vpow2.f32 %v8882_v7  ;;  %v5320_v44 = vand.u32 2147483647, %v14255_v58  ;;  %v8778_v29 = vcombine.low %v14212_v26, %v14258_v19  ;;  %v14284_v43 = vpop.f32.mrb[157].mxu1 }
 0x548   : > { %v8087_v48 = vmul.f32 0.6931472, %v9736_v50  ;;  %v9738_v46 = vpop.eup %9737  ;;  %v6228_v39 = vsel %vm14236_vm10, %v6225_v8, %v6222_v2  ;;  %9747 = vpow2.f32 %v5579_v41  ;;  %v6235_v49 = vand.u32 2147483647, %v14219_v10  ;;  %v14289_v8 = vpop.f32.mrb[158].mxu1 }
 0x549   : > { %v7482_v47 = vrot.slane %v7481_v42, 1  ;;  %v9740_v17 = vpop.eup %9739  ;;  %v6564_v36 = vadd.f32 %v6228_v39, %v5028_v53  ;;  %v5416_v6 = vsub.f32 0.0, %v5320_v44  ;;  %v4233_v26 = vadd.f32 %v8778_v29, %v14017_v45 }
 0x54a   : > { %v8093_v60 = vsel %vm14228_vm8, %v8090_v15, %v8087_v48  ;;  %v9742_v7 = vpop.eup %9741  ;;  %v8779_v13 = vcombine.low %v14245_v57, %v14261_v35  ;;  %v6234_v11 = vmul.f32 %v14219_v10, %v6233_v31  ;;  %9749 = vpow2.f32 %v8883_v27 }
 0x54b   : > { %v8125_v62 = vadd.f32 %v8093_v60, %v7997_v56  ;;  %v7483_v21 = vadd.f32 %v7482_v47, %v7481_v42  ;;  %v9744_v25 = vpop.eup %9743  ;;  %v6660_v53 = vsel %vm5124_vm9, %v14135_v37, %v6564_v36  ;;  %v6238_v4 = vadd.f32 1.0, %v9742_v7  ;;  %v14296_v56 = vpop.f32.mrb[159].mxu1 }
 0x54c   : > { %v6756_v15 = vmul.f32 %v9732_v38, %v6660_v53  ;;  %v6231_v54 = vmul.f32 0.6931472, %v9744_v25  ;;  %v14303_v32 = vpop.f32.mrb[160].mxu1  ;;  %vm6236_vm15 = vcmp.lt.f32.partialorder %v6235_v49, 0.0004427343  ;;  %v6241_v37 = vmul.f32 -0.5, %v9742_v7 }
 0x54d   : > { %v8133_v45 = vsel %vm8005_vm12, %v14154_v12, %v8125_v62  ;;  %v7701_v57 = vmul.f32 %v13984_v33, %v7483_v21  ;;  %9751 = vlog2.f32 %v6238_v4  ;;  %v5581_v10 = vmul.f32 1.442695, %v5416_v6  ;;  %v14306_v59 = vpop.f32.mrb[161].mxu1 }
 0x54e   : > { %8141 = vst [vmem:[%s12773_s26 + $0x20] sm:$0xff] %v8133_v45  ;;  %v6948_v27 = vcombine.high %v6756_v15, %v6756_v15  ;;  %v7054_v12 = vcombine.low %v6947_v1, %v6756_v15  ;;  %v6237_v50 = vsel %vm6236_vm15, %v6234_v11, %v6231_v54  ;;  %v14312_v42 = vpop.f32.mrb[162].mxu1  ;;  %vm5125_vm0 = vcmp.ne.f32.partialorder %v14148_v28, %v14148_v28 }
 0x54f   : > { %v7772_v20 = vadd.f32 %v13996_v16, %v7701_v57  ;;  %v6565_v38 = vadd.f32 %v6237_v50, %v5029_v61  ;;  %v4742_v2 = vadd.f32 1.0, %v9738_v46  ;;  %v14318_v41 = vpop.f32.mrb[163].mxu1  ;;  %v6244_v44 = vand.u32 2147483647, %v9742_v7 }
 0x550   : > { %v7484_v31 = vsel %vm7139_vm3, %v6948_v27, 0.0  ;;  %9753 = vpow2.f32 %v5581_v10  ;;  %v6242_v39 = vadd.f32 1.0, %v6241_v37  ;;  %v14323_v29 = vadd.f32 %v8779_v13, %v14023_v5 }
 0x551   : > { %v7937_v48 = vrot.slane %v7772_v20, 6  ;;  %v9746_v47 = vpop.eup %9745  ;;  %v7485_v24 = vadd.f32 %v7484_v31, %v7054_v12  ;;  %v6661_v1 = vsel %vm5125_vm0, %v14148_v28, %v6565_v38  ;;  %v5030_v36 = vmax.f32 %v14190_v52, 0.0 }
 0x552   : > { %v9748_v60 = vpop.eup %9747  ;;  %v6757_v46 = vmul.f32 %v9740_v17, %v6661_v1  ;;  %v3329_v49 = vcombine.high %v14258_v19, %v14261_v35  ;;  %9755 = vrcp.f32 %v4742_v2  ;;  %v8884_v21 = vmul.f32 -1.442695, %v4233_v26  ;;  %v14344_v26 = vpop.f32.mrb[164].mxu1 }
 0x553   : > { %v14327_v61 = vsel %vm7862_vm1, %v7937_v48, %v14215_v23  ;;  %v7486_v6 = vrot.slane %v7485_v24, 4  ;;  %v6247_v62 = vadd.f32 1.0, %v9748_v60  ;;  %vm5126_vm2 = vcmp.ne.f32.partialorder %v14190_v52, %v14190_v52  ;;  %v14349_v54 = vpop.f32.mrb[165].mxu1 }
 0x554   : > { %v4743_v5 = vadd.f32 1.0, %v9746_v47  ;;  %v5031_v28 = vmax.f32 %v14223_v51, 0.0  ;;  %v5321_v13 = vand.u32 2147483647, %v14323_v29  ;;  %v14338_v23 = vrot.slane %v15711_v18, %v15666_v14  ;;  %v9750_v17 = vpop.eup %9749  ;;  %v14355_v27 = vpop.f32.mrb[166].mxu1 }
 0x555   : > { %v7487_v25 = vadd.f32 %v7486_v6, %v7485_v24  ;;  %v6243_v53 = vmul.f32 %v9742_v7, %v6242_v39  ;;  %vm14340_vm4 = vcmp.lt.f32.partialorder %v6244_v44, 0.0004427343  ;;  %9757 = vlog2.f32 %v6247_v62  ;;  %v14359_v48 = vpop.f32.mrb[167].mxu1 }
 0x556   : > { %v6250_v4 = vmul.f32 -0.5, %v9748_v60  ;;  %v5417_v45 = vsub.f32 0.0, %v5321_v13  ;;  %v8780_v57 = vcombine.low %v3329_v49, %v14258_v19  ;;  %v3328_v15 = vcombine.low %v14258_v19, %v14261_v35 }
 0x557   : > { %v9752_v37 = vpop.eup %9751  ;;  %v7488_v10 = vrot.slane %v7487_v25, 2  ;;  %v6949_v20 = vcombine.high %v6757_v46, %v6757_v46  ;;  %9759 = vpow2.f32 %v8884_v21  ;;  %v14353_v7 = vadd.f32 %v14263_v3, %v14338_v23 }
 0x558   : > { %v6240_v12 = vmul.f32 0.6931472, %v9752_v37  ;;  %v5583_v50 = vmul.f32 1.442695, %v5417_v45  ;;  %v4239_v38 = vadd.f32 %v8780_v57, %v14080_v34  ;;  %v8781_v2 = vcombine.high %v14261_v35, %v3328_v15  ;;  %v15716_v57 = vld [vmem:[#allocation35_spill] sm:$0xff] }
 0x559   : > { %v7489_v19 = vadd.f32 %v7488_v10, %v7487_v25  ;;  %9761 = vrcp.f32 %v4743_v5  ;;  %v6253_v31 = vand.u32 2147483647, %v9748_v60  ;;  %v4744_v44 = vadd.f32 1.0, %v9750_v17 }
 0x55a   : > { %v14361_v47 = vpop.eup %9753  ;;  %v6246_v3 = vsel %vm14340_vm4, %v6243_v53, %v6240_v12  ;;  %v6251_v24 = vadd.f32 1.0, %v6250_v4  ;;  %9763 = vpow2.f32 %v5583_v50  ;;  %v14366_v1 = vadd.f32 %v8781_v2, %v14086_v30 }
 0x55b   : > { %v7490_v39 = vrot.slane %v7489_v19, 1  ;;  %v6566_v34 = vadd.f32 %v6246_v3, %v5030_v36  ;;  %v6256_v35 = vadd.f32 1.0, %v14361_v47  ;;  %v8886_v49 = vmul.f32 -1.442695, %v14266_v9  ;;  %v14416_v9 = vpop.f32.mrb[168].mxu1 }
 0x55c   : > { %v7055_v6 = vcombine.low %v6757_v46, %v6949_v20  ;;  %vm5127_vm8 = vcmp.ne.f32.partialorder %v14223_v51, %v14223_v51  ;;  %v5032_v62 = vmax.f32 %v14255_v58, 0.0  ;;  %v8885_v21 = vmul.f32 -1.442695, %v4239_v38  ;;  %v9756_v5 = vpop.eup %9755 }
 0x55d   : > { %v7491_v13 = vadd.f32 %v7490_v39, %v7489_v19  ;;  %v6662_v30 = vsel %vm5126_vm2, %v14190_v52, %v6566_v34  ;;  %9765 = vlog2.f32 %v6256_v35  ;;  %v6259_v36 = vmul.f32 -0.5, %v14361_v47 }
 0x55e   : > { %v6758_v17 = vmul.f32 %v9756_v5, %v6662_v30  ;;  %v6252_v25 = vmul.f32 %v9748_v60, %v6251_v24  ;;  %vm14378_vm9 = vcmp.lt.f32.partialorder %v6253_v31, 0.0004427343  ;;  %9767 = vrcp.f32 %v4744_v44 }
 0x55f   : > { %v9758_v46 = vpop.eup %9757  ;;  %v7702_v53 = vmul.f32 %v13984_v33, %v7491_v13  ;;  %v5322_v11 = vand.u32 2147483647, %v14366_v1  ;;  %9769 = vpow2.f32 %v8886_v49  ;;  %v5323_v4 = vand.u32 2147483647, %v14353_v7 }
 0x560   : > { %v7492_v52 = vsel %vm7139_vm3, %v6758_v17, 0.0  ;;  %v6249_v45 = vmul.f32 0.6931472, %v9758_v46  ;;  %9771 = vpow2.f32 %v8885_v21  ;;  %v14388_v60 = vrot.slane %v15716_v57, %v15669_v22 }
 0x561   : > { %v9760_v15 = vpop.eup %9759  ;;  %v7773_v37 = vadd.f32 %v13996_v16, %v7702_v53  ;;  %v7493_v10 = vadd.f32 %v7492_v52, %v7055_v6  ;;  %v6260_v20 = vadd.f32 1.0, %v6259_v36  ;;  %v5418_v12 = vsub.f32 0.0, %v5322_v11  ;;  %v14418_v52 = vpop.f32.mrb[169].mxu1 }
 0x562   : > { %v6255_v33 = vsel %vm14378_vm9, %v6252_v25, %v6249_v45  ;;  %v5419_v50 = vsub.f32 0.0, %v5323_v4  ;;  %v8782_v38 = vcombine.low %v14251_v55, %v14388_v60  ;;  %v14397_v2 = vrot.slane %v15716_v57, %v15666_v14 }
 0x563   : > { %v9762_v19 = vpop.eup %9761  ;;  %v7939_v31 = vrot.slane %v7773_v37, 5  ;;  %v7494_v44 = vrot.slane %v7493_v10, 4  ;;  %v6567_v16 = vadd.f32 %v6255_v33, %v5031_v28  ;;  %v5585_v3 = vmul.f32 1.442695, %v5418_v12 }
 0x564   : > { %v9764_v24 = vpop.eup %9763  ;;  %vm5128_vm10 = vcmp.ne.f32.partialorder %v14255_v58, %v14255_v58  ;;  %v6262_v39 = vand.u32 2147483647, %v14361_v47  ;;  %v4745_v34 = vadd.f32 1.0, %v9760_v15  ;;  %v4251_v55 = vadd.f32 %v8782_v38, %v14268_v0 }
 0x565   : > { %v8783_v35 = vcombine.low %v14338_v23, %v14397_v2  ;;  %v14409_v49 = vsel %vm7865_vm5, %v7939_v31, %v14327_v61  ;;  %v7495_v6 = vadd.f32 %v7494_v44, %v7493_v10  ;;  %v6663_v28 = vsel %vm5127_vm8, %v14223_v51, %v6567_v16 }
 0x566   : > { %v6265_v21 = vadd.f32 1.0, %v9764_v24  ;;  %v6950_v5 = vcombine.high %v6758_v17, %v6758_v17  ;;  %v6759_v13 = vmul.f32 %v9762_v19, %v6663_v28  ;;  %v6261_v30 = vmul.f32 %v14361_v47, %v6260_v20 }
 0x567   : > { %9773 = vpow2.f32 %v5585_v3  ;;  %v9766_v0 = vpop.eup %9765  ;;  %v7496_v36 = vrot.slane %v7495_v6, 2  ;;  %v6268_v23 = vmul.f32 -0.5, %v9764_v24  ;;  %v5587_v25 = vmul.f32 1.442695, %v5419_v50 }
 0x568   : > { %9775 = vlog2.f32 %v6265_v21  ;;  %v9768_v61 = vpop.eup %9767  ;;  %v6951_v46 = vcombine.high %v6759_v13, %v6759_v13  ;;  %v7056_v53 = vcombine.low %v6950_v5, %v6759_v13  ;;  %v6258_v11 = vmul.f32 0.6931472, %v9766_v0 }
 0x569   : > { %v8887_v4 = vmul.f32 -1.442695, %v4251_v55  ;;  %v9770_v51 = vpop.eup %9769  ;;  %v7497_v17 = vadd.f32 %v7496_v36, %v7495_v6  ;;  %vm6263_vm12 = vcmp.lt.f32.partialorder %v6262_v39, 0.0004427343  ;;  %v5033_v47 = vmax.f32 %v14323_v29, 0.0 }
 0x56a   : > { %v14422_v45 = vadd.f32 %v8783_v35, %v14271_v63  ;;  %v9772_v15 = vpop.eup %9771  ;;  %v7500_v37 = vsel %vm7139_vm3, %v6951_v46, 0.0  ;;  %v6264_v10 = vsel %vm6263_vm12, %v6261_v30, %v6258_v11  ;;  %9777 = vrcp.f32 %v4745_v34  ;;  %v14449_v55 = vld [vmem:[%s15333_s7] ss:$0 sm:$0xff] }
 0x56b   : > { %v14427_v20 = vcombine.high %v15711_v18, %v15711_v18  ;;  %v7498_v12 = vrot.slane %v7497_v17, 1  ;;  %v7501_v33 = vadd.f32 %v7500_v37, %v7056_v53  ;;  %v6568_v50 = vadd.f32 %v6264_v10, %v5032_v62  ;;  %v14469_v37 = vpop.f32.mrb[170].mxu1 }
 0x56c   : > { %9779 = vpow2.f32 %v5587_v25  ;;  %v6269_v38 = vadd.f32 1.0, %v6268_v23  ;;  %v6271_v19 = vand.u32 2147483647, %v9764_v24  ;;  %v5324_v63 = vand.u32 2147483647, %v14422_v45 }
 0x56d   : > { %9781 = vpow2.f32 %v8887_v4  ;;  %v7499_v31 = vadd.f32 %v7498_v12, %v7497_v17  ;;  %v7502_v44 = vrot.slane %v7501_v33, 4  ;;  %v6664_v16 = vsel %vm5128_vm10, %v14255_v58, %v6568_v50  ;;  %v14464_v23 = vld [vmem:[%s15334_s8] ss:$0 sm:$0xff] }
 0x56e   : > { %v3333_v18 = vcombine.high %v14388_v60, %v14397_v2  ;;  %v6760_v3 = vmul.f32 %v9768_v61, %v6664_v16  ;;  %vm5129_vm15 = vcmp.ne.f32.partialorder %v14323_v29, %v14323_v29  ;;  %v5420_v62 = vsub.f32 0.0, %v5324_v63 }
 0x56f   : > { %v3332_v39 = vcombine.low %v14388_v60, %v14397_v2  ;;  %v14444_v34 = vrot.slane %v14427_v20, %v15669_v22  ;;  %v7703_v58 = vmul.f32 %v14449_v55, %v7499_v31  ;;  %v7503_v35 = vadd.f32 %v7502_v44, %v7501_v33 }
 0x570   : > { %v4746_v6 = vadd.f32 1.0, %v9772_v15  ;;  %v5035_v28 = vmax.f32 %v14353_v7, 0.0  ;;  %v6270_v5 = vmul.f32 %v9764_v24, %v6269_v38  ;;  %vm14453_vm0 = vcmp.lt.f32.partialorder %v6271_v19, 0.0004427343  ;;  %v14478_v38 = vpop.f32.mrb[171].mxu1 }
 0x571   : > { %v9774_v21 = vpop.eup %9773  ;;  %v5589_v30 = vmul.f32 1.442695, %v5420_v62  ;;  %v14459_v0 = vadd.f32 %v14289_v8, %v14444_v34  ;;  %v7774_v25 = vadd.f32 %v14464_v23, %v7703_v58  ;;  %v7504_v61 = vrot.slane %v7503_v35, 2  ;;  %v14482_v16 = vpop.f32.mrb[172].mxu1 }
 0x572   : > { %v9776_v36 = vpop.eup %9775  ;;  %v6274_v46 = vadd.f32 1.0, %v9774_v21  ;;  %v8784_v24 = vcombine.low %v3333_v18, %v14388_v60  ;;  %v6277_v11 = vmul.f32 -0.5, %v9774_v21  ;;  %v8785_v4 = vcombine.high %v14397_v2, %v3332_v39  ;;  %v14488_v13 = vpop.f32.mrb[173].mxu1 }
 0x573   : > { %v6267_v53 = vmul.f32 0.6931472, %v9776_v36  ;;  %9783 = vpow2.f32 %v5589_v30  ;;  %v7941_v17 = vrot.slane %v7774_v25, 4  ;;  %v7505_v8 = vadd.f32 %v7504_v61, %v7503_v35 }
 0x574   : > { %v6952_v15 = vcombine.high %v6760_v3, %v6760_v3  ;;  %9785 = vlog2.f32 %v6274_v46  ;;  %v9778_v10 = vpop.eup %9777  ;;  %v5034_v33 = vmax.f32 %v14366_v1, 0.0  ;;  %v4257_v50 = vadd.f32 %v8784_v24, %v14277_v40 }
 0x575   : > { %v6273_v12 = vsel %vm14453_vm0, %v6270_v5, %v6267_v53  ;;  %v14476_v60 = vadd.f32 %v8785_v4, %v14284_v43  ;;  %v7942_v19 = vsel %vm7868_vm7, %v7941_v17, %v14409_v49  ;;  %v7506_v63 = vrot.slane %v7505_v8, 1 }
 0x576   : > { %v9780_v2 = vpop.eup %9779  ;;  %v6569_v31 = vadd.f32 %v6273_v12, %v5033_v47  ;;  %v4747_v44 = vadd.f32 1.0, %v9770_v51  ;;  %9787 = vrcp.f32 %v4746_v6  ;;  %v6278_v62 = vadd.f32 1.0, %v6277_v11 }
 0x577   : > { %v9782_v18 = vpop.eup %9781  ;;  %v6280_v39 = vand.u32 2147483647, %v9774_v21  ;;  %v6283_v58 = vadd.f32 1.0, %v9780_v2  ;;  %v7507_v40 = vadd.f32 %v7506_v63, %v7505_v8  ;;  %v7057_v35 = vcombine.low %v6760_v3, %v6952_v15 }
 0x578   : > { %v6665_v43 = vsel %vm5129_vm15, %v14323_v29, %v6569_v31  ;;  %v6286_v5 = vmul.f32 -0.5, %v9780_v2  ;;  %v6289_v51 = vand.u32 2147483647, %v9780_v2  ;;  %v4748_v47 = vadd.f32 1.0, %v9782_v18 }
 0x579   : > { %v14490_v49 = vmul.f32 %v9778_v10, %v6665_v43  ;;  %9789 = vlog2.f32 %v6283_v58  ;;  %v7704_v6 = vmul.f32 %v14449_v55, %v7507_v40  ;;  %v5325_v30 = vand.u32 2147483647, %v14476_v60  ;;  %v15723_v40 = vld [vmem:[#allocation34_spill] sm:$0xff] }
 0x57a   : > { %9791 = vrcp.f32 %v4747_v44  ;;  %v14496_v3 = vrot.slane %v14427_v20, %v15666_v14  ;;  %vm5130_vm2 = vcmp.ne.f32.partialorder %v14366_v1, %v14366_v1  ;;  %v6279_v36 = vmul.f32 %v9774_v21, %v6278_v62 }
 0x57b   : > { %v7508_v29 = vsel %vm7139_vm3, %v14490_v49, 0.0  ;;  %vm14502_vm4 = vcmp.lt.f32.partialorder %v6280_v39, 0.0004427343  ;;  %v8888_v61 = vmul.f32 -1.442695, %v4257_v50  ;;  %v7775_v46 = vadd.f32 %v14464_v23, %v7704_v6 }
 0x57c   : > { %v7509_v24 = vadd.f32 %v7508_v29, %v7057_v35  ;;  %v6287_v53 = vadd.f32 1.0, %v6286_v5  ;;  %v5421_v11 = vsub.f32 0.0, %v5325_v30  ;;  %v6953_v20 = vcombine.high %v14490_v49, %v14490_v49 }
 0x57d   : > { %v14507_v4 = vpop.eup %9783  ;;  %vm14511_vm8 = vcmp.lt.f32.partialorder %v6289_v51, 0.0004427343  ;;  %9793 = vrcp.f32 %v4748_v47  ;;  %v14517_v21 = vadd.f32 %v14296_v56, %v14496_v3  ;;  %v7943_v15 = vrot.slane %v7775_v46, 3 }
 0x57e   : > { %v9786_v8 = vpop.eup %9785  ;;  %v7510_v10 = vrot.slane %v7509_v24, 4  ;;  %v6292_v12 = vadd.f32 1.0, %v14507_v4  ;;  %v8889_v50 = vmul.f32 -1.442695, %v14459_v0  ;;  %9795 = vpow2.f32 %v8888_v61 }
 0x57f   : > { %v6276_v63 = vmul.f32 0.6931472, %v9786_v8  ;;  %v5591_v31 = vmul.f32 1.442695, %v5421_v11  ;;  %v2670_v44 = vcombine.high %v15716_v57, %v15716_v57  ;;  %v14524_v18 = vsel %vm7871_vm14, %v7943_v15, %v7942_v19  ;;  %v14563_v8 = vpop.f32.mrb[174].mxu1 }
 0x580   : > { %v7511_v62 = vadd.f32 %v7510_v10, %v7509_v24  ;;  %v6288_v39 = vmul.f32 %v9780_v2, %v6287_v53  ;;  %9797 = vlog2.f32 %v6292_v12  ;;  %v9788_v56 = vpop.eup %9787  ;;  %v14530_v0 = vrot.slane %v15723_v40, %v15669_v22 }
 0x581   : > { %v6282_v58 = vsel %vm14502_vm4, %v6279_v36, %v6276_v63  ;;  %9799 = vpow2.f32 %v5591_v31  ;;  %v14534_v35 = vrot.slane %v15723_v40, %v15666_v14  ;;  %v6295_v19 = vmul.f32 -0.5, %v14507_v4 }
 0x582   : > { %v7512_v57 = vrot.slane %v7511_v62, 2  ;;  %v6570_v43 = vadd.f32 %v6282_v58, %v5034_v33  ;;  %9801 = vpow2.f32 %v8889_v50  ;;  %v5326_v5 = vand.u32 2147483647, %v14517_v21 }
 0x583   : > { %v9790_v2 = vpop.eup %9789  ;;  %v14539_v49 = vrot.slane %v2670_v44, %v15669_v22  ;;  %v14542_v51 = vrot.slane %v2670_v44, %v15666_v14  ;;  %v14546_v47 = vadd.f32 %v14344_v26, %v14530_v0  ;;  %v14554_v36 = vadd.f32 %v14349_v54, %v14534_v35 }
 0x584   : > { %v9792_v6 = vpop.eup %9791  ;;  %v7513_v30 = vadd.f32 %v7512_v57, %v7511_v62  ;;  %v6666_v33 = vsel %vm5130_vm2, %v14366_v1, %v6570_v43  ;;  %v6285_v29 = vmul.f32 0.6931472, %v9790_v2  ;;  %v5422_v61 = vsub.f32 0.0, %v5326_v5 }
 0x585   : > { %v6762_v25 = vmul.f32 %v9788_v56, %v6666_v33  ;;  %v8786_v46 = vcombine.low %v14444_v34, %v14539_v49  ;;  %v8787_v26 = vcombine.low %v14496_v3, %v14542_v51  ;;  %v6296_v11 = vadd.f32 1.0, %v6295_v19  ;;  %v14567_v34 = vpop.f32.mrb[175].mxu1 }
 0x586   : > { %v7514_v24 = vrot.slane %v7513_v30, 1  ;;  %v6291_v53 = vsel %vm14511_vm8, %v6288_v39, %v6285_v29  ;;  %v6298_v1 = vand.u32 2147483647, %v14507_v4  ;;  %v5593_v50 = vmul.f32 1.442695, %v5422_v61 }
 0x587   : > { %v9794_v15 = vpop.eup %9793  ;;  %v6954_v54 = vcombine.high %v6762_v25, %v6762_v25  ;;  %v7058_v10 = vcombine.low %v6953_v20, %v6762_v25  ;;  %v6571_v12 = vadd.f32 %v6291_v53, %v5035_v28  ;;  %vm5131_vm9 = vcmp.ne.f32.partialorder %v14353_v7, %v14353_v7 }
 0x588   : > { %v7515_v63 = vadd.f32 %v7514_v24, %v7513_v30  ;;  %v4269_v3 = vadd.f32 %v8786_v46, %v14303_v32  ;;  %v14573_v17 = vadd.f32 %v8787_v26, %v14306_v59  ;;  %v9796_v31 = vpop.eup %9795  ;;  %9803 = vpow2.f32 %v5593_v50 }
 0x589   : > { %v7516_v44 = vsel %vm7139_vm3, %v6954_v54, 0.0  ;;  %v6667_v20 = vsel %vm5131_vm9, %v14353_v7, %v6571_v12  ;;  %v5036_v58 = vmax.f32 %v14422_v45, 0.0  ;;  %v6297_v32 = vmul.f32 %v14507_v4, %v6296_v11 }
 0x58a   : > { %v9798_v62 = vpop.eup %9797  ;;  %v7705_v28 = vmul.f32 %v14449_v55, %v7515_v63  ;;  %v7517_v39 = vadd.f32 %v7516_v44, %v7058_v10  ;;  %v6763_v56 = vmul.f32 %v9792_v6, %v6667_v20  ;;  %vm6299_vm10 = vcmp.lt.f32.partialorder %v6298_v1, 0.0004427343 }
 0x58b   : > { %v9800_v57 = vpop.eup %9799  ;;  %v6294_v43 = vmul.f32 0.6931472, %v9798_v62  ;;  %v3337_v59 = vcombine.high %v14539_v49, %v14542_v51  ;;  %vm5132_vm12 = vcmp.ne.f32.partialorder %v14422_v45, %v14422_v45  ;;  %v4749_v61 = vadd.f32 1.0, %v9796_v31 }
 0x58c   : > { %v9802_v19 = vpop.eup %9801  ;;  %v7776_v2 = vadd.f32 %v14464_v23, %v7705_v28  ;;  %v7518_v7 = vrot.slane %v7517_v39, 4  ;;  %v6955_v5 = vcombine.high %v6763_v56, %v6763_v56  ;;  %v6301_v30 = vadd.f32 1.0, %v9800_v57 }
 0x58d   : > { %v6300_v6 = vsel %vm6299_vm10, %v6297_v32, %v6294_v43  ;;  %v4750_v4 = vadd.f32 1.0, %v9802_v19  ;;  %v5327_v46 = vand.u32 2147483647, %v14573_v17  ;;  %v8788_v26 = vcombine.low %v3337_v59, %v14539_v49 }
 0x58e   : > { %v7945_v33 = vrot.slane %v7776_v2, 2  ;;  %v7519_v29 = vadd.f32 %v7518_v7, %v7517_v39  ;;  %v6572_v25 = vadd.f32 %v6300_v6, %v5036_v58  ;;  %9805 = vlog2.f32 %v6301_v30 }
 0x58f   : > { %v7059_v11 = vcombine.low %v6763_v56, %v6955_v5  ;;  %v6304_v10 = vmul.f32 -0.5, %v9800_v57  ;;  %v5423_v12 = vsub.f32 0.0, %v5327_v46  ;;  %v4275_v50 = vadd.f32 %v8788_v26, %v14312_v42  ;;  %v15726_v46 = vld [vmem:[#allocation36_spill] sm:$0xff] }
 0x590   : > { %v7946_v24 = vsel %vm7874_vm6, %v7945_v33, %v14524_v18  ;;  %v7520_v53 = vrot.slane %v7519_v29, 2  ;;  %v6668_v1 = vsel %vm5132_vm12, %v14422_v45, %v6572_v25  ;;  %9807 = vrcp.f32 %v4749_v61 }
 0x591   : > { %v14590_v54 = vmul.f32 %v9794_v15, %v6668_v1  ;;  %v6307_v31 = vand.u32 2147483647, %v9800_v57  ;;  %v3336_v44 = vcombine.low %v14539_v49, %v14542_v51  ;;  %9809 = vrcp.f32 %v4750_v4 }
 0x592   : > { %v7521_v63 = vadd.f32 %v7520_v53, %v7519_v29  ;;  %v14595_v20 = vpop.eup %9803  ;;  %v8890_v62 = vmul.f32 -1.442695, %v4269_v3  ;;  %v5595_v45 = vmul.f32 1.442695, %v5423_v12  ;;  %v8891_v56 = vmul.f32 -1.442695, %v4275_v50 }
 0x593   : > { %v7524_v18 = vsel %vm7139_vm3, %v14590_v54, 0.0  ;;  %v6310_v39 = vadd.f32 1.0, %v14595_v20  ;;  %v5037_v42 = vmax.f32 %v14476_v60, 0.0  ;;  %v6305_v58 = vadd.f32 1.0, %v6304_v10 }
 0x594   : > { %v7522_v15 = vrot.slane %v7521_v63, 1  ;;  %v7525_v28 = vadd.f32 %v7524_v18, %v7059_v11  ;;  %9811 = vpow2.f32 %v5595_v45  ;;  %v8789_v43 = vcombine.high %v14542_v51, %v3336_v44 }
 0x595   : > { %vm5133_vm15 = vcmp.ne.f32.partialorder %v14476_v60, %v14476_v60  ;;  %vm14604_vm0 = vcmp.lt.f32.partialorder %v6307_v31, 0.0004427343  ;;  %9813 = vlog2.f32 %v6310_v39  ;;  %v6313_v3 = vmul.f32 -0.5, %v14595_v20 }
 0x596   : > { %v7523_v49 = vadd.f32 %v7522_v15, %v7521_v63  ;;  %v7526_v32 = vrot.slane %v7525_v28, 4  ;;  %9815 = vpow2.f32 %v8890_v62  ;;  %v14610_v19 = vadd.f32 %v8789_v43, %v14318_v41 }
 0x597   : > { %v5329_v2 = vand.u32 2147483647, %v14554_v36  ;;  %9817 = vpow2.f32 %v8891_v56  ;;  %v8892_v5 = vmul.f32 -1.442695, %v14546_v47  ;;  %v6306_v6 = vmul.f32 %v9800_v57, %v6305_v58  ;;  %v10000_v56 = vld [vmem:[%s10457_s19 + $0x28] sm:$0xff] }
 0x598   : > { %v7706_v51 = vmul.f32 %v14449_v55, %v7523_v49  ;;  %v7527_v7 = vadd.f32 %v7526_v32, %v7525_v28  ;;  %v9806_v30 = vpop.eup %9805  ;;  %v6316_v33 = vand.u32 2147483647, %v14595_v20  ;;  %v5328_v29 = vand.u32 2147483647, %v14610_v19 }
 0x599   : > { %v5425_v25 = vsub.f32 0.0, %v5329_v2  ;;  %v6303_v41 = vmul.f32 0.6931472, %v9806_v30  ;;  %v14620_v26 = vrot.slane %v15726_v46, %v15669_v22  ;;  %v6314_v53 = vadd.f32 1.0, %v6313_v3 }
 0x59a   : > { %v7777_v61 = vadd.f32 %v14464_v23, %v7706_v51  ;;  %v7528_v4 = vrot.slane %v7527_v7, 2  ;;  %v5424_v11 = vsub.f32 0.0, %v5328_v29  ;;  %v14624_v47 = vrot.slane %v15726_v46, %v15666_v14  ;;  %v9808_v57 = vpop.eup %9807 }
 0x59b   : > { %v5599_v1 = vmul.f32 1.442695, %v5425_v25  ;;  %v6309_v50 = vsel %vm14604_vm0, %v6306_v6, %v6303_v41  ;;  %v8790_v63 = vcombine.low %v14530_v0, %v14620_v26  ;;  %v9810_v31 = vpop.eup %9809  ;;  %9819 = vpow2.f32 %v8892_v5 }
 0x59c   : > { %v7947_v10 = vrot.slane %v7777_v61, 1  ;;  %v7529_v12 = vadd.f32 %v7528_v4, %v7527_v7  ;;  %v6573_v44 = vadd.f32 %v6309_v50, %v5037_v42  ;;  %v5597_v18 = vmul.f32 1.442695, %v5424_v11 }
 0x59d   : > { %v8791_v62 = vcombine.low %v14534_v35, %v14624_v47  ;;  %9821 = vpow2.f32 %v5599_v1  ;;  %v4287_v28 = vadd.f32 %v8790_v63, %v14355_v27  ;;  %v5038_v27 = vmax.f32 %v14517_v21, 0.0 }
 0x59e   : > { %v7948_v45 = vsel %vm7877_vm11, %v7947_v10, %v7946_v24  ;;  %v7530_v15 = vrot.slane %v7529_v12, 1  ;;  %v9812_v39 = vpop.eup %9811  ;;  %v6669_v0 = vsel %vm5133_vm15, %v14476_v60, %v6573_v44  ;;  %9823 = vpow2.f32 %v5597_v18 }
 0x59f   : > { %v14635_v58 = vadd.f32 %v10000_v56, %v7948_v45  ;;  %v14642_v42 = vadd.f32 %v8791_v62, %v14359_v48  ;;  %v9814_v35 = vpop.eup %9813  ;;  %v6956_v24 = vcombine.high %v14590_v54, %v14590_v54  ;;  %v6765_v43 = vmul.f32 %v9808_v57, %v6669_v0 }
 0x5a0   : > { %v6319_v49 = vadd.f32 1.0, %v9812_v39  ;;  %v9816_v32 = vpop.eup %9815  ;;  %v6312_v3 = vmul.f32 0.6931472, %v9814_v35  ;;  %v6315_v2 = vmul.f32 %v14595_v20, %v6314_v53  ;;  %vm6317_vm2 = vcmp.lt.f32.partialorder %v6316_v33, 0.0004427343 }
 0x5a1   : > { %v8022_v59 = vand.u32 2147483647, %v14635_v58  ;;  %v9818_v60 = vpop.eup %9817  ;;  %v7531_v51 = vadd.f32 %v7530_v15, %v7529_v12  ;;  %v6957_v7 = vcombine.high %v6765_v43, %v6765_v43  ;;  %v7060_v48 = vcombine.low %v6956_v24, %v6765_v43 }
 0x5a2   : > { %9825 = vlog2.f32 %v6319_v49  ;;  %v6318_v30 = vsel %vm6317_vm2, %v6315_v2, %v6312_v3  ;;  %v6322_v6 = vmul.f32 -0.5, %v9812_v39  ;;  %v4751_v25 = vadd.f32 1.0, %v9816_v32 }
 0x5a3   : > { %v8030_v5 = vsub.f32 0.0, %v8022_v59  ;;  %v7532_v54 = vsel %vm7139_vm3, %v6957_v7, 0.0  ;;  %v6574_v29 = vadd.f32 %v6318_v30, %v5038_v27  ;;  %vm5134_vm4 = vcmp.ne.f32.partialorder %v14517_v21, %v14517_v21 }
 0x5a4   : > { %v7533_v4 = vadd.f32 %v7532_v54, %v7060_v48  ;;  %v4752_v41 = vadd.f32 1.0, %v9818_v60  ;;  %v7707_v20 = vmul.f32 %v14449_v55, %v7531_v51  ;;  %v6323_v57 = vadd.f32 1.0, %v6322_v6 }
 0x5a5   : > { %v8043_v61 = vmul.f32 1.442695, %v8030_v5  ;;  %v6670_v33 = vsel %vm5134_vm4, %v14517_v21, %v6574_v29  ;;  %v9820_v53 = vpop.eup %9819  ;;  %v5039_v12 = vmax.f32 %v14573_v17, 0.0  ;;  %v6325_v50 = vand.u32 2147483647, %v9812_v39 }
 0x5a6   : > { %v7534_v11 = vrot.slane %v7533_v4, 4  ;;  %v6766_v1 = vmul.f32 %v9810_v31, %v6670_v33  ;;  %v5041_v63 = vmax.f32 %v14554_v36, 0.0  ;;  %vm5135_vm8 = vcmp.ne.f32.partialorder %v14573_v17, %v14573_v17 }
 0x5a7   : > { %9827 = vpow2.f32 %v8043_v61  ;;  %v14654_v10 = vpop.eup %9821  ;;  %v5040_v21 = vmax.f32 %v14610_v19, 0.0  ;;  %v4753_v45 = vadd.f32 1.0, %v9820_v53  ;;  %v5330_v15 = vand.u32 2147483647, %v14642_v42 }
 0x5a8   : > { %9829 = vrcp.f32 %v4751_v25  ;;  %v9824_v44 = vpop.eup %9823  ;;  %v7535_v18 = vadd.f32 %v7534_v11, %v7533_v4  ;;  %v6337_v62 = vadd.f32 1.0, %v14654_v10  ;;  %v3341_v56 = vcombine.high %v14620_v26, %v14624_v47 }
 0x5a9   : > { %9831 = vrcp.f32 %v4752_v41  ;;  %v6328_v31 = vadd.f32 1.0, %v9824_v44  ;;  %v14666_v0 = vadd.f32 %v14464_v23, %v7707_v20  ;;  %v6324_v24 = vmul.f32 %v9812_v39, %v6323_v57 }
 0x5aa   : > { %v7536_v35 = vrot.slane %v7535_v18, 2  ;;  %9833 = vlog2.f32 %v6337_v62  ;;  %v6958_v27 = vcombine.high %v6766_v1, %v6766_v1  ;;  %vm6326_vm9 = vcmp.lt.f32.partialorder %v6325_v50, 0.0004427343 }
 0x5ab   : > { %9835 = vlog2.f32 %v6328_v31  ;;  %v8893_v49 = vmul.f32 -1.442695, %v4287_v28  ;;  %v6331_v3 = vmul.f32 -0.5, %v9824_v44  ;;  %v6340_v2 = vmul.f32 -0.5, %v14654_v10 }
 0x5ac   : > { %v9826_v43 = vpop.eup %9825  ;;  %v7537_v32 = vadd.f32 %v7536_v35, %v7535_v18  ;;  %9837 = vrcp.f32 %v4753_v45  ;;  %v5426_v60 = vsub.f32 0.0, %v5330_v15  ;;  %v8792_v51 = vcombine.low %v3341_v56, %v14620_v26  ;;  %v14710_v45 = vpop.f32.mrb[176].mxu1 }
 0x5ad   : > { %v6321_v59 = vmul.f32 0.6931472, %v9826_v43  ;;  %v3340_v7 = vcombine.low %v14620_v26, %v14624_v47  ;;  %v6334_v5 = vand.u32 2147483647, %v9824_v44  ;;  %v6343_v30 = vand.u32 2147483647, %v14654_v10 }
 0x5ae   : > { %v7538_v48 = vrot.slane %v7537_v32, 1  ;;  %9839 = vpow2.f32 %v8893_v49  ;;  %v5601_v28 = vmul.f32 1.442695, %v5426_v60  ;;  %v4293_v54 = vadd.f32 %v8792_v51, %v14416_v9 }
 0x5af   : > { %v6327_v39 = vsel %vm6326_vm9, %v6324_v24, %v6321_v59  ;;  %v7061_v61 = vcombine.low %v6766_v1, %v6958_v27  ;;  %v6332_v4 = vadd.f32 1.0, %v6331_v3  ;;  %v6341_v41 = vadd.f32 1.0, %v6340_v2 }
 0x5b0   : > { %v6575_v6 = vadd.f32 %v6327_v39, %v5039_v12  ;;  %v7539_v25 = vadd.f32 %v7538_v48, %v7537_v32  ;;  %vm5137_vm10 = vcmp.ne.f32.partialorder %v14554_v36, %v14554_v36  ;;  %v8793_v53 = vcombine.high %v14624_v47, %v3340_v7 }
 0x5b1   : > { %v14674_v29 = vpop.eup %9827  ;;  %v2669_v9 = vcombine.high %v15723_v40, %v15723_v40  ;;  %vm5136_vm12 = vcmp.ne.f32.partialorder %v14610_v19, %v14610_v19  ;;  %9841 = vpow2.f32 %v5601_v28  ;;  %vm14695_vm15 = vcmp.lt.f32.partialorder %v6334_v5, 0.0004427343 }
 0x5b2   : > { %v9830_v20 = vpop.eup %9829  ;;  %v8094_v33 = vadd.f32 1.0, %v14674_v29  ;;  %v6671_v26 = vsel %vm5135_vm8, %v14573_v17, %v6575_v6  ;;  %v7708_v1 = vmul.f32 %v14449_v55, %v7539_v25  ;;  %v14693_v17 = vcombine.high %v15726_v46, %v15726_v46 }
 0x5b3   : > { %v9832_v11 = vpop.eup %9831  ;;  %v14687_v57 = vmul.f32 %v9830_v20, %v6671_v26  ;;  %vm14699_vm0 = vcmp.lt.f32.partialorder %v6343_v30, 0.0004427343  ;;  %v14704_v47 = vadd.f32 %v8793_v53, %v14418_v52  ;;  %v6333_v46 = vmul.f32 %v9824_v44, %v6332_v4  ;;  %v14716_v52 = vpop.f32.mrb[177].mxu1 }
 0x5b4   : > { %9843 = vlog2.f32 %v8094_v33  ;;  %v9834_v50 = vpop.eup %9833  ;;  %v7779_v18 = vadd.f32 %v14464_v23, %v7708_v1  ;;  %v6342_v31 = vmul.f32 %v14654_v10, %v6341_v41  ;;  %v8097_v56 = vmul.f32 -0.5, %v14674_v29  ;;  %v14723_v10 = vpop.f32.mrb[178].mxu1 }
 0x5b5   : > { %v7540_v62 = vsel %vm7139_vm3, %v14687_v57, 0.0  ;;  %v9836_v15 = vpop.eup %9835  ;;  %v6339_v24 = vmul.f32 0.6931472, %v9834_v50  ;;  %v14714_v43 = vrot.slane %v2669_v9, %v15669_v22  ;;  %v5331_v32 = vand.u32 2147483647, %v14704_v47  ;;  %v14732_v7 = vpop.f32.mrb[179].mxu1 }
 0x5b6   : > { %v7541_v35 = vadd.f32 %v7540_v62, %v7061_v61  ;;  %v7949_v27 = vrot.slane %v7779_v18, 7  ;;  %v6330_v49 = vmul.f32 0.6931472, %v9836_v15  ;;  %v14721_v44 = vrot.slane %v14693_v17, %v15669_v22  ;;  %v9838_v59 = vpop.eup %9837  ;;  %v14742_v6 = vpop.f32.mrb[180].mxu1 }
 0x5b7   : > { %v6345_v2 = vsel %vm14699_vm0, %v6342_v31, %v6339_v24  ;;  %v4299_v60 = vadd.f32 %v14469_v37, %v14714_v43  ;;  %v14730_v51 = vrot.slane %v2669_v9, %v15666_v14  ;;  %v5427_v30 = vsub.f32 0.0, %v5331_v32  ;;  %v14746_v41 = vpop.f32.mrb[181].mxu1 }
 0x5b8   : > { %v7542_v3 = vrot.slane %v7541_v35, 4  ;;  %v14736_v48 = vsel %vm7859_vm13, %v7949_v27, %v14666_v0  ;;  %v6336_v39 = vsel %vm14695_vm15, %v6333_v46, %v6330_v49  ;;  %v6577_v5 = vadd.f32 %v6345_v2, %v5041_v63  ;;  %v9840_v28 = vpop.eup %9839  ;;  %v14758_v26 = vpop.f32.mrb[182].mxu1 }
 0x5b9   : > { %v8098_v37 = vadd.f32 1.0, %v8097_v56  ;;  %v6576_v61 = vadd.f32 %v6336_v39, %v5040_v21  ;;  %v8894_v4 = vmul.f32 -1.442695, %v4293_v54  ;;  %v5603_v20 = vmul.f32 1.442695, %v5427_v30 }
 0x5ba   : > { %v7543_v25 = vadd.f32 %v7542_v3, %v7541_v35  ;;  %v6673_v0 = vsel %vm5137_vm10, %v14554_v36, %v6577_v5  ;;  %v14754_v63 = vadd.f32 %v14478_v38, %v14730_v51  ;;  %v8794_v33 = vcombine.low %v14714_v43, %v14721_v44  ;;  %v14767_v36 = vpop.f32.mrb[183].mxu1 }
 0x5bb   : > { %v8100_v21 = vand.u32 2147483647, %v14674_v29  ;;  %v6672_v53 = vsel %vm5136_vm12, %v14610_v19, %v6576_v61  ;;  %v14765_v9 = vmul.f32 %v9838_v59, %v6673_v0  ;;  %v14769_v1 = vpop.eup %9841  ;;  %v6959_v38 = vcombine.high %v14687_v57, %v14687_v57  ;;  %v14773_v50 = vpop.f32.mrb[184].mxu1 }
 0x5bc   : > { %v7544_v54 = vrot.slane %v7543_v25, 2  ;;  %v6768_v12 = vmul.f32 %v9832_v11, %v6672_v53  ;;  %v4754_v40 = vadd.f32 1.0, %v9840_v28  ;;  %9845 = vpow2.f32 %v5603_v20  ;;  %v14777_v31 = vpop.f32.mrb[185].mxu1 }
 0x5bd   : > { %v7998_v62 = vmax.f32 %v14635_v58, 0.0  ;;  %v6346_v19 = vadd.f32 1.0, %v14769_v1  ;;  %9847 = vpow2.f32 %v8894_v4  ;;  %v8099_v56 = vmul.f32 %v14674_v29, %v8098_v37  ;;  %v14780_v57 = vpop.f32.mrb[186].mxu1  ;;  %v15731_v4 = vld [vmem:[#allocation37_spill] sm:$0xff] }
 0x5be   : > { %v9844_v18 = vpop.eup %9843  ;;  %v7545_v46 = vadd.f32 %v7544_v54, %v7543_v25  ;;  %v6960_v35 = vcombine.high %v6768_v12, %v6768_v12  ;;  %v7062_v24 = vcombine.low %v6959_v38, %v6768_v12  ;;  %vm8006_vm2 = vcmp.ne.f32.partialorder %v14635_v58, %v14635_v58  ;;  %v14784_v43 = vpop.f32.mrb[187].mxu1 }
 0x5bf   : > { %v8096_v15 = vmul.f32 0.6931472, %v9844_v18  ;;  %vm8101_vm4 = vcmp.lt.f32.partialorder %v8100_v21, 0.0004427343  ;;  %9849 = vlog2.f32 %v6346_v19  ;;  %v5042_v32 = vmax.f32 %v14642_v42, 0.0 }
 0x5c0   : > { %v7546_v11 = vrot.slane %v7545_v46, 1  ;;  %v7548_v49 = vsel %vm7139_vm3, %v6960_v35, 0.0  ;;  %9851 = vrcp.f32 %v4754_v40  ;;  %v6349_v2 = vmul.f32 -0.5, %v14769_v1 }
 0x5c1   : > { %v8102_v27 = vsel %vm8101_vm4, %v8099_v56, %v8096_v15  ;;  %v7549_v3 = vadd.f32 %v7548_v49, %v7062_v24  ;;  %v8895_v39 = vmul.f32 -1.442695, %v4299_v60  ;;  %v5332_v5 = vand.u32 2147483647, %v14754_v63 }
 0x5c2   : > { %v8126_v29 = vadd.f32 %v8102_v27, %v7998_v62  ;;  %v7547_v59 = vadd.f32 %v7546_v11, %v7545_v46  ;;  %v4305_v30 = vadd.f32 %v8794_v33, %v14482_v16  ;;  %v3169_v28 = vrot.slane %v14693_v17, %v15666_v14  ;;  %v14807_v33 = vpop.f32.mrb[188].mxu1 }
 0x5c3   : > { %v7550_v61 = vrot.slane %v7549_v3, 4  ;;  %v14800_v0 = vrot.slane %v15731_v4, %v15669_v22  ;;  %v6961_v60 = vcombine.high %v14765_v9, %v14765_v9  ;;  %v6352_v16 = vand.u32 2147483647, %v14769_v1  ;;  %v14812_v38 = vpop.f32.mrb[189].mxu1 }
 0x5c4   : > { %v8134_v37 = vsel %vm8006_vm2, %v14635_v58, %v8126_v29  ;;  %v7709_v25 = vmul.f32 %v14449_v55, %v7547_v59  ;;  %v5428_v20 = vsub.f32 0.0, %v5332_v5  ;;  %v8795_v17 = vcombine.low %v14730_v51, %v3169_v28  ;;  %v14822_v62 = vpop.f32.mrb[190].mxu1 }
 0x5c5   : > { %8142 = vst [vmem:[%s12773_s26 + $0x28] sm:$0xff] %v8134_v37  ;;  %v7551_v21 = vadd.f32 %v7550_v61, %v7549_v3  ;;  %v6350_v54 = vadd.f32 1.0, %v6349_v2  ;;  %v4317_v53 = vadd.f32 %v14710_v45, %v14800_v0  ;;  %vm5138_vm8 = vcmp.ne.f32.partialorder %v14642_v42, %v14642_v42  ;;  %v14826_v35 = vpop.f32.mrb[191].mxu1 }
 0x5c6   : > { %v7780_v58 = vadd.f32 %v14464_v23, %v7709_v25  ;;  %v14814_v12 = vpop.eup %9845  ;;  %v5605_v40 = vmul.f32 1.442695, %v5428_v20  ;;  %v14819_v18 = vadd.f32 %v8795_v17, %v14488_v13  ;;  %v3345_v51 = vcombine.high %v14721_v44, %v3169_v28 }
 0x5c7   : > { %v9848_v46 = vpop.eup %9847  ;;  %v7552_v15 = vrot.slane %v7551_v21, 2  ;;  %v6355_v45 = vadd.f32 1.0, %v14814_v12  ;;  %v3344_v56 = vcombine.low %v14721_v44, %v3169_v28  ;;  %v7063_v24 = vcombine.low %v14765_v9, %v6961_v60 }
 0x5c8   : > { %v7951_v19 = vrot.slane %v7780_v58, 6  ;;  %vm14829_vm9 = vcmp.lt.f32.partialorder %v6352_v16, 0.0004427343  ;;  %9853 = vpow2.f32 %v8895_v39  ;;  %v8896_v13 = vmul.f32 -1.442695, %v4305_v30 }
 0x5c9   : > { %v9850_v27 = vpop.eup %9849  ;;  %v7553_v29 = vadd.f32 %v7552_v15, %v7551_v21  ;;  %v6351_v59 = vmul.f32 %v14769_v1, %v6350_v54  ;;  %9855 = vlog2.f32 %v6355_v45  ;;  %v6358_v5 = vmul.f32 -0.5, %v14814_v12 }
 0x5ca   : > { %v7952_v49 = vsel %vm7862_vm1, %v7951_v19, %v14736_v48  ;;  %v9852_v3 = vpop.eup %9851  ;;  %v6348_v2 = vmul.f32 0.6931472, %v9850_v27  ;;  %9857 = vpow2.f32 %v5605_v40  ;;  %v5333_v9 = vand.u32 2147483647, %v14819_v18 }
 0x5cb   : > { %v7554_v37 = vrot.slane %v7553_v29, 1  ;;  %v4755_v25 = vadd.f32 1.0, %v9848_v46  ;;  %v8796_v39 = vcombine.low %v3345_v51, %v14721_v44  ;;  %v8797_v30 = vcombine.high %v3169_v28, %v3344_v56 }
 0x5cc   : > { %v6354_v61 = vsel %vm14829_vm9, %v6351_v59, %v6348_v2  ;;  %9859 = vpow2.f32 %v8896_v13  ;;  %v5429_v48 = vsub.f32 0.0, %v5333_v9  ;;  %v3177_v1 = vrot.slane %v15731_v4, %v15666_v14 }
 0x5cd   : > { %v7555_v60 = vadd.f32 %v7554_v37, %v7553_v29  ;;  %v6578_v16 = vadd.f32 %v6354_v61, %v5042_v32  ;;  %v4311_v20 = vadd.f32 %v8796_v39, %v14563_v8  ;;  %v14845_v17 = vadd.f32 %v8797_v30, %v14567_v34  ;;  %v15734_v34 = vld [vmem:[#allocation39_spill] sm:$0xff] }
 0x5ce   : > { %v6359_v58 = vadd.f32 1.0, %v6358_v5  ;;  %v5607_v21 = vmul.f32 1.442695, %v5429_v48  ;;  %v8898_v54 = vmul.f32 -1.442695, %v4317_v53  ;;  %v14848_v44 = vadd.f32 %v14716_v52, %v3177_v1 }
 0x5cf   : > { %v7710_v28 = vmul.f32 %v14449_v55, %v7555_v60  ;;  %v6674_v40 = vsel %vm5138_vm8, %v14642_v42, %v6578_v16  ;;  %9861 = vrcp.f32 %v4755_v25  ;;  %v8897_v32 = vmul.f32 -1.442695, %v4311_v20 }
 0x5d0   : > { %v6770_v51 = vmul.f32 %v9852_v3, %v6674_v40  ;;  %9863 = vpow2.f32 %v5607_v21  ;;  %v5334_v8 = vand.u32 2147483647, %v14845_v17  ;;  %v14858_v46 = vrot.slane %v15734_v34, %v15669_v22 }
 0x5d1   : > { %v7781_v52 = vadd.f32 %v14464_v23, %v7710_v28  ;;  %v5043_v53 = vmax.f32 %v14704_v47, 0.0  ;;  %v6361_v55 = vand.u32 2147483647, %v14814_v12  ;;  %v6360_v42 = vmul.f32 %v14814_v12, %v6359_v58 }
 0x5d2   : > { %v9854_v19 = vpop.eup %9853  ;;  %v7556_v15 = vsel %vm7139_vm3, %v6770_v51, 0.0  ;;  %v5430_v45 = vsub.f32 0.0, %v5334_v8  ;;  %9865 = vpow2.f32 %v8898_v54  ;;  %v5335_v27 = vand.u32 2147483647, %v14848_v44 }
 0x5d3   : > { %v9856_v56 = vpop.eup %9855  ;;  %v7953_v11 = vrot.slane %v7781_v52, 5  ;;  %v7557_v13 = vadd.f32 %v7556_v15, %v7063_v24  ;;  %9867 = vpow2.f32 %v8897_v32  ;;  %v8798_v3 = vcombine.low %v14800_v0, %v14858_v46 }
 0x5d4   : > { %v9858_v29 = vpop.eup %9857  ;;  %v6357_v59 = vmul.f32 0.6931472, %v9856_v56  ;;  %v5609_v23 = vmul.f32 1.442695, %v5430_v45  ;;  %v14870_v2 = vrot.slane %v15734_v34, %v15666_v14  ;;  %vm6362_vm10 = vcmp.lt.f32.partialorder %v6361_v55, 0.0004427343 }
 0x5d5   : > { %v14873_v12 = vsel %vm7865_vm5, %v7953_v11, %v7952_v49  ;;  %v7558_v5 = vrot.slane %v7557_v13, 4  ;;  %v6364_v9 = vadd.f32 1.0, %v9858_v29  ;;  %vm5139_vm12 = vcmp.ne.f32.partialorder %v14704_v47, %v14704_v47  ;;  %v14890_v56 = vpop.f32.mrb[192].mxu1 }
 0x5d6   : > { %v9860_v24 = vpop.eup %9859  ;;  %v6363_v37 = vsel %vm6362_vm10, %v6360_v42, %v6357_v59  ;;  %9869 = vpow2.f32 %v5609_v23  ;;  %v5431_v25 = vsub.f32 0.0, %v5335_v27  ;;  %v6367_v0 = vmul.f32 -0.5, %v9858_v29  ;;  %v14900_v59 = vpop.f32.mrb[193].mxu1 }
 0x5d7   : > { %v7559_v39 = vadd.f32 %v7558_v5, %v7557_v13  ;;  %v6579_v30 = vadd.f32 %v6363_v37, %v5043_v53  ;;  %9871 = vlog2.f32 %v6364_v9  ;;  %v4756_v61 = vadd.f32 1.0, %v9854_v19 }
 0x5d8   : > { %v5611_v48 = vmul.f32 1.442695, %v5431_v25  ;;  %v4323_v60 = vadd.f32 %v8798_v3, %v14723_v10  ;;  %v8799_v49 = vcombine.low %v3177_v1, %v14870_v2  ;;  %v6962_v20 = vcombine.high %v6770_v51, %v6770_v51 }
 0x5d9   : > { %v9862_v16 = vpop.eup %9861  ;;  %v7560_v58 = vrot.slane %v7559_v39, 2  ;;  %v6675_v21 = vsel %vm5139_vm12, %v14704_v47, %v6579_v30  ;;  %v4757_v54 = vadd.f32 1.0, %v9860_v24  ;;  %v6370_v32 = vand.u32 2147483647, %v9858_v29 }
 0x5da   : > { %v14880_v28 = vpop.eup %9863  ;;  %v6771_v40 = vmul.f32 %v9862_v16, %v6675_v21  ;;  %9873 = vpow2.f32 %v5611_v48  ;;  %v14883_v8 = vadd.f32 %v8799_v49, %v14732_v7  ;;  %v5044_v53 = vmax.f32 %v14754_v63, 0.0 }
 0x5db   : > { %v7561_v52 = vadd.f32 %v7560_v58, %v7559_v39  ;;  %v6368_v10 = vadd.f32 1.0, %v6367_v0  ;;  %v6373_v1 = vadd.f32 1.0, %v14880_v28  ;;  %9875 = vrcp.f32 %v4756_v61  ;;  %v14911_v61 = vld [vmem:[%s15333_s7] ss:$0 sm:$0xff] }
 0x5dc   : > { %v9866_v55 = vpop.eup %9865  ;;  %v6963_v51 = vcombine.high %v6771_v40, %v6771_v40  ;;  %v7064_v19 = vcombine.low %v6962_v20, %v6771_v40  ;;  %v5045_v47 = vmax.f32 %v14819_v18, 0.0  ;;  %v5046_v45 = vmax.f32 %v14845_v17, 0.0 }
 0x5dd   : > { %v9868_v15 = vpop.eup %9867  ;;  %v7562_v42 = vrot.slane %v7561_v52, 1  ;;  %9877 = vlog2.f32 %v6373_v1  ;;  %v5047_v7 = vmax.f32 %v14848_v44, 0.0  ;;  %vm5140_vm15 = vcmp.ne.f32.partialorder %v14754_v63, %v14754_v63 }
 0x5de   : > { %v7564_v11 = vsel %vm7139_vm3, %v6963_v51, 0.0  ;;  %vm14895_vm0 = vcmp.lt.f32.partialorder %v6370_v32, 0.0004427343  ;;  %9879 = vrcp.f32 %v4757_v54  ;;  %v6376_v27 = vmul.f32 -0.5, %v14880_v28  ;;  %v14919_v54 = vld [vmem:[%s15334_s8] ss:$0 sm:$0xff] }
 0x5df   : > { %v7563_v23 = vadd.f32 %v7562_v42, %v7561_v52  ;;  %v7565_v3 = vadd.f32 %v7564_v11, %v7064_v19  ;;  %v6369_v5 = vmul.f32 %v9858_v29, %v6368_v10  ;;  %v4759_v9 = vadd.f32 1.0, %v9866_v55 }
 0x5e0   : > { %v14902_v24 = vpop.eup %9869  ;;  %v6379_v37 = vand.u32 2147483647, %v14880_v28  ;;  %v8899_v25 = vmul.f32 -1.442695, %v4323_v60  ;;  %v5336_v39 = vand.u32 2147483647, %v14883_v8  ;;  %v3349_v30 = vcombine.high %v14858_v46, %v14870_v2 }
 0x5e1   : > { %v9872_v0 = vpop.eup %9871  ;;  %v7711_v48 = vmul.f32 %v14911_v61, %v7563_v23  ;;  %v7566_v29 = vrot.slane %v7565_v3, 4  ;;  %v4758_v49 = vadd.f32 1.0, %v9868_v15  ;;  %v6382_v16 = vadd.f32 1.0, %v14902_v24 }
 0x5e2   : > { %v6366_v20 = vmul.f32 0.6931472, %v9872_v0  ;;  %v6377_v58 = vadd.f32 1.0, %v6376_v27  ;;  %v5432_v60 = vsub.f32 0.0, %v5336_v39  ;;  %v8800_v21 = vcombine.low %v3349_v30, %v14858_v46 }
 0x5e3   : > { %v7782_v40 = vadd.f32 %v14919_v54, %v7711_v48  ;;  %v7567_v32 = vadd.f32 %v7566_v29, %v7565_v3  ;;  %9881 = vlog2.f32 %v6382_v16  ;;  %v6385_v52 = vmul.f32 -0.5, %v14902_v24  ;;  %v14944_v29 = vpop.f32.mrb[194].mxu1 }
 0x5e4   : > { %v14923_v10 = vpop.eup %9873  ;;  %v6372_v1 = vsel %vm14895_vm0, %v6369_v5, %v6366_v20  ;;  %vm5141_vm2 = vcmp.ne.f32.partialorder %v14819_v18, %v14819_v18  ;;  %9883 = vpow2.f32 %v8899_v25  ;;  %v5613_v55 = vmul.f32 1.442695, %v5432_v60  ;;  %v14949_v20 = vpop.f32.mrb[195].mxu1 }
 0x5e5   : > { %v4329_v51 = vadd.f32 %v8800_v21, %v14742_v6  ;;  %v7955_v19 = vrot.slane %v7782_v40, 4  ;;  %v7568_v15 = vrot.slane %v7567_v32, 2  ;;  %v6580_v42 = vadd.f32 %v6372_v1, %v5044_v53  ;;  %v9876_v27 = vpop.eup %9875 }
 0x5e6   : > { %v3348_v11 = vcombine.low %v14858_v46, %v14870_v2  ;;  %v6378_v23 = vmul.f32 %v14880_v28, %v6377_v58  ;;  %v6391_v3 = vadd.f32 1.0, %v14923_v10  ;;  %9885 = vpow2.f32 %v5613_v55 }
 0x5e7   : > { %v2718_v13 = vcombine.high %v15731_v4, %v15731_v4  ;;  %v9878_v5 = vpop.eup %9877  ;;  %v7956_v25 = vsel %vm7868_vm7, %v7955_v19, %v14873_v12  ;;  %v7569_v6 = vadd.f32 %v7568_v15, %v7567_v32  ;;  %v6676_v53 = vsel %vm5140_vm15, %v14754_v63, %v6580_v42 }
 0x5e8   : > { %v6386_v46 = vadd.f32 1.0, %v6385_v52  ;;  %v9880_v39 = vpop.eup %9879  ;;  %v6772_v30 = vmul.f32 %v9876_v27, %v6676_v53  ;;  %v6375_v28 = vmul.f32 0.6931472, %v9878_v5  ;;  %9887 = vlog2.f32 %v6391_v3 }
 0x5e9   : > { %v6394_v0 = vmul.f32 -0.5, %v14923_v10  ;;  %v7570_v48 = vrot.slane %v7569_v6, 1  ;;  %vm6380_vm4 = vcmp.lt.f32.partialorder %v6379_v37, 0.0004427343  ;;  %9889 = vrcp.f32 %v4758_v49  ;;  %v14957_v49 = vpop.f32.mrb[196].mxu1 }
 0x5ea   : > { %v8801_v4 = vcombine.high %v14870_v2, %v3348_v11  ;;  %v6964_v12 = vcombine.high %v6772_v30, %v6772_v30  ;;  %v6381_v16 = vsel %vm6380_vm4, %v6378_v23, %v6375_v28  ;;  %vm5142_vm8 = vcmp.ne.f32.partialorder %v14845_v17, %v14845_v17 }
 0x5eb   : > { %v6388_v63 = vand.u32 2147483647, %v14902_v24  ;;  %9891 = vrcp.f32 %v4759_v9  ;;  %v7571_v58 = vadd.f32 %v7570_v48, %v7569_v6  ;;  %v6581_v60 = vadd.f32 %v6381_v16, %v5045_v47  ;;  %v14961_v9 = vpop.f32.mrb[197].mxu1 }
 0x5ec   : > { %v6397_v37 = vand.u32 2147483647, %v14923_v10  ;;  %v14955_v2 = vadd.f32 %v8801_v4, %v14746_v41  ;;  %v6387_v21 = vmul.f32 %v14902_v24, %v6386_v46  ;;  %v6395_v40 = vadd.f32 1.0, %v6394_v0 }
 0x5ed   : > { %v8900_v32 = vmul.f32 -1.442695, %v4329_v51  ;;  %v3189_v52 = vrot.slane %v2718_v13, %v15669_v22  ;;  %v9882_v1 = vpop.eup %9881  ;;  %v7712_v55 = vmul.f32 %v14911_v61, %v7571_v58  ;;  %v7065_v19 = vcombine.low %v6772_v30, %v6964_v12 }
 0x5ee   : > { %v6677_v41 = vsel %vm5141_vm2, %v14819_v18, %v6581_v60  ;;  %v14969_v47 = vrot.slane %v2718_v13, %v15666_v14  ;;  %v9884_v15 = vpop.eup %9883  ;;  %v6384_v42 = vmul.f32 0.6931472, %v9882_v1  ;;  %v5337_v51 = vand.u32 2147483647, %v14955_v2 }
 0x5ef   : > { %v6773_v24 = vmul.f32 %v9880_v39, %v6677_v41  ;;  %v4335_v11 = vadd.f32 %v14758_v26, %v3189_v52  ;;  %v7783_v27 = vadd.f32 %v14919_v54, %v7712_v55  ;;  %vm6389_vm9 = vcmp.lt.f32.partialorder %v6388_v63, 0.0004427343 }
 0x5f0   : > { %vm14974_vm10 = vcmp.lt.f32.partialorder %v6397_v37, 0.0004427343  ;;  %v14980_v18 = vadd.f32 %v14767_v36, %v14969_v47  ;;  %v9886_v3 = vpop.eup %9885  ;;  %v6390_v5 = vsel %vm6389_vm9, %v6387_v21, %v6384_v42  ;;  %v5433_v6 = vsub.f32 0.0, %v5337_v51 }
 0x5f1   : > { %v7572_v13 = vsel %vm7139_vm3, %v6773_v24, 0.0  ;;  %v2720_v53 = vcombine.high %v15734_v34, %v15734_v34  ;;  %v7957_v26 = vrot.slane %v7783_v27, 3  ;;  %v6582_v39 = vadd.f32 %v6390_v5, %v5046_v45 }
 0x5f2   : > { %v7573_v46 = vadd.f32 %v7572_v13, %v7065_v19  ;;  %v6400_v30 = vadd.f32 1.0, %v9886_v3  ;;  %v9888_v28 = vpop.eup %9887  ;;  %v6396_v0 = vmul.f32 %v14923_v10, %v6395_v40  ;;  %v4760_v48 = vadd.f32 1.0, %v9884_v15 }
 0x5f3   : > { %9893 = vpow2.f32 %v8900_v32  ;;  %v5615_v36 = vmul.f32 1.442695, %v5433_v6  ;;  %v9890_v4 = vpop.eup %9889  ;;  %v14989_v12 = vsel %vm7871_vm14, %v7957_v26, %v7956_v25  ;;  %v6678_v34 = vsel %vm5142_vm8, %v14845_v17, %v6582_v39  ;;  %v15008_v39 = vpop.f32.mrb[198].mxu1 }
 0x5f4   : > { %v7574_v16 = vrot.slane %v7573_v46, 4  ;;  %v6393_v63 = vmul.f32 0.6931472, %v9888_v28  ;;  %v6965_v45 = vcombine.high %v6773_v24, %v6773_v24  ;;  %v6774_v60 = vmul.f32 %v9890_v4, %v6678_v34 }
 0x5f5   : > { %v9892_v58 = vpop.eup %9891  ;;  %9895 = vlog2.f32 %v6400_v30  ;;  %v3197_v10 = vrot.slane %v2720_v53, %v15669_v22  ;;  %v3201_v25 = vrot.slane %v2720_v53, %v15666_v14  ;;  %v6403_v17 = vmul.f32 -0.5, %v9886_v3 }
 0x5f6   : > { %v7575_v37 = vadd.f32 %v7574_v16, %v7573_v46  ;;  %v6399_v21 = vsel %vm14974_vm10, %v6396_v0, %v6393_v63  ;;  %9897 = vpow2.f32 %v5615_v36  ;;  %v6966_v40 = vcombine.high %v6774_v60, %v6774_v60 }
 0x5f7   : > { %v7066_v32 = vcombine.low %v6965_v45, %v6774_v60  ;;  %v6583_v1 = vadd.f32 %v6399_v21, %v5047_v7  ;;  %vm5143_vm12 = vcmp.ne.f32.partialorder %v14848_v44, %v14848_v44  ;;  %9899 = vrcp.f32 %v4760_v48  ;;  %v15014_v48 = vpop.f32.mrb[199].mxu1 }
 0x5f8   : > { %v7576_v55 = vrot.slane %v7575_v37, 2  ;;  %v7580_v19 = vsel %vm7139_vm3, %v6966_v40, 0.0  ;;  %v5338_v15 = vand.u32 2147483647, %v14980_v18  ;;  %v8802_v24 = vcombine.low %v3189_v52, %v3197_v10 }
 0x5f9   : > { %v6679_v41 = vsel %vm5143_vm12, %v14848_v44, %v6583_v1  ;;  %v7581_v51 = vadd.f32 %v7580_v19, %v7066_v32  ;;  %v6406_v23 = vand.u32 2147483647, %v9886_v3  ;;  %v6404_v13 = vadd.f32 1.0, %v6403_v17 }
 0x5fa   : > { %v7577_v42 = vadd.f32 %v7576_v55, %v7575_v37  ;;  %v6775_v27 = vmul.f32 %v9892_v58, %v6679_v41  ;;  %v5434_v5 = vsub.f32 0.0, %v5338_v15  ;;  %v4341_v7 = vadd.f32 %v8802_v24, %v14773_v50 }
 0x5fb   : > { %v8803_v6 = vcombine.low %v14969_v47, %v3201_v25  ;;  %v7582_v26 = vrot.slane %v7581_v51, 4  ;;  %v3353_v46 = vcombine.high %v3197_v10, %v3201_v25  ;;  %v5048_v44 = vmax.f32 %v14883_v8, 0.0 }
 0x5fc   : > { %v7578_v53 = vrot.slane %v7577_v42, 1  ;;  %v8901_v28 = vmul.f32 -1.442695, %v4335_v11  ;;  %v5617_v52 = vmul.f32 1.442695, %v5434_v5  ;;  %vm5144_vm15 = vcmp.ne.f32.partialorder %v14883_v8, %v14883_v8 }
 0x5fd   : > { %v9894_v30 = vpop.eup %9893  ;;  %v15012_v0 = vadd.f32 %v8803_v6, %v14777_v31  ;;  %v7583_v4 = vadd.f32 %v7582_v26, %v7581_v51  ;;  %vm15018_vm0 = vcmp.lt.f32.partialorder %v6406_v23, 0.0004427343  ;;  %v6405_v16 = vmul.f32 %v9886_v3, %v6404_v13 }
 0x5fe   : > { %v7579_v36 = vadd.f32 %v7578_v53, %v7577_v42  ;;  %9901 = vpow2.f32 %v5617_v52  ;;  %v3352_v34 = vcombine.low %v3197_v10, %v3201_v25  ;;  %v8804_v60 = vcombine.low %v3353_v46, %v3197_v10 }
 0x5ff   : > { %v9896_v47 = vpop.eup %9895  ;;  %v5339_v11 = vand.u32 2147483647, %v15012_v0  ;;  %v7584_v58 = vrot.slane %v7583_v4, 2  ;;  %v6967_v37 = vcombine.high %v6775_v27, %v6775_v27  ;;  %9903 = vpow2.f32 %v8901_v28 }
 0x600   : > { %v9898_v63 = vpop.eup %9897  ;;  %v7713_v31 = vmul.f32 %v14911_v61, %v7579_v36  ;;  %v6402_v45 = vmul.f32 0.6931472, %v9896_v47  ;;  %v4347_v55 = vadd.f32 %v8804_v60, %v14780_v57  ;;  %v8902_v41 = vmul.f32 -1.442695, %v4341_v7 }
 0x601   : > { %v6409_v21 = vadd.f32 1.0, %v9898_v63  ;;  %v5435_v40 = vsub.f32 0.0, %v5339_v11  ;;  %v9900_v32 = vpop.eup %9899  ;;  %v7585_v17 = vadd.f32 %v7584_v58, %v7583_v4  ;;  %v8805_v15 = vcombine.high %v3201_v25, %v3352_v34 }
 0x602   : > { %v7784_v1 = vadd.f32 %v14919_v54, %v7713_v31  ;;  %v6408_v3 = vsel %vm15018_vm0, %v6405_v16, %v6402_v45  ;;  %v4761_v10 = vadd.f32 1.0, %v9894_v30  ;;  %v7067_v23 = vcombine.low %v6775_v27, %v6967_v37 }
 0x603   : > { %v6584_v19 = vadd.f32 %v6408_v3, %v5048_v44  ;;  %9905 = vlog2.f32 %v6409_v21  ;;  %v7586_v42 = vrot.slane %v7585_v17, 1  ;;  %v5619_v51 = vmul.f32 1.442695, %v5435_v40  ;;  %v10003_v3 = vld [vmem:[%s10457_s19 + $0x30] sm:$0xff] }
 0x604   : > { %v7959_v24 = vrot.slane %v7784_v1, 2  ;;  %v6412_v5 = vmul.f32 -0.5, %v9898_v63  ;;  %v15033_v6 = vadd.f32 %v8805_v15, %v14784_v43  ;;  %v6415_v46 = vand.u32 2147483647, %v9898_v63 }
 0x605   : > { %v6680_v13 = vsel %vm5144_vm15, %v14883_v8, %v6584_v19  ;;  %v7587_v53 = vadd.f32 %v7586_v42, %v7585_v17  ;;  %9907 = vpow2.f32 %v5619_v51  ;;  %v5049_v8 = vmax.f32 %v14955_v2, 0.0 }
 0x606   : > { %v7960_v57 = vsel %vm7874_vm6, %v7959_v24, %v14989_v12  ;;  %v15037_v7 = vmul.f32 %v9900_v32, %v6680_v13  ;;  %9909 = vpow2.f32 %v8902_v41  ;;  %v5340_v25 = vand.u32 2147483647, %v15033_v6  ;;  %v15741_v12 = vld [vmem:[#allocation38_spill] sm:$0xff] }
 0x607   : > { %v7714_v27 = vmul.f32 %v14911_v61, %v7587_v53  ;;  %9911 = vrcp.f32 %v4761_v10  ;;  %v15046_v28 = vrot.slane %v15741_v12, %v15669_v22  ;;  %v6413_v36 = vadd.f32 1.0, %v6412_v5 }
 0x608   : > { %v7588_v26 = vsel %vm7139_vm3, %v15037_v7, 0.0  ;;  %v9902_v43 = vpop.eup %9901  ;;  %v5436_v44 = vsub.f32 0.0, %v5340_v25  ;;  %v8903_v50 = vmul.f32 -1.442695, %v4347_v55  ;;  %v15053_v31 = vrot.slane %v15741_v12, %v15666_v14  ;;  %v15744_v25 = vld [vmem:[#allocation40_spill] sm:$0xff] }
 0x609   : > { %v7589_v30 = vadd.f32 %v7588_v26, %v7067_v23  ;;  %v7785_v52 = vadd.f32 %v14919_v54, %v7714_v27  ;;  %v6418_v4 = vadd.f32 1.0, %v9902_v43  ;;  %v9904_v47 = vpop.eup %9903  ;;  %v4353_v34 = vadd.f32 %v14807_v33, %v15046_v28 }
 0x60a   : > { %v5621_v11 = vmul.f32 1.442695, %v5436_v44  ;;  %vm5145_vm2 = vcmp.ne.f32.partialorder %v14955_v2, %v14955_v2  ;;  %vm15057_vm4 = vcmp.lt.f32.partialorder %v6415_v46, 0.0004427343  ;;  %v6421_v21 = vmul.f32 -0.5, %v9902_v43 }
 0x60b   : > { %v7590_v16 = vrot.slane %v7589_v30, 4  ;;  %v7961_v58 = vrot.slane %v7785_v52, 1  ;;  %9913 = vlog2.f32 %v6418_v4  ;;  %v8904_v40 = vmul.f32 -1.442695, %v4353_v34 }
 0x60c   : > { %v15063_v33 = vadd.f32 %v14812_v38, %v15053_v31  ;;  %v6414_v17 = vmul.f32 %v9898_v63, %v6413_v36  ;;  %9915 = vpow2.f32 %v5621_v11  ;;  %v4762_v41 = vadd.f32 1.0, %v9904_v47 }
 0x60d   : > { %v9906_v60 = vpop.eup %9905  ;;  %v7591_v37 = vadd.f32 %v7590_v16, %v7589_v30  ;;  %v7962_v32 = vsel %vm7877_vm11, %v7961_v58, %v7960_v57  ;;  %9917 = vpow2.f32 %v8903_v50  ;;  %v5050_v42 = vmax.f32 %v14980_v18, 0.0 }
 0x60e   : > { %v6411_v1 = vmul.f32 0.6931472, %v9906_v60  ;;  %v15067_v55 = vadd.f32 %v10003_v3, %v7962_v32  ;;  %9919 = vpow2.f32 %v8904_v40  ;;  %v5341_v38 = vand.u32 2147483647, %v15063_v33 }
 0x60f   : > { %v7592_v19 = vrot.slane %v7591_v37, 2  ;;  %v15069_v15 = vpop.eup %9907  ;;  %v6422_v51 = vadd.f32 1.0, %v6421_v21  ;;  %v6424_v23 = vand.u32 2147483647, %v9902_v43  ;;  %v5051_v13 = vmax.f32 %v15012_v0, 0.0 }
 0x610   : > { %v6417_v24 = vsel %vm15057_vm4, %v6414_v17, %v6411_v1  ;;  %v9910_v10 = vpop.eup %9909  ;;  %v8023_v63 = vand.u32 2147483647, %v15067_v55  ;;  %v6427_v53 = vadd.f32 1.0, %v15069_v15  ;;  %v15080_v27 = vrot.slane %v15744_v25, %v15669_v22 }
 0x611   : > { %v7593_v5 = vadd.f32 %v7592_v19, %v7591_v37  ;;  %v6585_v57 = vadd.f32 %v6417_v24, %v5049_v8  ;;  %v9912_v26 = vpop.eup %9911  ;;  %9921 = vrcp.f32 %v4762_v41  ;;  %v5052_v30 = vmax.f32 %v15033_v6, 0.0 }
 0x612   : > { %v8031_v46 = vsub.f32 0.0, %v8023_v63  ;;  %v5437_v44 = vsub.f32 0.0, %v5341_v38  ;;  %v6968_v52 = vcombine.high %v15037_v7, %v15037_v7  ;;  %vm5146_vm8 = vcmp.ne.f32.partialorder %v14980_v18, %v14980_v18 }
 0x613   : > { %v6681_v8 = vsel %vm5145_vm2, %v14955_v2, %v6585_v57  ;;  %v4763_v36 = vadd.f32 1.0, %v9910_v10  ;;  %9923 = vlog2.f32 %v6427_v53  ;;  %v6423_v47 = vmul.f32 %v9902_v43, %v6422_v51 }
 0x614   : > { %v8045_v4 = vmul.f32 1.442695, %v8031_v46  ;;  %v6777_v50 = vmul.f32 %v9912_v26, %v6681_v8  ;;  %vm15091_vm9 = vcmp.lt.f32.partialorder %v6424_v23, 0.0004427343  ;;  %v7594_v34 = vrot.slane %v7593_v5, 1 }
 0x615   : > { %v9914_v11 = vpop.eup %9913  ;;  %v5623_v7 = vmul.f32 1.442695, %v5437_v44  ;;  %v8806_v58 = vcombine.low %v15046_v28, %v15080_v27  ;;  %v15099_v2 = vrot.slane %v15744_v25, %v15666_v14  ;;  %v6430_v37 = vmul.f32 -0.5, %v15069_v15 }
 0x616   : > { %9925 = vpow2.f32 %v8045_v4  ;;  %v6969_v45 = vcombine.high %v6777_v50, %v6777_v50  ;;  %v7068_v60 = vcombine.low %v6968_v52, %v6777_v50  ;;  %v9916_v43 = vpop.eup %9915  ;;  %v6420_v21 = vmul.f32 0.6931472, %v9914_v11 }
 0x617   : > { %9927 = vpow2.f32 %v5623_v7  ;;  %v4359_v40 = vadd.f32 %v8806_v58, %v14822_v62  ;;  %v8807_v32 = vcombine.low %v15053_v31, %v15099_v2  ;;  %v9918_v1 = vpop.eup %9917  ;;  %v6433_v17 = vand.u32 2147483647, %v15069_v15 }
 0x618   : > { %v7596_v28 = vsel %vm7139_vm3, %v6969_v45, 0.0  ;;  %9929 = vrcp.f32 %v4763_v36  ;;  %v6436_v3 = vadd.f32 1.0, %v9916_v43  ;;  %v9920_v19 = vpop.eup %9919  ;;  %v7595_v41 = vadd.f32 %v7594_v34, %v7593_v5 }
 0x619   : > { %v7597_v24 = vadd.f32 %v7596_v28, %v7068_v60  ;;  %v6426_v38 = vsel %vm15091_vm9, %v6423_v47, %v6420_v21  ;;  %v5053_v10 = vmax.f32 %v15063_v33, 0.0  ;;  %v7999_v62 = vmax.f32 %v15067_v55, 0.0 }
 0x61a   : > { %v6586_v63 = vadd.f32 %v6426_v38, %v5050_v42  ;;  %v6431_v51 = vadd.f32 1.0, %v6430_v37  ;;  %9931 = vlog2.f32 %v6436_v3  ;;  %vm5147_vm10 = vcmp.ne.f32.partialorder %v15012_v0, %v15012_v0 }
 0x61b   : > { %v7598_v31 = vrot.slane %v7597_v24, 4  ;;  %v4764_v23 = vadd.f32 1.0, %v9918_v1  ;;  %v6439_v57 = vmul.f32 -0.5, %v9916_v43  ;;  %v15114_v53 = vadd.f32 %v8807_v32, %v14826_v35  ;;  %v9922_v5 = vpop.eup %9921 }
 0x61c   : > { %v6682_v26 = vsel %vm5146_vm8, %v14980_v18, %v6586_v63  ;;  %vm15120_vm12 = vcmp.lt.f32.partialorder %v6433_v17, 0.0004427343  ;;  %v4765_v42 = vadd.f32 1.0, %v9920_v19  ;;  %v3357_v44 = vcombine.high %v15080_v27, %v15099_v2 }
 0x61d   : > { %v9924_v52 = vpop.eup %9923  ;;  %v7715_v8 = vmul.f32 %v14911_v61, %v7595_v41  ;;  %v7599_v36 = vadd.f32 %v7598_v31, %v7597_v24  ;;  %v6778_v35 = vmul.f32 %v9922_v5, %v6682_v26  ;;  %v8905_v4 = vmul.f32 -1.442695, %v4359_v40 }
 0x61e   : > { %v6429_v50 = vmul.f32 0.6931472, %v9924_v52  ;;  %v6432_v47 = vmul.f32 %v15069_v15, %v6431_v51  ;;  %v5342_v16 = vand.u32 2147483647, %v15114_v53  ;;  %v8808_v18 = vcombine.low %v3357_v44, %v15080_v27 }
 0x61f   : > { %v7600_v11 = vrot.slane %v7599_v36, 2  ;;  %9933 = vrcp.f32 %v4764_v23  ;;  %v6440_v34 = vadd.f32 1.0, %v6439_v57  ;;  %v6442_v7 = vand.u32 2147483647, %v9916_v43 }
 0x620   : > { %v9926_v58 = vpop.eup %9925  ;;  %v6970_v45 = vcombine.high %v6778_v35, %v6778_v35  ;;  %v6435_v60 = vsel %vm15120_vm12, %v6432_v47, %v6429_v50  ;;  %9935 = vrcp.f32 %v4765_v42  ;;  %v15133_v37 = vadd.f32 %v8808_v18, %v14890_v56 }
 0x621   : > { %v15135_v21 = vpop.eup %9927  ;;  %v8103_v15 = vadd.f32 1.0, %v9926_v58  ;;  %v7786_v40 = vadd.f32 %v14919_v54, %v7715_v8  ;;  %v7601_v32 = vadd.f32 %v7600_v11, %v7599_v36  ;;  %vm5148_vm15 = vcmp.ne.f32.partialorder %v15033_v6, %v15033_v6 }
 0x622   : > { %9937 = vpow2.f32 %v8905_v4  ;;  %v9930_v1 = vpop.eup %9929  ;;  %v6587_v28 = vadd.f32 %v6435_v60, %v5051_v13  ;;  %v6445_v17 = vadd.f32 1.0, %v15135_v21  ;;  %v5438_v3 = vsub.f32 0.0, %v5342_v16 }
 0x623   : > { %v3356_v56 = vcombine.low %v15080_v27, %v15099_v2  ;;  %9939 = vlog2.f32 %v8103_v15  ;;  %v7602_v19 = vrot.slane %v7601_v32, 1  ;;  %v6441_v41 = vmul.f32 %v9916_v43, %v6440_v34 }
 0x624   : > { %vm15145_vm0 = vcmp.lt.f32.partialorder %v6442_v7, 0.0004427343  ;;  %v9932_v38 = vpop.eup %9931  ;;  %v8106_v63 = vmul.f32 -0.5, %v9926_v58  ;;  %v7069_v51 = vcombine.low %v6778_v35, %v6970_v45  ;;  %v6683_v13 = vsel %vm5147_vm10, %v15012_v0, %v6587_v28 }
 0x625   : > { %9941 = vlog2.f32 %v6445_v17  ;;  %v8109_v31 = vand.u32 2147483647, %v9926_v58  ;;  %v7603_v23 = vadd.f32 %v7602_v19, %v7601_v32  ;;  %v6779_v57 = vmul.f32 %v9930_v1, %v6683_v13 }
 0x626   : > { %v6438_v27 = vmul.f32 0.6931472, %v9932_v38  ;;  %v5625_v5 = vmul.f32 1.442695, %v5438_v3  ;;  %v8809_v43 = vcombine.high %v15099_v2, %v3356_v56  ;;  %v2719_v26 = vcombine.high %v15741_v12, %v15741_v12 }
 0x627   : > { %v15158_v46 = vcombine.high %v15744_v25, %v15744_v25  ;;  %v7716_v42 = vmul.f32 %v14911_v61, %v7603_v23  ;;  %v7604_v44 = vsel %vm7139_vm3, %v6779_v57, 0.0  ;;  %v6448_v52 = vmul.f32 -0.5, %v15135_v21 }
 0x628   : > { %v6444_v0 = vsel %vm15145_vm0, %v6441_v41, %v6438_v27  ;;  %v8107_v8 = vadd.f32 1.0, %v8106_v63  ;;  %v7605_v36 = vadd.f32 %v7604_v44, %v7069_v51  ;;  %9943 = vpow2.f32 %v5625_v5 }
 0x629   : > { %v6588_v2 = vadd.f32 %v6444_v0, %v5052_v30  ;;  %v9934_v12 = vpop.eup %9933  ;;  %vm15167_vm2 = vcmp.lt.f32.partialorder %v8109_v31, 0.0004427343  ;;  %v7787_v25 = vadd.f32 %v14919_v54, %v7716_v42  ;;  %v6451_v4 = vand.u32 2147483647, %v15135_v21 }
 0x62a   : > { %v15174_v50 = vadd.f32 %v8809_v43, %v14900_v59  ;;  %v9936_v47 = vpop.eup %9935  ;;  %v7606_v16 = vrot.slane %v7605_v36, 4  ;;  %v3221_v18 = vrot.slane %v2719_v26, %v15669_v22  ;;  %v15182_v11 = vrot.slane %v2719_v26, %v15666_v14 }
 0x62b   : > { %v6684_v30 = vsel %vm5148_vm15, %v15033_v6, %v6588_v2  ;;  %v7963_v7 = vrot.slane %v7787_v25, 7  ;;  %v6971_v45 = vcombine.high %v6779_v57, %v6779_v57  ;;  %v6449_v15 = vadd.f32 1.0, %v6448_v52 }
 0x62c   : > { %v9938_v34 = vpop.eup %9937  ;;  %v6780_v60 = vmul.f32 %v9934_v12, %v6684_v30  ;;  %v7607_v32 = vadd.f32 %v7606_v16, %v7605_v36  ;;  %v5343_v59 = vand.u32 2147483647, %v15174_v50  ;;  %v4371_v1 = vadd.f32 %v14944_v29, %v3221_v18 }
 0x62d   : > { %v15188_v28 = vadd.f32 %v14949_v20, %v15182_v11  ;;  %v9940_v6 = vpop.eup %9939  ;;  %v8108_v17 = vmul.f32 %v9926_v58, %v8107_v8  ;;  %v7964_v3 = vsel %vm7859_vm13, %v7963_v7, %v7786_v40  ;;  %vm15191_vm4 = vcmp.lt.f32.partialorder %v6451_v4, 0.0004427343 }
 0x62e   : > { %v6972_v56 = vcombine.high %v6780_v60, %v6780_v60  ;;  %v7070_v19 = vcombine.low %v6971_v45, %v6780_v60  ;;  %v8105_v24 = vmul.f32 0.6931472, %v9940_v6  ;;  %v7608_v38 = vrot.slane %v7607_v32, 2 }
 0x62f   : > { %v9942_v41 = vpop.eup %9941  ;;  %v5439_v51 = vsub.f32 0.0, %v5343_v59  ;;  %v6450_v20 = vmul.f32 %v15135_v21, %v6449_v15  ;;  %v8906_v31 = vmul.f32 -1.442695, %v15133_v37  ;;  %vm8007_vm13 = vcmp.ne.f32.partialorder %v15067_v55, %v15067_v55 }
 0x630   : > { %v7612_v29 = vsel %vm7139_vm3, %v6972_v56, 0.0  ;;  %v6447_v13 = vmul.f32 0.6931472, %v9942_v41  ;;  %v8111_v58 = vsel %vm15167_vm2, %v8108_v17, %v8105_v24  ;;  %v7609_v40 = vadd.f32 %v7608_v38, %v7607_v32 }
 0x631   : > { %v7613_v23 = vadd.f32 %v7612_v29, %v7070_v19  ;;  %v5627_v57 = vmul.f32 1.442695, %v5439_v51  ;;  %v8127_v27 = vadd.f32 %v8111_v58, %v7999_v62  ;;  %v5344_v21 = vand.u32 2147483647, %v15188_v28 }
 0x632   : > { %v6453_v5 = vsel %vm15191_vm4, %v6450_v20, %v6447_v13  ;;  %v9944_v43 = vpop.eup %9943  ;;  %v7610_v37 = vrot.slane %v7609_v40, 1  ;;  %vm5149_vm8 = vcmp.ne.f32.partialorder %v15063_v33, %v15063_v33  ;;  %v3229_v62 = vrot.slane %v15158_v46, %v15669_v22 }
 0x633   : > { %v7614_v26 = vrot.slane %v7613_v23, 4  ;;  %v6589_v42 = vadd.f32 %v6453_v5, %v5053_v10  ;;  %9945 = vpow2.f32 %v5627_v57  ;;  %v8135_v44 = vsel %vm8007_vm13, %v15067_v55, %v8127_v27 }
 0x634   : > { %v6454_v0 = vadd.f32 1.0, %v9944_v43  ;;  %8143 = vst [vmem:[%s12773_s26 + $0x30] sm:$0xff] %v8135_v44  ;;  %v7611_v52 = vadd.f32 %v7610_v37, %v7609_v40  ;;  %9947 = vpow2.f32 %v8906_v31  ;;  %v4766_v12 = vadd.f32 1.0, %v9938_v34 }
 0x635   : > { %v7615_v8 = vadd.f32 %v7614_v26, %v7613_v23  ;;  %v6685_v36 = vsel %vm5149_vm8, %v15063_v33, %v6589_v42  ;;  %v5440_v55 = vsub.f32 0.0, %v5344_v21  ;;  %v6457_v25 = vmul.f32 -0.5, %v9944_v43 }
 0x636   : > { %v6781_v2 = vmul.f32 %v9936_v47, %v6685_v36  ;;  %9949 = vlog2.f32 %v6454_v0  ;;  %v7717_v10 = vmul.f32 %v14911_v61, %v7611_v52  ;;  %v8907_v4 = vmul.f32 -1.442695, %v4371_v1 }
 0x637   : > { %v7616_v35 = vrot.slane %v7615_v8, 2  ;;  %v8810_v16 = vcombine.low %v3221_v18, %v3229_v62  ;;  %v3233_v30 = vrot.slane %v15158_v46, %v15666_v14  ;;  %v5629_v45 = vmul.f32 1.442695, %v5440_v55 }
 0x638   : > { %v7788_v22 = vadd.f32 %v14919_v54, %v7717_v10  ;;  %9951 = vrcp.f32 %v4766_v12  ;;  %v6458_v59 = vadd.f32 1.0, %v6457_v25  ;;  %v6460_v6 = vand.u32 2147483647, %v9944_v43 }
 0x639   : > { %v7617_v7 = vadd.f32 %v7616_v35, %v7615_v8  ;;  %v4377_v33 = vadd.f32 %v8810_v16, %v14957_v49  ;;  %v8811_v47 = vcombine.low %v15182_v11, %v3233_v30  ;;  %v3361_v34 = vcombine.high %v3229_v62, %v3233_v30 }
 0x63a   : > { %v7965_v60 = vrot.slane %v7788_v22, 6  ;;  %9953 = vpow2.f32 %v5629_v45  ;;  %v3360_v32 = vcombine.low %v3229_v62, %v3233_v30  ;;  %v5054_v24 = vmax.f32 %v15114_v53, 0.0 }
 0x63b   : > { %v7618_v15 = vrot.slane %v7617_v7, 1  ;;  %9955 = vpow2.f32 %v8907_v4  ;;  %v15223_v18 = vadd.f32 %v8811_v47, %v14961_v9  ;;  %v8812_v11 = vcombine.low %v3361_v34, %v3229_v62 }
 0x63c   : > { %v7966_v46 = vsel %vm7862_vm1, %v7965_v60, %v7964_v3  ;;  %v8813_v19 = vcombine.high %v3233_v30, %v3360_v32  ;;  %v6459_v38 = vmul.f32 %v9944_v43, %v6458_v59  ;;  %v6973_v13 = vcombine.high %v6781_v2, %v6781_v2 }
 0x63d   : > { %v9946_v14 = vpop.eup %9945  ;;  %v7619_v1 = vadd.f32 %v7618_v15, %v7617_v7  ;;  %v5345_v63 = vand.u32 2147483647, %v15223_v18  ;;  %v4383_v3 = vadd.f32 %v8812_v11, %v15008_v39  ;;  %vm6461_vm1 = vcmp.lt.f32.partialorder %v6460_v6, 0.0004427343 }
 0x63e   : > { %v6463_v17 = vadd.f32 1.0, %v9946_v14  ;;  %v9948_v56 = vpop.eup %9947  ;;  %v15232_v29 = vadd.f32 %v8813_v19, %v15014_v48  ;;  %v6466_v23 = vmul.f32 -0.5, %v9946_v14  ;;  %vm5150_vm9 = vcmp.ne.f32.partialorder %v15114_v53, %v15114_v53 }
 0x63f   : > { %v7718_v49 = vmul.f32 %v14911_v61, %v7619_v1  ;;  %v4767_v20 = vadd.f32 1.0, %v9948_v56  ;;  %v5441_v31 = vsub.f32 0.0, %v5345_v63  ;;  %v8908_v39 = vmul.f32 -1.442695, %v4377_v33 }
 0x640   : > { %v9950_v41 = vpop.eup %9949  ;;  %9957 = vlog2.f32 %v6463_v17  ;;  %v5346_v21 = vand.u32 2147483647, %v15232_v29  ;;  %v7071_v26 = vcombine.low %v6781_v2, %v6973_v13  ;;  %v6467_v62 = vadd.f32 1.0, %v6466_v23 }
 0x641   : > { %v7789_v9 = vadd.f32 %v14919_v54, %v7718_v49  ;;  %v6456_v51 = vmul.f32 0.6931472, %v9950_v41  ;;  %v5631_v5 = vmul.f32 1.442695, %v5441_v31  ;;  %9959 = vrcp.f32 %v4767_v20 }
 0x642   : > { %v9952_v57 = vpop.eup %9951  ;;  %v5442_v52 = vsub.f32 0.0, %v5346_v21  ;;  %v6469_v8 = vand.u32 2147483647, %v9946_v14  ;;  %v8909_v25 = vmul.f32 -1.442695, %v4383_v3  ;;  %v6468_v2 = vmul.f32 %v9946_v14, %v6467_v62 }
 0x643   : > { %v7967_v58 = vrot.slane %v7789_v9, 5  ;;  %v6462_v40 = vsel %vm6461_vm1, %v6459_v38, %v6456_v51  ;;  %9961 = vpow2.f32 %v5631_v5  ;;  %v5055_v30 = vmax.f32 %v15174_v50, 0.0 }
 0x644   : > { %v6590_v27 = vadd.f32 %v6462_v40, %v5054_v24  ;;  %v9954_v43 = vpop.eup %9953  ;;  %v5633_v10 = vmul.f32 1.442695, %v5442_v52  ;;  %vm5151_vm10 = vcmp.ne.f32.partialorder %v15174_v50, %v15174_v50  ;;  %v5056_v24 = vmax.f32 %v15188_v28, 0.0 }
 0x645   : > { %v15236_v37 = vsel %vm7865_vm5, %v7967_v58, %v7966_v46  ;;  %v9956_v48 = vpop.eup %9955  ;;  %v6472_v44 = vadd.f32 1.0, %v9954_v43  ;;  %v6475_v16 = vmul.f32 -0.5, %v9954_v43  ;;  %vm6470_vm5 = vcmp.lt.f32.partialorder %v6469_v8, 0.0004427343 }
 0x646   : > { %v6686_v42 = vsel %vm5150_vm9, %v15114_v53, %v6590_v27  ;;  %v4768_v12 = vadd.f32 1.0, %v9956_v48  ;;  %v6478_v15 = vand.u32 2147483647, %v9954_v43  ;;  %vm5152_vm15 = vcmp.ne.f32.partialorder %v15188_v28, %v15188_v28 }
 0x647   : > { %v6782_v0 = vmul.f32 %v9952_v57, %v6686_v42  ;;  %9963 = vlog2.f32 %v6472_v44  ;;  %v6476_v33 = vadd.f32 1.0, %v6475_v16  ;;  %vm5153_vm2 = vcmp.ne.f32.partialorder %v15223_v18, %v15223_v18 }
 0x648   : > { %9965 = vpow2.f32 %v8908_v39  ;;  %vm6479_vm12 = vcmp.lt.f32.partialorder %v6478_v15, 0.0004427343  ;;  %vm5154_vm4 = vcmp.ne.f32.partialorder %v15232_v29, %v15232_v29 }
 0x649   : > { %v7620_v36 = vsel %vm7139_vm3, %v6782_v0, 0.0  ;;  %9967 = vpow2.f32 %v5633_v10  ;;  %v6974_v59 = vcombine.high %v6782_v0, %v6782_v0  ;;  %v6477_v19 = vmul.f32 %v9954_v43, %v6476_v33 }
 0x64a   : > { %v9958_v35 = vpop.eup %9957  ;;  %v7621_v55 = vadd.f32 %v7620_v36, %v7071_v26  ;;  %9969 = vrcp.f32 %v4768_v12 }
 0x64b   : > { %v6465_v4 = vmul.f32 0.6931472, %v9958_v35  ;;  %9971 = vpow2.f32 %v8909_v25  ;;  %v9960_v47 = vpop.eup %9959 }
 0x64c   : > { %v7622_v53 = vrot.slane %v7621_v55, 4 }
 0x64d   : > { %v6471_v22 = vsel %vm6470_vm5, %v6468_v2, %v6465_v4  ;;  %v9962_v32 = vpop.eup %9961 }
 0x64e   : > { %v7623_v7 = vadd.f32 %v7622_v53, %v7621_v55  ;;  %v6591_v45 = vadd.f32 %v6471_v22, %v5055_v30  ;;  %v6481_v6 = vadd.f32 1.0, %v9962_v32  ;;  %v6484_v31 = vmul.f32 -0.5, %v9962_v32  ;;  %v10004_v53 = vld [vmem:[%s15333_s7] ss:$0 sm:$0xff] }
 0x64f   : > { %v6487_v0 = vand.u32 2147483647, %v9962_v32 }
 0x650   : > { %v7624_v34 = vrot.slane %v7623_v7, 2  ;;  %v6687_v60 = vsel %vm5151_vm10, %v15174_v50, %v6591_v45  ;;  %9973 = vlog2.f32 %v6481_v6  ;;  %v6485_v39 = vadd.f32 1.0, %v6484_v31 }
 0x651   : > { %v6783_v14 = vmul.f32 %v9960_v47, %v6687_v60  ;;  %v9964_v46 = vpop.eup %9963  ;;  %vm6488_vm0 = vcmp.lt.f32.partialorder %v6487_v0, 0.0004427343  ;;  %v5058_v47 = vmax.f32 %v15232_v29, 0.0 }
 0x652   : > { %v7625_v1 = vadd.f32 %v7624_v34, %v7623_v7  ;;  %v9966_v17 = vpop.eup %9965  ;;  %v6474_v11 = vmul.f32 0.6931472, %v9964_v46  ;;  %v6486_v36 = vmul.f32 %v9962_v32, %v6485_v39  ;;  %v10005_v34 = vld [vmem:[%s15334_s8] ss:$0 sm:$0xff] }
 0x653   : > { %v6975_v56 = vcombine.high %v6783_v14, %v6783_v14  ;;  %v7072_v49 = vcombine.low %v6974_v59, %v6783_v14  ;;  %v9968_v63 = vpop.eup %9967  ;;  %v4769_v13 = vadd.f32 1.0, %v9966_v17 }
 0x654   : > { %v7626_v41 = vrot.slane %v7625_v1, 1  ;;  %v6480_v50 = vsel %vm6479_vm12, %v6477_v19, %v6474_v11  ;;  %v9970_v20 = vpop.eup %9969  ;;  %v6490_v58 = vadd.f32 1.0, %v9968_v63  ;;  %v6493_v26 = vmul.f32 -0.5, %v9968_v63 }
 0x655   : > { %v7628_v38 = vsel %vm7139_vm3, %v6975_v56, 0.0  ;;  %v6592_v3 = vadd.f32 %v6480_v50, %v5056_v24  ;;  %v9972_v40 = vpop.eup %9971  ;;  %v6496_v55 = vand.u32 2147483647, %v9968_v63 }
 0x656   : > { %v7627_v9 = vadd.f32 %v7626_v41, %v7625_v1  ;;  %v7629_v51 = vadd.f32 %v7628_v38, %v7072_v49  ;;  %9975 = vlog2.f32 %v6490_v58  ;;  %v4770_v48 = vadd.f32 1.0, %v9972_v40 }
 0x657   : > { %v6688_v27 = vsel %vm5152_vm15, %v15188_v28, %v6592_v3  ;;  %9977 = vrcp.f32 %v4769_v13  ;;  %v6494_v28 = vadd.f32 1.0, %v6493_v26 }
 0x658   : > { %v7719_v23 = vmul.f32 %v14911_v61, %v7627_v9  ;;  %v7630_v57 = vrot.slane %v7629_v51, 4  ;;  %v6784_v5 = vmul.f32 %v9970_v20, %v6688_v27  ;;  %9979 = vrcp.f32 %v4770_v48  ;;  %v10006_v48 = vld [vmem:[%s10457_s19 + $0x38] sm:$0xff]  ;;  %s8159_s19 = sshll.u32 %s12773_s26, 4  ;;  %s15282_s19 = int_to_ptr.vmem [resolvable:$true] %s8159_s19 }
 0x659   : > { %v6495_v16 = vmul.f32 %v9968_v63, %v6494_v28  ;;  %s10121_s13 = scalar_lea.vmem %s15282_s19, 1024  ;;  %p10128_p7 = scmp.lt.s32.totalorder %s15282_s19, %s10126_s21 }
 0x65a   : > { %v7790_v21 = vadd.f32 %v14919_v54, %v7719_v23  ;;  %v7631_v43 = vadd.f32 %v7630_v57, %v7629_v51  ;;  %v9974_v62 = vpop.eup %9973  ;;  %v6976_v10 = vcombine.high %v6784_v5, %v6784_v5  ;;  %v5057_v54 = vmax.f32 %v15223_v18, 0.0  ;;  %p10122_p8 = scmp.ne.s32.totalorder %s15282_s19, %s10121_s13  ;;  %p10129_p9 = scmp.lt.s32.totalorder %s10127_s23, %s10121_s13 }
 0x65b   : > { %v6483_v8 = vmul.f32 0.6931472, %v9974_v62 }
 0x65c   : > { %v7969_v42 = vrot.slane %v7790_v21, 4  ;;  %v7632_v44 = vrot.slane %v7631_v43, 2  ;;  %v7073_v22 = vcombine.low %v6784_v5, %v6976_v10  ;;  %p10123_p13 = pnand %p10122_p8, %p10400_p11  ;;  %p10130_p12 = por %p10129_p9, %p10128_p7 }
 0x65d   : > { %v6489_v35 = vsel %vm6488_vm0, %v6486_v36, %v6483_v8 }
 0x65e   : > { %v7970_v52 = vsel %vm7868_vm7, %v7969_v42, %v15236_v37  ;;  %v7633_v61 = vadd.f32 %v7632_v44, %v7631_v43  ;;  %v6593_v4 = vadd.f32 %v6489_v35, %v5057_v54  ;;  %vm6497_vm7 = vcmp.lt.f32.partialorder %v6496_v55, 0.0004427343  ;;  %p10124_p3 = pneg %p10123_p13 }
 0x660   : > { %v7634_v12 = vrot.slane %v7633_v61, 1  ;;  %v9976_v2 = vpop.eup %9975  ;;  %v6689_v7 = vsel %vm5153_vm2, %v15223_v18, %v6593_v4  ;;  %p10131_p0 = pnand %p10130_p12, %p10124_p3 }
 0x661   : > { %v9978_v37 = vpop.eup %9977  ;;  %v6492_v45 = vmul.f32 0.6931472, %v9976_v2 }
 0x662   : > { %v7635_v25 = vadd.f32 %v7634_v12, %v7633_v61  ;;  %v6785_v33 = vmul.f32 %v9978_v37, %v6689_v7  ;;  %v9980_v18 = vpop.eup %9979 }
 0x663   : > { %v6498_v15 = vsel %vm6497_vm7, %v6495_v16, %v6492_v45 }
 0x664   : > { %v7720_v30 = vmul.f32 %v10004_v53, %v7635_v25  ;;  %v7636_v32 = vsel %vm7139_vm3, %v6785_v33, 0.0  ;;  %v6594_v59 = vadd.f32 %v6498_v15, %v5058_v47  ;;  %v6977_v17 = vcombine.high %v6785_v33, %v6785_v33 }
 0x665   : > { %v7637_v46 = vadd.f32 %v7636_v32, %v7073_v22 }
 0x666   : > { %v7791_v60 = vadd.f32 %v10005_v34, %v7720_v30  ;;  %v6690_v1 = vsel %vm5154_vm4, %v15232_v29, %v6594_v59 }
 0x667   : > { %v7638_v56 = vrot.slane %v7637_v46, 4  ;;  %v6786_v49 = vmul.f32 %v9980_v18, %v6690_v1 }
 0x668   : > { %v7971_v14 = vrot.slane %v7791_v60, 3 }
 0x669   : > { %v7639_v11 = vadd.f32 %v7638_v56, %v7637_v46  ;;  %v6978_v19 = vcombine.high %v6786_v49, %v6786_v49  ;;  %v7074_v41 = vcombine.low %v6977_v17, %v6786_v49 }
 0x66a   : > { %v7972_v6 = vsel %vm7871_vm14, %v7971_v14, %v7970_v52 }
 0x66b   : > { %v7640_v24 = vrot.slane %v7639_v11, 2  ;;  %v7644_v38 = vsel %vm7139_vm3, %v6978_v19, 0.0 }
 0x66c   : > { %v7645_v50 = vadd.f32 %v7644_v38, %v7074_v41 }
 0x66d   : > { %v7641_v63 = vadd.f32 %v7640_v24, %v7639_v11 }
 0x66e   : > { %v7646_v9 = vrot.slane %v7645_v50, 4 }
 0x66f   : > { %v7642_v51 = vrot.slane %v7641_v63, 1 }
 0x670   : > { %v7647_v3 = vadd.f32 %v7646_v9, %v7645_v50 }
 0x671   : > { %v7643_v13 = vadd.f32 %v7642_v51, %v7641_v63 }
 0x672   : > { %v7648_v20 = vrot.slane %v7647_v3, 2 }
 0x673   : > { %v7721_v29 = vmul.f32 %v10004_v53, %v7643_v13 }
 0x674   : > { %v7649_v31 = vadd.f32 %v7648_v20, %v7647_v3 }
 0x675   : > { %v7792_v58 = vadd.f32 %v10005_v34, %v7721_v29 }
 0x676   : > { %v7650_v40 = vrot.slane %v7649_v31, 1 }
 0x677   : > { %v7973_v23 = vrot.slane %v7792_v58, 2 }
 0x678   : > { %v7651_v57 = vadd.f32 %v7650_v40, %v7649_v31 }
 0x679   : > { %v7974_v27 = vsel %vm7874_vm6, %v7973_v23, %v7972_v6 }
 0x67a   : > { %v7722_v5 = vmul.f32 %v10004_v53, %v7651_v57 }
 0x67c   : > { %v7793_v21 = vadd.f32 %v10005_v34, %v7722_v5 }
 0x67e   : > { %v7975_v43 = vrot.slane %v7793_v21, 1 }
 0x680   : > { %v7976_v39 = vsel %vm7877_vm11, %v7975_v43, %v7974_v27 }
 0x681   : > { %v7992_v26 = vadd.f32 %v10006_v48, %v7976_v39 }
 0x683   : > { %v8024_v42 = vand.u32 2147483647, %v7992_v26  ;;  %v8000_v54 = vmax.f32 %v7992_v26, 0.0  ;;  %vm8008_vm14 = vcmp.ne.f32.partialorder %v7992_v26, %v7992_v26 }
 0x685   : > { %v8032_v44 = vsub.f32 0.0, %v8024_v42 }
 0x687   : > { %v8047_v0 = vmul.f32 1.442695, %v8032_v44 }
 0x689   : > { %9981 = vpow2.f32 %v8047_v0 }
 0x693   : > { %v9982_v62 = vpop.eup %9981 }
 0x694   : > { %v8112_v52 = vadd.f32 1.0, %v9982_v62  ;;  %v8115_v61 = vmul.f32 -0.5, %v9982_v62  ;;  %v8118_v36 = vand.u32 2147483647, %v9982_v62 }
 0x696   : > { %9983 = vlog2.f32 %v8112_v52  ;;  %v8116_v8 = vadd.f32 1.0, %v8115_v61  ;;  %vm8119_vm3 = vcmp.lt.f32.partialorder %v8118_v36, 0.0004427343 }
 0x698   : > { %v8117_v10 = vmul.f32 %v9982_v62, %v8116_v8 }
 0x6a0   : > { %v9984_v28 = vpop.eup %9983 }
 0x6a1   : > { %v8114_v12 = vmul.f32 0.6931472, %v9984_v28 }
 0x6a3   : > { %v8120_v35 = vsel %vm8119_vm3, %v8117_v10, %v8114_v12 }
 0x6a4   : > { %v8128_v55 = vadd.f32 %v8120_v35, %v8000_v54 }
 0x6a6   : > { %v8136_v25 = vsel %vm8008_vm14, %v7992_v26, %v8128_v55 }
 0x6a7   : > { %8144 = vst [vmem:[%s12773_s26 + $0x38] sm:$0xff] %v8136_v25 }
 0x6a8   : > { %10134 = shalt.err (!%p10131_p0)
}
 0x6a9   : > { %s10135_s26 = scalar_lea.hbm %s15280_s14, 1024  ;;  %s10139_s15 = scalar_lea.hbm %s15755_s16, 4096 }
 0x6aa   : > { %p10136_p5 = scmp.ne.s32.totalorder %s15280_s14, %s10135_s26  ;;  %p10140_p2 = scmp.lt.u32.totalorder %s15280_s14, %s15755_s16 }
 0x6ab   : > { %p10141_p4 = scmp.lt.u32.totalorder %s10139_s15, %s10135_s26  ;;  %p10143_p8 = scmp.lt.u32.totalorder %s10135_s26, %s15280_s14 }
 0x6ac   : > { %p10137_p10 = pnand %p10136_p5, %p10400_p11 }
 0x6ad   : > { %p10142_p6 = por %p10141_p4, %p10140_p2 }
 0x6ae   : > { %p10138_p1 = pneg %p10137_p10 }
 0x6af   : > { %p10144_p13 = por %p10143_p8, %p10142_p6 }
 0x6b1   : > { %p10145_p3 = pnand %p10144_p13, %p10138_p1 }
 0x6b3   : > { %10148 = shalt.err (!%p10145_p3)
}
 0x6b4   : > { %s10211_s22 = smov 128   ;;  %s10212_s9 = smov 8  }
 0x6b5   : > { %9109 = dma.vmem_to_hbm [thread:$0]  (%p10400_p11), %s15282_s19, 1024, %s15280_s14, %s8146_s18, %s10211_s22, %s10211_s22, %s10212_s9  }
 0x6b6 PF: > { %s15756_s13 = sld [smem:[#allocation15_spill]]  ;;  %s15757_s30 = sld [smem:[#allocation16_spill]] }
 0x6b7   : > { %p9136_p7 = scmp.ge.s32.totalorder %s10195_s12, 2 }
 0x6bc   : > { %s8174_s21 = sand.u32 1, %s15756_s13   ;;  %p15758_p9 = scmp.ne.s32.totalorder %s15757_s30, 0 }
 0x6bd   : > { %s8175_s23 = scalar_lea.sflag [#allocation4], %s8174_s21 }
 0x6be   : > { %p9126_p12 = pnand %p9136_p7, %p15758_p9 }
 0x6c0   : > { %10178 = dma.done.wait (!%p9126_p12), %s8175_s23, 1024  }
 0x6c1   : > { %10180 = vsyncadd (!%p9126_p12), %s8175_s23, 4294966272  ;;  %p24_p0 = scmp.ge.s32.totalorder %s10368_s29, 6   ;;  %s15759_s30 = smov %s10187_s10 }
 0x6c2   : > { %s15760_s10 = smov %s10191_s11  ;;  %s15761_s11 = smov %s10396_s20 }
 0x6c3   : > { %s15762_s12 = smov %s10368_s29  ;;  %26 = sbr.rel (!%p24_p0) target bundleno = 10 (0xa), region = 119 }
 0x6ca   :  { %8180 = vsyncpa [#allocation3], 1 }
 0x6cb   :  { %8182 = vsyncpa [#allocation3 + $0x1], 1 }
 0x6cc   :  { %8183 = vsyncpa [#allocation6], 1 }
 0x6cd   :  { %8184 = vsyncpa [#allocation9], 1 }
 0x6ce   :  { %8185 = vsyncpa [#allocation4], 1 }
 0x6cf   :  { %8187 = vsyncpa [#allocation4 + $0x1], 1 }

</bundles_post_ra>
